<compile_context>
chip_gen: v5e
topology: v5e:2x2
jax: 0.10.0
libtpu: 0.0.40
codegen_flags: <defaults>
</compile_context>

<pallas_src>
import functools

import numpy as np
import jax
import jax.numpy as jnp
from jax.experimental import pallas as pl
from jax.experimental.pallas import tpu as pltpu

EPS = 1e-5          # nn.InstanceNorm2d default eps
CP = 128            # channel lanes carried through the whole internal graph


def _round_up(x, m):
    return (x + m - 1) // m * m


# --------------------------------------------------------------------------
# Kernel 1: fused  (im2col) matmul + bias  [+ grouped InstanceNorm]  + act
#   grid=(N,): each grid step handles one image's output rows.
#   groups>1 is used by the phase-decomposed ConvTranspose (4 lane-groups that
#   share the same output channel share IN statistics).
# --------------------------------------------------------------------------

def _mm_in_act_kernel(a_ref, b_ref, bias_ref, o_ref, *, rows, groups, act, do_in):
    acc = jnp.dot(a_ref[...], b_ref[...], preferred_element_type=jnp.float32)
    acc = acc + bias_ref[...]
    if do_in:
        gc = acc.shape[1]
        cp = gc // groups
        cnt = float(rows * groups)
        s = jnp.zeros((1, cp), jnp.float32)
        for g in range(groups):
            s = s + jnp.sum(acc[:, g * cp:(g + 1) * cp], axis=0, keepdims=True)
        mean = s / cnt
        ssd = jnp.zeros((1, cp), jnp.float32)
        for g in range(groups):
            d = acc[:, g * cp:(g + 1) * cp] - mean
            ssd = ssd + jnp.sum(d * d, axis=0, keepdims=True)
        scale = jax.lax.rsqrt(ssd / cnt + EPS)
        parts = [(acc[:, g * cp:(g + 1) * cp] - mean) * scale for g in range(groups)]
        acc = parts[0] if groups == 1 else jnp.concatenate(parts, axis=1)
    if act == "relu":
        acc = jnp.maximum(acc, 0.0)
    elif act == "tanh":
        acc = jnp.tanh(acc)
    o_ref[0] = acc


def fused_matmul(a, b, bias, *, n, act="none", do_in=False, groups=1):
    """a:(n*rows, Kp) @ b:(Kp, G*CP) + bias, optional per-image grouped IN, act."""
    m_total, kp = a.shape
    rows = m_total // n
    gc = b.shape[1]
    kernel = functools.partial(_mm_in_act_kernel, rows=rows, groups=groups,
                               act=act, do_in=do_in)
    return pl.pallas_call(
        kernel,
        out_shape=jax.ShapeDtypeStruct((n, rows, gc), jnp.float32),
        grid=(n,),
        in_specs=[
            pl.BlockSpec((rows, kp), lambda i: (i, 0)),
            pl.BlockSpec((kp, gc), lambda i: (0, 0)),
            pl.BlockSpec((1, gc), lambda i: (0, 0)),
        ],
        out_specs=pl.BlockSpec((1, rows, gc), lambda i: (i, 0, 0)),
        compiler_params=pltpu.CompilerParams(dimension_semantics=("parallel",)),
    )(a, b, bias)


# --------------------------------------------------------------------------
# Kernel 2: ALL MobileResnetBlocks fused into one kernel (grid over images).
#   Depthwise reflect-padded 3x3 taps are produced in-kernel by a precomputed
#   0/1 shift operator T:(9*HW, HW); pointwise 1x1 convs run on the MXU.
# --------------------------------------------------------------------------

def _resblocks_kernel(x_ref, t_ref, dww_ref, dwb_ref, pww_ref, pwb_ref, o_ref,
                      *, n_blocks, hw):
    cp = x_ref.shape[-1]
    x = x_ref[0]                                   # (hw, cp)
    t = t_ref[...]                                 # (9*hw, hw)
    inv = 1.0 / float(hw)

    def inorm(v):                                  # two-pass InstanceNorm, f32
        mean = jnp.sum(v, axis=0, keepdims=True) * inv
        d = v - mean
        var = jnp.sum(d * d, axis=0, keepdims=True) * inv
        return d * jax.lax.rsqrt(var + EPS)

    def sepconv(v, blk, si):
        # depthwise 3x3 with reflect padding, built from in-kernel shifted views
        shifted = jnp.dot(t, v, preferred_element_type=jnp.float32)   # (9*hw, cp)
        taps = dww_ref[blk, si]                                       # (9, cp)
        acc = shifted[0:hw, :] * taps[0][None, :]
        for k in range(1, 9):
            acc = acc + shifted[k * hw:(k + 1) * hw, :] * taps[k][None, :]
        acc = acc + dwb_ref[blk, si]                                  # (1, cp)
        acc = inorm(acc)                       # IN inside SeparableConv2d
        return jnp.dot(acc, pww_ref[blk, si],
                       preferred_element_type=jnp.float32) + pwb_ref[blk, si]

    for blk in range(n_blocks):
        y = sepconv(x, blk, 0)
        y = jnp.maximum(inorm(y), 0.0)
        # TODO(synk): nn.Dropout(dropout_rate=0.0) is the identity; nothing to do.
        y = sepconv(y, blk, 1)
        x = x + inorm(y)                       # residual connection
    o_ref[0] = x


def resnet_blocks(x, t, dww, dwb, pww, pwb):
    n, hw, cp = x.shape
    nb = dww.shape[0]
    kernel = functools.partial(_resblocks_kernel, n_blocks=nb, hw=hw)
    return pl.pallas_call(
        kernel,
        out_shape=jax.ShapeDtypeStruct((n, hw, cp), jnp.float32),
        grid=(n,),
        in_specs=[
            pl.BlockSpec((1, hw, cp), lambda i: (i, 0, 0)),
            pl.BlockSpec(t.shape, lambda i: (0, 0)),
            pl.BlockSpec(dww.shape, lambda i: (0, 0, 0, 0)),
            pl.BlockSpec(dwb.shape, lambda i: (0, 0, 0, 0)),
            pl.BlockSpec(pww.shape, lambda i: (0, 0, 0, 0)),
            pl.BlockSpec(pwb.shape, lambda i: (0, 0, 0, 0)),
        ],
        out_specs=pl.BlockSpec((1, hw, cp), lambda i: (i, 0, 0)),
        compiler_params=pltpu.CompilerParams(dimension_semantics=("parallel",)),
    )(x, t, dww, dwb, pww, pwb)


# --------------------------------------------------------------------------
# Glue (tiny host-side layout ops; all heavy math lives in the kernels)
# --------------------------------------------------------------------------

def _reflect_pad(x, p):
    return jnp.pad(x, ((0, 0), (p, p), (p, p), (0, 0)), mode="reflect")


def _im2col(xp, k, stride):
    """xp: already-padded NHWC. Returns (N, Ho, Wo, k*k*C); tap order (i,j) row-major."""
    _, hp, wp, _ = xp.shape
    ho = (hp - k) // stride + 1
    wo = (wp - k) // stride + 1
    taps = []
    for i in range(k):
        for j in range(k):
            taps.append(xp[:, i:i + stride * (ho - 1) + 1:stride,
                           j:j + stride * (wo - 1) + 1:stride, :])
    return jnp.concatenate(taps, axis=-1), ho, wo


def _pad_k(a2d, kp):
    m, k = a2d.shape
    if k == kp:
        return a2d
    return jnp.zeros((m, kp), jnp.float32).at[:, :k].set(a2d)


def generator_forward(prep, x_nchw, *, ngf=8, output_nc=3):
    """Standard forward (extract_layer_ids=[]): encoder -> decoder. I/O is NCHW."""
    x = jnp.transpose(x_nchw, (0, 2, 3, 1)).astype(jnp.float32)       # -> NHWC
    n = x.shape[0]

    # ---- ReflectionPad(3) + Conv7x7 + IN + ReLU (one fused kernel) ----
    a, ho, wo = _im2col(_reflect_pad(x, 3), 7, 1)
    a = _pad_k(a.reshape(n * ho * wo, a.shape[-1]), prep["c0_B"].shape[0])
    y = fused_matmul(a, prep["c0_B"], prep["c0_bias"], n=n,
                     act="relu", do_in=True)
    y = y.reshape(n, ho, wo, CP)

    # ---- two stride-2 3x3 down convs + IN + ReLU ----
    for name in ("down0", "down1"):
        a, ho, wo = _im2col(jnp.pad(y, ((0, 0), (1, 1), (1, 1), (0, 0))), 3, 2)
        a = a.reshape(n * ho * wo, a.shape[-1])        # K = 9*CP, already aligned
        y = fused_matmul(a, prep[f"{name}_B"], prep[f"{name}_bias"], n=n,
                         act="relu", do_in=True).reshape(n, ho, wo, CP)

    # ---- all MobileResnetBlocks in one kernel ----
    hb, wb = y.shape[1], y.shape[2]
    yf = resnet_blocks(y.reshape(n, hb * wb, CP), prep["blk_T"],
                       prep["blk_dwW"], prep["blk_dwB"],
                       prep["blk_pwW"], prep["blk_pwB"])
    y = yf.reshape(n, hb, wb, CP)

    # ---- decoder: ConvTranspose(3,s2,p1,op1)+IN+ReLU, phase-decomposed ----
    for name in ("up0", "up1"):
        _, h_, w_, _ = y.shape
        x_r = jnp.pad(y[:, :, 1:, :], ((0, 0), (0, 0), (0, 1), (0, 0)))
        x_d = jnp.pad(y[:, 1:, :, :], ((0, 0), (0, 1), (0, 0), (0, 0)))
        x_dr = jnp.pad(y[:, 1:, 1:, :], ((0, 0), (0, 1), (0, 1), (0, 0)))
        a = jnp.concatenate([y, x_r, x_d, x_dr], axis=-1).reshape(n * h_ * w_, 4 * CP)
        o = fused_matmul(a, prep[f"{name}_B"], prep[f"{name}_bias"], n=n,
                         act="relu", do_in=True, groups=4)        # (n, h*w, 4*CP)
        o = o.reshape(n, h_, w_, 2, 2, CP).transpose(0, 1, 3, 2, 4, 5)
        y = o.reshape(n, 2 * h_, 2 * w_, CP)

    # ---- ReflectionPad(3) + Conv7x7 + Tanh ----
    a, ho, wo = _im2col(_reflect_pad(y[..., :ngf], 3), 7, 1)
    a = _pad_k(a.reshape(n * ho * wo, a.shape[-1]), prep["out_B"].shape[0])
    o = fused_matmul(a, prep["out_B"], prep["out_bias"], n=n,
                     act="tanh", do_in=False).reshape(n, ho, wo, CP)
    return jnp.transpose(o[..., :output_nc], (0, 3, 1, 2))           # -> NCHW


# --------------------------------------------------------------------------
# One-time weight preparation (transposes / flips / 128-lane padding)
# --------------------------------------------------------------------------

def _reflect_idx(i, size):
    if i < 0:
        return -i
    if i >= size:
        return 2 * (size - 1) - i
    return i


def _build_shift_operator(h, w):
    """(9*HW, HW) 0/1 operator: row k*HW+p selects the reflect-padded neighbour
    of output position p for tap k (tap k = kernel position (k//3, k%3))."""
    hw = h * w
    t = np.zeros((9 * hw, hw), np.float32)
    for k in range(9):
        dy, dx = k // 3 - 1, k % 3 - 1
        for y in range(h):
            for x in range(w):
                q = _reflect_idx(y + dy, h) * w + _reflect_idx(x + dx, w)
                t[k * hw + y * w + x, q] = 1.0
    return jnp.asarray(t)


def prepare_params(params, *, img_size=16):
    f32 = jnp.float32

    def pad_mat(m, rows, cols):
        return jnp.zeros((rows, cols), f32).at[:m.shape[0], :m.shape[1]].set(m)

    def conv_b(w):                     # (Cout, Cin, k, k) -> (k*k*Cin, Cout)
        cout, cin, k, _ = w.shape
        return jnp.transpose(w, (2, 3, 1, 0)).reshape(k * k * cin, cout)

    def conv_b_padded_cin(w):          # Cin/Cout embedded into CP lanes
        cout, cin, k, _ = w.shape
        wt = jnp.transpose(w, (2, 3, 1, 0))                 # (k,k,Cin,Cout)
        full = jnp.zeros((k, k, CP, CP), f32).at[:, :, :cin, :cout].set(wt)
        return full.reshape(k * k * CP, CP)

    def bias_row(b):
        return jnp.zeros((1, CP), f32).at[0, :b.shape[0]].set(b)

    def prep_up(w, b):                 # ConvTranspose2d weight (Cin, Cout, 3, 3)
        cin, cout = w.shape[0], w.shape[1]

        def wf(ky, kx):                # flipped-kernel (Cin, Cout) block
            return jnp.zeros((CP, CP), f32).at[:cin, :cout].set(w[:, :, 2 - ky, 2 - kx])

        big = jnp.zeros((4 * CP, 4 * CP), f32)

        def put(mat, rg, p, m):
            return mat.at[rg * CP:(rg + 1) * CP, p * CP:(p + 1) * CP].set(m)

        # row groups: 0=x, 1=x(j+1), 2=x(i+1), 3=x(i+1,j+1); phase p = di*2 + dj
        big = put(big, 0, 0, wf(1, 1))
        big = put(big, 0, 1, wf(1, 0)); big = put(big, 1, 1, wf(1, 2))
        big = put(big, 0, 2, wf(0, 1)); big = put(big, 2, 2, wf(2, 1))
        big = put(big, 0, 3, wf(0, 0)); big = put(big, 1, 3, wf(0, 2))
        big = put(big, 2, 3, wf(2, 0)); big = put(big, 3, 3, wf(2, 2))
        brow = jnp.zeros((CP,), f32).at[:cout].set(b)
        return big, jnp.tile(brow, (4,))[None, :]

    prep = {}
    # first 7x7 conv works on the raw input channels; K padded to 128 multiple
    prep["c0_B"] = pad_mat(conv_b(params["c0_w"]),
                           _round_up(params["c0_w"].shape[1] * 49, 128), CP)
    prep["c0_bias"] = bias_row(params["c0_b"])
    # down convs consume the CP-padded feature map
    prep["down0_B"] = conv_b_padded_cin(params["down0_w"])
    prep["down0_bias"] = bias_row(params["down0_b"])
    prep["down1_B"] = conv_b_padded_cin(params["down1_w"])
    prep["down1_bias"] = bias_row(params["down1_b"])
    # resnet blocks (stacked weights for the single fused kernel)
    blocks = params["blocks"]
    nb = len(blocks)
    dim = blocks[0]["pw1_w"].shape[0]
    dww = jnp.zeros((nb, 2, 9, CP), f32)
    dwb = jnp.zeros((nb, 2, 1, CP), f32)
    pww = jnp.zeros((nb, 2, CP, CP), f32)
    pwb = jnp.zeros((nb, 2, 1, CP), f32)
    for bi, blk in enumerate(blocks):
        for si, pfx in enumerate(("1", "2")):
            taps = jnp.transpose(blk[f"dw{pfx}_w"][:, 0], (1, 2, 0)).reshape(9, dim)
            dww = dww.at[bi, si, :, :dim].set(taps)
            dwb = dwb.at[bi, si, 0, :dim].set(blk[f"dw{pfx}_b"])
            pw = blk[f"pw{pfx}_w"][:, :, 0, 0]                 # (Cout, Cin)
            pww = pww.at[bi, si, :dim, :dim].set(jnp.transpose(pw, (1, 0)))
            pwb = pwb.at[bi, si, 0, :dim].set(blk[f"pw{pfx}_b"])
    prep["blk_dwW"], prep["blk_dwB"] = dww, dwb
    prep["blk_pwW"], prep["blk_pwB"] = pww, pwb
    hb = img_size // 4
    prep["blk_T"] = _build_shift_operator(hb, hb)
    # up (transposed) convs
    prep["up0_B"], prep["up0_bias"] = prep_up(params["up0_w"], params["up0_b"])
    prep["up1_B"], prep["up1_bias"] = prep_up(params["up1_w"], params["up1_b"])
    # final 7x7 conv on the real ngf channels
    ngf = params["out_w"].shape[1]
    prep["out_B"] = pad_mat(conv_b(params["out_w"]), _round_up(ngf * 49, 128), CP)
    prep["out_bias"] = bias_row(params["out_b"])
    return prep


# --------------------------------------------------------------------------
# Deterministic PyTorch-layout parameter init (init_type='normal', gain=0.02)
# --------------------------------------------------------------------------

def init_params(key, input_nc=3, output_nc=3, ngf=8, n_blocks=3, gain=0.02):
    keys = iter(jax.random.split(key, 64))

    def w(shape):
        return gain * jax.random.normal(next(keys), shape, jnp.float32)

    def b(nch):
        return jnp.zeros((nch,), jnp.float32)

    params = {
        "c0_w": w((ngf, input_nc, 7, 7)), "c0_b": b(ngf),
        "down0_w": w((ngf * 2, ngf, 3, 3)), "down0_b": b(ngf * 2),
        "down1_w": w((ngf * 4, ngf * 2, 3, 3)), "down1_b": b(ngf * 4),
        "up0_w": w((ngf * 4, ngf * 2, 3, 3)), "up0_b": b(ngf * 2),   # (Cin,Cout,k,k)
        "up1_w": w((ngf * 2, ngf, 3, 3)), "up1_b": b(ngf),
        "out_w": w((output_nc, ngf, 7, 7)), "out_b": b(output_nc),
    }
    dim = ngf * 4
    blocks = []
    for _ in range(n_blocks):
        blocks.append({
            "dw1_w": w((dim, 1, 3, 3)), "dw1_b": b(dim),
            "pw1_w": w((dim, dim, 1, 1)), "pw1_b": b(dim),
            "dw2_w": w((dim, 1, 3, 3)), "dw2_b": b(dim),
            "pw2_w": w((dim, dim, 1, 1)), "pw2_b": b(dim),
        })
    params["blocks"] = blocks
    return params


if __name__ == "__main__":
    key = jax.random.PRNGKey(0)
    pkey, xkey = jax.random.split(key)
    # MobileResnetGenerator(input_nc=3, output_nc=3, ngf=8, n_blocks=3), img 16x16
    params = init_params(pkey, input_nc=3, output_nc=3, ngf=8, n_blocks=3)
    prep = prepare_params(params, img_size=16)           # one-time weight prep
    x = jax.random.normal(xkey, (2, 3, 16, 16), jnp.float32)  # NCHW like PyTorch

    fwd = jax.jit(functools.partial(generator_forward, ngf=8, output_nc=3))
    out = jax.block_until_ready(fwd(prep, x))

    assert out.shape == (2, 3, 16, 16), out.shape
    assert bool(jnp.all(jnp.isfinite(out)))
    assert bool(jnp.all(jnp.abs(out) <= 1.0 + 1e-6))      # tanh output range
    print("KERNEL_OK")
</pallas_src>

<mosaic_0001>
module attributes {stable_mosaic.version = 11 : i64} {
  func.func @_mm_in_act_kernel(%arg0: i32, %arg1: memref<256x256xf32, #tpu.memory_space<vmem>>, %arg2: memref<256x128xf32, #tpu.memory_space<vmem>>, %arg3: memref<1x128xf32, #tpu.memory_space<vmem>>, %arg4: memref<1x256x128xf32, #tpu.memory_space<vmem>>) attributes {dimension_semantics = [#tpu.dimension_semantics<parallel>], iteration_bounds = array<i64: 2>, scalar_prefetch = 0 : i64, scratch_operands = 0 : i64, tpu.core_type = #tpu.core_type<tc>, window_params = [{transform_indices = @transform_0, window_bounds = array<i64: 256, 256>}, {pipeline_mode = #tpu.pipeline_mode<synchronous>, transform_indices = @transform_1, window_bounds = array<i64: 256, 128>}, {pipeline_mode = #tpu.pipeline_mode<synchronous>, transform_indices = @transform_2, window_bounds = array<i64: 1, 128>}, {transform_indices = @transform_3, window_bounds = array<i64: 1, 256, 128>}]} {
    %c0 = arith.constant 0 : index
    %c0_0 = arith.constant 0 : index
    %0 = vector.load %arg1[%c0, %c0_0] : memref<256x256xf32, #tpu.memory_space<vmem>>, vector<256x256xf32>
    %c0_1 = arith.constant 0 : index
    %c0_2 = arith.constant 0 : index
    %1 = vector.load %arg2[%c0_1, %c0_2] : memref<256x128xf32, #tpu.memory_space<vmem>>, vector<256x128xf32>
    %cst = arith.constant dense<0.000000e+00> : vector<256x128xf32>
    %2 = tpu.matmul %0, %1, %cst {dimension_numbers = #tpu.dot_dimension_numbers<[1], [0], [0], [1], [0, 0, 1, 1], [], []>} : vector<256x256xf32>, vector<256x128xf32>, vector<256x128xf32> -> vector<256x128xf32>
    %c0_3 = arith.constant 0 : index
    %c0_4 = arith.constant 0 : index
    %3 = vector.load %arg3[%c0_3, %c0_4] : memref<1x128xf32, #tpu.memory_space<vmem>>, vector<1x128xf32>
    %4 = vector.broadcast %3 : vector<1x128xf32> to vector<256x128xf32>
    %5 = arith.addf %2, %4 : vector<256x128xf32>
    %cst_5 = arith.constant 0.000000e+00 : f32
    %6 = vector.broadcast %cst_5 : f32 to vector<1x128xf32>
    %cst_6 = arith.constant dense<0.000000e+00> : vector<128xf32>
    %7 = vector.multi_reduction <add>, %5, %cst_6 [0] : vector<256x128xf32> to vector<128xf32>
    %8 = vector.shape_cast %7 : vector<128xf32> to vector<1x128xf32>
    %9 = arith.addf %6, %8 : vector<1x128xf32>
    %cst_7 = arith.constant 2.560000e+02 : f32
    %10 = vector.broadcast %cst_7 : f32 to vector<1x128xf32>
    %11 = arith.divf %9, %10 : vector<1x128xf32>
    %cst_8 = arith.constant 0.000000e+00 : f32
    %12 = vector.broadcast %cst_8 : f32 to vector<1x128xf32>
    %13 = vector.broadcast %11 : vector<1x128xf32> to vector<256x128xf32>
    %14 = arith.subf %5, %13 : vector<256x128xf32>
    %15 = arith.mulf %14, %14 : vector<256x128xf32>
    %cst_9 = arith.constant dense<0.000000e+00> : vector<128xf32>
    %16 = vector.multi_reduction <add>, %15, %cst_9 [0] : vector<256x128xf32> to vector<128xf32>
    %17 = vector.shape_cast %16 : vector<128xf32> to vector<1x128xf32>
    %18 = arith.addf %12, %17 : vector<1x128xf32>
    %cst_10 = arith.constant 2.560000e+02 : f32
    %19 = vector.broadcast %cst_10 : f32 to vector<1x128xf32>
    %20 = arith.divf %18, %19 : vector<1x128xf32>
    %cst_11 = arith.constant 9.99999974E-6 : f32
    %21 = vector.broadcast %cst_11 : f32 to vector<1x128xf32>
    %22 = arith.addf %20, %21 : vector<1x128xf32>
    %23 = math.rsqrt %22 : vector<1x128xf32>
    %24 = vector.broadcast %11 : vector<1x128xf32> to vector<256x128xf32>
    %25 = arith.subf %5, %24 : vector<256x128xf32>
    %26 = vector.broadcast %23 : vector<1x128xf32> to vector<256x128xf32>
    %27 = arith.mulf %25, %26 : vector<256x128xf32>
    %cst_12 = arith.constant 0.000000e+00 : f32
    %28 = vector.broadcast %cst_12 : f32 to vector<256x128xf32>
    %29 = arith.maximumf %27, %28 : vector<256x128xf32>
    %c0_13 = arith.constant 0 : index
    %c0_14 = arith.constant 0 : index
    %c0_15 = arith.constant 0 : index
    %30 = vector.load %arg4[%c0_13, %c0_14, %c0_15] : memref<1x256x128xf32, #tpu.memory_space<vmem>>, vector<1x256x128xf32>
    %31 = vector.shape_cast %30 : vector<1x256x128xf32> to vector<256x128xf32>
    %32 = vector.shape_cast %29 : vector<256x128xf32> to vector<1x256x128xf32>
    tpu.vector_store %arg4[%c0_13, %c0_14, %c0_15], %32 {strides = array<i32>} : memref<1x256x128xf32, #tpu.memory_space<vmem>>, vector<1x256x128xf32>,
    return
  }
  func.func @transform_0(%arg0: i32) -> (i32, i32) {
    %c0_i32 = arith.constant 0 : i32
    %c0_i32_0 = arith.constant 0 : i32
    return %arg0, %c0_i32 : i32, i32
  }
  func.func @transform_1(%arg0: i32) -> (i32, i32) {
    %c0_i32 = arith.constant 0 : i32
    %c0_i32_0 = arith.constant 0 : i32
    %c0_i32_1 = arith.constant 0 : i32
    return %c0_i32, %c0_i32_0 : i32, i32
  }
  func.func @transform_2(%arg0: i32) -> (i32, i32) {
    %c0_i32 = arith.constant 0 : i32
    %c0_i32_0 = arith.constant 0 : i32
    %c0_i32_1 = arith.constant 0 : i32
    return %c0_i32, %c0_i32_0 : i32, i32
  }
  func.func @transform_3(%arg0: i32) -> (i32, i32, i32) {
    %c0_i32 = arith.constant 0 : i32
    %c0_i32_0 = arith.constant 0 : i32
    %c0_i32_1 = arith.constant 0 : i32
    return %arg0, %c0_i32, %c0_i32_0 : i32, i32, i32
  }
}

module attributes {stable_mosaic.version = 11 : i64} {
  func.func @_mm_in_act_kernel(%arg0: i32, %arg1: memref<64x1152xf32, #tpu.memory_space<vmem>>, %arg2: memref<1152x128xf32, #tpu.memory_space<vmem>>, %arg3: memref<1x128xf32, #tpu.memory_space<vmem>>, %arg4: memref<1x64x128xf32, #tpu.memory_space<vmem>>) attributes {dimension_semantics = [#tpu.dimension_semantics<parallel>], iteration_bounds = array<i64: 2>, scalar_prefetch = 0 : i64, scratch_operands = 0 : i64, tpu.core_type = #tpu.core_type<tc>, window_params = [{transform_indices = @transform_0, window_bounds = array<i64: 64, 1152>}, {pipeline_mode = #tpu.pipeline_mode<synchronous>, transform_indices = @transform_1, window_bounds = array<i64: 1152, 128>}, {pipeline_mode = #tpu.pipeline_mode<synchronous>, transform_indices = @transform_2, window_bounds = array<i64: 1, 128>}, {transform_indices = @transform_3, window_bounds = array<i64: 1, 64, 128>}]} {
    %c0 = arith.constant 0 : index
    %c0_0 = arith.constant 0 : index
    %0 = vector.load %arg1[%c0, %c0_0] : memref<64x1152xf32, #tpu.memory_space<vmem>>, vector<64x1152xf32>
    %c0_1 = arith.constant 0 : index
    %c0_2 = arith.constant 0 : index
    %1 = vector.load %arg2[%c0_1, %c0_2] : memref<1152x128xf32, #tpu.memory_space<vmem>>, vector<1152x128xf32>
    %cst = arith.constant dense<0.000000e+00> : vector<64x128xf32>
    %2 = tpu.matmul %0, %1, %cst {dimension_numbers = #tpu.dot_dimension_numbers<[1], [0], [0], [1], [0, 0, 1, 1], [], []>} : vector<64x1152xf32>, vector<1152x128xf32>, vector<64x128xf32> -> vector<64x128xf32>
    %c0_3 = arith.constant 0 : index
    %c0_4 = arith.constant 0 : index
    %3 = vector.load %arg3[%c0_3, %c0_4] : memref<1x128xf32, #tpu.memory_space<vmem>>, vector<1x128xf32>
    %4 = vector.broadcast %3 : vector<1x128xf32> to vector<64x128xf32>
    %5 = arith.addf %2, %4 : vector<64x128xf32>
    %cst_5 = arith.constant 0.000000e+00 : f32
    %6 = vector.broadcast %cst_5 : f32 to vector<1x128xf32>
    %cst_6 = arith.constant dense<0.000000e+00> : vector<128xf32>
    %7 = vector.multi_reduction <add>, %5, %cst_6 [0] : vector<64x128xf32> to vector<128xf32>
    %8 = vector.shape_cast %7 : vector<128xf32> to vector<1x128xf32>
    %9 = arith.addf %6, %8 : vector<1x128xf32>
    %cst_7 = arith.constant 6.400000e+01 : f32
    %10 = vector.broadcast %cst_7 : f32 to vector<1x128xf32>
    %11 = arith.divf %9, %10 : vector<1x128xf32>
    %cst_8 = arith.constant 0.000000e+00 : f32
    %12 = vector.broadcast %cst_8 : f32 to vector<1x128xf32>
    %13 = vector.broadcast %11 : vector<1x128xf32> to vector<64x128xf32>
    %14 = arith.subf %5, %13 : vector<64x128xf32>
    %15 = arith.mulf %14, %14 : vector<64x128xf32>
    %cst_9 = arith.constant dense<0.000000e+00> : vector<128xf32>
    %16 = vector.multi_reduction <add>, %15, %cst_9 [0] : vector<64x128xf32> to vector<128xf32>
    %17 = vector.shape_cast %16 : vector<128xf32> to vector<1x128xf32>
    %18 = arith.addf %12, %17 : vector<1x128xf32>
    %cst_10 = arith.constant 6.400000e+01 : f32
    %19 = vector.broadcast %cst_10 : f32 to vector<1x128xf32>
    %20 = arith.divf %18, %19 : vector<1x128xf32>
    %cst_11 = arith.constant 9.99999974E-6 : f32
    %21 = vector.broadcast %cst_11 : f32 to vector<1x128xf32>
    %22 = arith.addf %20, %21 : vector<1x128xf32>
    %23 = math.rsqrt %22 : vector<1x128xf32>
    %24 = vector.broadcast %11 : vector<1x128xf32> to vector<64x128xf32>
    %25 = arith.subf %5, %24 : vector<64x128xf32>
    %26 = vector.broadcast %23 : vector<1x128xf32> to vector<64x128xf32>
    %27 = arith.mulf %25, %26 : vector<64x128xf32>
    %cst_12 = arith.constant 0.000000e+00 : f32
    %28 = vector.broadcast %cst_12 : f32 to vector<64x128xf32>
    %29 = arith.maximumf %27, %28 : vector<64x128xf32>
    %c0_13 = arith.constant 0 : index
    %c0_14 = arith.constant 0 : index
    %c0_15 = arith.constant 0 : index
    %30 = vector.load %arg4[%c0_13, %c0_14, %c0_15] : memref<1x64x128xf32, #tpu.memory_space<vmem>>, vector<1x64x128xf32>
    %31 = vector.shape_cast %30 : vector<1x64x128xf32> to vector<64x128xf32>
    %32 = vector.shape_cast %29 : vector<64x128xf32> to vector<1x64x128xf32>
    tpu.vector_store %arg4[%c0_13, %c0_14, %c0_15], %32 {strides = array<i32>} : memref<1x64x128xf32, #tpu.memory_space<vmem>>, vector<1x64x128xf32>,
    return
  }
  func.func @transform_0(%arg0: i32) -> (i32, i32) {
    %c0_i32 = arith.constant 0 : i32
    %c0_i32_0 = arith.constant 0 : i32
    return %arg0, %c0_i32 : i32, i32
  }
  func.func @transform_1(%arg0: i32) -> (i32, i32) {
    %c0_i32 = arith.constant 0 : i32
    %c0_i32_0 = arith.constant 0 : i32
    %c0_i32_1 = arith.constant 0 : i32
    return %c0_i32, %c0_i32_0 : i32, i32
  }
  func.func @transform_2(%arg0: i32) -> (i32, i32) {
    %c0_i32 = arith.constant 0 : i32
    %c0_i32_0 = arith.constant 0 : i32
    %c0_i32_1 = arith.constant 0 : i32
    return %c0_i32, %c0_i32_0 : i32, i32
  }
  func.func @transform_3(%arg0: i32) -> (i32, i32, i32) {
    %c0_i32 = arith.constant 0 : i32
    %c0_i32_0 = arith.constant 0 : i32
    %c0_i32_1 = arith.constant 0 : i32
    return %arg0, %c0_i32, %c0_i32_0 : i32, i32, i32
  }
}

module attributes {stable_mosaic.version = 11 : i64} {
  func.func @_mm_in_act_kernel(%arg0: i32, %arg1: memref<16x512xf32, #tpu.memory_space<vmem>>, %arg2: memref<512x512xf32, #tpu.memory_space<vmem>>, %arg3: memref<1x512xf32, #tpu.memory_space<vmem>>, %arg4: memref<1x16x512xf32, #tpu.memory_space<vmem>>) attributes {dimension_semantics = [#tpu.dimension_semantics<parallel>], iteration_bounds = array<i64: 2>, scalar_prefetch = 0 : i64, scratch_operands = 0 : i64, tpu.core_type = #tpu.core_type<tc>, window_params = [{transform_indices = @transform_0, window_bounds = array<i64: 16, 512>}, {pipeline_mode = #tpu.pipeline_mode<synchronous>, transform_indices = @transform_1, window_bounds = array<i64: 512, 512>}, {pipeline_mode = #tpu.pipeline_mode<synchronous>, transform_indices = @transform_2, window_bounds = array<i64: 1, 512>}, {transform_indices = @transform_3, window_bounds = array<i64: 1, 16, 512>}]} {
    %c0 = arith.constant 0 : index
    %c0_0 = arith.constant 0 : index
    %0 = vector.load %arg1[%c0, %c0_0] : memref<16x512xf32, #tpu.memory_space<vmem>>, vector<16x512xf32>
    %c0_1 = arith.constant 0 : index
    %c0_2 = arith.constant 0 : index
    %1 = vector.load %arg2[%c0_1, %c0_2] : memref<512x512xf32, #tpu.memory_space<vmem>>, vector<512x512xf32>
    %cst = arith.constant dense<0.000000e+00> : vector<16x512xf32>
    %2 = tpu.matmul %0, %1, %cst {dimension_numbers = #tpu.dot_dimension_numbers<[1], [0], [0], [1], [0, 0, 1, 1], [], []>} : vector<16x512xf32>, vector<512x512xf32>, vector<16x512xf32> -> vector<16x512xf32>
    %c0_3 = arith.constant 0 : index
    %c0_4 = arith.constant 0 : index
    %3 = vector.load %arg3[%c0_3, %c0_4] : memref<1x512xf32, #tpu.memory_space<vmem>>, vector<1x512xf32>
    %4 = vector.broadcast %3 : vector<1x512xf32> to vector<16x512xf32>
    %5 = arith.addf %2, %4 : vector<16x512xf32>
    %cst_5 = arith.constant 0.000000e+00 : f32
    %6 = vector.broadcast %cst_5 : f32 to vector<1x128xf32>
    %7 = vector.extract_strided_slice %5 {offsets = [0, 0], sizes = [16, 128], strides = [1, 1]} : vector<16x512xf32> to vector<16x128xf32>
    %cst_6 = arith.constant dense<0.000000e+00> : vector<128xf32>
    %8 = vector.multi_reduction <add>, %7, %cst_6 [0] : vector<16x128xf32> to vector<128xf32>
    %9 = vector.shape_cast %8 : vector<128xf32> to vector<1x128xf32>
    %10 = arith.addf %6, %9 : vector<1x128xf32>
    %11 = vector.extract_strided_slice %5 {offsets = [0, 128], sizes = [16, 128], strides = [1, 1]} : vector<16x512xf32> to vector<16x128xf32>
    %cst_7 = arith.constant dense<0.000000e+00> : vector<128xf32>
    %12 = vector.multi_reduction <add>, %11, %cst_7 [0] : vector<16x128xf32> to vector<128xf32>
    %13 = vector.shape_cast %12 : vector<128xf32> to vector<1x128xf32>
    %14 = arith.addf %10, %13 : vector<1x128xf32>
    %15 = vector.extract_strided_slice %5 {offsets = [0, 256], sizes = [16, 128], strides = [1, 1]} : vector<16x512xf32> to vector<16x128xf32>
    %cst_8 = arith.constant dense<0.000000e+00> : vector<128xf32>
    %16 = vector.multi_reduction <add>, %15, %cst_8 [0] : vector<16x128xf32> to vector<128xf32>
    %17 = vector.shape_cast %16 : vector<128xf32> to vector<1x128xf32>
    %18 = arith.addf %14, %17 : vector<1x128xf32>
    %19 = vector.extract_strided_slice %5 {offsets = [0, 384], sizes = [16, 128], strides = [1, 1]} : vector<16x512xf32> to vector<16x128xf32>
    %cst_9 = arith.constant dense<0.000000e+00> : vector<128xf32>
    %20 = vector.multi_reduction <add>, %19, %cst_9 [0] : vector<16x128xf32> to vector<128xf32>
    %21 = vector.shape_cast %20 : vector<128xf32> to vector<1x128xf32>
    %22 = arith.addf %18, %21 : vector<1x128xf32>
    %cst_10 = arith.constant 6.400000e+01 : f32
    %23 = vector.broadcast %cst_10 : f32 to vector<1x128xf32>
    %24 = arith.divf %22, %23 : vector<1x128xf32>
    %cst_11 = arith.constant 0.000000e+00 : f32
    %25 = vector.broadcast %cst_11 : f32 to vector<1x128xf32>
    %26 = vector.extract_strided_slice %5 {offsets = [0, 0], sizes = [16, 128], strides = [1, 1]} : vector<16x512xf32> to vector<16x128xf32>
    %27 = vector.broadcast %24 : vector<1x128xf32> to vector<16x128xf32>
    %28 = arith.subf %26, %27 : vector<16x128xf32>
    %29 = arith.mulf %28, %28 : vector<16x128xf32>
    %cst_12 = arith.constant dense<0.000000e+00> : vector<128xf32>
    %30 = vector.multi_reduction <add>, %29, %cst_12 [0] : vector<16x128xf32> to vector<128xf32>
    %31 = vector.shape_cast %30 : vector<128xf32> to vector<1x128xf32>
    %32 = arith.addf %25, %31 : vector<1x128xf32>
    %33 = vector.extract_strided_slice %5 {offsets = [0, 128], sizes = [16, 128], strides = [1, 1]} : vector<16x512xf32> to vector<16x128xf32>
    %34 = vector.broadcast %24 : vector<1x128xf32> to vector<16x128xf32>
    %35 = arith.subf %33, %34 : vector<16x128xf32>
    %36 = arith.mulf %35, %35 : vector<16x128xf32>
    %cst_13 = arith.constant dense<0.000000e+00> : vector<128xf32>
    %37 = vector.multi_reduction <add>, %36, %cst_13 [0] : vector<16x128xf32> to vector<128xf32>
    %38 = vector.shape_cast %37 : vector<128xf32> to vector<1x128xf32>
    %39 = arith.addf %32, %38 : vector<1x128xf32>
    %40 = vector.extract_strided_slice %5 {offsets = [0, 256], sizes = [16, 128], strides = [1, 1]} : vector<16x512xf32> to vector<16x128xf32>
    %41 = vector.broadcast %24 : vector<1x128xf32> to vector<16x128xf32>
    %42 = arith.subf %40, %41 : vector<16x128xf32>
    %43 = arith.mulf %42, %42 : vector<16x128xf32>
    %cst_14 = arith.constant dense<0.000000e+00> : vector<128xf32>
    %44 = vector.multi_reduction <add>, %43, %cst_14 [0] : vector<16x128xf32> to vector<128xf32>
    %45 = vector.shape_cast %44 : vector<128xf32> to vector<1x128xf32>
    %46 = arith.addf %39, %45 : vector<1x128xf32>
    %47 = vector.extract_strided_slice %5 {offsets = [0, 384], sizes = [16, 128], strides = [1, 1]} : vector<16x512xf32> to vector<16x128xf32>
    %48 = vector.broadcast %24 : vector<1x128xf32> to vector<16x128xf32>
    %49 = arith.subf %47, %48 : vector<16x128xf32>
    %50 = arith.mulf %49, %49 : vector<16x128xf32>
    %cst_15 = arith.constant dense<0.000000e+00> : vector<128xf32>
    %51 = vector.multi_reduction <add>, %50, %cst_15 [0] : vector<16x128xf32> to vector<128xf32>
    %52 = vector.shape_cast %51 : vector<128xf32> to vector<1x128xf32>
    %53 = arith.addf %46, %52 : vector<1x128xf32>
    %cst_16 = arith.constant 6.400000e+01 : f32
    %54 = vector.broadcast %cst_16 : f32 to vector<1x128xf32>
    %55 = arith.divf %53, %54 : vector<1x128xf32>
    %cst_17 = arith.constant 9.99999974E-6 : f32
    %56 = vector.broadcast %cst_17 : f32 to vector<1x128xf32>
    %57 = arith.addf %55, %56 : vector<1x128xf32>
    %58 = math.rsqrt %57 : vector<1x128xf32>
    %59 = vector.extract_strided_slice %5 {offsets = [0, 0], sizes = [16, 128], strides = [1, 1]} : vector<16x512xf32> to vector<16x128xf32>
    %60 = vector.broadcast %24 : vector<1x128xf32> to vector<16x128xf32>
    %61 = arith.subf %59, %60 : vector<16x128xf32>
    %62 = vector.broadcast %58 : vector<1x128xf32> to vector<16x128xf32>
    %63 = arith.mulf %61, %62 : vector<16x128xf32>
    %64 = vector.extract_strided_slice %5 {offsets = [0, 128], sizes = [16, 128], strides = [1, 1]} : vector<16x512xf32> to vector<16x128xf32>
    %65 = vector.broadcast %24 : vector<1x128xf32> to vector<16x128xf32>
    %66 = arith.subf %64, %65 : vector<16x128xf32>
    %67 = vector.broadcast %58 : vector<1x128xf32> to vector<16x128xf32>
    %68 = arith.mulf %66, %67 : vector<16x128xf32>
    %69 = vector.extract_strided_slice %5 {offsets = [0, 256], sizes = [16, 128], strides = [1, 1]} : vector<16x512xf32> to vector<16x128xf32>
    %70 = vector.broadcast %24 : vector<1x128xf32> to vector<16x128xf32>
    %71 = arith.subf %69, %70 : vector<16x128xf32>
    %72 = vector.broadcast %58 : vector<1x128xf32> to vector<16x128xf32>
    %73 = arith.mulf %71, %72 : vector<16x128xf32>
    %74 = vector.extract_strided_slice %5 {offsets = [0, 384], sizes = [16, 128], strides = [1, 1]} : vector<16x512xf32> to vector<16x128xf32>
    %75 = vector.broadcast %24 : vector<1x128xf32> to vector<16x128xf32>
    %76 = arith.subf %74, %75 : vector<16x128xf32>
    %77 = vector.broadcast %58 : vector<1x128xf32> to vector<16x128xf32>
    %78 = arith.mulf %76, %77 : vector<16x128xf32>
    %79 = tpu.concatenate %63, %68, %73, %78 in 1 : vector<16x128xf32>, vector<16x128xf32>, vector<16x128xf32>, vector<16x128xf32> -> vector<16x512xf32>
    %cst_18 = arith.constant 0.000000e+00 : f32
    %80 = vector.broadcast %cst_18 : f32 to vector<16x512xf32>
    %81 = arith.maximumf %79, %80 : vector<16x512xf32>
    %c0_19 = arith.constant 0 : index
    %c0_20 = arith.constant 0 : index
    %c0_21 = arith.constant 0 : index
    %82 = vector.load %arg4[%c0_19, %c0_20, %c0_21] : memref<1x16x512xf32, #tpu.memory_space<vmem>>, vector<1x16x512xf32>
    %83 = vector.shape_cast %82 : vector<1x16x512xf32> to vector<16x512xf32>
    %84 = vector.shape_cast %81 : vector<16x512xf32> to vector<1x16x512xf32>
    tpu.vector_store %arg4[%c0_19, %c0_20, %c0_21], %84 {strides = array<i32>} : memref<1x16x512xf32, #tpu.memory_space<vmem>>, vector<1x16x512xf32>,
    return
  }
  func.func @transform_0(%arg0: i32) -> (i32, i32) {
    %c0_i32 = arith.constant 0 : i32
    %c0_i32_0 = arith.constant 0 : i32
    return %arg0, %c0_i32 : i32, i32
  }
  func.func @transform_1(%arg0: i32) -> (i32, i32) {
    %c0_i32 = arith.constant 0 : i32
    %c0_i32_0 = arith.constant 0 : i32
    %c0_i32_1 = arith.constant 0 : i32
    return %c0_i32, %c0_i32_0 : i32, i32
  }
  func.func @transform_2(%arg0: i32) -> (i32, i32) {
    %c0_i32 = arith.constant 0 : i32
    %c0_i32_0 = arith.constant 0 : i32
    %c0_i32_1 = arith.constant 0 : i32
    return %c0_i32, %c0_i32_0 : i32, i32
  }
  func.func @transform_3(%arg0: i32) -> (i32, i32, i32) {
    %c0_i32 = arith.constant 0 : i32
    %c0_i32_0 = arith.constant 0 : i32
    %c0_i32_1 = arith.constant 0 : i32
    return %arg0, %c0_i32, %c0_i32_0 : i32, i32, i32
  }
}

module attributes {stable_mosaic.version = 11 : i64} {
  func.func @_mm_in_act_kernel(%arg0: i32, %arg1: memref<16x1152xf32, #tpu.memory_space<vmem>>, %arg2: memref<1152x128xf32, #tpu.memory_space<vmem>>, %arg3: memref<1x128xf32, #tpu.memory_space<vmem>>, %arg4: memref<1x16x128xf32, #tpu.memory_space<vmem>>) attributes {dimension_semantics = [#tpu.dimension_semantics<parallel>], iteration_bounds = array<i64: 2>, scalar_prefetch = 0 : i64, scratch_operands = 0 : i64, tpu.core_type = #tpu.core_type<tc>, window_params = [{transform_indices = @transform_0, window_bounds = array<i64: 16, 1152>}, {pipeline_mode = #tpu.pipeline_mode<synchronous>, transform_indices = @transform_1, window_bounds = array<i64: 1152, 128>}, {pipeline_mode = #tpu.pipeline_mode<synchronous>, transform_indices = @transform_2, window_bounds = array<i64: 1, 128>}, {transform_indices = @transform_3, window_bounds = array<i64: 1, 16, 128>}]} {
    %c0 = arith.constant 0 : index
    %c0_0 = arith.constant 0 : index
    %0 = vector.load %arg1[%c0, %c0_0] : memref<16x1152xf32, #tpu.memory_space<vmem>>, vector<16x1152xf32>
    %c0_1 = arith.constant 0 : index
    %c0_2 = arith.constant 0 : index
    %1 = vector.load %arg2[%c0_1, %c0_2] : memref<1152x128xf32, #tpu.memory_space<vmem>>, vector<1152x128xf32>
    %cst = arith.constant dense<0.000000e+00> : vector<16x128xf32>
    %2 = tpu.matmul %0, %1, %cst {dimension_numbers = #tpu.dot_dimension_numbers<[1], [0], [0], [1], [0, 0, 1, 1], [], []>} : vector<16x1152xf32>, vector<1152x128xf32>, vector<16x128xf32> -> vector<16x128xf32>
    %c0_3 = arith.constant 0 : index
    %c0_4 = arith.constant 0 : index
    %3 = vector.load %arg3[%c0_3, %c0_4] : memref<1x128xf32, #tpu.memory_space<vmem>>, vector<1x128xf32>
    %4 = vector.broadcast %3 : vector<1x128xf32> to vector<16x128xf32>
    %5 = arith.addf %2, %4 : vector<16x128xf32>
    %cst_5 = arith.constant 0.000000e+00 : f32
    %6 = vector.broadcast %cst_5 : f32 to vector<1x128xf32>
    %cst_6 = arith.constant dense<0.000000e+00> : vector<128xf32>
    %7 = vector.multi_reduction <add>, %5, %cst_6 [0] : vector<16x128xf32> to vector<128xf32>
    %8 = vector.shape_cast %7 : vector<128xf32> to vector<1x128xf32>
    %9 = arith.addf %6, %8 : vector<1x128xf32>
    %cst_7 = arith.constant 1.600000e+01 : f32
    %10 = vector.broadcast %cst_7 : f32 to vector<1x128xf32>
    %11 = arith.divf %9, %10 : vector<1x128xf32>
    %cst_8 = arith.constant 0.000000e+00 : f32
    %12 = vector.broadcast %cst_8 : f32 to vector<1x128xf32>
    %13 = vector.broadcast %11 : vector<1x128xf32> to vector<16x128xf32>
    %14 = arith.subf %5, %13 : vector<16x128xf32>
    %15 = arith.mulf %14, %14 : vector<16x128xf32>
    %cst_9 = arith.constant dense<0.000000e+00> : vector<128xf32>
    %16 = vector.multi_reduction <add>, %15, %cst_9 [0] : vector<16x128xf32> to vector<128xf32>
    %17 = vector.shape_cast %16 : vector<128xf32> to vector<1x128xf32>
    %18 = arith.addf %12, %17 : vector<1x128xf32>
    %cst_10 = arith.constant 1.600000e+01 : f32
    %19 = vector.broadcast %cst_10 : f32 to vector<1x128xf32>
    %20 = arith.divf %18, %19 : vector<1x128xf32>
    %cst_11 = arith.constant 9.99999974E-6 : f32
    %21 = vector.broadcast %cst_11 : f32 to vector<1x128xf32>
    %22 = arith.addf %20, %21 : vector<1x128xf32>
    %23 = math.rsqrt %22 : vector<1x128xf32>
    %24 = vector.broadcast %11 : vector<1x128xf32> to vector<16x128xf32>
    %25 = arith.subf %5, %24 : vector<16x128xf32>
    %26 = vector.broadcast %23 : vector<1x128xf32> to vector<16x128xf32>
    %27 = arith.mulf %25, %26 : vector<16x128xf32>
    %cst_12 = arith.constant 0.000000e+00 : f32
    %28 = vector.broadcast %cst_12 : f32 to vector<16x128xf32>
    %29 = arith.maximumf %27, %28 : vector<16x128xf32>
    %c0_13 = arith.constant 0 : index
    %c0_14 = arith.constant 0 : index
    %c0_15 = arith.constant 0 : index
    %30 = vector.load %arg4[%c0_13, %c0_14, %c0_15] : memref<1x16x128xf32, #tpu.memory_space<vmem>>, vector<1x16x128xf32>
    %31 = vector.shape_cast %30 : vector<1x16x128xf32> to vector<16x128xf32>
    %32 = vector.shape_cast %29 : vector<16x128xf32> to vector<1x16x128xf32>
    tpu.vector_store %arg4[%c0_13, %c0_14, %c0_15], %32 {strides = array<i32>} : memref<1x16x128xf32, #tpu.memory_space<vmem>>, vector<1x16x128xf32>,
    return
  }
  func.func @transform_0(%arg0: i32) -> (i32, i32) {
    %c0_i32 = arith.constant 0 : i32
    %c0_i32_0 = arith.constant 0 : i32
    return %arg0, %c0_i32 : i32, i32
  }
  func.func @transform_1(%arg0: i32) -> (i32, i32) {
    %c0_i32 = arith.constant 0 : i32
    %c0_i32_0 = arith.constant 0 : i32
    %c0_i32_1 = arith.constant 0 : i32
    return %c0_i32, %c0_i32_0 : i32, i32
  }
  func.func @transform_2(%arg0: i32) -> (i32, i32) {
    %c0_i32 = arith.constant 0 : i32
    %c0_i32_0 = arith.constant 0 : i32
    %c0_i32_1 = arith.constant 0 : i32
    return %c0_i32, %c0_i32_0 : i32, i32
  }
  func.func @transform_3(%arg0: i32) -> (i32, i32, i32) {
    %c0_i32 = arith.constant 0 : i32
    %c0_i32_0 = arith.constant 0 : i32
    %c0_i32_1 = arith.constant 0 : i32
    return %arg0, %c0_i32, %c0_i32_0 : i32, i32, i32
  }
}

module attributes {stable_mosaic.version = 11 : i64} {
  func.func @_mm_in_act_kernel(%arg0: i32, %arg1: memref<64x512xf32, #tpu.memory_space<vmem>>, %arg2: memref<512x512xf32, #tpu.memory_space<vmem>>, %arg3: memref<1x512xf32, #tpu.memory_space<vmem>>, %arg4: memref<1x64x512xf32, #tpu.memory_space<vmem>>) attributes {dimension_semantics = [#tpu.dimension_semantics<parallel>], iteration_bounds = array<i64: 2>, scalar_prefetch = 0 : i64, scratch_operands = 0 : i64, tpu.core_type = #tpu.core_type<tc>, window_params = [{transform_indices = @transform_0, window_bounds = array<i64: 64, 512>}, {pipeline_mode = #tpu.pipeline_mode<synchronous>, transform_indices = @transform_1, window_bounds = array<i64: 512, 512>}, {pipeline_mode = #tpu.pipeline_mode<synchronous>, transform_indices = @transform_2, window_bounds = array<i64: 1, 512>}, {transform_indices = @transform_3, window_bounds = array<i64: 1, 64, 512>}]} {
    %c0 = arith.constant 0 : index
    %c0_0 = arith.constant 0 : index
    %0 = vector.load %arg1[%c0, %c0_0] : memref<64x512xf32, #tpu.memory_space<vmem>>, vector<64x512xf32>
    %c0_1 = arith.constant 0 : index
    %c0_2 = arith.constant 0 : index
    %1 = vector.load %arg2[%c0_1, %c0_2] : memref<512x512xf32, #tpu.memory_space<vmem>>, vector<512x512xf32>
    %cst = arith.constant dense<0.000000e+00> : vector<64x512xf32>
    %2 = tpu.matmul %0, %1, %cst {dimension_numbers = #tpu.dot_dimension_numbers<[1], [0], [0], [1], [0, 0, 1, 1], [], []>} : vector<64x512xf32>, vector<512x512xf32>, vector<64x512xf32> -> vector<64x512xf32>
    %c0_3 = arith.constant 0 : index
    %c0_4 = arith.constant 0 : index
    %3 = vector.load %arg3[%c0_3, %c0_4] : memref<1x512xf32, #tpu.memory_space<vmem>>, vector<1x512xf32>
    %4 = vector.broadcast %3 : vector<1x512xf32> to vector<64x512xf32>
    %5 = arith.addf %2, %4 : vector<64x512xf32>
    %cst_5 = arith.constant 0.000000e+00 : f32
    %6 = vector.broadcast %cst_5 : f32 to vector<1x128xf32>
    %7 = vector.extract_strided_slice %5 {offsets = [0, 0], sizes = [64, 128], strides = [1, 1]} : vector<64x512xf32> to vector<64x128xf32>
    %cst_6 = arith.constant dense<0.000000e+00> : vector<128xf32>
    %8 = vector.multi_reduction <add>, %7, %cst_6 [0] : vector<64x128xf32> to vector<128xf32>
    %9 = vector.shape_cast %8 : vector<128xf32> to vector<1x128xf32>
    %10 = arith.addf %6, %9 : vector<1x128xf32>
    %11 = vector.extract_strided_slice %5 {offsets = [0, 128], sizes = [64, 128], strides = [1, 1]} : vector<64x512xf32> to vector<64x128xf32>
    %cst_7 = arith.constant dense<0.000000e+00> : vector<128xf32>
    %12 = vector.multi_reduction <add>, %11, %cst_7 [0] : vector<64x128xf32> to vector<128xf32>
    %13 = vector.shape_cast %12 : vector<128xf32> to vector<1x128xf32>
    %14 = arith.addf %10, %13 : vector<1x128xf32>
    %15 = vector.extract_strided_slice %5 {offsets = [0, 256], sizes = [64, 128], strides = [1, 1]} : vector<64x512xf32> to vector<64x128xf32>
    %cst_8 = arith.constant dense<0.000000e+00> : vector<128xf32>
    %16 = vector.multi_reduction <add>, %15, %cst_8 [0] : vector<64x128xf32> to vector<128xf32>
    %17 = vector.shape_cast %16 : vector<128xf32> to vector<1x128xf32>
    %18 = arith.addf %14, %17 : vector<1x128xf32>
    %19 = vector.extract_strided_slice %5 {offsets = [0, 384], sizes = [64, 128], strides = [1, 1]} : vector<64x512xf32> to vector<64x128xf32>
    %cst_9 = arith.constant dense<0.000000e+00> : vector<128xf32>
    %20 = vector.multi_reduction <add>, %19, %cst_9 [0] : vector<64x128xf32> to vector<128xf32>
    %21 = vector.shape_cast %20 : vector<128xf32> to vector<1x128xf32>
    %22 = arith.addf %18, %21 : vector<1x128xf32>
    %cst_10 = arith.constant 2.560000e+02 : f32
    %23 = vector.broadcast %cst_10 : f32 to vector<1x128xf32>
    %24 = arith.divf %22, %23 : vector<1x128xf32>
    %cst_11 = arith.constant 0.000000e+00 : f32
    %25 = vector.broadcast %cst_11 : f32 to vector<1x128xf32>
    %26 = vector.extract_strided_slice %5 {offsets = [0, 0], sizes = [64, 128], strides = [1, 1]} : vector<64x512xf32> to vector<64x128xf32>
    %27 = vector.broadcast %24 : vector<1x128xf32> to vector<64x128xf32>
    %28 = arith.subf %26, %27 : vector<64x128xf32>
    %29 = arith.mulf %28, %28 : vector<64x128xf32>
    %cst_12 = arith.constant dense<0.000000e+00> : vector<128xf32>
    %30 = vector.multi_reduction <add>, %29, %cst_12 [0] : vector<64x128xf32> to vector<128xf32>
    %31 = vector.shape_cast %30 : vector<128xf32> to vector<1x128xf32>
    %32 = arith.addf %25, %31 : vector<1x128xf32>
    %33 = vector.extract_strided_slice %5 {offsets = [0, 128], sizes = [64, 128], strides = [1, 1]} : vector<64x512xf32> to vector<64x128xf32>
    %34 = vector.broadcast %24 : vector<1x128xf32> to vector<64x128xf32>
    %35 = arith.subf %33, %34 : vector<64x128xf32>
    %36 = arith.mulf %35, %35 : vector<64x128xf32>
    %cst_13 = arith.constant dense<0.000000e+00> : vector<128xf32>
    %37 = vector.multi_reduction <add>, %36, %cst_13 [0] : vector<64x128xf32> to vector<128xf32>
    %38 = vector.shape_cast %37 : vector<128xf32> to vector<1x128xf32>
    %39 = arith.addf %32, %38 : vector<1x128xf32>
    %40 = vector.extract_strided_slice %5 {offsets = [0, 256], sizes = [64, 128], strides = [1, 1]} : vector<64x512xf32> to vector<64x128xf32>
    %41 = vector.broadcast %24 : vector<1x128xf32> to vector<64x128xf32>
    %42 = arith.subf %40, %41 : vector<64x128xf32>
    %43 = arith.mulf %42, %42 : vector<64x128xf32>
    %cst_14 = arith.constant dense<0.000000e+00> : vector<128xf32>
    %44 = vector.multi_reduction <add>, %43, %cst_14 [0] : vector<64x128xf32> to vector<128xf32>
    %45 = vector.shape_cast %44 : vector<128xf32> to vector<1x128xf32>
    %46 = arith.addf %39, %45 : vector<1x128xf32>
    %47 = vector.extract_strided_slice %5 {offsets = [0, 384], sizes = [64, 128], strides = [1, 1]} : vector<64x512xf32> to vector<64x128xf32>
    %48 = vector.broadcast %24 : vector<1x128xf32> to vector<64x128xf32>
    %49 = arith.subf %47, %48 : vector<64x128xf32>
    %50 = arith.mulf %49, %49 : vector<64x128xf32>
    %cst_15 = arith.constant dense<0.000000e+00> : vector<128xf32>
    %51 = vector.multi_reduction <add>, %50, %cst_15 [0] : vector<64x128xf32> to vector<128xf32>
    %52 = vector.shape_cast %51 : vector<128xf32> to vector<1x128xf32>
    %53 = arith.addf %46, %52 : vector<1x128xf32>
    %cst_16 = arith.constant 2.560000e+02 : f32
    %54 = vector.broadcast %cst_16 : f32 to vector<1x128xf32>
    %55 = arith.divf %53, %54 : vector<1x128xf32>
    %cst_17 = arith.constant 9.99999974E-6 : f32
    %56 = vector.broadcast %cst_17 : f32 to vector<1x128xf32>
    %57 = arith.addf %55, %56 : vector<1x128xf32>
    %58 = math.rsqrt %57 : vector<1x128xf32>
    %59 = vector.extract_strided_slice %5 {offsets = [0, 0], sizes = [64, 128], strides = [1, 1]} : vector<64x512xf32> to vector<64x128xf32>
    %60 = vector.broadcast %24 : vector<1x128xf32> to vector<64x128xf32>
    %61 = arith.subf %59, %60 : vector<64x128xf32>
    %62 = vector.broadcast %58 : vector<1x128xf32> to vector<64x128xf32>
    %63 = arith.mulf %61, %62 : vector<64x128xf32>
    %64 = vector.extract_strided_slice %5 {offsets = [0, 128], sizes = [64, 128], strides = [1, 1]} : vector<64x512xf32> to vector<64x128xf32>
    %65 = vector.broadcast %24 : vector<1x128xf32> to vector<64x128xf32>
    %66 = arith.subf %64, %65 : vector<64x128xf32>
    %67 = vector.broadcast %58 : vector<1x128xf32> to vector<64x128xf32>
    %68 = arith.mulf %66, %67 : vector<64x128xf32>
    %69 = vector.extract_strided_slice %5 {offsets = [0, 256], sizes = [64, 128], strides = [1, 1]} : vector<64x512xf32> to vector<64x128xf32>
    %70 = vector.broadcast %24 : vector<1x128xf32> to vector<64x128xf32>
    %71 = arith.subf %69, %70 : vector<64x128xf32>
    %72 = vector.broadcast %58 : vector<1x128xf32> to vector<64x128xf32>
    %73 = arith.mulf %71, %72 : vector<64x128xf32>
    %74 = vector.extract_strided_slice %5 {offsets = [0, 384], sizes = [64, 128], strides = [1, 1]} : vector<64x512xf32> to vector<64x128xf32>
    %75 = vector.broadcast %24 : vector<1x128xf32> to vector<64x128xf32>
    %76 = arith.subf %74, %75 : vector<64x128xf32>
    %77 = vector.broadcast %58 : vector<1x128xf32> to vector<64x128xf32>
    %78 = arith.mulf %76, %77 : vector<64x128xf32>
    %79 = tpu.concatenate %63, %68, %73, %78 in 1 : vector<64x128xf32>, vector<64x128xf32>, vector<64x128xf32>, vector<64x128xf32> -> vector<64x512xf32>
    %cst_18 = arith.constant 0.000000e+00 : f32
    %80 = vector.broadcast %cst_18 : f32 to vector<64x512xf32>
    %81 = arith.maximumf %79, %80 : vector<64x512xf32>
    %c0_19 = arith.constant 0 : index
    %c0_20 = arith.constant 0 : index
    %c0_21 = arith.constant 0 : index
    %82 = vector.load %arg4[%c0_19, %c0_20, %c0_21] : memref<1x64x512xf32, #tpu.memory_space<vmem>>, vector<1x64x512xf32>
    %83 = vector.shape_cast %82 : vector<1x64x512xf32> to vector<64x512xf32>
    %84 = vector.shape_cast %81 : vector<64x512xf32> to vector<1x64x512xf32>
    tpu.vector_store %arg4[%c0_19, %c0_20, %c0_21], %84 {strides = array<i32>} : memref<1x64x512xf32, #tpu.memory_space<vmem>>, vector<1x64x512xf32>,
    return
  }
  func.func @transform_0(%arg0: i32) -> (i32, i32) {
    %c0_i32 = arith.constant 0 : i32
    %c0_i32_0 = arith.constant 0 : i32
    return %arg0, %c0_i32 : i32, i32
  }
  func.func @transform_1(%arg0: i32) -> (i32, i32) {
    %c0_i32 = arith.constant 0 : i32
    %c0_i32_0 = arith.constant 0 : i32
    %c0_i32_1 = arith.constant 0 : i32
    return %c0_i32, %c0_i32_0 : i32, i32
  }
  func.func @transform_2(%arg0: i32) -> (i32, i32) {
    %c0_i32 = arith.constant 0 : i32
    %c0_i32_0 = arith.constant 0 : i32
    %c0_i32_1 = arith.constant 0 : i32
    return %c0_i32, %c0_i32_0 : i32, i32
  }
  func.func @transform_3(%arg0: i32) -> (i32, i32, i32) {
    %c0_i32 = arith.constant 0 : i32
    %c0_i32_0 = arith.constant 0 : i32
    %c0_i32_1 = arith.constant 0 : i32
    return %arg0, %c0_i32, %c0_i32_0 : i32, i32, i32
  }
}

module attributes {stable_mosaic.version = 11 : i64} {
  func.func @_resblocks_kernel(%arg0: i32, %arg1: memref<1x16x128xf32, #tpu.memory_space<vmem>>, %arg2: memref<144x16xf32, #tpu.memory_space<vmem>>, %arg3: memref<3x2x9x128xf32, #tpu.memory_space<vmem>>, %arg4: memref<3x2x1x128xf32, #tpu.memory_space<vmem>>, %arg5: memref<3x2x128x128xf32, #tpu.memory_space<vmem>>, %arg6: memref<3x2x1x128xf32, #tpu.memory_space<vmem>>, %arg7: memref<1x16x128xf32, #tpu.memory_space<vmem>>) attributes {dimension_semantics = [#tpu.dimension_semantics<parallel>], iteration_bounds = array<i64: 2>, scalar_prefetch = 0 : i64, scratch_operands = 0 : i64, tpu.core_type = #tpu.core_type<tc>, window_params = [{transform_indices = @transform_0, window_bounds = array<i64: 1, 16, 128>}, {pipeline_mode = #tpu.pipeline_mode<synchronous>, transform_indices = @transform_1, window_bounds = array<i64: 144, 16>}, {pipeline_mode = #tpu.pipeline_mode<synchronous>, transform_indices = @transform_2, window_bounds = array<i64: 3, 2, 9, 128>}, {pipeline_mode = #tpu.pipeline_mode<synchronous>, transform_indices = @transform_3, window_bounds = array<i64: 3, 2, 1, 128>}, {pipeline_mode = #tpu.pipeline_mode<synchronous>, transform_indices = @transform_4, window_bounds = array<i64: 3, 2, 128, 128>}, {pipeline_mode = #tpu.pipeline_mode<synchronous>, transform_indices = @transform_5, window_bounds = array<i64: 3, 2, 1, 128>}, {transform_indices = @transform_6, window_bounds = array<i64: 1, 16, 128>}]} {
    %c0 = arith.constant 0 : index
    %c0_0 = arith.constant 0 : index
    %c0_1 = arith.constant 0 : index
    %0 = vector.load %arg1[%c0, %c0_0, %c0_1] : memref<1x16x128xf32, #tpu.memory_space<vmem>>, vector<1x16x128xf32>
    %1 = vector.shape_cast %0 : vector<1x16x128xf32> to vector<16x128xf32>
    %c0_2 = arith.constant 0 : index
    %c0_3 = arith.constant 0 : index
    %2 = vector.load %arg2[%c0_2, %c0_3] : memref<144x16xf32, #tpu.memory_space<vmem>>, vector<144x16xf32>
    %cst = arith.constant dense<0.000000e+00> : vector<144x128xf32>
    %3 = tpu.matmul %2, %1, %cst {dimension_numbers = #tpu.dot_dimension_numbers<[1], [0], [0], [1], [0, 0, 1, 1], [], []>} : vector<144x16xf32>, vector<16x128xf32>, vector<144x128xf32> -> vector<144x128xf32>
    %c0_4 = arith.constant 0 : index
    %c0_5 = arith.constant 0 : index
    %c0_6 = arith.constant 0 : index
    %c0_7 = arith.constant 0 : index
    %4 = vector.load %arg3[%c0_4, %c0_5, %c0_6, %c0_7] : memref<3x2x9x128xf32, #tpu.memory_space<vmem>>, vector<1x1x9x128xf32>
    %5 = vector.shape_cast %4 : vector<1x1x9x128xf32> to vector<9x128xf32>
    %6 = vector.extract_strided_slice %3 {offsets = [0, 0], sizes = [16, 128], strides = [1, 1]} : vector<144x128xf32> to vector<16x128xf32>
    %7 = vector.extract_strided_slice %5 {offsets = [0, 0], sizes = [1, 128], strides = [1, 1]} : vector<9x128xf32> to vector<1x128xf32>
    %8 = vector.shape_cast %7 : vector<1x128xf32> to vector<128xf32>
    %9 = vector.shape_cast %8 : vector<128xf32> to vector<1x128xf32>
    %10 = vector.broadcast %9 : vector<1x128xf32> to vector<16x128xf32>
    %11 = arith.mulf %6, %10 : vector<16x128xf32>
    %12 = vector.extract_strided_slice %3 {offsets = [16, 0], sizes = [16, 128], strides = [1, 1]} : vector<144x128xf32> to vector<16x128xf32>
    %13 = vector.extract_strided_slice %5 {offsets = [1, 0], sizes = [1, 128], strides = [1, 1]} : vector<9x128xf32> to vector<1x128xf32>
    %14 = vector.shape_cast %13 : vector<1x128xf32> to vector<128xf32>
    %15 = vector.shape_cast %14 : vector<128xf32> to vector<1x128xf32>
    %16 = vector.broadcast %15 : vector<1x128xf32> to vector<16x128xf32>
    %17 = arith.mulf %12, %16 : vector<16x128xf32>
    %18 = arith.addf %11, %17 : vector<16x128xf32>
    %19 = vector.extract_strided_slice %3 {offsets = [32, 0], sizes = [16, 128], strides = [1, 1]} : vector<144x128xf32> to vector<16x128xf32>
    %20 = vector.extract_strided_slice %5 {offsets = [2, 0], sizes = [1, 128], strides = [1, 1]} : vector<9x128xf32> to vector<1x128xf32>
    %21 = vector.shape_cast %20 : vector<1x128xf32> to vector<128xf32>
    %22 = vector.shape_cast %21 : vector<128xf32> to vector<1x128xf32>
    %23 = vector.broadcast %22 : vector<1x128xf32> to vector<16x128xf32>
    %24 = arith.mulf %19, %23 : vector<16x128xf32>
    %25 = arith.addf %18, %24 : vector<16x128xf32>
    %26 = vector.extract_strided_slice %3 {offsets = [48, 0], sizes = [16, 128], strides = [1, 1]} : vector<144x128xf32> to vector<16x128xf32>
    %27 = vector.extract_strided_slice %5 {offsets = [3, 0], sizes = [1, 128], strides = [1, 1]} : vector<9x128xf32> to vector<1x128xf32>
    %28 = vector.shape_cast %27 : vector<1x128xf32> to vector<128xf32>
    %29 = vector.shape_cast %28 : vector<128xf32> to vector<1x128xf32>
    %30 = vector.broadcast %29 : vector<1x128xf32> to vector<16x128xf32>
    %31 = arith.mulf %26, %30 : vector<16x128xf32>
    %32 = arith.addf %25, %31 : vector<16x128xf32>
    %33 = vector.extract_strided_slice %3 {offsets = [64, 0], sizes = [16, 128], strides = [1, 1]} : vector<144x128xf32> to vector<16x128xf32>
    %34 = vector.extract_strided_slice %5 {offsets = [4, 0], sizes = [1, 128], strides = [1, 1]} : vector<9x128xf32> to vector<1x128xf32>
    %35 = vector.shape_cast %34 : vector<1x128xf32> to vector<128xf32>
    %36 = vector.shape_cast %35 : vector<128xf32> to vector<1x128xf32>
    %37 = vector.broadcast %36 : vector<1x128xf32> to vector<16x128xf32>
    %38 = arith.mulf %33, %37 : vector<16x128xf32>
    %39 = arith.addf %32, %38 : vector<16x128xf32>
    %40 = vector.extract_strided_slice %3 {offsets = [80, 0], sizes = [16, 128], strides = [1, 1]} : vector<144x128xf32> to vector<16x128xf32>
    %41 = vector.extract_strided_slice %5 {offsets = [5, 0], sizes = [1, 128], strides = [1, 1]} : vector<9x128xf32> to vector<1x128xf32>
    %42 = vector.shape_cast %41 : vector<1x128xf32> to vector<128xf32>
    %43 = vector.shape_cast %42 : vector<128xf32> to vector<1x128xf32>
    %44 = vector.broadcast %43 : vector<1x128xf32> to vector<16x128xf32>
    %45 = arith.mulf %40, %44 : vector<16x128xf32>
    %46 = arith.addf %39, %45 : vector<16x128xf32>
    %47 = vector.extract_strided_slice %3 {offsets = [96, 0], sizes = [16, 128], strides = [1, 1]} : vector<144x128xf32> to vector<16x128xf32>
    %48 = vector.extract_strided_slice %5 {offsets = [6, 0], sizes = [1, 128], strides = [1, 1]} : vector<9x128xf32> to vector<1x128xf32>
    %49 = vector.shape_cast %48 : vector<1x128xf32> to vector<128xf32>
    %50 = vector.shape_cast %49 : vector<128xf32> to vector<1x128xf32>
    %51 = vector.broadcast %50 : vector<1x128xf32> to vector<16x128xf32>
    %52 = arith.mulf %47, %51 : vector<16x128xf32>
    %53 = arith.addf %46, %52 : vector<16x128xf32>
    %54 = vector.extract_strided_slice %3 {offsets = [112, 0], sizes = [16, 128], strides = [1, 1]} : vector<144x128xf32> to vector<16x128xf32>
    %55 = vector.extract_strided_slice %5 {offsets = [7, 0], sizes = [1, 128], strides = [1, 1]} : vector<9x128xf32> to vector<1x128xf32>
    %56 = vector.shape_cast %55 : vector<1x128xf32> to vector<128xf32>
    %57 = vector.shape_cast %56 : vector<128xf32> to vector<1x128xf32>
    %58 = vector.broadcast %57 : vector<1x128xf32> to vector<16x128xf32>
    %59 = arith.mulf %54, %58 : vector<16x128xf32>
    %60 = arith.addf %53, %59 : vector<16x128xf32>
    %61 = vector.extract_strided_slice %3 {offsets = [128, 0], sizes = [16, 128], strides = [1, 1]} : vector<144x128xf32> to vector<16x128xf32>
    %62 = vector.extract_strided_slice %5 {offsets = [8, 0], sizes = [1, 128], strides = [1, 1]} : vector<9x128xf32> to vector<1x128xf32>
    %63 = vector.shape_cast %62 : vector<1x128xf32> to vector<128xf32>
    %64 = vector.shape_cast %63 : vector<128xf32> to vector<1x128xf32>
    %65 = vector.broadcast %64 : vector<1x128xf32> to vector<16x128xf32>
    %66 = arith.mulf %61, %65 : vector<16x128xf32>
    %67 = arith.addf %60, %66 : vector<16x128xf32>
    %c0_8 = arith.constant 0 : index
    %c0_9 = arith.constant 0 : index
    %c0_10 = arith.constant 0 : index
    %c0_11 = arith.constant 0 : index
    %68 = vector.load %arg4[%c0_8, %c0_9, %c0_10, %c0_11] : memref<3x2x1x128xf32, #tpu.memory_space<vmem>>, vector<1x1x1x128xf32>
    %69 = vector.shape_cast %68 : vector<1x1x1x128xf32> to vector<1x128xf32>
    %70 = vector.broadcast %69 : vector<1x128xf32> to vector<16x128xf32>
    %71 = arith.addf %67, %70 : vector<16x128xf32>
    %cst_12 = arith.constant dense<0.000000e+00> : vector<128xf32>
    %72 = vector.multi_reduction <add>, %71, %cst_12 [0] : vector<16x128xf32> to vector<128xf32>
    %73 = vector.shape_cast %72 : vector<128xf32> to vector<1x128xf32>
    %cst_13 = arith.constant 6.250000e-02 : f32
    %74 = vector.broadcast %cst_13 : f32 to vector<1x128xf32>
    %75 = arith.mulf %73, %74 : vector<1x128xf32>
    %76 = vector.broadcast %75 : vector<1x128xf32> to vector<16x128xf32>
    %77 = arith.subf %71, %76 : vector<16x128xf32>
    %78 = arith.mulf %77, %77 : vector<16x128xf32>
    %cst_14 = arith.constant dense<0.000000e+00> : vector<128xf32>
    %79 = vector.multi_reduction <add>, %78, %cst_14 [0] : vector<16x128xf32> to vector<128xf32>
    %80 = vector.shape_cast %79 : vector<128xf32> to vector<1x128xf32>
    %cst_15 = arith.constant 6.250000e-02 : f32
    %81 = vector.broadcast %cst_15 : f32 to vector<1x128xf32>
    %82 = arith.mulf %80, %81 : vector<1x128xf32>
    %cst_16 = arith.constant 9.99999974E-6 : f32
    %83 = vector.broadcast %cst_16 : f32 to vector<1x128xf32>
    %84 = arith.addf %82, %83 : vector<1x128xf32>
    %85 = math.rsqrt %84 : vector<1x128xf32>
    %86 = vector.broadcast %85 : vector<1x128xf32> to vector<16x128xf32>
    %87 = arith.mulf %77, %86 : vector<16x128xf32>
    %c0_17 = arith.constant 0 : index
    %c0_18 = arith.constant 0 : index
    %c0_19 = arith.constant 0 : index
    %c0_20 = arith.constant 0 : index
    %88 = vector.load %arg5[%c0_17, %c0_18, %c0_19, %c0_20] : memref<3x2x128x128xf32, #tpu.memory_space<vmem>>, vector<1x1x128x128xf32>
    %89 = vector.shape_cast %88 : vector<1x1x128x128xf32> to vector<128x128xf32>
    %cst_21 = arith.constant dense<0.000000e+00> : vector<16x128xf32>
    %90 = tpu.matmul %87, %89, %cst_21 {dimension_numbers = #tpu.dot_dimension_numbers<[1], [0], [0], [1], [0, 0, 1, 1], [], []>} : vector<16x128xf32>, vector<128x128xf32>, vector<16x128xf32> -> vector<16x128xf32>
    %c0_22 = arith.constant 0 : index
    %c0_23 = arith.constant 0 : index
    %c0_24 = arith.constant 0 : index
    %c0_25 = arith.constant 0 : index
    %91 = vector.load %arg6[%c0_22, %c0_23, %c0_24, %c0_25] : memref<3x2x1x128xf32, #tpu.memory_space<vmem>>, vector<1x1x1x128xf32>
    %92 = vector.shape_cast %91 : vector<1x1x1x128xf32> to vector<1x128xf32>
    %93 = vector.broadcast %92 : vector<1x128xf32> to vector<16x128xf32>
    %94 = arith.addf %90, %93 : vector<16x128xf32>
    %cst_26 = arith.constant dense<0.000000e+00> : vector<128xf32>
    %95 = vector.multi_reduction <add>, %94, %cst_26 [0] : vector<16x128xf32> to vector<128xf32>
    %96 = vector.shape_cast %95 : vector<128xf32> to vector<1x128xf32>
    %cst_27 = arith.constant 6.250000e-02 : f32
    %97 = vector.broadcast %cst_27 : f32 to vector<1x128xf32>
    %98 = arith.mulf %96, %97 : vector<1x128xf32>
    %99 = vector.broadcast %98 : vector<1x128xf32> to vector<16x128xf32>
    %100 = arith.subf %94, %99 : vector<16x128xf32>
    %101 = arith.mulf %100, %100 : vector<16x128xf32>
    %cst_28 = arith.constant dense<0.000000e+00> : vector<128xf32>
    %102 = vector.multi_reduction <add>, %101, %cst_28 [0] : vector<16x128xf32> to vector<128xf32>
    %103 = vector.shape_cast %102 : vector<128xf32> to vector<1x128xf32>
    %cst_29 = arith.constant 6.250000e-02 : f32
    %104 = vector.broadcast %cst_29 : f32 to vector<1x128xf32>
    %105 = arith.mulf %103, %104 : vector<1x128xf32>
    %cst_30 = arith.constant 9.99999974E-6 : f32
    %106 = vector.broadcast %cst_30 : f32 to vector<1x128xf32>
    %107 = arith.addf %105, %106 : vector<1x128xf32>
    %108 = math.rsqrt %107 : vector<1x128xf32>
    %109 = vector.broadcast %108 : vector<1x128xf32> to vector<16x128xf32>
    %110 = arith.mulf %100, %109 : vector<16x128xf32>
    %cst_31 = arith.constant 0.000000e+00 : f32
    %111 = vector.broadcast %cst_31 : f32 to vector<16x128xf32>
    %112 = arith.maximumf %110, %111 : vector<16x128xf32>
    %cst_32 = arith.constant dense<0.000000e+00> : vector<144x128xf32>
    %113 = tpu.matmul %2, %112, %cst_32 {dimension_numbers = #tpu.dot_dimension_numbers<[1], [0], [0], [1], [0, 0, 1, 1], [], []>} : vector<144x16xf32>, vector<16x128xf32>, vector<144x128xf32> -> vector<144x128xf32>
    %c0_33 = arith.constant 0 : index
    %c1 = arith.constant 1 : index
    %c0_34 = arith.constant 0 : index
    %c0_35 = arith.constant 0 : index
    %114 = vector.load %arg3[%c0_33, %c1, %c0_34, %c0_35] : memref<3x2x9x128xf32, #tpu.memory_space<vmem>>, vector<1x1x9x128xf32>
    %115 = vector.shape_cast %114 : vector<1x1x9x128xf32> to vector<9x128xf32>
    %116 = vector.extract_strided_slice %113 {offsets = [0, 0], sizes = [16, 128], strides = [1, 1]} : vector<144x128xf32> to vector<16x128xf32>
    %117 = vector.extract_strided_slice %115 {offsets = [0, 0], sizes = [1, 128], strides = [1, 1]} : vector<9x128xf32> to vector<1x128xf32>
    %118 = vector.shape_cast %117 : vector<1x128xf32> to vector<128xf32>
    %119 = vector.shape_cast %118 : vector<128xf32> to vector<1x128xf32>
    %120 = vector.broadcast %119 : vector<1x128xf32> to vector<16x128xf32>
    %121 = arith.mulf %116, %120 : vector<16x128xf32>
    %122 = vector.extract_strided_slice %113 {offsets = [16, 0], sizes = [16, 128], strides = [1, 1]} : vector<144x128xf32> to vector<16x128xf32>
    %123 = vector.extract_strided_slice %115 {offsets = [1, 0], sizes = [1, 128], strides = [1, 1]} : vector<9x128xf32> to vector<1x128xf32>
    %124 = vector.shape_cast %123 : vector<1x128xf32> to vector<128xf32>
    %125 = vector.shape_cast %124 : vector<128xf32> to vector<1x128xf32>
    %126 = vector.broadcast %125 : vector<1x128xf32> to vector<16x128xf32>
    %127 = arith.mulf %122, %126 : vector<16x128xf32>
    %128 = arith.addf %121, %127 : vector<16x128xf32>
    %129 = vector.extract_strided_slice %113 {offsets = [32, 0], sizes = [16, 128], strides = [1, 1]} : vector<144x128xf32> to vector<16x128xf32>
    %130 = vector.extract_strided_slice %115 {offsets = [2, 0], sizes = [1, 128], strides = [1, 1]} : vector<9x128xf32> to vector<1x128xf32>
    %131 = vector.shape_cast %130 : vector<1x128xf32> to vector<128xf32>
    %132 = vector.shape_cast %131 : vector<128xf32> to vector<1x128xf32>
    %133 = vector.broadcast %132 : vector<1x128xf32> to vector<16x128xf32>
    %134 = arith.mulf %129, %133 : vector<16x128xf32>
    %135 = arith.addf %128, %134 : vector<16x128xf32>
    %136 = vector.extract_strided_slice %113 {offsets = [48, 0], sizes = [16, 128], strides = [1, 1]} : vector<144x128xf32> to vector<16x128xf32>
    %137 = vector.extract_strided_slice %115 {offsets = [3, 0], sizes = [1, 128], strides = [1, 1]} : vector<9x128xf32> to vector<1x128xf32>
    %138 = vector.shape_cast %137 : vector<1x128xf32> to vector<128xf32>
    %139 = vector.shape_cast %138 : vector<128xf32> to vector<1x128xf32>
    %140 = vector.broadcast %139 : vector<1x128xf32> to vector<16x128xf32>
    %141 = arith.mulf %136, %140 : vector<16x128xf32>
    %142 = arith.addf %135, %141 : vector<16x128xf32>
    %143 = vector.extract_strided_slice %113 {offsets = [64, 0], sizes = [16, 128], strides = [1, 1]} : vector<144x128xf32> to vector<16x128xf32>
    %144 = vector.extract_strided_slice %115 {offsets = [4, 0], sizes = [1, 128], strides = [1, 1]} : vector<9x128xf32> to vector<1x128xf32>
    %145 = vector.shape_cast %144 : vector<1x128xf32> to vector<128xf32>
    %146 = vector.shape_cast %145 : vector<128xf32> to vector<1x128xf32>
    %147 = vector.broadcast %146 : vector<1x128xf32> to vector<16x128xf32>
    %148 = arith.mulf %143, %147 : vector<16x128xf32>
    %149 = arith.addf %142, %148 : vector<16x128xf32>
    %150 = vector.extract_strided_slice %113 {offsets = [80, 0], sizes = [16, 128], strides = [1, 1]} : vector<144x128xf32> to vector<16x128xf32>
    %151 = vector.extract_strided_slice %115 {offsets = [5, 0], sizes = [1, 128], strides = [1, 1]} : vector<9x128xf32> to vector<1x128xf32>
    %152 = vector.shape_cast %151 : vector<1x128xf32> to vector<128xf32>
    %153 = vector.shape_cast %152 : vector<128xf32> to vector<1x128xf32>
    %154 = vector.broadcast %153 : vector<1x128xf32> to vector<16x128xf32>
    %155 = arith.mulf %150, %154 : vector<16x128xf32>
    %156 = arith.addf %149, %155 : vector<16x128xf32>
    %157 = vector.extract_strided_slice %113 {offsets = [96, 0], sizes = [16, 128], strides = [1, 1]} : vector<144x128xf32> to vector<16x128xf32>
    %158 = vector.extract_strided_slice %115 {offsets = [6, 0], sizes = [1, 128], strides = [1, 1]} : vector<9x128xf32> to vector<1x128xf32>
    %159 = vector.shape_cast %158 : vector<1x128xf32> to vector<128xf32>
    %160 = vector.shape_cast %159 : vector<128xf32> to vector<1x128xf32>
    %161 = vector.broadcast %160 : vector<1x128xf32> to vector<16x128xf32>
    %162 = arith.mulf %157, %161 : vector<16x128xf32>
    %163 = arith.addf %156, %162 : vector<16x128xf32>
    %164 = vector.extract_strided_slice %113 {offsets = [112, 0], sizes = [16, 128], strides = [1, 1]} : vector<144x128xf32> to vector<16x128xf32>
    %165 = vector.extract_strided_slice %115 {offsets = [7, 0], sizes = [1, 128], strides = [1, 1]} : vector<9x128xf32> to vector<1x128xf32>
    %166 = vector.shape_cast %165 : vector<1x128xf32> to vector<128xf32>
    %167 = vector.shape_cast %166 : vector<128xf32> to vector<1x128xf32>
    %168 = vector.broadcast %167 : vector<1x128xf32> to vector<16x128xf32>
    %169 = arith.mulf %164, %168 : vector<16x128xf32>
    %170 = arith.addf %163, %169 : vector<16x128xf32>
    %171 = vector.extract_strided_slice %113 {offsets = [128, 0], sizes = [16, 128], strides = [1, 1]} : vector<144x128xf32> to vector<16x128xf32>
    %172 = vector.extract_strided_slice %115 {offsets = [8, 0], sizes = [1, 128], strides = [1, 1]} : vector<9x128xf32> to vector<1x128xf32>
    %173 = vector.shape_cast %172 : vector<1x128xf32> to vector<128xf32>
    %174 = vector.shape_cast %173 : vector<128xf32> to vector<1x128xf32>
    %175 = vector.broadcast %174 : vector<1x128xf32> to vector<16x128xf32>
    %176 = arith.mulf %171, %175 : vector<16x128xf32>
    %177 = arith.addf %170, %176 : vector<16x128xf32>
    %c0_36 = arith.constant 0 : index
    %c1_37 = arith.constant 1 : index
    %c0_38 = arith.constant 0 : index
    %c0_39 = arith.constant 0 : index
    %178 = vector.load %arg4[%c0_36, %c1_37, %c0_38, %c0_39] : memref<3x2x1x128xf32, #tpu.memory_space<vmem>>, vector<1x1x1x128xf32>
    %179 = vector.shape_cast %178 : vector<1x1x1x128xf32> to vector<1x128xf32>
    %180 = vector.broadcast %179 : vector<1x128xf32> to vector<16x128xf32>
    %181 = arith.addf %177, %180 : vector<16x128xf32>
    %cst_40 = arith.constant dense<0.000000e+00> : vector<128xf32>
    %182 = vector.multi_reduction <add>, %181, %cst_40 [0] : vector<16x128xf32> to vector<128xf32>
    %183 = vector.shape_cast %182 : vector<128xf32> to vector<1x128xf32>
    %cst_41 = arith.constant 6.250000e-02 : f32
    %184 = vector.broadcast %cst_41 : f32 to vector<1x128xf32>
    %185 = arith.mulf %183, %184 : vector<1x128xf32>
    %186 = vector.broadcast %185 : vector<1x128xf32> to vector<16x128xf32>
    %187 = arith.subf %181, %186 : vector<16x128xf32>
    %188 = arith.mulf %187, %187 : vector<16x128xf32>
    %cst_42 = arith.constant dense<0.000000e+00> : vector<128xf32>
    %189 = vector.multi_reduction <add>, %188, %cst_42 [0] : vector<16x128xf32> to vector<128xf32>
    %190 = vector.shape_cast %189 : vector<128xf32> to vector<1x128xf32>
    %cst_43 = arith.constant 6.250000e-02 : f32
    %191 = vector.broadcast %cst_43 : f32 to vector<1x128xf32>
    %192 = arith.mulf %190, %191 : vector<1x128xf32>
    %cst_44 = arith.constant 9.99999974E-6 : f32
    %193 = vector.broadcast %cst_44 : f32 to vector<1x128xf32>
    %194 = arith.addf %192, %193 : vector<1x128xf32>
    %195 = math.rsqrt %194 : vector<1x128xf32>
    %196 = vector.broadcast %195 : vector<1x128xf32> to vector<16x128xf32>
    %197 = arith.mulf %187, %196 : vector<16x128xf32>
    %c0_45 = arith.constant 0 : index
    %c1_46 = arith.constant 1 : index
    %c0_47 = arith.constant 0 : index
    %c0_48 = arith.constant 0 : index
    %198 = vector.load %arg5[%c0_45, %c1_46, %c0_47, %c0_48] : memref<3x2x128x128xf32, #tpu.memory_space<vmem>>, vector<1x1x128x128xf32>
    %199 = vector.shape_cast %198 : vector<1x1x128x128xf32> to vector<128x128xf32>
    %cst_49 = arith.constant dense<0.000000e+00> : vector<16x128xf32>
    %200 = tpu.matmul %197, %199, %cst_49 {dimension_numbers = #tpu.dot_dimension_numbers<[1], [0], [0], [1], [0, 0, 1, 1], [], []>} : vector<16x128xf32>, vector<128x128xf32>, vector<16x128xf32> -> vector<16x128xf32>
    %c0_50 = arith.constant 0 : index
    %c1_51 = arith.constant 1 : index
    %c0_52 = arith.constant 0 : index
    %c0_53 = arith.constant 0 : index
    %201 = vector.load %arg6[%c0_50, %c1_51, %c0_52, %c0_53] : memref<3x2x1x128xf32, #tpu.memory_space<vmem>>, vector<1x1x1x128xf32>
    %202 = vector.shape_cast %201 : vector<1x1x1x128xf32> to vector<1x128xf32>
    %203 = vector.broadcast %202 : vector<1x128xf32> to vector<16x128xf32>
    %204 = arith.addf %200, %203 : vector<16x128xf32>
    %cst_54 = arith.constant dense<0.000000e+00> : vector<128xf32>
    %205 = vector.multi_reduction <add>, %204, %cst_54 [0] : vector<16x128xf32> to vector<128xf32>
    %206 = vector.shape_cast %205 : vector<128xf32> to vector<1x128xf32>
    %cst_55 = arith.constant 6.250000e-02 : f32
    %207 = vector.broadcast %cst_55 : f32 to vector<1x128xf32>
    %208 = arith.mulf %206, %207 : vector<1x128xf32>
    %209 = vector.broadcast %208 : vector<1x128xf32> to vector<16x128xf32>
    %210 = arith.subf %204, %209 : vector<16x128xf32>
    %211 = arith.mulf %210, %210 : vector<16x128xf32>
    %cst_56 = arith.constant dense<0.000000e+00> : vector<128xf32>
    %212 = vector.multi_reduction <add>, %211, %cst_56 [0] : vector<16x128xf32> to vector<128xf32>
    %213 = vector.shape_cast %212 : vector<128xf32> to vector<1x128xf32>
    %cst_57 = arith.constant 6.250000e-02 : f32
    %214 = vector.broadcast %cst_57 : f32 to vector<1x128xf32>
    %215 = arith.mulf %213, %214 : vector<1x128xf32>
    %cst_58 = arith.constant 9.99999974E-6 : f32
    %216 = vector.broadcast %cst_58 : f32 to vector<1x128xf32>
    %217 = arith.addf %215, %216 : vector<1x128xf32>
    %218 = math.rsqrt %217 : vector<1x128xf32>
    %219 = vector.broadcast %218 : vector<1x128xf32> to vector<16x128xf32>
    %220 = arith.mulf %210, %219 : vector<16x128xf32>
    %221 = arith.addf %1, %220 : vector<16x128xf32>
    %cst_59 = arith.constant dense<0.000000e+00> : vector<144x128xf32>
    %222 = tpu.matmul %2, %221, %cst_59 {dimension_numbers = #tpu.dot_dimension_numbers<[1], [0], [0], [1], [0, 0, 1, 1], [], []>} : vector<144x16xf32>, vector<16x128xf32>, vector<144x128xf32> -> vector<144x128xf32>
    %c1_60 = arith.constant 1 : index
    %c0_61 = arith.constant 0 : index
    %c0_62 = arith.constant 0 : index
    %c0_63 = arith.constant 0 : index
    %223 = vector.load %arg3[%c1_60, %c0_61, %c0_62, %c0_63] : memref<3x2x9x128xf32, #tpu.memory_space<vmem>>, vector<1x1x9x128xf32>
    %224 = vector.shape_cast %223 : vector<1x1x9x128xf32> to vector<9x128xf32>
    %225 = vector.extract_strided_slice %222 {offsets = [0, 0], sizes = [16, 128], strides = [1, 1]} : vector<144x128xf32> to vector<16x128xf32>
    %226 = vector.extract_strided_slice %224 {offsets = [0, 0], sizes = [1, 128], strides = [1, 1]} : vector<9x128xf32> to vector<1x128xf32>
    %227 = vector.shape_cast %226 : vector<1x128xf32> to vector<128xf32>
    %228 = vector.shape_cast %227 : vector<128xf32> to vector<1x128xf32>
    %229 = vector.broadcast %228 : vector<1x128xf32> to vector<16x128xf32>
    %230 = arith.mulf %225, %229 : vector<16x128xf32>
    %231 = vector.extract_strided_slice %222 {offsets = [16, 0], sizes = [16, 128], strides = [1, 1]} : vector<144x128xf32> to vector<16x128xf32>
    %232 = vector.extract_strided_slice %224 {offsets = [1, 0], sizes = [1, 128], strides = [1, 1]} : vector<9x128xf32> to vector<1x128xf32>
    %233 = vector.shape_cast %232 : vector<1x128xf32> to vector<128xf32>
    %234 = vector.shape_cast %233 : vector<128xf32> to vector<1x128xf32>
    %235 = vector.broadcast %234 : vector<1x128xf32> to vector<16x128xf32>
    %236 = arith.mulf %231, %235 : vector<16x128xf32>
    %237 = arith.addf %230, %236 : vector<16x128xf32>
    %238 = vector.extract_strided_slice %222 {offsets = [32, 0], sizes = [16, 128], strides = [1, 1]} : vector<144x128xf32> to vector<16x128xf32>
    %239 = vector.extract_strided_slice %224 {offsets = [2, 0], sizes = [1, 128], strides = [1, 1]} : vector<9x128xf32> to vector<1x128xf32>
    %240 = vector.shape_cast %239 : vector<1x128xf32> to vector<128xf32>
    %241 = vector.shape_cast %240 : vector<128xf32> to vector<1x128xf32>
    %242 = vector.broadcast %241 : vector<1x128xf32> to vector<16x128xf32>
    %243 = arith.mulf %238, %242 : vector<16x128xf32>
    %244 = arith.addf %237, %243 : vector<16x128xf32>
    %245 = vector.extract_strided_slice %222 {offsets = [48, 0], sizes = [16, 128], strides = [1, 1]} : vector<144x128xf32> to vector<16x128xf32>
    %246 = vector.extract_strided_slice %224 {offsets = [3, 0], sizes = [1, 128], strides = [1, 1]} : vector<9x128xf32> to vector<1x128xf32>
    %247 = vector.shape_cast %246 : vector<1x128xf32> to vector<128xf32>
    %248 = vector.shape_cast %247 : vector<128xf32> to vector<1x128xf32>
    %249 = vector.broadcast %248 : vector<1x128xf32> to vector<16x128xf32>
    %250 = arith.mulf %245, %249 : vector<16x128xf32>
    %251 = arith.addf %244, %250 : vector<16x128xf32>
    %252 = vector.extract_strided_slice %222 {offsets = [64, 0], sizes = [16, 128], strides = [1, 1]} : vector<144x128xf32> to vector<16x128xf32>
    %253 = vector.extract_strided_slice %224 {offsets = [4, 0], sizes = [1, 128], strides = [1, 1]} : vector<9x128xf32> to vector<1x128xf32>
    %254 = vector.shape_cast %253 : vector<1x128xf32> to vector<128xf32>
    %255 = vector.shape_cast %254 : vector<128xf32> to vector<1x128xf32>
    %256 = vector.broadcast %255 : vector<1x128xf32> to vector<16x128xf32>
    %257 = arith.mulf %252, %256 : vector<16x128xf32>
    %258 = arith.addf %251, %257 : vector<16x128xf32>
    %259 = vector.extract_strided_slice %222 {offsets = [80, 0], sizes = [16, 128], strides = [1, 1]} : vector<144x128xf32> to vector<16x128xf32>
    %260 = vector.extract_strided_slice %224 {offsets = [5, 0], sizes = [1, 128], strides = [1, 1]} : vector<9x128xf32> to vector<1x128xf32>
    %261 = vector.shape_cast %260 : vector<1x128xf32> to vector<128xf32>
    %262 = vector.shape_cast %261 : vector<128xf32> to vector<1x128xf32>
    %263 = vector.broadcast %262 : vector<1x128xf32> to vector<16x128xf32>
    %264 = arith.mulf %259, %263 : vector<16x128xf32>
    %265 = arith.addf %258, %264 : vector<16x128xf32>
    %266 = vector.extract_strided_slice %222 {offsets = [96, 0], sizes = [16, 128], strides = [1, 1]} : vector<144x128xf32> to vector<16x128xf32>
    %267 = vector.extract_strided_slice %224 {offsets = [6, 0], sizes = [1, 128], strides = [1, 1]} : vector<9x128xf32> to vector<1x128xf32>
    %268 = vector.shape_cast %267 : vector<1x128xf32> to vector<128xf32>
    %269 = vector.shape_cast %268 : vector<128xf32> to vector<1x128xf32>
    %270 = vector.broadcast %269 : vector<1x128xf32> to vector<16x128xf32>
    %271 = arith.mulf %266, %270 : vector<16x128xf32>
    %272 = arith.addf %265, %271 : vector<16x128xf32>
    %273 = vector.extract_strided_slice %222 {offsets = [112, 0], sizes = [16, 128], strides = [1, 1]} : vector<144x128xf32> to vector<16x128xf32>
    %274 = vector.extract_strided_slice %224 {offsets = [7, 0], sizes = [1, 128], strides = [1, 1]} : vector<9x128xf32> to vector<1x128xf32>
    %275 = vector.shape_cast %274 : vector<1x128xf32> to vector<128xf32>
    %276 = vector.shape_cast %275 : vector<128xf32> to vector<1x128xf32>
    %277 = vector.broadcast %276 : vector<1x128xf32> to vector<16x128xf32>
    %278 = arith.mulf %273, %277 : vector<16x128xf32>
    %279 = arith.addf %272, %278 : vector<16x128xf32>
    %280 = vector.extract_strided_slice %222 {offsets = [128, 0], sizes = [16, 128], strides = [1, 1]} : vector<144x128xf32> to vector<16x128xf32>
    %281 = vector.extract_strided_slice %224 {offsets = [8, 0], sizes = [1, 128], strides = [1, 1]} : vector<9x128xf32> to vector<1x128xf32>
    %282 = vector.shape_cast %281 : vector<1x128xf32> to vector<128xf32>
    %283 = vector.shape_cast %282 : vector<128xf32> to vector<1x128xf32>
    %284 = vector.broadcast %283 : vector<1x128xf32> to vector<16x128xf32>
    %285 = arith.mulf %280, %284 : vector<16x128xf32>
    %286 = arith.addf %279, %285 : vector<16x128xf32>
    %c1_64 = arith.constant 1 : index
    %c0_65 = arith.constant 0 : index
    %c0_66 = arith.constant 0 : index
    %c0_67 = arith.constant 0 : index
    %287 = vector.load %arg4[%c1_64, %c0_65, %c0_66, %c0_67] : memref<3x2x1x128xf32, #tpu.memory_space<vmem>>, vector<1x1x1x128xf32>
    %288 = vector.shape_cast %287 : vector<1x1x1x128xf32> to vector<1x128xf32>
    %289 = vector.broadcast %288 : vector<1x128xf32> to vector<16x128xf32>
    %290 = arith.addf %286, %289 : vector<16x128xf32>
    %cst_68 = arith.constant dense<0.000000e+00> : vector<128xf32>
    %291 = vector.multi_reduction <add>, %290, %cst_68 [0] : vector<16x128xf32> to vector<128xf32>
    %292 = vector.shape_cast %291 : vector<128xf32> to vector<1x128xf32>
    %cst_69 = arith.constant 6.250000e-02 : f32
    %293 = vector.broadcast %cst_69 : f32 to vector<1x128xf32>
    %294 = arith.mulf %292, %293 : vector<1x128xf32>
    %295 = vector.broadcast %294 : vector<1x128xf32> to vector<16x128xf32>
    %296 = arith.subf %290, %295 : vector<16x128xf32>
    %297 = arith.mulf %296, %296 : vector<16x128xf32>
    %cst_70 = arith.constant dense<0.000000e+00> : vector<128xf32>
    %298 = vector.multi_reduction <add>, %297, %cst_70 [0] : vector<16x128xf32> to vector<128xf32>
    %299 = vector.shape_cast %298 : vector<128xf32> to vector<1x128xf32>
    %cst_71 = arith.constant 6.250000e-02 : f32
    %300 = vector.broadcast %cst_71 : f32 to vector<1x128xf32>
    %301 = arith.mulf %299, %300 : vector<1x128xf32>
    %cst_72 = arith.constant 9.99999974E-6 : f32
    %302 = vector.broadcast %cst_72 : f32 to vector<1x128xf32>
    %303 = arith.addf %301, %302 : vector<1x128xf32>
    %304 = math.rsqrt %303 : vector<1x128xf32>
    %305 = vector.broadcast %304 : vector<1x128xf32> to vector<16x128xf32>
    %306 = arith.mulf %296, %305 : vector<16x128xf32>
    %c1_73 = arith.constant 1 : index
    %c0_74 = arith.constant 0 : index
    %c0_75 = arith.constant 0 : index
    %c0_76 = arith.constant 0 : index
    %307 = vector.load %arg5[%c1_73, %c0_74, %c0_75, %c0_76] : memref<3x2x128x128xf32, #tpu.memory_space<vmem>>, vector<1x1x128x128xf32>
    %308 = vector.shape_cast %307 : vector<1x1x128x128xf32> to vector<128x128xf32>
    %cst_77 = arith.constant dense<0.000000e+00> : vector<16x128xf32>
    %309 = tpu.matmul %306, %308, %cst_77 {dimension_numbers = #tpu.dot_dimension_numbers<[1], [0], [0], [1], [0, 0, 1, 1], [], []>} : vector<16x128xf32>, vector<128x128xf32>, vector<16x128xf32> -> vector<16x128xf32>
    %c1_78 = arith.constant 1 : index
    %c0_79 = arith.constant 0 : index
    %c0_80 = arith.constant 0 : index
    %c0_81 = arith.constant 0 : index
    %310 = vector.load %arg6[%c1_78, %c0_79, %c0_80, %c0_81] : memref<3x2x1x128xf32, #tpu.memory_space<vmem>>, vector<1x1x1x128xf32>
    %311 = vector.shape_cast %310 : vector<1x1x1x128xf32> to vector<1x128xf32>
    %312 = vector.broadcast %311 : vector<1x128xf32> to vector<16x128xf32>
    %313 = arith.addf %309, %312 : vector<16x128xf32>
    %cst_82 = arith.constant dense<0.000000e+00> : vector<128xf32>
    %314 = vector.multi_reduction <add>, %313, %cst_82 [0] : vector<16x128xf32> to vector<128xf32>
    %315 = vector.shape_cast %314 : vector<128xf32> to vector<1x128xf32>
    %cst_83 = arith.constant 6.250000e-02 : f32
    %316 = vector.broadcast %cst_83 : f32 to vector<1x128xf32>
    %317 = arith.mulf %315, %316 : vector<1x128xf32>
    %318 = vector.broadcast %317 : vector<1x128xf32> to vector<16x128xf32>
    %319 = arith.subf %313, %318 : vector<16x128xf32>
    %320 = arith.mulf %319, %319 : vector<16x128xf32>
    %cst_84 = arith.constant dense<0.000000e+00> : vector<128xf32>
    %321 = vector.multi_reduction <add>, %320, %cst_84 [0] : vector<16x128xf32> to vector<128xf32>
    %322 = vector.shape_cast %321 : vector<128xf32> to vector<1x128xf32>
    %cst_85 = arith.constant 6.250000e-02 : f32
    %323 = vector.broadcast %cst_85 : f32 to vector<1x128xf32>
    %324 = arith.mulf %322, %323 : vector<1x128xf32>
    %cst_86 = arith.constant 9.99999974E-6 : f32
    %325 = vector.broadcast %cst_86 : f32 to vector<1x128xf32>
    %326 = arith.addf %324, %325 : vector<1x128xf32>
    %327 = math.rsqrt %326 : vector<1x128xf32>
    %328 = vector.broadcast %327 : vector<1x128xf32> to vector<16x128xf32>
    %329 = arith.mulf %319, %328 : vector<16x128xf32>
    %cst_87 = arith.constant 0.000000e+00 : f32
    %330 = vector.broadcast %cst_87 : f32 to vector<16x128xf32>
    %331 = arith.maximumf %329, %330 : vector<16x128xf32>
    %cst_88 = arith.constant dense<0.000000e+00> : vector<144x128xf32>
    %332 = tpu.matmul %2, %331, %cst_88 {dimension_numbers = #tpu.dot_dimension_numbers<[1], [0], [0], [1], [0, 0, 1, 1], [], []>} : vector<144x16xf32>, vector<16x128xf32>, vector<144x128xf32> -> vector<144x128xf32>
    %c1_89 = arith.constant 1 : index
    %c1_90 = arith.constant 1 : index
    %c0_91 = arith.constant 0 : index
    %c0_92 = arith.constant 0 : index
    %333 = vector.load %arg3[%c1_89, %c1_90, %c0_91, %c0_92] : memref<3x2x9x128xf32, #tpu.memory_space<vmem>>, vector<1x1x9x128xf32>
    %334 = vector.shape_cast %333 : vector<1x1x9x128xf32> to vector<9x128xf32>
    %335 = vector.extract_strided_slice %332 {offsets = [0, 0], sizes = [16, 128], strides = [1, 1]} : vector<144x128xf32> to vector<16x128xf32>
    %336 = vector.extract_strided_slice %334 {offsets = [0, 0], sizes = [1, 128], strides = [1, 1]} : vector<9x128xf32> to vector<1x128xf32>
    %337 = vector.shape_cast %336 : vector<1x128xf32> to vector<128xf32>
    %338 = vector.shape_cast %337 : vector<128xf32> to vector<1x128xf32>
    %339 = vector.broadcast %338 : vector<1x128xf32> to vector<16x128xf32>
    %340 = arith.mulf %335, %339 : vector<16x128xf32>
    %341 = vector.extract_strided_slice %332 {offsets = [16, 0], sizes = [16, 128], strides = [1, 1]} : vector<144x128xf32> to vector<16x128xf32>
    %342 = vector.extract_strided_slice %334 {offsets = [1, 0], sizes = [1, 128], strides = [1, 1]} : vector<9x128xf32> to vector<1x128xf32>
    %343 = vector.shape_cast %342 : vector<1x128xf32> to vector<128xf32>
    %344 = vector.shape_cast %343 : vector<128xf32> to vector<1x128xf32>
    %345 = vector.broadcast %344 : vector<1x128xf32> to vector<16x128xf32>
    %346 = arith.mulf %341, %345 : vector<16x128xf32>
    %347 = arith.addf %340, %346 : vector<16x128xf32>
    %348 = vector.extract_strided_slice %332 {offsets = [32, 0], sizes = [16, 128], strides = [1, 1]} : vector<144x128xf32> to vector<16x128xf32>
    %349 = vector.extract_strided_slice %334 {offsets = [2, 0], sizes = [1, 128], strides = [1, 1]} : vector<9x128xf32> to vector<1x128xf32>
    %350 = vector.shape_cast %349 : vector<1x128xf32> to vector<128xf32>
    %351 = vector.shape_cast %350 : vector<128xf32> to vector<1x128xf32>
    %352 = vector.broadcast %351 : vector<1x128xf32> to vector<16x128xf32>
    %353 = arith.mulf %348, %352 : vector<16x128xf32>
    %354 = arith.addf %347, %353 : vector<16x128xf32>
    %355 = vector.extract_strided_slice %332 {offsets = [48, 0], sizes = [16, 128], strides = [1, 1]} : vector<144x128xf32> to vector<16x128xf32>
    %356 = vector.extract_strided_slice %334 {offsets = [3, 0], sizes = [1, 128], strides = [1, 1]} : vector<9x128xf32> to vector<1x128xf32>
    %357 = vector.shape_cast %356 : vector<1x128xf32> to vector<128xf32>
    %358 = vector.shape_cast %357 : vector<128xf32> to vector<1x128xf32>
    %359 = vector.broadcast %358 : vector<1x128xf32> to vector<16x128xf32>
    %360 = arith.mulf %355, %359 : vector<16x128xf32>
    %361 = arith.addf %354, %360 : vector<16x128xf32>
    %362 = vector.extract_strided_slice %332 {offsets = [64, 0], sizes = [16, 128], strides = [1, 1]} : vector<144x128xf32> to vector<16x128xf32>
    %363 = vector.extract_strided_slice %334 {offsets = [4, 0], sizes = [1, 128], strides = [1, 1]} : vector<9x128xf32> to vector<1x128xf32>
    %364 = vector.shape_cast %363 : vector<1x128xf32> to vector<128xf32>
    %365 = vector.shape_cast %364 : vector<128xf32> to vector<1x128xf32>
    %366 = vector.broadcast %365 : vector<1x128xf32> to vector<16x128xf32>
    %367 = arith.mulf %362, %366 : vector<16x128xf32>
    %368 = arith.addf %361, %367 : vector<16x128xf32>
    %369 = vector.extract_strided_slice %332 {offsets = [80, 0], sizes = [16, 128], strides = [1, 1]} : vector<144x128xf32> to vector<16x128xf32>
    %370 = vector.extract_strided_slice %334 {offsets = [5, 0], sizes = [1, 128], strides = [1, 1]} : vector<9x128xf32> to vector<1x128xf32>
    %371 = vector.shape_cast %370 : vector<1x128xf32> to vector<128xf32>
    %372 = vector.shape_cast %371 : vector<128xf32> to vector<1x128xf32>
    %373 = vector.broadcast %372 : vector<1x128xf32> to vector<16x128xf32>
    %374 = arith.mulf %369, %373 : vector<16x128xf32>
    %375 = arith.addf %368, %374 : vector<16x128xf32>
    %376 = vector.extract_strided_slice %332 {offsets = [96, 0], sizes = [16, 128], strides = [1, 1]} : vector<144x128xf32> to vector<16x128xf32>
    %377 = vector.extract_strided_slice %334 {offsets = [6, 0], sizes = [1, 128], strides = [1, 1]} : vector<9x128xf32> to vector<1x128xf32>
    %378 = vector.shape_cast %377 : vector<1x128xf32> to vector<128xf32>
    %379 = vector.shape_cast %378 : vector<128xf32> to vector<1x128xf32>
    %380 = vector.broadcast %379 : vector<1x128xf32> to vector<16x128xf32>
    %381 = arith.mulf %376, %380 : vector<16x128xf32>
    %382 = arith.addf %375, %381 : vector<16x128xf32>
    %383 = vector.extract_strided_slice %332 {offsets = [112, 0], sizes = [16, 128], strides = [1, 1]} : vector<144x128xf32> to vector<16x128xf32>
    %384 = vector.extract_strided_slice %334 {offsets = [7, 0], sizes = [1, 128], strides = [1, 1]} : vector<9x128xf32> to vector<1x128xf32>
    %385 = vector.shape_cast %384 : vector<1x128xf32> to vector<128xf32>
    %386 = vector.shape_cast %385 : vector<128xf32> to vector<1x128xf32>
    %387 = vector.broadcast %386 : vector<1x128xf32> to vector<16x128xf32>
    %388 = arith.mulf %383, %387 : vector<16x128xf32>
    %389 = arith.addf %382, %388 : vector<16x128xf32>
    %390 = vector.extract_strided_slice %332 {offsets = [128, 0], sizes = [16, 128], strides = [1, 1]} : vector<144x128xf32> to vector<16x128xf32>
    %391 = vector.extract_strided_slice %334 {offsets = [8, 0], sizes = [1, 128], strides = [1, 1]} : vector<9x128xf32> to vector<1x128xf32>
    %392 = vector.shape_cast %391 : vector<1x128xf32> to vector<128xf32>
    %393 = vector.shape_cast %392 : vector<128xf32> to vector<1x128xf32>
    %394 = vector.broadcast %393 : vector<1x128xf32> to vector<16x128xf32>
    %395 = arith.mulf %390, %394 : vector<16x128xf32>
    %396 = arith.addf %389, %395 : vector<16x128xf32>
    %c1_93 = arith.constant 1 : index
    %c1_94 = arith.constant 1 : index
    %c0_95 = arith.constant 0 : index
    %c0_96 = arith.constant 0 : index
    %397 = vector.load %arg4[%c1_93, %c1_94, %c0_95, %c0_96] : memref<3x2x1x128xf32, #tpu.memory_space<vmem>>, vector<1x1x1x128xf32>
    %398 = vector.shape_cast %397 : vector<1x1x1x128xf32> to vector<1x128xf32>
    %399 = vector.broadcast %398 : vector<1x128xf32> to vector<16x128xf32>
    %400 = arith.addf %396, %399 : vector<16x128xf32>
    %cst_97 = arith.constant dense<0.000000e+00> : vector<128xf32>
    %401 = vector.multi_reduction <add>, %400, %cst_97 [0] : vector<16x128xf32> to vector<128xf32>
    %402 = vector.shape_cast %401 : vector<128xf32> to vector<1x128xf32>
    %cst_98 = arith.constant 6.250000e-02 : f32
    %403 = vector.broadcast %cst_98 : f32 to vector<1x128xf32>
    %404 = arith.mulf %402, %403 : vector<1x128xf32>
    %405 = vector.broadcast %404 : vector<1x128xf32> to vector<16x128xf32>
    %406 = arith.subf %400, %405 : vector<16x128xf32>
    %407 = arith.mulf %406, %406 : vector<16x128xf32>
    %cst_99 = arith.constant dense<0.000000e+00> : vector<128xf32>
    %408 = vector.multi_reduction <add>, %407, %cst_99 [0] : vector<16x128xf32> to vector<128xf32>
    %409 = vector.shape_cast %408 : vector<128xf32> to vector<1x128xf32>
    %cst_100 = arith.constant 6.250000e-02 : f32
    %410 = vector.broadcast %cst_100 : f32 to vector<1x128xf32>
    %411 = arith.mulf %409, %410 : vector<1x128xf32>
    %cst_101 = arith.constant 9.99999974E-6 : f32
    %412 = vector.broadcast %cst_101 : f32 to vector<1x128xf32>
    %413 = arith.addf %411, %412 : vector<1x128xf32>
    %414 = math.rsqrt %413 : vector<1x128xf32>
    %415 = vector.broadcast %414 : vector<1x128xf32> to vector<16x128xf32>
    %416 = arith.mulf %406, %415 : vector<16x128xf32>
    %c1_102 = arith.constant 1 : index
    %c1_103 = arith.constant 1 : index
    %c0_104 = arith.constant 0 : index
    %c0_105 = arith.constant 0 : index
    %417 = vector.load %arg5[%c1_102, %c1_103, %c0_104, %c0_105] : memref<3x2x128x128xf32, #tpu.memory_space<vmem>>, vector<1x1x128x128xf32>
    %418 = vector.shape_cast %417 : vector<1x1x128x128xf32> to vector<128x128xf32>
    %cst_106 = arith.constant dense<0.000000e+00> : vector<16x128xf32>
    %419 = tpu.matmul %416, %418, %cst_106 {dimension_numbers = #tpu.dot_dimension_numbers<[1], [0], [0], [1], [0, 0, 1, 1], [], []>} : vector<16x128xf32>, vector<128x128xf32>, vector<16x128xf32> -> vector<16x128xf32>
    %c1_107 = arith.constant 1 : index
    %c1_108 = arith.constant 1 : index
    %c0_109 = arith.constant 0 : index
    %c0_110 = arith.constant 0 : index
    %420 = vector.load %arg6[%c1_107, %c1_108, %c0_109, %c0_110] : memref<3x2x1x128xf32, #tpu.memory_space<vmem>>, vector<1x1x1x128xf32>
    %421 = vector.shape_cast %420 : vector<1x1x1x128xf32> to vector<1x128xf32>
    %422 = vector.broadcast %421 : vector<1x128xf32> to vector<16x128xf32>
    %423 = arith.addf %419, %422 : vector<16x128xf32>
    %cst_111 = arith.constant dense<0.000000e+00> : vector<128xf32>
    %424 = vector.multi_reduction <add>, %423, %cst_111 [0] : vector<16x128xf32> to vector<128xf32>
    %425 = vector.shape_cast %424 : vector<128xf32> to vector<1x128xf32>
    %cst_112 = arith.constant 6.250000e-02 : f32
    %426 = vector.broadcast %cst_112 : f32 to vector<1x128xf32>
    %427 = arith.mulf %425, %426 : vector<1x128xf32>
    %428 = vector.broadcast %427 : vector<1x128xf32> to vector<16x128xf32>
    %429 = arith.subf %423, %428 : vector<16x128xf32>
    %430 = arith.mulf %429, %429 : vector<16x128xf32>
    %cst_113 = arith.constant dense<0.000000e+00> : vector<128xf32>
    %431 = vector.multi_reduction <add>, %430, %cst_113 [0] : vector<16x128xf32> to vector<128xf32>
    %432 = vector.shape_cast %431 : vector<128xf32> to vector<1x128xf32>
    %cst_114 = arith.constant 6.250000e-02 : f32
    %433 = vector.broadcast %cst_114 : f32 to vector<1x128xf32>
    %434 = arith.mulf %432, %433 : vector<1x128xf32>
    %cst_115 = arith.constant 9.99999974E-6 : f32
    %435 = vector.broadcast %cst_115 : f32 to vector<1x128xf32>
    %436 = arith.addf %434, %435 : vector<1x128xf32>
    %437 = math.rsqrt %436 : vector<1x128xf32>
    %438 = vector.broadcast %437 : vector<1x128xf32> to vector<16x128xf32>
    %439 = arith.mulf %429, %438 : vector<16x128xf32>
    %440 = arith.addf %221, %439 : vector<16x128xf32>
    %cst_116 = arith.constant dense<0.000000e+00> : vector<144x128xf32>
    %441 = tpu.matmul %2, %440, %cst_116 {dimension_numbers = #tpu.dot_dimension_numbers<[1], [0], [0], [1], [0, 0, 1, 1], [], []>} : vector<144x16xf32>, vector<16x128xf32>, vector<144x128xf32> -> vector<144x128xf32>
    %c2 = arith.constant 2 : index
    %c0_117 = arith.constant 0 : index
    %c0_118 = arith.constant 0 : index
    %c0_119 = arith.constant 0 : index
    %442 = vector.load %arg3[%c2, %c0_117, %c0_118, %c0_119] : memref<3x2x9x128xf32, #tpu.memory_space<vmem>>, vector<1x1x9x128xf32>
    %443 = vector.shape_cast %442 : vector<1x1x9x128xf32> to vector<9x128xf32>
    %444 = vector.extract_strided_slice %441 {offsets = [0, 0], sizes = [16, 128], strides = [1, 1]} : vector<144x128xf32> to vector<16x128xf32>
    %445 = vector.extract_strided_slice %443 {offsets = [0, 0], sizes = [1, 128], strides = [1, 1]} : vector<9x128xf32> to vector<1x128xf32>
    %446 = vector.shape_cast %445 : vector<1x128xf32> to vector<128xf32>
    %447 = vector.shape_cast %446 : vector<128xf32> to vector<1x128xf32>
    %448 = vector.broadcast %447 : vector<1x128xf32> to vector<16x128xf32>
    %449 = arith.mulf %444, %448 : vector<16x128xf32>
    %450 = vector.extract_strided_slice %441 {offsets = [16, 0], sizes = [16, 128], strides = [1, 1]} : vector<144x128xf32> to vector<16x128xf32>
    %451 = vector.extract_strided_slice %443 {offsets = [1, 0], sizes = [1, 128], strides = [1, 1]} : vector<9x128xf32> to vector<1x128xf32>
    %452 = vector.shape_cast %451 : vector<1x128xf32> to vector<128xf32>
    %453 = vector.shape_cast %452 : vector<128xf32> to vector<1x128xf32>
    %454 = vector.broadcast %453 : vector<1x128xf32> to vector<16x128xf32>
    %455 = arith.mulf %450, %454 : vector<16x128xf32>
    %456 = arith.addf %449, %455 : vector<16x128xf32>
    %457 = vector.extract_strided_slice %441 {offsets = [32, 0], sizes = [16, 128], strides = [1, 1]} : vector<144x128xf32> to vector<16x128xf32>
    %458 = vector.extract_strided_slice %443 {offsets = [2, 0], sizes = [1, 128], strides = [1, 1]} : vector<9x128xf32> to vector<1x128xf32>
    %459 = vector.shape_cast %458 : vector<1x128xf32> to vector<128xf32>
    %460 = vector.shape_cast %459 : vector<128xf32> to vector<1x128xf32>
    %461 = vector.broadcast %460 : vector<1x128xf32> to vector<16x128xf32>
    %462 = arith.mulf %457, %461 : vector<16x128xf32>
    %463 = arith.addf %456, %462 : vector<16x128xf32>
    %464 = vector.extract_strided_slice %441 {offsets = [48, 0], sizes = [16, 128], strides = [1, 1]} : vector<144x128xf32> to vector<16x128xf32>
    %465 = vector.extract_strided_slice %443 {offsets = [3, 0], sizes = [1, 128], strides = [1, 1]} : vector<9x128xf32> to vector<1x128xf32>
    %466 = vector.shape_cast %465 : vector<1x128xf32> to vector<128xf32>
    %467 = vector.shape_cast %466 : vector<128xf32> to vector<1x128xf32>
    %468 = vector.broadcast %467 : vector<1x128xf32> to vector<16x128xf32>
    %469 = arith.mulf %464, %468 : vector<16x128xf32>
    %470 = arith.addf %463, %469 : vector<16x128xf32>
    %471 = vector.extract_strided_slice %441 {offsets = [64, 0], sizes = [16, 128], strides = [1, 1]} : vector<144x128xf32> to vector<16x128xf32>
    %472 = vector.extract_strided_slice %443 {offsets = [4, 0], sizes = [1, 128], strides = [1, 1]} : vector<9x128xf32> to vector<1x128xf32>
    %473 = vector.shape_cast %472 : vector<1x128xf32> to vector<128xf32>
    %474 = vector.shape_cast %473 : vector<128xf32> to vector<1x128xf32>
    %475 = vector.broadcast %474 : vector<1x128xf32> to vector<16x128xf32>
    %476 = arith.mulf %471, %475 : vector<16x128xf32>
    %477 = arith.addf %470, %476 : vector<16x128xf32>
    %478 = vector.extract_strided_slice %441 {offsets = [80, 0], sizes = [16, 128], strides = [1, 1]} : vector<144x128xf32> to vector<16x128xf32>
    %479 = vector.extract_strided_slice %443 {offsets = [5, 0], sizes = [1, 128], strides = [1, 1]} : vector<9x128xf32> to vector<1x128xf32>
    %480 = vector.shape_cast %479 : vector<1x128xf32> to vector<128xf32>
    %481 = vector.shape_cast %480 : vector<128xf32> to vector<1x128xf32>
    %482 = vector.broadcast %481 : vector<1x128xf32> to vector<16x128xf32>
    %483 = arith.mulf %478, %482 : vector<16x128xf32>
    %484 = arith.addf %477, %483 : vector<16x128xf32>
    %485 = vector.extract_strided_slice %441 {offsets = [96, 0], sizes = [16, 128], strides = [1, 1]} : vector<144x128xf32> to vector<16x128xf32>
    %486 = vector.extract_strided_slice %443 {offsets = [6, 0], sizes = [1, 128], strides = [1, 1]} : vector<9x128xf32> to vector<1x128xf32>
    %487 = vector.shape_cast %486 : vector<1x128xf32> to vector<128xf32>
    %488 = vector.shape_cast %487 : vector<128xf32> to vector<1x128xf32>
    %489 = vector.broadcast %488 : vector<1x128xf32> to vector<16x128xf32>
    %490 = arith.mulf %485, %489 : vector<16x128xf32>
    %491 = arith.addf %484, %490 : vector<16x128xf32>
    %492 = vector.extract_strided_slice %441 {offsets = [112, 0], sizes = [16, 128], strides = [1, 1]} : vector<144x128xf32> to vector<16x128xf32>
    %493 = vector.extract_strided_slice %443 {offsets = [7, 0], sizes = [1, 128], strides = [1, 1]} : vector<9x128xf32> to vector<1x128xf32>
    %494 = vector.shape_cast %493 : vector<1x128xf32> to vector<128xf32>
    %495 = vector.shape_cast %494 : vector<128xf32> to vector<1x128xf32>
    %496 = vector.broadcast %495 : vector<1x128xf32> to vector<16x128xf32>
    %497 = arith.mulf %492, %496 : vector<16x128xf32>
    %498 = arith.addf %491, %497 : vector<16x128xf32>
    %499 = vector.extract_strided_slice %441 {offsets = [128, 0], sizes = [16, 128], strides = [1, 1]} : vector<144x128xf32> to vector<16x128xf32>
    %500 = vector.extract_strided_slice %443 {offsets = [8, 0], sizes = [1, 128], strides = [1, 1]} : vector<9x128xf32> to vector<1x128xf32>
    %501 = vector.shape_cast %500 : vector<1x128xf32> to vector<128xf32>
    %502 = vector.shape_cast %501 : vector<128xf32> to vector<1x128xf32>
    %503 = vector.broadcast %502 : vector<1x128xf32> to vector<16x128xf32>
    %504 = arith.mulf %499, %503 : vector<16x128xf32>
    %505 = arith.addf %498, %504 : vector<16x128xf32>
    %c2_120 = arith.constant 2 : index
    %c0_121 = arith.constant 0 : index
    %c0_122 = arith.constant 0 : index
    %c0_123 = arith.constant 0 : index
    %506 = vector.load %arg4[%c2_120, %c0_121, %c0_122, %c0_123] : memref<3x2x1x128xf32, #tpu.memory_space<vmem>>, vector<1x1x1x128xf32>
    %507 = vector.shape_cast %506 : vector<1x1x1x128xf32> to vector<1x128xf32>
    %508 = vector.broadcast %507 : vector<1x128xf32> to vector<16x128xf32>
    %509 = arith.addf %505, %508 : vector<16x128xf32>
    %cst_124 = arith.constant dense<0.000000e+00> : vector<128xf32>
    %510 = vector.multi_reduction <add>, %509, %cst_124 [0] : vector<16x128xf32> to vector<128xf32>
    %511 = vector.shape_cast %510 : vector<128xf32> to vector<1x128xf32>
    %cst_125 = arith.constant 6.250000e-02 : f32
    %512 = vector.broadcast %cst_125 : f32 to vector<1x128xf32>
    %513 = arith.mulf %511, %512 : vector<1x128xf32>
    %514 = vector.broadcast %513 : vector<1x128xf32> to vector<16x128xf32>
    %515 = arith.subf %509, %514 : vector<16x128xf32>
    %516 = arith.mulf %515, %515 : vector<16x128xf32>
    %cst_126 = arith.constant dense<0.000000e+00> : vector<128xf32>
    %517 = vector.multi_reduction <add>, %516, %cst_126 [0] : vector<16x128xf32> to vector<128xf32>
    %518 = vector.shape_cast %517 : vector<128xf32> to vector<1x128xf32>
    %cst_127 = arith.constant 6.250000e-02 : f32
    %519 = vector.broadcast %cst_127 : f32 to vector<1x128xf32>
    %520 = arith.mulf %518, %519 : vector<1x128xf32>
    %cst_128 = arith.constant 9.99999974E-6 : f32
    %521 = vector.broadcast %cst_128 : f32 to vector<1x128xf32>
    %522 = arith.addf %520, %521 : vector<1x128xf32>
    %523 = math.rsqrt %522 : vector<1x128xf32>
    %524 = vector.broadcast %523 : vector<1x128xf32> to vector<16x128xf32>
    %525 = arith.mulf %515, %524 : vector<16x128xf32>
    %c2_129 = arith.constant 2 : index
    %c0_130 = arith.constant 0 : index
    %c0_131 = arith.constant 0 : index
    %c0_132 = arith.constant 0 : index
    %526 = vector.load %arg5[%c2_129, %c0_130, %c0_131, %c0_132] : memref<3x2x128x128xf32, #tpu.memory_space<vmem>>, vector<1x1x128x128xf32>
    %527 = vector.shape_cast %526 : vector<1x1x128x128xf32> to vector<128x128xf32>
    %cst_133 = arith.constant dense<0.000000e+00> : vector<16x128xf32>
    %528 = tpu.matmul %525, %527, %cst_133 {dimension_numbers = #tpu.dot_dimension_numbers<[1], [0], [0], [1], [0, 0, 1, 1], [], []>} : vector<16x128xf32>, vector<128x128xf32>, vector<16x128xf32> -> vector<16x128xf32>
    %c2_134 = arith.constant 2 : index
    %c0_135 = arith.constant 0 : index
    %c0_136 = arith.constant 0 : index
    %c0_137 = arith.constant 0 : index
    %529 = vector.load %arg6[%c2_134, %c0_135, %c0_136, %c0_137] : memref<3x2x1x128xf32, #tpu.memory_space<vmem>>, vector<1x1x1x128xf32>
    %530 = vector.shape_cast %529 : vector<1x1x1x128xf32> to vector<1x128xf32>
    %531 = vector.broadcast %530 : vector<1x128xf32> to vector<16x128xf32>
    %532 = arith.addf %528, %531 : vector<16x128xf32>
    %cst_138 = arith.constant dense<0.000000e+00> : vector<128xf32>
    %533 = vector.multi_reduction <add>, %532, %cst_138 [0] : vector<16x128xf32> to vector<128xf32>
    %534 = vector.shape_cast %533 : vector<128xf32> to vector<1x128xf32>
    %cst_139 = arith.constant 6.250000e-02 : f32
    %535 = vector.broadcast %cst_139 : f32 to vector<1x128xf32>
    %536 = arith.mulf %534, %535 : vector<1x128xf32>
    %537 = vector.broadcast %536 : vector<1x128xf32> to vector<16x128xf32>
    %538 = arith.subf %532, %537 : vector<16x128xf32>
    %539 = arith.mulf %538, %538 : vector<16x128xf32>
    %cst_140 = arith.constant dense<0.000000e+00> : vector<128xf32>
    %540 = vector.multi_reduction <add>, %539, %cst_140 [0] : vector<16x128xf32> to vector<128xf32>
    %541 = vector.shape_cast %540 : vector<128xf32> to vector<1x128xf32>
    %cst_141 = arith.constant 6.250000e-02 : f32
    %542 = vector.broadcast %cst_141 : f32 to vector<1x128xf32>
    %543 = arith.mulf %541, %542 : vector<1x128xf32>
    %cst_142 = arith.constant 9.99999974E-6 : f32
    %544 = vector.broadcast %cst_142 : f32 to vector<1x128xf32>
    %545 = arith.addf %543, %544 : vector<1x128xf32>
    %546 = math.rsqrt %545 : vector<1x128xf32>
    %547 = vector.broadcast %546 : vector<1x128xf32> to vector<16x128xf32>
    %548 = arith.mulf %538, %547 : vector<16x128xf32>
    %cst_143 = arith.constant 0.000000e+00 : f32
    %549 = vector.broadcast %cst_143 : f32 to vector<16x128xf32>
    %550 = arith.maximumf %548, %549 : vector<16x128xf32>
    %cst_144 = arith.constant dense<0.000000e+00> : vector<144x128xf32>
    %551 = tpu.matmul %2, %550, %cst_144 {dimension_numbers = #tpu.dot_dimension_numbers<[1], [0], [0], [1], [0, 0, 1, 1], [], []>} : vector<144x16xf32>, vector<16x128xf32>, vector<144x128xf32> -> vector<144x128xf32>
    %c2_145 = arith.constant 2 : index
    %c1_146 = arith.constant 1 : index
    %c0_147 = arith.constant 0 : index
    %c0_148 = arith.constant 0 : index
    %552 = vector.load %arg3[%c2_145, %c1_146, %c0_147, %c0_148] : memref<3x2x9x128xf32, #tpu.memory_space<vmem>>, vector<1x1x9x128xf32>
    %553 = vector.shape_cast %552 : vector<1x1x9x128xf32> to vector<9x128xf32>
    %554 = vector.extract_strided_slice %551 {offsets = [0, 0], sizes = [16, 128], strides = [1, 1]} : vector<144x128xf32> to vector<16x128xf32>
    %555 = vector.extract_strided_slice %553 {offsets = [0, 0], sizes = [1, 128], strides = [1, 1]} : vector<9x128xf32> to vector<1x128xf32>
    %556 = vector.shape_cast %555 : vector<1x128xf32> to vector<128xf32>
    %557 = vector.shape_cast %556 : vector<128xf32> to vector<1x128xf32>
    %558 = vector.broadcast %557 : vector<1x128xf32> to vector<16x128xf32>
    %559 = arith.mulf %554, %558 : vector<16x128xf32>
    %560 = vector.extract_strided_slice %551 {offsets = [16, 0], sizes = [16, 128], strides = [1, 1]} : vector<144x128xf32> to vector<16x128xf32>
    %561 = vector.extract_strided_slice %553 {offsets = [1, 0], sizes = [1, 128], strides = [1, 1]} : vector<9x128xf32> to vector<1x128xf32>
    %562 = vector.shape_cast %561 : vector<1x128xf32> to vector<128xf32>
    %563 = vector.shape_cast %562 : vector<128xf32> to vector<1x128xf32>
    %564 = vector.broadcast %563 : vector<1x128xf32> to vector<16x128xf32>
    %565 = arith.mulf %560, %564 : vector<16x128xf32>
    %566 = arith.addf %559, %565 : vector<16x128xf32>
    %567 = vector.extract_strided_slice %551 {offsets = [32, 0], sizes = [16, 128], strides = [1, 1]} : vector<144x128xf32> to vector<16x128xf32>
    %568 = vector.extract_strided_slice %553 {offsets = [2, 0], sizes = [1, 128], strides = [1, 1]} : vector<9x128xf32> to vector<1x128xf32>
    %569 = vector.shape_cast %568 : vector<1x128xf32> to vector<128xf32>
    %570 = vector.shape_cast %569 : vector<128xf32> to vector<1x128xf32>
    %571 = vector.broadcast %570 : vector<1x128xf32> to vector<16x128xf32>
    %572 = arith.mulf %567, %571 : vector<16x128xf32>
    %573 = arith.addf %566, %572 : vector<16x128xf32>
    %574 = vector.extract_strided_slice %551 {offsets = [48, 0], sizes = [16, 128], strides = [1, 1]} : vector<144x128xf32> to vector<16x128xf32>
    %575 = vector.extract_strided_slice %553 {offsets = [3, 0], sizes = [1, 128], strides = [1, 1]} : vector<9x128xf32> to vector<1x128xf32>
    %576 = vector.shape_cast %575 : vector<1x128xf32> to vector<128xf32>
    %577 = vector.shape_cast %576 : vector<128xf32> to vector<1x128xf32>
    %578 = vector.broadcast %577 : vector<1x128xf32> to vector<16x128xf32>
    %579 = arith.mulf %574, %578 : vector<16x128xf32>
    %580 = arith.addf %573, %579 : vector<16x128xf32>
    %581 = vector.extract_strided_slice %551 {offsets = [64, 0], sizes = [16, 128], strides = [1, 1]} : vector<144x128xf32> to vector<16x128xf32>
    %582 = vector.extract_strided_slice %553 {offsets = [4, 0], sizes = [1, 128], strides = [1, 1]} : vector<9x128xf32> to vector<1x128xf32>
    %583 = vector.shape_cast %582 : vector<1x128xf32> to vector<128xf32>
    %584 = vector.shape_cast %583 : vector<128xf32> to vector<1x128xf32>
    %585 = vector.broadcast %584 : vector<1x128xf32> to vector<16x128xf32>
    %586 = arith.mulf %581, %585 : vector<16x128xf32>
    %587 = arith.addf %580, %586 : vector<16x128xf32>
    %588 = vector.extract_strided_slice %551 {offsets = [80, 0], sizes = [16, 128], strides = [1, 1]} : vector<144x128xf32> to vector<16x128xf32>
    %589 = vector.extract_strided_slice %553 {offsets = [5, 0], sizes = [1, 128], strides = [1, 1]} : vector<9x128xf32> to vector<1x128xf32>
    %590 = vector.shape_cast %589 : vector<1x128xf32> to vector<128xf32>
    %591 = vector.shape_cast %590 : vector<128xf32> to vector<1x128xf32>
    %592 = vector.broadcast %591 : vector<1x128xf32> to vector<16x128xf32>
    %593 = arith.mulf %588, %592 : vector<16x128xf32>
    %594 = arith.addf %587, %593 : vector<16x128xf32>
    %595 = vector.extract_strided_slice %551 {offsets = [96, 0], sizes = [16, 128], strides = [1, 1]} : vector<144x128xf32> to vector<16x128xf32>
    %596 = vector.extract_strided_slice %553 {offsets = [6, 0], sizes = [1, 128], strides = [1, 1]} : vector<9x128xf32> to vector<1x128xf32>
    %597 = vector.shape_cast %596 : vector<1x128xf32> to vector<128xf32>
    %598 = vector.shape_cast %597 : vector<128xf32> to vector<1x128xf32>
    %599 = vector.broadcast %598 : vector<1x128xf32> to vector<16x128xf32>
    %600 = arith.mulf %595, %599 : vector<16x128xf32>
    %601 = arith.addf %594, %600 : vector<16x128xf32>
    %602 = vector.extract_strided_slice %551 {offsets = [112, 0], sizes = [16, 128], strides = [1, 1]} : vector<144x128xf32> to vector<16x128xf32>
    %603 = vector.extract_strided_slice %553 {offsets = [7, 0], sizes = [1, 128], strides = [1, 1]} : vector<9x128xf32> to vector<1x128xf32>
    %604 = vector.shape_cast %603 : vector<1x128xf32> to vector<128xf32>
    %605 = vector.shape_cast %604 : vector<128xf32> to vector<1x128xf32>
    %606 = vector.broadcast %605 : vector<1x128xf32> to vector<16x128xf32>
    %607 = arith.mulf %602, %606 : vector<16x128xf32>
    %608 = arith.addf %601, %607 : vector<16x128xf32>
    %609 = vector.extract_strided_slice %551 {offsets = [128, 0], sizes = [16, 128], strides = [1, 1]} : vector<144x128xf32> to vector<16x128xf32>
    %610 = vector.extract_strided_slice %553 {offsets = [8, 0], sizes = [1, 128], strides = [1, 1]} : vector<9x128xf32> to vector<1x128xf32>
    %611 = vector.shape_cast %610 : vector<1x128xf32> to vector<128xf32>
    %612 = vector.shape_cast %611 : vector<128xf32> to vector<1x128xf32>
    %613 = vector.broadcast %612 : vector<1x128xf32> to vector<16x128xf32>
    %614 = arith.mulf %609, %613 : vector<16x128xf32>
    %615 = arith.addf %608, %614 : vector<16x128xf32>
    %c2_149 = arith.constant 2 : index
    %c1_150 = arith.constant 1 : index
    %c0_151 = arith.constant 0 : index
    %c0_152 = arith.constant 0 : index
    %616 = vector.load %arg4[%c2_149, %c1_150, %c0_151, %c0_152] : memref<3x2x1x128xf32, #tpu.memory_space<vmem>>, vector<1x1x1x128xf32>
    %617 = vector.shape_cast %616 : vector<1x1x1x128xf32> to vector<1x128xf32>
    %618 = vector.broadcast %617 : vector<1x128xf32> to vector<16x128xf32>
    %619 = arith.addf %615, %618 : vector<16x128xf32>
    %cst_153 = arith.constant dense<0.000000e+00> : vector<128xf32>
    %620 = vector.multi_reduction <add>, %619, %cst_153 [0] : vector<16x128xf32> to vector<128xf32>
    %621 = vector.shape_cast %620 : vector<128xf32> to vector<1x128xf32>
    %cst_154 = arith.constant 6.250000e-02 : f32
    %622 = vector.broadcast %cst_154 : f32 to vector<1x128xf32>
    %623 = arith.mulf %621, %622 : vector<1x128xf32>
    %624 = vector.broadcast %623 : vector<1x128xf32> to vector<16x128xf32>
    %625 = arith.subf %619, %624 : vector<16x128xf32>
    %626 = arith.mulf %625, %625 : vector<16x128xf32>
    %cst_155 = arith.constant dense<0.000000e+00> : vector<128xf32>
    %627 = vector.multi_reduction <add>, %626, %cst_155 [0] : vector<16x128xf32> to vector<128xf32>
    %628 = vector.shape_cast %627 : vector<128xf32> to vector<1x128xf32>
    %cst_156 = arith.constant 6.250000e-02 : f32
    %629 = vector.broadcast %cst_156 : f32 to vector<1x128xf32>
    %630 = arith.mulf %628, %629 : vector<1x128xf32>
    %cst_157 = arith.constant 9.99999974E-6 : f32
    %631 = vector.broadcast %cst_157 : f32 to vector<1x128xf32>
    %632 = arith.addf %630, %631 : vector<1x128xf32>
    %633 = math.rsqrt %632 : vector<1x128xf32>
    %634 = vector.broadcast %633 : vector<1x128xf32> to vector<16x128xf32>
    %635 = arith.mulf %625, %634 : vector<16x128xf32>
    %c2_158 = arith.constant 2 : index
    %c1_159 = arith.constant 1 : index
    %c0_160 = arith.constant 0 : index
    %c0_161 = arith.constant 0 : index
    %636 = vector.load %arg5[%c2_158, %c1_159, %c0_160, %c0_161] : memref<3x2x128x128xf32, #tpu.memory_space<vmem>>, vector<1x1x128x128xf32>
    %637 = vector.shape_cast %636 : vector<1x1x128x128xf32> to vector<128x128xf32>
    %cst_162 = arith.constant dense<0.000000e+00> : vector<16x128xf32>
    %638 = tpu.matmul %635, %637, %cst_162 {dimension_numbers = #tpu.dot_dimension_numbers<[1], [0], [0], [1], [0, 0, 1, 1], [], []>} : vector<16x128xf32>, vector<128x128xf32>, vector<16x128xf32> -> vector<16x128xf32>
    %c2_163 = arith.constant 2 : index
    %c1_164 = arith.constant 1 : index
    %c0_165 = arith.constant 0 : index
    %c0_166 = arith.constant 0 : index
    %639 = vector.load %arg6[%c2_163, %c1_164, %c0_165, %c0_166] : memref<3x2x1x128xf32, #tpu.memory_space<vmem>>, vector<1x1x1x128xf32>
    %640 = vector.shape_cast %639 : vector<1x1x1x128xf32> to vector<1x128xf32>
    %641 = vector.broadcast %640 : vector<1x128xf32> to vector<16x128xf32>
    %642 = arith.addf %638, %641 : vector<16x128xf32>
    %cst_167 = arith.constant dense<0.000000e+00> : vector<128xf32>
    %643 = vector.multi_reduction <add>, %642, %cst_167 [0] : vector<16x128xf32> to vector<128xf32>
    %644 = vector.shape_cast %643 : vector<128xf32> to vector<1x128xf32>
    %cst_168 = arith.constant 6.250000e-02 : f32
    %645 = vector.broadcast %cst_168 : f32 to vector<1x128xf32>
    %646 = arith.mulf %644, %645 : vector<1x128xf32>
    %647 = vector.broadcast %646 : vector<1x128xf32> to vector<16x128xf32>
    %648 = arith.subf %642, %647 : vector<16x128xf32>
    %649 = arith.mulf %648, %648 : vector<16x128xf32>
    %cst_169 = arith.constant dense<0.000000e+00> : vector<128xf32>
    %650 = vector.multi_reduction <add>, %649, %cst_169 [0] : vector<16x128xf32> to vector<128xf32>
    %651 = vector.shape_cast %650 : vector<128xf32> to vector<1x128xf32>
    %cst_170 = arith.constant 6.250000e-02 : f32
    %652 = vector.broadcast %cst_170 : f32 to vector<1x128xf32>
    %653 = arith.mulf %651, %652 : vector<1x128xf32>
    %cst_171 = arith.constant 9.99999974E-6 : f32
    %654 = vector.broadcast %cst_171 : f32 to vector<1x128xf32>
    %655 = arith.addf %653, %654 : vector<1x128xf32>
    %656 = math.rsqrt %655 : vector<1x128xf32>
    %657 = vector.broadcast %656 : vector<1x128xf32> to vector<16x128xf32>
    %658 = arith.mulf %648, %657 : vector<16x128xf32>
    %659 = arith.addf %440, %658 : vector<16x128xf32>
    %c0_172 = arith.constant 0 : index
    %c0_173 = arith.constant 0 : index
    %c0_174 = arith.constant 0 : index
    %660 = vector.load %arg7[%c0_172, %c0_173, %c0_174] : memref<1x16x128xf32, #tpu.memory_space<vmem>>, vector<1x16x128xf32>
    %661 = vector.shape_cast %660 : vector<1x16x128xf32> to vector<16x128xf32>
    %662 = vector.shape_cast %659 : vector<16x128xf32> to vector<1x16x128xf32>
    tpu.vector_store %arg7[%c0_172, %c0_173, %c0_174], %662 {strides = array<i32>} : memref<1x16x128xf32, #tpu.memory_space<vmem>>, vector<1x16x128xf32>,
    return
  }
  func.func @transform_0(%arg0: i32) -> (i32, i32, i32) {
    %c0_i32 = arith.constant 0 : i32
    %c0_i32_0 = arith.constant 0 : i32
    %c0_i32_1 = arith.constant 0 : i32
    return %arg0, %c0_i32, %c0_i32_0 : i32, i32, i32
  }
  func.func @transform_1(%arg0: i32) -> (i32, i32) {
    %c0_i32 = arith.constant 0 : i32
    %c0_i32_0 = arith.constant 0 : i32
    %c0_i32_1 = arith.constant 0 : i32
    return %c0_i32, %c0_i32_0 : i32, i32
  }
  func.func @transform_2(%arg0: i32) -> (i32, i32, i32, i32) {
    %c0_i32 = arith.constant 0 : i32
    %c0_i32_0 = arith.constant 0 : i32
    %c0_i32_1 = arith.constant 0 : i32
    %c0_i32_2 = arith.constant 0 : i32
    %c0_i32_3 = arith.constant 0 : i32
    return %c0_i32, %c0_i32_0, %c0_i32_1, %c0_i32_2 : i32, i32, i32, i32
  }
  func.func @transform_3(%arg0: i32) -> (i32, i32, i32, i32) {
    %c0_i32 = arith.constant 0 : i32
    %c0_i32_0 = arith.constant 0 : i32
    %c0_i32_1 = arith.constant 0 : i32
    %c0_i32_2 = arith.constant 0 : i32
    %c0_i32_3 = arith.constant 0 : i32
    return %c0_i32, %c0_i32_0, %c0_i32_1, %c0_i32_2 : i32, i32, i32, i32
  }
  func.func @transform_4(%arg0: i32) -> (i32, i32, i32, i32) {
    %c0_i32 = arith.constant 0 : i32
    %c0_i32_0 = arith.constant 0 : i32
    %c0_i32_1 = arith.constant 0 : i32
    %c0_i32_2 = arith.constant 0 : i32
    %c0_i32_3 = arith.constant 0 : i32
    return %c0_i32, %c0_i32_0, %c0_i32_1, %c0_i32_2 : i32, i32, i32, i32
  }
  func.func @transform_5(%arg0: i32) -> (i32, i32, i32, i32) {
    %c0_i32 = arith.constant 0 : i32
    %c0_i32_0 = arith.constant 0 : i32
    %c0_i32_1 = arith.constant 0 : i32
    %c0_i32_2 = arith.constant 0 : i32
    %c0_i32_3 = arith.constant 0 : i32
    return %c0_i32, %c0_i32_0, %c0_i32_1, %c0_i32_2 : i32, i32, i32, i32
  }
  func.func @transform_6(%arg0: i32) -> (i32, i32, i32) {
    %c0_i32 = arith.constant 0 : i32
    %c0_i32_0 = arith.constant 0 : i32
    %c0_i32_1 = arith.constant 0 : i32
    return %arg0, %c0_i32, %c0_i32_0 : i32, i32, i32
  }
}

module attributes {stable_mosaic.version = 11 : i64} {
  func.func @_mm_in_act_kernel(%arg0: i32, %arg1: memref<256x512xf32, #tpu.memory_space<vmem>>, %arg2: memref<512x128xf32, #tpu.memory_space<vmem>>, %arg3: memref<1x128xf32, #tpu.memory_space<vmem>>, %arg4: memref<1x256x128xf32, #tpu.memory_space<vmem>>) attributes {dimension_semantics = [#tpu.dimension_semantics<parallel>], iteration_bounds = array<i64: 2>, scalar_prefetch = 0 : i64, scratch_operands = 0 : i64, tpu.core_type = #tpu.core_type<tc>, window_params = [{transform_indices = @transform_0, window_bounds = array<i64: 256, 512>}, {pipeline_mode = #tpu.pipeline_mode<synchronous>, transform_indices = @transform_1, window_bounds = array<i64: 512, 128>}, {pipeline_mode = #tpu.pipeline_mode<synchronous>, transform_indices = @transform_2, window_bounds = array<i64: 1, 128>}, {transform_indices = @transform_3, window_bounds = array<i64: 1, 256, 128>}]} {
    %c0 = arith.constant 0 : index
    %c0_0 = arith.constant 0 : index
    %0 = vector.load %arg1[%c0, %c0_0] : memref<256x512xf32, #tpu.memory_space<vmem>>, vector<256x512xf32>
    %c0_1 = arith.constant 0 : index
    %c0_2 = arith.constant 0 : index
    %1 = vector.load %arg2[%c0_1, %c0_2] : memref<512x128xf32, #tpu.memory_space<vmem>>, vector<512x128xf32>
    %cst = arith.constant dense<0.000000e+00> : vector<256x128xf32>
    %2 = tpu.matmul %0, %1, %cst {dimension_numbers = #tpu.dot_dimension_numbers<[1], [0], [0], [1], [0, 0, 1, 1], [], []>} : vector<256x512xf32>, vector<512x128xf32>, vector<256x128xf32> -> vector<256x128xf32>
    %c0_3 = arith.constant 0 : index
    %c0_4 = arith.constant 0 : index
    %3 = vector.load %arg3[%c0_3, %c0_4] : memref<1x128xf32, #tpu.memory_space<vmem>>, vector<1x128xf32>
    %4 = vector.broadcast %3 : vector<1x128xf32> to vector<256x128xf32>
    %5 = arith.addf %2, %4 : vector<256x128xf32>
    %6 = math.tanh %5 : vector<256x128xf32>
    %c0_5 = arith.constant 0 : index
    %c0_6 = arith.constant 0 : index
    %c0_7 = arith.constant 0 : index
    %7 = vector.load %arg4[%c0_5, %c0_6, %c0_7] : memref<1x256x128xf32, #tpu.memory_space<vmem>>, vector<1x256x128xf32>
    %8 = vector.shape_cast %7 : vector<1x256x128xf32> to vector<256x128xf32>
    %9 = vector.shape_cast %6 : vector<256x128xf32> to vector<1x256x128xf32>
    tpu.vector_store %arg4[%c0_5, %c0_6, %c0_7], %9 {strides = array<i32>} : memref<1x256x128xf32, #tpu.memory_space<vmem>>, vector<1x256x128xf32>,
    return
  }
  func.func @transform_0(%arg0: i32) -> (i32, i32) {
    %c0_i32 = arith.constant 0 : i32
    %c0_i32_0 = arith.constant 0 : i32
    return %arg0, %c0_i32 : i32, i32
  }
  func.func @transform_1(%arg0: i32) -> (i32, i32) {
    %c0_i32 = arith.constant 0 : i32
    %c0_i32_0 = arith.constant 0 : i32
    %c0_i32_1 = arith.constant 0 : i32
    return %c0_i32, %c0_i32_0 : i32, i32
  }
  func.func @transform_2(%arg0: i32) -> (i32, i32) {
    %c0_i32 = arith.constant 0 : i32
    %c0_i32_0 = arith.constant 0 : i32
    %c0_i32_1 = arith.constant 0 : i32
    return %c0_i32, %c0_i32_0 : i32, i32
  }
  func.func @transform_3(%arg0: i32) -> (i32, i32, i32) {
    %c0_i32 = arith.constant 0 : i32
    %c0_i32_0 = arith.constant 0 : i32
    %c0_i32_1 = arith.constant 0 : i32
    return %arg0, %c0_i32, %c0_i32_0 : i32, i32, i32
  }
}

</mosaic_0001>

<bundles_post_ra>
// kernel: generator_forward.7
= control target key start
LH: loop header
LB: loop body
LE: loop exit
PB: predicated region body
PF: predicated region fallthrough
CT: control target
= control target key end

     0   :  { %s902_s12 = smov 0   ;;  %s1475_s0 = inlined_call_operand.vmem [shape: f32[512,256], index: 0, kind: input, shape index: {}]   ;;  %s1476_s1 = inlined_call_operand.vmem [shape: f32[256,128], index: 1, kind: input, shape index: {}]   ;;  %s1477_s2 = inlined_call_operand.vmem [shape: f32[1,128], index: 2, kind: input, shape index: {}]   ;;  %s1478_s3 = inlined_call_operand.vmem [shape: f32[2,256,128], index: 3, kind: output, shape index: {}]  }
   0x1 LB: > { %s908_s13 = sadd.s32 4294967295, %s879_s12   ;;  %p817_p0 = scmp.ge.s32.totalorder %s879_s12, 1  ;;  %s879_s12 = sphi %s902_s12, %s13_s12  }
   0x2   : > { %p139_p1 = scmp.lt.s32.totalorder %s879_s12, 3 }
   0x4   : > { %p140_p2 = pnand %p817_p0, %p139_p1 }
   0x5   : > { %s818_s21 = sshll.u32 (!%p140_p2), %s908_s13, 5  ;;  %p171_p4 = scmp.lt.s32.totalorder (!%p140_p2), %s908_s13, 1 }
   0x6   : > { %143 = sbr.rel (%p140_p2) target bundleno = 481 (0x1e1), region = 32  ;;  %p165_p3 = scmp.lt.s32.totalorder (!%p140_p2), %s818_s21, 63 }
   0xb   : > { %v255_v0 = vld [vmem:[%s1476_s1 + $0x78] sm:$0xff]  ;;  %v254_v1 = vld [vmem:[%s1476_s1 + $0x70] sm:$0xff]  ;;  %v253_v4 = vld [vmem:[%s1476_s1 + $0x68] sm:$0xff]  ;;  %s1480_s21 = smov (!%p165_p3, %s818_s21), 63  ;;  %s1482_s13 = smov (!%p171_p4, %s908_s13), 1 }
   0xc   : > { %v271_v2 = vld [vmem:[%s1476_s1 + $0xf8] sm:$0xff]  ;;  %276 = vmatpush.msra.mxu0 %v255_v0  ;;  %v270_v3 = vld [vmem:[%s1476_s1 + $0xf0] sm:$0xff]  ;;  %v269_v5 = vld [vmem:[%s1476_s1 + $0xe8] sm:$0xff]  ;;  %827 = vmatpush.msra.mxu2 %v255_v0  ;;  %s825_s17 = sshll.u32 %s1480_s21, 4  ;;  %s826_s8 = sshll.u32 %s1482_s13, 8 }
   0xd   : > { %389 = vmatpush.msra.mxu1 %v271_v2  ;;  %843 = vmatpush.msra.mxu3 %v271_v2  ;;  %v252_v6 = vld [vmem:[%s1476_s1 + $0x60] sm:$0xff]  ;;  %v251_v8 = vld [vmem:[%s1476_s1 + $0x58] sm:$0xff]  ;;  %v250_v10 = vld [vmem:[%s1476_s1 + $0x50] sm:$0xff]  ;;  %s1006_s28 = scalar_lea.vmem %s1475_s0, %s825_s17  ;;  %s1384_s11 = scalar_lea.vmem %s1478_s3, %s826_s8 }
   0xe   : > { %277 = vmatpush.msra.mxu0 %v254_v1  ;;  %v268_v7 = vld [vmem:[%s1476_s1 + $0xe0] sm:$0xff]  ;;  %828 = vmatpush.msra.mxu2 %v254_v1  ;;  %v267_v9 = vld [vmem:[%s1476_s1 + $0xd8] sm:$0xff]  ;;  %v266_v11 = vld [vmem:[%s1476_s1 + $0xd0] sm:$0xff] }
   0xf   : > { %390 = vmatpush.msra.mxu1 %v270_v3  ;;  %844 = vmatpush.msra.mxu3 %v270_v3  ;;  %v249_v12 = vld [vmem:[%s1476_s1 + $0x48] sm:$0xff]  ;;  %v248_v14 = vld [vmem:[%s1476_s1 + $0x40] sm:$0xff]  ;;  %v247_v16 = vld [vmem:[%s1476_s1 + $0x38] sm:$0xff] }
  0x10   : > { %278 = vmatpush.msra.mxu0 %v253_v4  ;;  %829 = vmatpush.msra.mxu2 %v253_v4  ;;  %v265_v13 = vld [vmem:[%s1476_s1 + $0xc8] sm:$0xff]  ;;  %v264_v15 = vld [vmem:[%s1476_s1 + $0xc0] sm:$0xff]  ;;  %v263_v17 = vld [vmem:[%s1476_s1 + $0xb8] sm:$0xff] }
  0x11   : > { %391 = vmatpush.msra.mxu1 %v269_v5  ;;  %845 = vmatpush.msra.mxu3 %v269_v5  ;;  %v246_v18 = vld [vmem:[%s1476_s1 + $0x30] sm:$0xff]  ;;  %v245_v20 = vld [vmem:[%s1476_s1 + $0x28] sm:$0xff]  ;;  %v244_v22 = vld [vmem:[%s1476_s1 + $0x20] sm:$0xff] }
  0x12   : > { %279 = vmatpush.msra.mxu0 %v252_v6  ;;  %830 = vmatpush.msra.mxu2 %v252_v6  ;;  %v262_v19 = vld [vmem:[%s1476_s1 + $0xb0] sm:$0xff]  ;;  %v261_v21 = vld [vmem:[%s1476_s1 + $0xa8] sm:$0xff]  ;;  %v260_v23 = vld [vmem:[%s1476_s1 + $0xa0] sm:$0xff] }
  0x13   : > { %392 = vmatpush.msra.mxu1 %v268_v7  ;;  %846 = vmatpush.msra.mxu3 %v268_v7  ;;  %v243_v24 = vld [vmem:[%s1476_s1 + $0x18] sm:$0xff]  ;;  %v242_v26 = vld [vmem:[%s1476_s1 + $0x10] sm:$0xff]  ;;  %v241_v28 = vld [vmem:[%s1476_s1 + $0x8] sm:$0xff] }
  0x14   : > { %280 = vmatpush.msra.mxu0 %v251_v8  ;;  %831 = vmatpush.msra.mxu2 %v251_v8  ;;  %v259_v25 = vld [vmem:[%s1476_s1 + $0x98] sm:$0xff]  ;;  %v258_v27 = vld [vmem:[%s1476_s1 + $0x90] sm:$0xff]  ;;  %v257_v29 = vld [vmem:[%s1476_s1 + $0x88] sm:$0xff] }
  0x15   : > { %393 = vmatpush.msra.mxu1 %v267_v9  ;;  %847 = vmatpush.msra.mxu3 %v267_v9  ;;  %v240_v30 = vld [vmem:[%s1476_s1] sm:$0xff]  ;;  %v177_v33 = vld [vmem:[%s1006_s28 + $0x8] sm:$0xff]  ;;  %v178_v36 = vld [vmem:[%s1006_s28 + $0x10] sm:$0xff] }
  0x16   : > { %281 = vmatpush.msra.mxu0 %v250_v10  ;;  %832 = vmatpush.msra.mxu2 %v250_v10  ;;  %v256_v31 = vld [vmem:[%s1476_s1 + $0x80] sm:$0xff]  ;;  %v209_v35 = vld [vmem:[%s1006_s28 + $0x108] sm:$0xff]  ;;  %v179_v37 = vld [vmem:[%s1006_s28 + $0x18] sm:$0xff] }
  0x17   : > { %394 = vmatpush.msra.mxu1 %v266_v11  ;;  %848 = vmatpush.msra.mxu3 %v266_v11  ;;  %v176_v32 = vld [vmem:[%s1006_s28] sm:$0xff]  ;;  %v210_v38 = vld [vmem:[%s1006_s28 + $0x110] sm:$0xff]  ;;  %v211_v39 = vld [vmem:[%s1006_s28 + $0x118] sm:$0xff] }
  0x18   : > { %282 = vmatpush.msra.mxu0 %v249_v12  ;;  %833 = vmatpush.msra.mxu2 %v249_v12  ;;  %v208_v34 = vld [vmem:[%s1006_s28 + $0x100] sm:$0xff]  ;;  %v181_v41 = vld [vmem:[%s1006_s28 + $0x28] sm:$0xff]  ;;  %v182_v44 = vld [vmem:[%s1006_s28 + $0x30] sm:$0xff] }
  0x19   : > { %395 = vmatpush.msra.mxu1 %v265_v13  ;;  %849 = vmatpush.msra.mxu3 %v265_v13  ;;  %v180_v40 = vld [vmem:[%s1006_s28 + $0x20] sm:$0xff]  ;;  %v213_v43 = vld [vmem:[%s1006_s28 + $0x128] sm:$0xff]  ;;  %v183_v45 = vld [vmem:[%s1006_s28 + $0x38] sm:$0xff] }
  0x1a   : > { %283 = vmatpush.msra.mxu0 %v248_v14  ;;  %834 = vmatpush.msra.mxu2 %v248_v14  ;;  %v212_v42 = vld [vmem:[%s1006_s28 + $0x120] sm:$0xff]  ;;  %v214_v46 = vld [vmem:[%s1006_s28 + $0x130] sm:$0xff]  ;;  %v215_v47 = vld [vmem:[%s1006_s28 + $0x138] sm:$0xff] }
  0x1b   : > { %396 = vmatpush.msra.mxu1 %v264_v15  ;;  %850 = vmatpush.msra.mxu3 %v264_v15  ;;  %v184_v48 = vld [vmem:[%s1006_s28 + $0x40] sm:$0xff]  ;;  %v185_v49 = vld [vmem:[%s1006_s28 + $0x48] sm:$0xff]  ;;  %v186_v52 = vld [vmem:[%s1006_s28 + $0x50] sm:$0xff] }
  0x1c   : > { %284 = vmatpush.msra.mxu0 %v247_v16  ;;  %835 = vmatpush.msra.mxu2 %v247_v16  ;;  %v216_v50 = vld [vmem:[%s1006_s28 + $0x140] sm:$0xff]  ;;  %v217_v51 = vld [vmem:[%s1006_s28 + $0x148] sm:$0xff]  ;;  %v187_v53 = vld [vmem:[%s1006_s28 + $0x58] sm:$0xff] }
  0x1d   : > { %397 = vmatpush.msra.mxu1 %v263_v17  ;;  %851 = vmatpush.msra.mxu3 %v263_v17  ;;  %v218_v54 = vld [vmem:[%s1006_s28 + $0x150] sm:$0xff]  ;;  %v219_v55 = vld [vmem:[%s1006_s28 + $0x158] sm:$0xff]  ;;  %v188_v56 = vld [vmem:[%s1006_s28 + $0x60] sm:$0xff] }
  0x1e   : > { %285 = vmatpush.msra.mxu0 %v246_v18  ;;  %836 = vmatpush.msra.mxu2 %v246_v18  ;;  %v189_v57 = vld [vmem:[%s1006_s28 + $0x68] sm:$0xff]  ;;  %v220_v58 = vld [vmem:[%s1006_s28 + $0x160] sm:$0xff]  ;;  %v190_v60 = vld [vmem:[%s1006_s28 + $0x70] sm:$0xff] }
  0x1f   : > { %398 = vmatpush.msra.mxu1 %v262_v19  ;;  %852 = vmatpush.msra.mxu3 %v262_v19  ;;  %v221_v59 = vld [vmem:[%s1006_s28 + $0x168] sm:$0xff]  ;;  %v191_v61 = vld [vmem:[%s1006_s28 + $0x78] sm:$0xff]  ;;  %v222_v62 = vld [vmem:[%s1006_s28 + $0x170] sm:$0xff] }
  0x20   : > { %286 = vmatpush.msra.mxu0 %v245_v20  ;;  %837 = vmatpush.msra.mxu2 %v245_v20  ;;  %v223_v63 = vld [vmem:[%s1006_s28 + $0x178] sm:$0xff]  ;;  %v192_v0 = vld [vmem:[%s1006_s28 + $0x80] sm:$0xff]  ;;  %v193_v1 = vld [vmem:[%s1006_s28 + $0x88] sm:$0xff] }
  0x21   : > { %399 = vmatpush.msra.mxu1 %v261_v21  ;;  %853 = vmatpush.msra.mxu3 %v261_v21  ;;  %v224_v2 = vld [vmem:[%s1006_s28 + $0x180] sm:$0xff]  ;;  %v225_v3 = vld [vmem:[%s1006_s28 + $0x188] sm:$0xff]  ;;  %v194_v4 = vld [vmem:[%s1006_s28 + $0x90] sm:$0xff] }
  0x22   : > { %287 = vmatpush.msra.mxu0 %v244_v22  ;;  %838 = vmatpush.msra.mxu2 %v244_v22  ;;  %v195_v5 = vld [vmem:[%s1006_s28 + $0x98] sm:$0xff]  ;;  %v226_v6 = vld [vmem:[%s1006_s28 + $0x190] sm:$0xff]  ;;  %v196_v8 = vld [vmem:[%s1006_s28 + $0xa0] sm:$0xff] }
  0x23   : > { %400 = vmatpush.msra.mxu1 %v260_v23  ;;  %854 = vmatpush.msra.mxu3 %v260_v23  ;;  %v227_v7 = vld [vmem:[%s1006_s28 + $0x198] sm:$0xff]  ;;  %v197_v9 = vld [vmem:[%s1006_s28 + $0xa8] sm:$0xff]  ;;  %v228_v10 = vld [vmem:[%s1006_s28 + $0x1a0] sm:$0xff] }
  0x24   : > { %288 = vmatpush.msra.mxu0 %v243_v24  ;;  %839 = vmatpush.msra.mxu2 %v243_v24  ;;  %v229_v11 = vld [vmem:[%s1006_s28 + $0x1a8] sm:$0xff]  ;;  %v198_v12 = vld [vmem:[%s1006_s28 + $0xb0] sm:$0xff]  ;;  %v199_v13 = vld [vmem:[%s1006_s28 + $0xb8] sm:$0xff] }
  0x25   : > { %401 = vmatpush.msra.mxu1 %v259_v25  ;;  %855 = vmatpush.msra.mxu3 %v259_v25  ;;  %v230_v14 = vld [vmem:[%s1006_s28 + $0x1b0] sm:$0xff]  ;;  %v231_v15 = vld [vmem:[%s1006_s28 + $0x1b8] sm:$0xff]  ;;  %v200_v16 = vld [vmem:[%s1006_s28 + $0xc0] sm:$0xff] }
  0x26   : > { %289 = vmatpush.msra.mxu0 %v242_v26  ;;  %840 = vmatpush.msra.mxu2 %v242_v26  ;;  %v201_v17 = vld [vmem:[%s1006_s28 + $0xc8] sm:$0xff]  ;;  %v232_v18 = vld [vmem:[%s1006_s28 + $0x1c0] sm:$0xff]  ;;  %v202_v20 = vld [vmem:[%s1006_s28 + $0xd0] sm:$0xff] }
  0x27   : > { %402 = vmatpush.msra.mxu1 %v258_v27  ;;  %856 = vmatpush.msra.mxu3 %v258_v27  ;;  %v233_v19 = vld [vmem:[%s1006_s28 + $0x1c8] sm:$0xff]  ;;  %v203_v21 = vld [vmem:[%s1006_s28 + $0xd8] sm:$0xff]  ;;  %v234_v22 = vld [vmem:[%s1006_s28 + $0x1d0] sm:$0xff] }
  0x28   : > { %290 = vmatpush.msra.mxu0 %v241_v28  ;;  %841 = vmatpush.msra.mxu2 %v241_v28  ;;  %v235_v23 = vld [vmem:[%s1006_s28 + $0x1d8] sm:$0xff]  ;;  %v204_v24 = vld [vmem:[%s1006_s28 + $0xe0] sm:$0xff]  ;;  %v205_v25 = vld [vmem:[%s1006_s28 + $0xe8] sm:$0xff] }
  0x29   : > { %403 = vmatpush.msra.mxu1 %v257_v29  ;;  %857 = vmatpush.msra.mxu3 %v257_v29  ;;  %v236_v26 = vld [vmem:[%s1006_s28 + $0x1e0] sm:$0xff]  ;;  %v237_v27 = vld [vmem:[%s1006_s28 + $0x1e8] sm:$0xff]  ;;  %v206_v28 = vld [vmem:[%s1006_s28 + $0xf0] sm:$0xff] }
  0x2a   : > { %291 = vmatpush.msra.mxu0 %v240_v30  ;;  %842 = vmatpush.msra.mxu2 %v240_v30  ;;  %v207_v29 = vld [vmem:[%s1006_s28 + $0xf8] sm:$0xff]  ;;  %v238_v30 = vld [vmem:[%s1006_s28 + $0x1f0] sm:$0xff] }
  0x2b   : > { %404 = vmatpush.msra.mxu1 %v256_v31  ;;  %292 = vmatmul.f32.vlgmr.msra.gmra.mxu0 %v176_v32  ;;  %v1081_v32 = vld [vmem:[%s1477_s2] ss:$0 sm:$0xff] }
  0x2c   : > { %405 = vmatmul.f32.vlgmr.msra.gmra.mxu1 %v177_v33  ;;  %858 = vmatpush.msra.mxu3 %v256_v31  ;;  %v239_v31 = vld [vmem:[%s1006_s28 + $0x1f8] sm:$0xff] }
  0x2d   : > { %340 = vmatmul.f32.vlgmr.msra.gmra.mxu2 %v208_v34  ;;  %453 = vmatmul.f32.vlgmr.msra.gmra.mxu3 %v209_v35 }
  0x33   : > { %295 = vmatmul.f32.gmra.mxu0 %v178_v36 }
  0x34   : > { %408 = vmatmul.f32.gmra.mxu1 %v179_v37 }
  0x35   : > { %343 = vmatmul.f32.gmra.mxu2 %v210_v38  ;;  %456 = vmatmul.f32.gmra.mxu3 %v211_v39 }
  0x3b   : > { %298 = vmatmul.f32.gmra.mxu0 %v180_v40 }
  0x3c   : > { %411 = vmatmul.f32.gmra.mxu1 %v181_v41 }
  0x3d   : > { %346 = vmatmul.f32.gmra.mxu2 %v212_v42  ;;  %459 = vmatmul.f32.gmra.mxu3 %v213_v43 }
  0x43   : > { %301 = vmatmul.f32.gmra.mxu0 %v182_v44 }
  0x44   : > { %414 = vmatmul.f32.gmra.mxu1 %v183_v45 }
  0x45   : > { %349 = vmatmul.f32.gmra.mxu2 %v214_v46  ;;  %462 = vmatmul.f32.gmra.mxu3 %v215_v47 }
  0x4b   : > { %304 = vmatmul.f32.gmra.mxu0 %v184_v48 }
  0x4c   : > { %417 = vmatmul.f32.gmra.mxu1 %v185_v49 }
  0x4d   : > { %352 = vmatmul.f32.gmra.mxu2 %v216_v50  ;;  %465 = vmatmul.f32.gmra.mxu3 %v217_v51 }
  0x53   : > { %307 = vmatmul.f32.gmra.mxu0 %v186_v52 }
  0x54   : > { %420 = vmatmul.f32.gmra.mxu1 %v187_v53 }
  0x55   : > { %355 = vmatmul.f32.gmra.mxu2 %v218_v54  ;;  %468 = vmatmul.f32.gmra.mxu3 %v219_v55 }
  0x5b   : > { %310 = vmatmul.f32.gmra.mxu0 %v188_v56 }
  0x5c   : > { %423 = vmatmul.f32.gmra.mxu1 %v189_v57 }
  0x5d   : > { %358 = vmatmul.f32.gmra.mxu2 %v220_v58  ;;  %471 = vmatmul.f32.gmra.mxu3 %v221_v59 }
  0x63   : > { %313 = vmatmul.f32.gmra.mxu0 %v190_v60 }
  0x64   : > { %426 = vmatmul.f32.gmra.mxu1 %v191_v61 }
  0x65   : > { %361 = vmatmul.f32.gmra.mxu2 %v222_v62  ;;  %474 = vmatmul.f32.gmra.mxu3 %v223_v63 }
  0x6b   : > { %316 = vmatmul.f32.gmra.mxu0 %v192_v0 }
  0x6c   : > { %429 = vmatmul.f32.gmra.mxu1 %v193_v1 }
  0x6d   : > { %364 = vmatmul.f32.gmra.mxu2 %v224_v2  ;;  %477 = vmatmul.f32.gmra.mxu3 %v225_v3 }
  0x73   : > { %319 = vmatmul.f32.gmra.mxu0 %v194_v4 }
  0x74   : > { %432 = vmatmul.f32.gmra.mxu1 %v195_v5 }
  0x75   : > { %367 = vmatmul.f32.gmra.mxu2 %v226_v6  ;;  %480 = vmatmul.f32.gmra.mxu3 %v227_v7 }
  0x7b   : > { %322 = vmatmul.f32.gmra.mxu0 %v196_v8 }
  0x7c   : > { %435 = vmatmul.f32.gmra.mxu1 %v197_v9 }
  0x7d   : > { %370 = vmatmul.f32.gmra.mxu2 %v228_v10  ;;  %483 = vmatmul.f32.gmra.mxu3 %v229_v11 }
  0x83   : > { %325 = vmatmul.f32.gmra.mxu0 %v198_v12 }
  0x84   : > { %438 = vmatmul.f32.gmra.mxu1 %v199_v13 }
  0x85   : > { %373 = vmatmul.f32.gmra.mxu2 %v230_v14  ;;  %486 = vmatmul.f32.gmra.mxu3 %v231_v15 }
  0x8b   : > { %328 = vmatmul.f32.gmra.mxu0 %v200_v16 }
  0x8c   : > { %441 = vmatmul.f32.gmra.mxu1 %v201_v17 }
  0x8d   : > { %376 = vmatmul.f32.gmra.mxu2 %v232_v18  ;;  %489 = vmatmul.f32.gmra.mxu3 %v233_v19 }
  0x93   : > { %331 = vmatmul.f32.gmra.mxu0 %v202_v20 }
  0x94   : > { %444 = vmatmul.f32.gmra.mxu1 %v203_v21 }
  0x95   : > { %379 = vmatmul.f32.gmra.mxu2 %v234_v22  ;;  %492 = vmatmul.f32.gmra.mxu3 %v235_v23 }
  0x9b   : > { %334 = vmatmul.f32.gmra.mxu0 %v204_v24 }
  0x9c   : > { %447 = vmatmul.f32.gmra.mxu1 %v205_v25 }
  0x9d   : > { %382 = vmatmul.f32.gmra.mxu2 %v236_v26  ;;  %495 = vmatmul.f32.gmra.mxu3 %v237_v27 }
  0xa3   : > { %337 = vmatmul.f32.gmra.mxu0 %v206_v28 }
  0xa4   : > { %450 = vmatmul.f32.gmra.mxu1 %v207_v29 }
  0xa5   : > { %385 = vmatmul.f32.gmra.mxu2 %v238_v30  ;;  %498 = vmatmul.f32.gmra.mxu3 %v239_v31 }
  0xa8   : > { %v293_v33 = vpop.f32.mrf.mxu0 }
  0xa9   : > { %v406_v34 = vpop.f32.mrf.mxu1  ;;  %v294_v35 = vadd.f32 %v1081_v32, %v293_v33 }
  0xab   : > { %v1084_v36 = vadd.f32 %v406_v34, %v294_v35 }
  0xb0   : > { %v296_v37 = vpop.f32.mrf.mxu0  ;;  %v341_v40 = vpop.f32.mrf.mxu2 }
  0xb1   : > { %v409_v38 = vpop.f32.mrf.mxu1  ;;  %v297_v39 = vadd.f32 %v1081_v32, %v296_v37  ;;  %v454_v41 = vpop.f32.mrf.mxu3  ;;  %v342_v42 = vadd.f32 %v1081_v32, %v341_v40 }
  0xb3   : > { %v1088_v43 = vadd.f32 %v409_v38, %v297_v39  ;;  %v1090_v44 = vadd.f32 %v454_v41, %v342_v42 }
  0xb5   : > { %v502_v38 = vadd.f32 %v1088_v43, %v1084_v36 }
  0xb8   : > { %v299_v45 = vpop.f32.mrf.mxu0  ;;  %v344_v48 = vpop.f32.mrf.mxu2 }
  0xb9   : > { %v412_v46 = vpop.f32.mrf.mxu1  ;;  %v300_v47 = vadd.f32 %v1081_v32, %v299_v45  ;;  %v457_v49 = vpop.f32.mrf.mxu3  ;;  %v345_v50 = vadd.f32 %v1081_v32, %v344_v48 }
  0xbb   : > { %v1094_v51 = vadd.f32 %v412_v46, %v300_v47  ;;  %v1096_v52 = vadd.f32 %v457_v49, %v345_v50 }
  0xbd   : > { %v503_v40 = vadd.f32 %v502_v38, %v1094_v51 }
  0xc0   : > { %v302_v53 = vpop.f32.mrf.mxu0  ;;  %v347_v56 = vpop.f32.mrf.mxu2 }
  0xc1   : > { %v415_v54 = vpop.f32.mrf.mxu1  ;;  %v303_v55 = vadd.f32 %v1081_v32, %v302_v53  ;;  %v460_v57 = vpop.f32.mrf.mxu3  ;;  %v348_v58 = vadd.f32 %v1081_v32, %v347_v56 }
  0xc3   : > { %v1100_v59 = vadd.f32 %v415_v54, %v303_v55  ;;  %v1102_v60 = vadd.f32 %v460_v57, %v348_v58 }
  0xc5   : > { %v504_v45 = vadd.f32 %v503_v40, %v1100_v59 }
  0xc8   : > { %v305_v61 = vpop.f32.mrf.mxu0  ;;  %v350_v0 = vpop.f32.mrf.mxu2 }
  0xc9   : > { %v418_v62 = vpop.f32.mrf.mxu1  ;;  %v306_v63 = vadd.f32 %v1081_v32, %v305_v61  ;;  %v463_v1 = vpop.f32.mrf.mxu3  ;;  %v351_v2 = vadd.f32 %v1081_v32, %v350_v0 }
  0xcb   : > { %v1106_v3 = vadd.f32 %v418_v62, %v306_v63  ;;  %v1108_v4 = vadd.f32 %v463_v1, %v351_v2 }
  0xcd   : > { %v505_v48 = vadd.f32 %v504_v45, %v1106_v3 }
  0xd0   : > { %v308_v5 = vpop.f32.mrf.mxu0  ;;  %v353_v7 = vpop.f32.mrf.mxu2 }
  0xd1   : > { %v421_v6 = vpop.f32.mrf.mxu1  ;;  %v466_v8 = vpop.f32.mrf.mxu3  ;;  %v354_v9 = vadd.f32 %v1081_v32, %v353_v7  ;;  %v309_v39 = vadd.f32 %v1081_v32, %v308_v5 }
  0xd3   : > { %v1111_v10 = vadd.f32 %v466_v8, %v354_v9  ;;  %v1143_v46 = vadd.f32 %v421_v6, %v309_v39 }
  0xd5   : > { %v506_v55 = vadd.f32 %v505_v48, %v1143_v46 }
  0xd8   : > { %v311_v11 = vpop.f32.mrf.mxu0  ;;  %v1113_v13 = vpop.f32.mrf.mxu2 }
  0xd9   : > { %v424_v12 = vpop.f32.mrf.mxu1  ;;  %v1115_v14 = vpop.f32.mrf.mxu3  ;;  %v312_v41 = vadd.f32 %v1081_v32, %v311_v11 }
  0xdb   : > { %v1147_v49 = vadd.f32 %v424_v12, %v312_v41 }
  0xdd   : > { %v507_v61 = vadd.f32 %v506_v55, %v1147_v49  ;;  %v357_v55 = vadd.f32 %v1081_v32, %v1113_v13 }
  0xe0   : > { %v314_v15 = vpop.f32.mrf.mxu0  ;;  %v1117_v17 = vpop.f32.mrf.mxu2 }
  0xe1   : > { %v427_v16 = vpop.f32.mrf.mxu1  ;;  %v1119_v18 = vpop.f32.mrf.mxu3  ;;  %v315_v47 = vadd.f32 %v1081_v32, %v314_v15 }
  0xe3   : > { %v1151_v56 = vadd.f32 %v427_v16, %v315_v47 }
  0xe5   : > { %v508_v0 = vadd.f32 %v507_v61, %v1151_v56  ;;  %v360_v61 = vadd.f32 %v1081_v32, %v1117_v17 }
  0xe8   : > { %v317_v19 = vpop.f32.mrf.mxu0  ;;  %v1121_v21 = vpop.f32.mrf.mxu2 }
  0xe9   : > { %v430_v20 = vpop.f32.mrf.mxu1  ;;  %v1123_v22 = vpop.f32.mrf.mxu3  ;;  %v318_v50 = vadd.f32 %v1081_v32, %v317_v19 }
  0xeb   : > { %v1155_v62 = vadd.f32 %v430_v20, %v318_v50 }
  0xed   : > { %v509_v6 = vadd.f32 %v508_v0, %v1155_v62  ;;  %v470_v0 = vadd.f32 %v1115_v14, %v357_v55 }
  0xf0   : > { %v320_v23 = vpop.f32.mrf.mxu0  ;;  %v1125_v25 = vpop.f32.mrf.mxu2 }
  0xf1   : > { %v433_v24 = vpop.f32.mrf.mxu1  ;;  %v1127_v26 = vpop.f32.mrf.mxu3  ;;  %v321_v57 = vadd.f32 %v1081_v32, %v320_v23  ;;  %v366_v13 = vadd.f32 %v1081_v32, %v1125_v25  ;;  %v881_v25 = vmov 256.0  }
  0xf2   : > { %869 = vrcp.f32 %v881_v25 }
  0xf3   : > { %v1159_v1 = vadd.f32 %v433_v24, %v321_v57  ;;  %v479_v14 = vadd.f32 %v1127_v26, %v366_v13 }
  0xf5   : > { %v510_v12 = vadd.f32 %v509_v6, %v1159_v1 }
  0xf8   : > { %v323_v27 = vpop.f32.mrf.mxu0  ;;  %v1129_v29 = vpop.f32.mrf.mxu2 }
  0xf9   : > { %v436_v28 = vpop.f32.mrf.mxu1  ;;  %v1131_v33 = vpop.f32.mrf.mxu3  ;;  %v324_v63 = vadd.f32 %v1081_v32, %v323_v27  ;;  %v369_v17 = vadd.f32 %v1081_v32, %v1129_v29 }
  0xfb   : > { %v1163_v7 = vadd.f32 %v436_v28, %v324_v63 }
  0xfd   : > { %v511_v19 = vadd.f32 %v510_v12, %v1163_v7 }
 0x100   : > { %v326_v30 = vpop.f32.mrf.mxu0  ;;  %v1133_v34 = vpop.f32.mrf.mxu2 }
 0x101   : > { %v439_v31 = vpop.f32.mrf.mxu1  ;;  %v1140_v42 = vpop.f32.mrf.mxu3  ;;  %v327_v2 = vadd.f32 %v1081_v32, %v326_v30 }
 0x103   : > { %v1167_v15 = vadd.f32 %v439_v31, %v327_v2  ;;  %v363_v2 = vadd.f32 %v1081_v32, %v1121_v21  ;;  %v372_v21 = vadd.f32 %v1081_v32, %v1133_v34 }
 0x105   : > { %v512_v27 = vadd.f32 %v511_v19, %v1167_v15  ;;  %v476_v12 = vadd.f32 %v1123_v22, %v363_v2  ;;  %v485_v22 = vadd.f32 %v1140_v42, %v372_v21 }
 0x108   : > { %v329_v35 = vpop.f32.mrf.mxu0  ;;  %v374_v58 = vpop.f32.mrf.mxu2 }
 0x109   : > { %v442_v37 = vpop.f32.mrf.mxu1  ;;  %v487_v5 = vpop.f32.mrf.mxu3  ;;  %v330_v8 = vadd.f32 %v1081_v32, %v329_v35 }
 0x10b   : > { %v1171_v20 = vadd.f32 %v442_v37, %v330_v8 }
 0x10d   : > { %v513_v30 = vadd.f32 %v512_v27, %v1171_v20  ;;  %v482_v27 = vadd.f32 %v1131_v33, %v369_v17 }
 0x110   : > { %v332_v53 = vpop.f32.mrf.mxu0  ;;  %v377_v24 = vpop.f32.mrf.mxu2 }
 0x111   : > { %v445_v54 = vpop.f32.mrf.mxu1  ;;  %v333_v16 = vadd.f32 %v1081_v32, %v332_v53  ;;  %v490_v38 = vpop.f32.mrf.mxu3  ;;  %v378_v29 = vadd.f32 %v1081_v32, %v377_v24 }
 0x113   : > { %v1175_v28 = vadd.f32 %v445_v54, %v333_v16  ;;  %v491_v34 = vadd.f32 %v490_v38, %v378_v29 }
 0x115   : > { %v514_v40 = vadd.f32 %v513_v30, %v1175_v28 }
 0x118   : > { %v335_v9 = vpop.f32.mrf.mxu0  ;;  %v380_v48 = vpop.f32.mrf.mxu2 }
 0x119   : > { %v448_v11 = vpop.f32.mrf.mxu1  ;;  %v336_v23 = vadd.f32 %v1081_v32, %v335_v9  ;;  %v493_v54 = vpop.f32.mrf.mxu3  ;;  %v473_v9 = vadd.f32 %v1119_v18, %v360_v61  ;;  %v375_v18 = vadd.f32 %v1081_v32, %v374_v58  ;;  %v381_v26 = vadd.f32 %v1081_v32, %v380_v48 }
 0x11a   : > { %v870_v58 = vpop.eup %869 }
 0x11b   : > { %v1178_v35 = vadd.f32 %v448_v11, %v336_v23  ;;  %v494_v55 = vadd.f32 %v493_v54, %v381_v26  ;;  %vm545_vm0 = vweird.f32 %v870_v58 }
 0x11d   : > { %v515_v37 = vadd.f32 %v514_v40, %v1178_v35  ;;  %v488_v40 = vadd.f32 %v487_v5, %v375_v18 }
 0x120   : > { %v338_v31 = vpop.f32.mrf.mxu0  ;;  %v383_v8 = vpop.f32.mrf.mxu2 }
 0x121   : > { %v451_v39 = vpop.f32.mrf.mxu1  ;;  %v339_v41 = vadd.f32 %v1081_v32, %v338_v31  ;;  %v496_v19 = vpop.f32.mrf.mxu3 }
 0x123   : > { %v1183_v45 = vadd.f32 %v451_v39, %v339_v41 }
 0x125   : > { %v516_v47 = vadd.f32 %v515_v37, %v1183_v45 }
 0x127   : > { %v517_v50 = vadd.f32 %v516_v47, %v1090_v44  ;;  %v384_v47 = vadd.f32 %v1081_v32, %v383_v8 }
 0x128   : > { %v386_v39 = vpop.f32.mrf.mxu2 }
 0x129   : > { %v518_v53 = vadd.f32 %v517_v50, %v1096_v52  ;;  %v387_v33 = vadd.f32 %v1081_v32, %v386_v39  ;;  %v499_v50 = vpop.f32.mrf.mxu3  ;;  %v497_v42 = vadd.f32 %v496_v19, %v384_v47 }
 0x12b   : > { %v519_v57 = vadd.f32 %v518_v53, %v1102_v60  ;;  %v500_v61 = vadd.f32 %v499_v50, %v387_v33 }
 0x12d   : > { %v520_v63 = vadd.f32 %v519_v57, %v1108_v4 }
 0x12f   : > { %v521_v6 = vadd.f32 %v520_v63, %v1111_v10  ;;  %v541_v63 = vmul.f32 256.0, %v870_v58 }
 0x131   : > { %v522_v11 = vadd.f32 %v521_v6, %v470_v0  ;;  %v542_v5 = vsub.f32 1.0, %v541_v63 }
 0x133   : > { %v523_v16 = vadd.f32 %v522_v11, %v473_v9  ;;  %v543_v48 = vmul.f32 %v870_v58, %v542_v5 }
 0x135   : > { %v524_v23 = vadd.f32 %v523_v16, %v476_v12  ;;  %v544_v17 = vadd.f32 %v870_v58, %v543_v48 }
 0x137   : > { %v525_v30 = vadd.f32 %v524_v23, %v479_v14  ;;  %v1214_v16 = vsel %vm545_vm0, %v870_v58, %v544_v17 }
 0x139   : > { %v526_v31 = vadd.f32 %v525_v30, %v482_v27 }
 0x13b   : > { %v527_v41 = vadd.f32 %v526_v31, %v485_v22 }
 0x13d   : > { %v528_v37 = vadd.f32 %v527_v41, %v488_v40 }
 0x13f   : > { %v529_v53 = vadd.f32 %v528_v37, %v491_v34 }
 0x141   : > { %v530_v57 = vadd.f32 %v529_v53, %v494_v55 }
 0x143   : > { %v531_v24 = vadd.f32 %v530_v57, %v497_v42 }
 0x145   : > { %v532_v2 = vadd.f32 %v531_v24, %v500_v61 }
 0x147   : > { %v533_v6 = vrot.slane %v532_v2, 4 }
 0x149   : > { %v534_v13 = vadd.f32 %v533_v6, %v532_v2 }
 0x14b   : > { %v535_v11 = vrot.slane %v534_v13, 2 }
 0x14d   : > { %v536_v38 = vadd.f32 %v535_v11, %v534_v13 }
 0x14f   : > { %v537_v8 = vrot.slane %v536_v38, 1 }
 0x151   : > { %v538_v32 = vadd.f32 %v537_v8, %v536_v38 }
 0x153   : > { %v547_v54 = vmul.f32 %v1214_v16, %v538_v32 }
 0x155   : > { %v1218_v19 = vsub.f32 %v1178_v35, %v547_v54  ;;  %v1221_v21 = vsub.f32 %v1183_v45, %v547_v54  ;;  %v1224_v23 = vsub.f32 %v1090_v44, %v547_v54  ;;  %v1227_v18 = vsub.f32 %v1096_v52, %v547_v54 }
 0x156   : > { %v1230_v30 = vsub.f32 %v1102_v60, %v547_v54  ;;  %v1233_v25 = vsub.f32 %v1108_v4, %v547_v54  ;;  %v1236_v31 = vsub.f32 %v1111_v10, %v547_v54  ;;  %v1238_v35 = vsub.f32 %v470_v0, %v547_v54 }
 0x157   : > { %v1240_v29 = vsub.f32 %v473_v9, %v547_v54  ;;  %v1242_v45 = vsub.f32 %v476_v12, %v547_v54  ;;  %v1244_v44 = vsub.f32 %v479_v14, %v547_v54  ;;  %v1246_v39 = vsub.f32 %v482_v27, %v547_v54 }
 0x158   : > { %v1248_v52 = vsub.f32 %v485_v22, %v547_v54  ;;  %v1250_v60 = vsub.f32 %v488_v40, %v547_v54  ;;  %v1252_v41 = vsub.f32 %v491_v34, %v547_v54  ;;  %v1254_v4 = vsub.f32 %v494_v55, %v547_v54 }
 0x159   : > { %v1256_v10 = vsub.f32 %v497_v42, %v547_v54  ;;  %v1258_v0 = vsub.f32 %v500_v61, %v547_v54  ;;  %v1261_v9 = vsub.f32 %v1084_v36, %v547_v54  ;;  %v1264_v12 = vsub.f32 %v1088_v43, %v547_v54 }
 0x15a   : > { %v1267_v14 = vsub.f32 %v1094_v51, %v547_v54  ;;  %v1274_v40 = vsub.f32 %v1100_v59, %v547_v54  ;;  %v1277_v26 = vsub.f32 %v1106_v3, %v547_v54  ;;  %v1282_v37 = vsub.f32 %v1143_v46, %v547_v54 }
 0x15b   : > { %v580_v27 = vmul.f32 %v1261_v9, %v1261_v9  ;;  %v581_v22 = vmul.f32 %v1264_v12, %v1264_v12  ;;  %v1287_v47 = vsub.f32 %v1147_v49, %v547_v54  ;;  %v1292_v3 = vsub.f32 %v1151_v56, %v547_v54 }
 0x15c   : > { %v582_v36 = vmul.f32 %v1267_v14, %v1267_v14  ;;  %v583_v51 = vmul.f32 %v1274_v40, %v1274_v40  ;;  %v584_v59 = vmul.f32 %v1277_v26, %v1277_v26  ;;  %v585_v58 = vmul.f32 %v1282_v37, %v1282_v37 }
 0x15d   : > { %v612_v43 = vadd.f32 %v581_v22, %v580_v27  ;;  %v1297_v46 = vsub.f32 %v1155_v62, %v547_v54  ;;  %v586_v53 = vmul.f32 %v1287_v47, %v1287_v47  ;;  %v1302_v49 = vsub.f32 %v1159_v1, %v547_v54 }
 0x15e   : > { %v587_v57 = vmul.f32 %v1292_v3, %v1292_v3  ;;  %v1307_v56 = vsub.f32 %v1163_v7, %v547_v54  ;;  %v1312_v62 = vsub.f32 %v1167_v15, %v547_v54  ;;  %v1317_v1 = vsub.f32 %v1171_v20, %v547_v54 }
 0x15f   : > { %v613_v34 = vadd.f32 %v612_v43, %v582_v36  ;;  %v588_v61 = vmul.f32 %v1297_v46, %v1297_v46  ;;  %v589_v24 = vmul.f32 %v1302_v49, %v1302_v49  ;;  %v1322_v7 = vsub.f32 %v1175_v28, %v547_v54 }
 0x160   : > { %v590_v5 = vmul.f32 %v1307_v56, %v1307_v56  ;;  %v591_v13 = vmul.f32 %v1312_v62, %v1312_v62  ;;  %v592_v15 = vmul.f32 %v1317_v1, %v1317_v1  ;;  %v594_v17 = vmul.f32 %v1218_v19, %v1218_v19 }
 0x161   : > { %v614_v33 = vadd.f32 %v613_v34, %v583_v51  ;;  %v593_v38 = vmul.f32 %v1322_v7, %v1322_v7  ;;  %v595_v28 = vmul.f32 %v1221_v21, %v1221_v21  ;;  %v596_v54 = vmul.f32 %v1224_v23, %v1224_v23 }
 0x162   : > { %v597_v22 = vmul.f32 %v1227_v18, %v1227_v18  ;;  %v598_v43 = vmul.f32 %v1230_v30, %v1230_v30  ;;  %v599_v34 = vmul.f32 %v1233_v25, %v1233_v25 }
 0x163   : > { %v615_v50 = vadd.f32 %v614_v33, %v584_v59  ;;  %v600_v33 = vmul.f32 %v1236_v31, %v1236_v31 }
 0x165   : > { %v616_v55 = vadd.f32 %v615_v50, %v585_v58  ;;  %v601_v50 = vmul.f32 %v1238_v35, %v1238_v35 }
 0x167   : > { %v617_v42 = vadd.f32 %v616_v55, %v586_v53  ;;  %v602_v55 = vmul.f32 %v1240_v29, %v1240_v29 }
 0x169   : > { %v618_v63 = vadd.f32 %v617_v42, %v587_v57  ;;  %v603_v42 = vmul.f32 %v1242_v45, %v1242_v45 }
 0x16b   : > { %v619_v2 = vadd.f32 %v618_v63, %v588_v61  ;;  %v604_v63 = vmul.f32 %v1244_v44, %v1244_v44 }
 0x16d   : > { %v620_v6 = vadd.f32 %v619_v2, %v589_v24  ;;  %v605_v2 = vmul.f32 %v1246_v39, %v1246_v39 }
 0x16f   : > { %v621_v48 = vadd.f32 %v620_v6, %v590_v5  ;;  %v606_v6 = vmul.f32 %v1248_v52, %v1248_v52 }
 0x171   : > { %v622_v11 = vadd.f32 %v621_v48, %v591_v13  ;;  %v607_v48 = vmul.f32 %v1250_v60, %v1250_v60 }
 0x173   : > { %v623_v20 = vadd.f32 %v622_v11, %v592_v15  ;;  %v608_v11 = vmul.f32 %v1252_v41, %v1252_v41 }
 0x175   : > { %v624_v8 = vadd.f32 %v623_v20, %v593_v38  ;;  %v609_v20 = vmul.f32 %v1254_v4, %v1254_v4 }
 0x177   : > { %v625_v32 = vadd.f32 %v624_v8, %v594_v17  ;;  %v610_v8 = vmul.f32 %v1256_v10, %v1256_v10 }
 0x179   : > { %v626_v27 = vadd.f32 %v625_v32, %v595_v28  ;;  %v611_v32 = vmul.f32 %v1258_v0, %v1258_v0 }
 0x17b   : > { %v627_v36 = vadd.f32 %v626_v27, %v596_v54 }
 0x17d   : > { %v628_v51 = vadd.f32 %v627_v36, %v597_v22 }
 0x17f   : > { %v629_v59 = vadd.f32 %v628_v51, %v598_v43 }
 0x181   : > { %v630_v58 = vadd.f32 %v629_v59, %v599_v34 }
 0x183   : > { %v631_v53 = vadd.f32 %v630_v58, %v600_v33 }
 0x185   : > { %v632_v57 = vadd.f32 %v631_v53, %v601_v50 }
 0x187   : > { %v633_v61 = vadd.f32 %v632_v57, %v602_v55 }
 0x189   : > { %v634_v24 = vadd.f32 %v633_v61, %v603_v42 }
 0x18b   : > { %v635_v5 = vadd.f32 %v634_v24, %v604_v63 }
 0x18d   : > { %v636_v13 = vadd.f32 %v635_v5, %v605_v2 }
 0x18f   : > { %v637_v15 = vadd.f32 %v636_v13, %v606_v6 }
 0x191   : > { %v638_v38 = vadd.f32 %v637_v15, %v607_v48 }
 0x193   : > { %v639_v17 = vadd.f32 %v638_v38, %v608_v11 }
 0x195   : > { %v640_v28 = vadd.f32 %v639_v17, %v609_v20 }
 0x197   : > { %v641_v54 = vadd.f32 %v640_v28, %v610_v8 }
 0x199   : > { %v642_v27 = vadd.f32 %v641_v54, %v611_v32 }
 0x19b   : > { %v643_v22 = vrot.slane %v642_v27, 4 }
 0x19d   : > { %v644_v36 = vadd.f32 %v643_v22, %v642_v27 }
 0x19f   : > { %v645_v43 = vrot.slane %v644_v36, 2 }
 0x1a1   : > { %v646_v51 = vadd.f32 %v645_v43, %v644_v36 }
 0x1a3   : > { %v647_v34 = vrot.slane %v646_v51, 1 }
 0x1a5   : > { %v648_v59 = vadd.f32 %v647_v34, %v646_v51 }
 0x1a7   : > { %v650_v33 = vmul.f32 %v648_v59, %v1214_v16 }
 0x1a9   : > { %v651_v58 = vadd.f32 1e-05, %v650_v33 }
 0x1ab   : > { %871 = vrsqrt.f32 %v651_v58  ;;  %vm658_vm2 = vweird.f32 %v651_v58 }
 0x1b1   : > { %v872_v50 = vpop.eup %871 }
 0x1b2   : > { %v653_v53 = vmul.f32 %v872_v50, %v651_v58  ;;  %vm659_vm1 = vweird.f32 %v872_v50 }
 0x1b3   : > { %vm660_vm3 = vmor %vm658_vm2, %vm659_vm1 }
 0x1b4   : > { %v654_v55 = vmul.f32 %v872_v50, %v653_v53 }
 0x1b6   : > { %v655_v57 = vmul.f32 0.5, %v654_v55 }
 0x1b8   : > { %v656_v42 = vsub.f32 1.5, %v655_v57 }
 0x1ba   : > { %v657_v61 = vmul.f32 %v872_v50, %v656_v42 }
 0x1bc   : > { %v1369_v63 = vsel %vm660_vm3, %v872_v50, %v657_v61 }
 0x1bd   : > { %v662_v24 = vmul.f32 %v1369_v63, %v1261_v9  ;;  %v663_v16 = vmul.f32 %v1369_v63, %v1264_v12  ;;  %v664_v2 = vmul.f32 %v1369_v63, %v1267_v14  ;;  %v665_v5 = vmul.f32 %v1369_v63, %v1274_v40 }
 0x1be   : > { %v666_v6 = vmul.f32 %v1369_v63, %v1277_v26  ;;  %v667_v9 = vmul.f32 %v1369_v63, %v1282_v37  ;;  %v668_v12 = vmul.f32 %v1369_v63, %v1287_v47  ;;  %v669_v26 = vmul.f32 %v1369_v63, %v1292_v3 }
 0x1bf   : > { %v694_v14 = vmax.f32 %v662_v24, 0.0  ;;  %v695_v40 = vmax.f32 %v663_v16, 0.0  ;;  %v696_v13 = vmax.f32 %v664_v2, 0.0  ;;  %v697_v48 = vmax.f32 %v665_v5, 0.0 }
 0x1c0   : > { %v670_v15 = vmul.f32 %v1369_v63, %v1297_v46  ;;  %v698_v11 = vmax.f32 %v666_v6, 0.0  ;;  %v671_v37 = vmul.f32 %v1369_v63, %v1302_v49  ;;  %v699_v38 = vmax.f32 %v667_v9, 0.0 }
 0x1c1   : > { %726 = vst [vmem:[%s1384_s11] sm:$0xff] %v694_v14  ;;  %v672_v47 = vmul.f32 %v1369_v63, %v1307_v56  ;;  %v700_v20 = vmax.f32 %v668_v12, 0.0  ;;  %v673_v3 = vmul.f32 %v1369_v63, %v1312_v62  ;;  %v701_v17 = vmax.f32 %v669_v26, 0.0 }
 0x1c2   : > { %727 = vst [vmem:[%s1384_s11 + $0x8] sm:$0xff] %v695_v40  ;;  %v674_v46 = vmul.f32 %v1369_v63, %v1317_v1  ;;  %v702_v8 = vmax.f32 %v670_v15, 0.0  ;;  %v675_v49 = vmul.f32 %v1369_v63, %v1322_v7  ;;  %v703_v28 = vmax.f32 %v671_v37, 0.0 }
 0x1c3   : > { %728 = vst [vmem:[%s1384_s11 + $0x10] sm:$0xff] %v696_v13  ;;  %v676_v56 = vmul.f32 %v1369_v63, %v1218_v19  ;;  %v704_v32 = vmax.f32 %v672_v47, 0.0  ;;  %v677_v62 = vmul.f32 %v1369_v63, %v1221_v21  ;;  %v705_v54 = vmax.f32 %v673_v3, 0.0 }
 0x1c4   : > { %729 = vst [vmem:[%s1384_s11 + $0x18] sm:$0xff] %v697_v48  ;;  %v678_v1 = vmul.f32 %v1369_v63, %v1224_v23  ;;  %v706_v27 = vmax.f32 %v674_v46, 0.0  ;;  %v679_v7 = vmul.f32 %v1369_v63, %v1227_v18  ;;  %v707_v22 = vmax.f32 %v675_v49, 0.0 }
 0x1c5   : > { %730 = vst [vmem:[%s1384_s11 + $0x20] sm:$0xff] %v698_v11  ;;  %v680_v19 = vmul.f32 %v1369_v63, %v1230_v30  ;;  %v708_v36 = vmax.f32 %v676_v56, 0.0  ;;  %v681_v21 = vmul.f32 %v1369_v63, %v1233_v25  ;;  %v709_v43 = vmax.f32 %v677_v62, 0.0 }
 0x1c6   : > { %731 = vst [vmem:[%s1384_s11 + $0x28] sm:$0xff] %v699_v38  ;;  %v682_v23 = vmul.f32 %v1369_v63, %v1236_v31  ;;  %v710_v51 = vmax.f32 %v678_v1, 0.0  ;;  %v683_v18 = vmul.f32 %v1369_v63, %v1238_v35  ;;  %v711_v34 = vmax.f32 %v679_v7, 0.0 }
 0x1c7   : > { %732 = vst [vmem:[%s1384_s11 + $0x30] sm:$0xff] %v700_v20  ;;  %v684_v30 = vmul.f32 %v1369_v63, %v1240_v29  ;;  %v712_v59 = vmax.f32 %v680_v19, 0.0  ;;  %v685_v25 = vmul.f32 %v1369_v63, %v1242_v45  ;;  %v713_v33 = vmax.f32 %v681_v21, 0.0 }
 0x1c8   : > { %733 = vst [vmem:[%s1384_s11 + $0x38] sm:$0xff] %v701_v17  ;;  %v686_v31 = vmul.f32 %v1369_v63, %v1244_v44  ;;  %v714_v58 = vmax.f32 %v682_v23, 0.0  ;;  %v687_v35 = vmul.f32 %v1369_v63, %v1246_v39  ;;  %v715_v50 = vmax.f32 %v683_v18, 0.0 }
 0x1c9   : > { %734 = vst [vmem:[%s1384_s11 + $0x40] sm:$0xff] %v702_v8  ;;  %v688_v29 = vmul.f32 %v1369_v63, %v1248_v52  ;;  %v716_v53 = vmax.f32 %v684_v30, 0.0  ;;  %v689_v45 = vmul.f32 %v1369_v63, %v1250_v60  ;;  %v717_v44 = vmax.f32 %v685_v25, 0.0 }
 0x1ca   : > { %735 = vst [vmem:[%s1384_s11 + $0x48] sm:$0xff] %v703_v28  ;;  %v690_v55 = vmul.f32 %v1369_v63, %v1252_v41  ;;  %v718_v39 = vmax.f32 %v686_v31, 0.0  ;;  %v691_v57 = vmul.f32 %v1369_v63, %v1254_v4  ;;  %v719_v52 = vmax.f32 %v687_v35, 0.0 }
 0x1cb   : > { %736 = vst [vmem:[%s1384_s11 + $0x50] sm:$0xff] %v704_v32  ;;  %v692_v60 = vmul.f32 %v1369_v63, %v1256_v10  ;;  %v720_v42 = vmax.f32 %v688_v29, 0.0  ;;  %v693_v41 = vmul.f32 %v1369_v63, %v1258_v0  ;;  %v721_v61 = vmax.f32 %v689_v45, 0.0 }
 0x1cc   : > { %737 = vst [vmem:[%s1384_s11 + $0x58] sm:$0xff] %v705_v54  ;;  %v722_v24 = vmax.f32 %v690_v55, 0.0  ;;  %v723_v4 = vmax.f32 %v691_v57, 0.0 }
 0x1cd   : > { %738 = vst [vmem:[%s1384_s11 + $0x60] sm:$0xff] %v706_v27  ;;  %v724_v16 = vmax.f32 %v692_v60, 0.0  ;;  %v725_v2 = vmax.f32 %v693_v41, 0.0 }
 0x1ce   : > { %739 = vst [vmem:[%s1384_s11 + $0x68] sm:$0xff] %v707_v22 }
 0x1cf   : > { %740 = vst [vmem:[%s1384_s11 + $0x70] sm:$0xff] %v708_v36 }
 0x1d0   : > { %741 = vst [vmem:[%s1384_s11 + $0x78] sm:$0xff] %v709_v43 }
 0x1d1   : > { %742 = vst [vmem:[%s1384_s11 + $0x80] sm:$0xff] %v710_v51 }
 0x1d2   : > { %743 = vst [vmem:[%s1384_s11 + $0x88] sm:$0xff] %v711_v34 }
 0x1d3   : > { %744 = vst [vmem:[%s1384_s11 + $0x90] sm:$0xff] %v712_v59 }
 0x1d4   : > { %745 = vst [vmem:[%s1384_s11 + $0x98] sm:$0xff] %v713_v33 }
 0x1d5   : > { %746 = vst [vmem:[%s1384_s11 + $0xa0] sm:$0xff] %v714_v58 }
 0x1d6   : > { %747 = vst [vmem:[%s1384_s11 + $0xa8] sm:$0xff] %v715_v50 }
 0x1d7   : > { %748 = vst [vmem:[%s1384_s11 + $0xb0] sm:$0xff] %v716_v53 }
 0x1d8   : > { %749 = vst [vmem:[%s1384_s11 + $0xb8] sm:$0xff] %v717_v44 }
 0x1d9   : > { %750 = vst [vmem:[%s1384_s11 + $0xc0] sm:$0xff] %v718_v39 }
 0x1da   : > { %751 = vst [vmem:[%s1384_s11 + $0xc8] sm:$0xff] %v719_v52 }
 0x1db   : > { %752 = vst [vmem:[%s1384_s11 + $0xd0] sm:$0xff] %v720_v42 }
 0x1dc   : > { %753 = vst [vmem:[%s1384_s11 + $0xd8] sm:$0xff] %v721_v61 }
 0x1dd   : > { %754 = vst [vmem:[%s1384_s11 + $0xe0] sm:$0xff] %v722_v24 }
 0x1de   : > { %755 = vst [vmem:[%s1384_s11 + $0xe8] sm:$0xff] %v723_v4 }
 0x1df   : > { %756 = vst [vmem:[%s1384_s11 + $0xf0] sm:$0xff] %v724_v16 }
 0x1e0   : > { %757 = vst [vmem:[%s1384_s11 + $0xf8] sm:$0xff] %v725_v2 }
 0x1e1 PF: > { %s13_s12 = sadd.s32 1, %s879_s12  }
 0x1e2   : > { %p10_p5 = scmp.ge.s32.totalorder %s13_s12, 4  }
 0x1e4   :  { %12 = sbr.rel (!%p10_p5) target bundleno = 1 (0x1), region = 62 }

// kernel: generator_forward.8
= control target key start
LH: loop header
LB: loop body
LE: loop exit
PB: predicated region body
PF: predicated region fallthrough
CT: control target
= control target key end

     0   :  { %s996_s12 = smov 0   ;;  %s1600_s0 = inlined_call_operand.vmem [shape: f32[128,1152], index: 0, kind: input, shape index: {}]   ;;  %s1601_s1 = inlined_call_operand.vmem [shape: f32[1152,128], index: 1, kind: input, shape index: {}]   ;;  %s1602_s2 = inlined_call_operand.vmem [shape: f32[1,128], index: 2, kind: input, shape index: {}]   ;;  %s1603_s3 = inlined_call_operand.vmem [shape: f32[2,64,128], index: 3, kind: output, shape index: {}]  }
   0x1 LB: > { %s1002_s13 = sadd.s32 4294967295, %s973_s12   ;;  %p912_p0 = scmp.ge.s32.totalorder %s973_s12, 1  ;;  %s973_s12 = sphi %s996_s12, %s13_s12  }
   0x2   : > { %p139_p1 = scmp.lt.s32.totalorder %s973_s12, 3 }
   0x4   : > { %p140_p2 = pnand %p912_p0, %p139_p1 }
   0x5   : > { %s913_s19 = sshll.u32 (!%p140_p2), %s1002_s13, 3  ;;  %p171_p4 = scmp.lt.s32.totalorder (!%p140_p2), %s1002_s13, 1 }
   0x6   : > { %143 = sbr.rel (%p140_p2) target bundleno = 409 (0x199), region = 32  ;;  %p1067_p3 = scmp.lt.s32.totalorder (!%p140_p2), %s913_s19, 15 }
   0xb   : > { %v263_v0 = vld [vmem:[%s1601_s1 + $0x78] sm:$0xff]  ;;  %v262_v1 = vld [vmem:[%s1601_s1 + $0x70] sm:$0xff]  ;;  %v261_v2 = vld [vmem:[%s1601_s1 + $0x68] sm:$0xff]  ;;  %s1606_s19 = smov (!%p1067_p3, %s913_s19), 15  ;;  %s1608_s13 = smov (!%p171_p4, %s1002_s13), 1 }
   0xc   : > { %920 = vmatpush.msra.mxu1 %v263_v0  ;;  %396 = vmatpush.msra.mxu0 %v263_v0  ;;  %v295_v3 = vld [vmem:[%s1601_s1 + $0x178] sm:$0xff]  ;;  %v294_v4 = vld [vmem:[%s1601_s1 + $0x170] sm:$0xff]  ;;  %v260_v5 = vld [vmem:[%s1601_s1 + $0x60] sm:$0xff]  ;;  %s952_s4 = smul.u32 72, %s1606_s19 }
   0xd   : > { %478 = vmatpush.msra.mxu2 %v295_v3  ;;  %v293_v6 = vld [vmem:[%s1601_s1 + $0x168] sm:$0xff]  ;;  %v259_v7 = vld [vmem:[%s1601_s1 + $0x58] sm:$0xff]  ;;  %v292_v8 = vld [vmem:[%s1601_s1 + $0x160] sm:$0xff] }
   0xe   : > { %921 = vmatpush.msra.mxu1 %v262_v1  ;;  %397 = vmatpush.msra.mxu0 %v262_v1  ;;  %v258_v9 = vld [vmem:[%s1601_s1 + $0x50] sm:$0xff]  ;;  %v311_v10 = vld [vmem:[%s1601_s1 + $0x1f8] sm:$0xff]  ;;  %v257_v13 = vld [vmem:[%s1601_s1 + $0x48] sm:$0xff]  ;;  %s1133_s21 = scalar_lea.vmem %s1600_s0, %s952_s4 }
   0xf   : > { %479 = vmatpush.msra.mxu2 %v294_v4  ;;  %v291_v11 = vld [vmem:[%s1601_s1 + $0x158] sm:$0xff]  ;;  %v310_v12 = vld [vmem:[%s1601_s1 + $0x1f0] sm:$0xff]  ;;  %519 = vmatpush.msra.mxu3 %v311_v10  ;;  %v309_v15 = vld [vmem:[%s1601_s1 + $0x1e8] sm:$0xff] }
  0x10   : > { %922 = vmatpush.msra.mxu1 %v261_v2  ;;  %398 = vmatpush.msra.mxu0 %v261_v2  ;;  %v290_v14 = vld [vmem:[%s1601_s1 + $0x150] sm:$0xff]  ;;  %v256_v16 = vld [vmem:[%s1601_s1 + $0x40] sm:$0xff]  ;;  %v289_v17 = vld [vmem:[%s1601_s1 + $0x148] sm:$0xff] }
  0x11   : > { %480 = vmatpush.msra.mxu2 %v293_v6  ;;  %520 = vmatpush.msra.mxu3 %v310_v12  ;;  %v308_v18 = vld [vmem:[%s1601_s1 + $0x1e0] sm:$0xff]  ;;  %v255_v19 = vld [vmem:[%s1601_s1 + $0x38] sm:$0xff]  ;;  %v254_v22 = vld [vmem:[%s1601_s1 + $0x30] sm:$0xff] }
  0x12   : > { %923 = vmatpush.msra.mxu1 %v260_v5  ;;  %399 = vmatpush.msra.mxu0 %v260_v5  ;;  %v288_v20 = vld [vmem:[%s1601_s1 + $0x140] sm:$0xff]  ;;  %v307_v21 = vld [vmem:[%s1601_s1 + $0x1d8] sm:$0xff]  ;;  %v306_v24 = vld [vmem:[%s1601_s1 + $0x1d0] sm:$0xff] }
  0x13   : > { %481 = vmatpush.msra.mxu2 %v292_v8  ;;  %521 = vmatpush.msra.mxu3 %v309_v15  ;;  %v287_v23 = vld [vmem:[%s1601_s1 + $0x138] sm:$0xff]  ;;  %v253_v25 = vld [vmem:[%s1601_s1 + $0x28] sm:$0xff]  ;;  %v286_v26 = vld [vmem:[%s1601_s1 + $0x130] sm:$0xff] }
  0x14   : > { %924 = vmatpush.msra.mxu1 %v259_v7  ;;  %400 = vmatpush.msra.mxu0 %v259_v7  ;;  %v305_v27 = vld [vmem:[%s1601_s1 + $0x1c8] sm:$0xff]  ;;  %v252_v28 = vld [vmem:[%s1601_s1 + $0x20] sm:$0xff]  ;;  %v251_v31 = vld [vmem:[%s1601_s1 + $0x18] sm:$0xff] }
  0x15   : > { %482 = vmatpush.msra.mxu2 %v291_v11  ;;  %522 = vmatpush.msra.mxu3 %v308_v18  ;;  %v285_v29 = vld [vmem:[%s1601_s1 + $0x128] sm:$0xff]  ;;  %v304_v30 = vld [vmem:[%s1601_s1 + $0x1c0] sm:$0xff]  ;;  %v303_v33 = vld [vmem:[%s1601_s1 + $0x1b8] sm:$0xff] }
  0x16   : > { %925 = vmatpush.msra.mxu1 %v258_v9  ;;  %401 = vmatpush.msra.mxu0 %v258_v9  ;;  %v284_v32 = vld [vmem:[%s1601_s1 + $0x120] sm:$0xff]  ;;  %v250_v34 = vld [vmem:[%s1601_s1 + $0x10] sm:$0xff]  ;;  %v283_v35 = vld [vmem:[%s1601_s1 + $0x118] sm:$0xff] }
  0x17   : > { %483 = vmatpush.msra.mxu2 %v290_v14  ;;  %523 = vmatpush.msra.mxu3 %v307_v21  ;;  %v302_v36 = vld [vmem:[%s1601_s1 + $0x1b0] sm:$0xff]  ;;  %v249_v37 = vld [vmem:[%s1601_s1 + $0x8] sm:$0xff]  ;;  %v248_v40 = vld [vmem:[%s1601_s1] sm:$0xff] }
  0x18   : > { %926 = vmatpush.msra.mxu1 %v257_v13  ;;  %402 = vmatpush.msra.mxu0 %v257_v13  ;;  %v282_v38 = vld [vmem:[%s1601_s1 + $0x110] sm:$0xff]  ;;  %v301_v39 = vld [vmem:[%s1601_s1 + $0x1a8] sm:$0xff]  ;;  %v212_v41 = vld [vmem:[%s1133_s21 + $0x120] sm:$0xff] }
  0x19   : > { %484 = vmatpush.msra.mxu2 %v289_v17  ;;  %524 = vmatpush.msra.mxu3 %v306_v24  ;;  %v176_v42 = vld [vmem:[%s1133_s21] sm:$0xff]  ;;  %v279_v43 = vld [vmem:[%s1601_s1 + $0xf8] sm:$0xff]  ;;  %v281_v45 = vld [vmem:[%s1601_s1 + $0x108] sm:$0xff] }
  0x1a   : > { %927 = vmatpush.msra.mxu1 %v256_v16  ;;  %403 = vmatpush.msra.mxu0 %v256_v16  ;;  %v327_v44 = vld [vmem:[%s1601_s1 + $0x278] sm:$0xff]  ;;  %v300_v46 = vld [vmem:[%s1601_s1 + $0x1a0] sm:$0xff]  ;;  %v278_v47 = vld [vmem:[%s1601_s1 + $0xf0] sm:$0xff] }
  0x1b   : > { %485 = vmatpush.msra.mxu2 %v288_v20  ;;  %525 = vmatpush.msra.mxu3 %v305_v27  ;;  %v326_v48 = vld [vmem:[%s1601_s1 + $0x270] sm:$0xff]  ;;  %v280_v49 = vld [vmem:[%s1601_s1 + $0x100] sm:$0xff]  ;;  %v299_v50 = vld [vmem:[%s1601_s1 + $0x198] sm:$0xff] }
  0x1c   : > { %928 = vmatpush.msra.mxu1 %v255_v19  ;;  %404 = vmatpush.msra.mxu0 %v255_v19  ;;  %v277_v51 = vld [vmem:[%s1601_s1 + $0xe8] sm:$0xff]  ;;  %v178_v53 = vld [vmem:[%s1133_s21 + $0x10] sm:$0xff]  ;;  %v276_v55 = vld [vmem:[%s1601_s1 + $0xe0] sm:$0xff] }
  0x1d   : > { %486 = vmatpush.msra.mxu2 %v287_v23  ;;  %526 = vmatpush.msra.mxu3 %v304_v30  ;;  %v325_v52 = vld [vmem:[%s1601_s1 + $0x268] sm:$0xff]  ;;  %v298_v54 = vld [vmem:[%s1601_s1 + $0x190] sm:$0xff]  ;;  %v324_v56 = vld [vmem:[%s1601_s1 + $0x260] sm:$0xff] }
  0x1e   : > { %929 = vmatpush.msra.mxu1 %v254_v22  ;;  %405 = vmatpush.msra.mxu0 %v254_v22  ;;  %v221_v57 = vld [vmem:[%s1133_s21 + $0x168] sm:$0xff]  ;;  %v275_v59 = vld [vmem:[%s1601_s1 + $0xd8] sm:$0xff]  ;;  %v274_v63 = vld [vmem:[%s1601_s1 + $0xd0] sm:$0xff] }
  0x1f   : > { %487 = vmatpush.msra.mxu2 %v286_v26  ;;  %527 = vmatpush.msra.mxu3 %v303_v33  ;;  %v185_v58 = vld [vmem:[%s1133_s21 + $0x48] sm:$0xff]  ;;  %v323_v60 = vld [vmem:[%s1601_s1 + $0x258] sm:$0xff]  ;;  %v322_v0 = vld [vmem:[%s1601_s1 + $0x250] sm:$0xff] }
  0x20   : > { %930 = vmatpush.msra.mxu1 %v253_v25  ;;  %406 = vmatpush.msra.mxu0 %v253_v25  ;;  %v359_v61 = vld [vmem:[%s1601_s1 + $0x378] sm:$0xff]  ;;  %v297_v62 = vld [vmem:[%s1601_s1 + $0x188] sm:$0xff]  ;;  %v358_v1 = vld [vmem:[%s1601_s1 + $0x370] sm:$0xff] }
  0x21   : > { %488 = vmatpush.msra.mxu2 %v285_v29  ;;  %528 = vmatpush.msra.mxu3 %v302_v36  ;;  %v296_v2 = vld [vmem:[%s1601_s1 + $0x180] sm:$0xff]  ;;  %v273_v3 = vld [vmem:[%s1601_s1 + $0xc8] sm:$0xff]  ;;  %v187_v5 = vld [vmem:[%s1133_s21 + $0x58] sm:$0xff] }
  0x22   : > { %931 = vmatpush.msra.mxu1 %v252_v28  ;;  %407 = vmatpush.msra.mxu0 %v252_v28  ;;  %v321_v4 = vld [vmem:[%s1601_s1 + $0x248] sm:$0xff]  ;;  %v179_v6 = vld [vmem:[%s1133_s21 + $0x18] sm:$0xff]  ;;  %v272_v7 = vld [vmem:[%s1601_s1 + $0xc0] sm:$0xff] }
  0x23   : > { %489 = vmatpush.msra.mxu2 %v284_v32  ;;  %529 = vmatpush.msra.mxu3 %v301_v39  ;;  %v320_v8 = vld [vmem:[%s1601_s1 + $0x240] sm:$0xff]  ;;  %v230_v9 = vld [vmem:[%s1133_s21 + $0x1b0] sm:$0xff]  ;;  %v271_v11 = vld [vmem:[%s1601_s1 + $0xb8] sm:$0xff] }
  0x24   : > { %932 = vmatpush.msra.mxu1 %v251_v31  ;;  %408 = vmatpush.msra.mxu0 %v251_v31  ;;  %v194_v10 = vld [vmem:[%s1133_s21 + $0x90] sm:$0xff]  ;;  %v319_v12 = vld [vmem:[%s1601_s1 + $0x238] sm:$0xff]  ;;  %v357_v13 = vld [vmem:[%s1601_s1 + $0x368] sm:$0xff] }
  0x25   : > { %490 = vmatpush.msra.mxu2 %v283_v35  ;;  %530 = vmatpush.msra.mxu3 %v300_v46  ;;  %v375_v14 = vld [vmem:[%s1601_s1 + $0x3f8] sm:$0xff]  ;;  %v270_v15 = vld [vmem:[%s1601_s1 + $0xb0] sm:$0xff]  ;;  %v356_v17 = vld [vmem:[%s1601_s1 + $0x360] sm:$0xff] }
  0x26   : > { %933 = vmatpush.msra.mxu1 %v250_v34  ;;  %409 = vmatpush.msra.mxu0 %v250_v34  ;;  %v318_v16 = vld [vmem:[%s1601_s1 + $0x230] sm:$0xff]  ;;  %v269_v19 = vld [vmem:[%s1601_s1 + $0xa8] sm:$0xff]  ;;  %v196_v21 = vld [vmem:[%s1133_s21 + $0xa0] sm:$0xff] }
  0x27   : > { %491 = vmatpush.msra.mxu2 %v282_v38  ;;  %531 = vmatpush.msra.mxu3 %v299_v50  ;;  %v374_v18 = vld [vmem:[%s1601_s1 + $0x3f0] sm:$0xff]  ;;  %v317_v20 = vld [vmem:[%s1601_s1 + $0x228] sm:$0xff]  ;;  %v188_v22 = vld [vmem:[%s1133_s21 + $0x60] sm:$0xff] }
  0x28   : > { %934 = vmatpush.msra.mxu1 %v249_v37  ;;  %410 = vmatpush.msra.mxu0 %v249_v37  ;;  %v268_v23 = vld [vmem:[%s1601_s1 + $0xa0] sm:$0xff]  ;;  %v239_v25 = vld [vmem:[%s1133_s21 + $0x1f8] sm:$0xff]  ;;  %v373_v30 = vld [vmem:[%s1601_s1 + $0x3e8] sm:$0xff] }
  0x29   : > { %492 = vmatpush.msra.mxu2 %v281_v45  ;;  %532 = vmatpush.msra.mxu3 %v298_v54  ;;  %v316_v24 = vld [vmem:[%s1601_s1 + $0x220] sm:$0xff]  ;;  %v203_v26 = vld [vmem:[%s1133_s21 + $0xd8] sm:$0xff]  ;;  %v266_v31 = vld [vmem:[%s1601_s1 + $0x90] sm:$0xff] }
  0x2a   : > { %935 = vmatpush.msra.mxu1 %v248_v40  ;;  %411 = vmatpush.msra.mxu0 %v248_v40  ;;  %v267_v27 = vld [vmem:[%s1601_s1 + $0x98] sm:$0xff]  ;;  %v314_v32 = vld [vmem:[%s1601_s1 + $0x210] sm:$0xff]  ;;  %v372_v34 = vld [vmem:[%s1601_s1 + $0x3e0] sm:$0xff] }
  0x2b   : > { %424 = vmatmul.f32.vlgmr.msra.gmra.mxu1 %v212_v41  ;;  %412 = vmatmul.f32.vlgmr.msra.gmra.mxu0 %v176_v42  ;;  %v315_v28 = vld [vmem:[%s1601_s1 + $0x218] sm:$0xff]  ;;  %v354_v33 = vld [vmem:[%s1601_s1 + $0x350] sm:$0xff]  ;;  %v265_v35 = vld [vmem:[%s1601_s1 + $0x88] sm:$0xff] }
  0x2c   : > { %437 = vmatpush.msrb.mxu1 %v279_v43  ;;  %560 = vmatpush.msrb.mxu0 %v327_v44  ;;  %v355_v29 = vld [vmem:[%s1601_s1 + $0x358] sm:$0xff]  ;;  %v313_v36 = vld [vmem:[%s1601_s1 + $0x208] sm:$0xff]  ;;  %v264_v39 = vld [vmem:[%s1601_s1 + $0x80] sm:$0xff] }
  0x2d   : > { %493 = vmatpush.msra.mxu2 %v280_v49  ;;  %533 = vmatpush.msra.mxu3 %v297_v62  ;;  %v205_v37 = vld [vmem:[%s1133_s21 + $0xe8] sm:$0xff]  ;;  %v312_v40 = vld [vmem:[%s1601_s1 + $0x200] sm:$0xff]  ;;  %v343_v43 = vld [vmem:[%s1601_s1 + $0x2f8] sm:$0xff] }
  0x2e   : > { %438 = vmatpush.msrb.mxu1 %v278_v47  ;;  %561 = vmatpush.msrb.mxu0 %v326_v48  ;;  %v197_v38 = vld [vmem:[%s1133_s21 + $0xa8] sm:$0xff]  ;;  %v180_v42 = vld [vmem:[%s1133_s21 + $0x20] sm:$0xff]  ;;  %v371_v45 = vld [vmem:[%s1601_s1 + $0x3d8] sm:$0xff] }
  0x2f   : > { %494 = vmatmul.f32.vlgmr.msra.gmra.mxu2 %v178_v53  ;;  %534 = vmatpush.msra.mxu3 %v296_v2  ;;  %v177_v41 = vld [vmem:[%s1133_s21 + $0x8] sm:$0xff]  ;;  %v1320_v46 = vld [vmem:[%s1601_s1 + $0x478] sm:$0xff]  ;;  %v342_v47 = vld [vmem:[%s1601_s1 + $0x2f0] sm:$0xff] }
  0x30   : > { %439 = vmatpush.msrb.mxu1 %v277_v51  ;;  %562 = vmatpush.msrb.mxu0 %v325_v52  ;;  %v353_v44 = vld [vmem:[%s1601_s1 + $0x348] sm:$0xff]  ;;  %v352_v48 = vld [vmem:[%s1601_s1 + $0x340] sm:$0xff]  ;;  %v370_v49 = vld [vmem:[%s1601_s1 + $0x3d0] sm:$0xff] }
  0x31   : > { %642 = vmatpush.msrb.mxu2 %v359_v61  ;;  %535 = vmatmul.f32.vlgmr.msra.gmra.mxu3 %v179_v6  ;;  %v1334_v50 = vld [vmem:[%s1601_s1 + $0x470] sm:$0xff]  ;;  %v341_v51 = vld [vmem:[%s1601_s1 + $0x2e8] sm:$0xff]  ;;  %v351_v52 = vld [vmem:[%s1601_s1 + $0x338] sm:$0xff] }
  0x32   : > { %440 = vmatpush.msrb.mxu1 %v276_v55  ;;  %563 = vmatpush.msrb.mxu0 %v324_v56  ;;  %v214_v53 = vld [vmem:[%s1133_s21 + $0x130] sm:$0xff]  ;;  %v340_v55 = vld [vmem:[%s1601_s1 + $0x2e0] sm:$0xff]  ;;  %v349_v61 = vld [vmem:[%s1601_s1 + $0x328] sm:$0xff] }
  0x33   : > { %427 = vmatmul.f32.gmra.mxu1 %v221_v57  ;;  %415 = vmatmul.f32.gmra.mxu0 %v185_v58  ;;  %v206_v54 = vld [vmem:[%s1133_s21 + $0xf0] sm:$0xff]  ;;  %v189_v58 = vld [vmem:[%s1133_s21 + $0x68] sm:$0xff]  ;;  %v1380_v2 = vld [vmem:[%s1601_s1 + $0x460] sm:$0xff] }
  0x34   : > { %441 = vmatpush.msrb.mxu1 %v275_v59  ;;  %564 = vmatpush.msrb.mxu0 %v323_v60  ;;  %v350_v56 = vld [vmem:[%s1601_s1 + $0x330] sm:$0xff]  ;;  %v339_v59 = vld [vmem:[%s1601_s1 + $0x2d8] sm:$0xff]  ;;  %v369_v60 = vld [vmem:[%s1601_s1 + $0x3c8] sm:$0xff] }
  0x35   : > { %643 = vmatpush.msrb.mxu2 %v358_v1  ;;  %683 = vmatpush.msrb.mxu3 %v375_v14  ;;  %v186_v57 = vld [vmem:[%s1133_s21 + $0x50] sm:$0xff]  ;;  %v1366_v62 = vld [vmem:[%s1601_s1 + $0x468] sm:$0xff]  ;;  %v348_v1 = vld [vmem:[%s1601_s1 + $0x320] sm:$0xff] }
  0x36   : > { %442 = vmatpush.msrb.mxu1 %v274_v63  ;;  %565 = vmatpush.msrb.mxu0 %v322_v0  ;;  %v338_v63 = vld [vmem:[%s1601_s1 + $0x2d0] sm:$0xff]  ;;  %v368_v0 = vld [vmem:[%s1601_s1 + $0x3c0] sm:$0xff]  ;;  %v215_v6 = vld [vmem:[%s1133_s21 + $0x138] sm:$0xff] }
  0x37   : > { %497 = vmatmul.f32.gmra.mxu2 %v187_v5  ;;  %684 = vmatpush.msrb.mxu3 %v374_v18  ;;  %v223_v5 = vld [vmem:[%s1133_s21 + $0x178] sm:$0xff]  ;;  %v346_v14 = vld [vmem:[%s1601_s1 + $0x310] sm:$0xff]  ;;  %v345_v18 = vld [vmem:[%s1601_s1 + $0x308] sm:$0xff] }
  0x38   : > { %443 = vmatpush.msrb.mxu1 %v273_v3  ;;  %566 = vmatpush.msrb.mxu0 %v321_v4  ;;  %v337_v3 = vld [vmem:[%s1601_s1 + $0x2c8] sm:$0xff]  ;;  %v367_v4 = vld [vmem:[%s1601_s1 + $0x3b8] sm:$0xff] }
  0x39   : > { %644 = vmatpush.msrb.mxu2 %v357_v13  ;;  %538 = vmatmul.f32.gmra.mxu3 %v188_v22  ;;  %v1409_v13 = vld [vmem:[%s1601_s1 + $0x458] sm:$0xff]  ;;  %v224_v22 = vld [vmem:[%s1133_s21 + $0x180] sm:$0xff] }
  0x3a   : > { %444 = vmatpush.msrb.mxu1 %v272_v7  ;;  %567 = vmatpush.msrb.mxu0 %v320_v8  ;;  %v336_v7 = vld [vmem:[%s1601_s1 + $0x2c0] sm:$0xff]  ;;  %v347_v8 = vld [vmem:[%s1601_s1 + $0x318] sm:$0xff] }
  0x3b   : > { %430 = vmatmul.f32.gmra.mxu1 %v230_v9  ;;  %418 = vmatmul.f32.gmra.mxu0 %v194_v10  ;;  %v195_v9 = vld [vmem:[%s1133_s21 + $0x98] sm:$0xff]  ;;  %v198_v10 = vld [vmem:[%s1133_s21 + $0xb0] sm:$0xff] }
  0x3c   : > { %445 = vmatpush.msrb.mxu1 %v271_v11  ;;  %568 = vmatpush.msrb.mxu0 %v319_v12  ;;  %v335_v11 = vld [vmem:[%s1601_s1 + $0x2b8] sm:$0xff]  ;;  %v366_v12 = vld [vmem:[%s1601_s1 + $0x3b0] sm:$0xff] }
  0x3d   : > { %645 = vmatpush.msrb.mxu2 %v356_v17  ;;  %685 = vmatpush.msrb.mxu3 %v373_v30  ;;  %v1423_v17 = vld [vmem:[%s1601_s1 + $0x450] sm:$0xff]  ;;  %v331_v30 = vld [vmem:[%s1601_s1 + $0x298] sm:$0xff] }
  0x3e   : > { %446 = vmatpush.msrb.mxu1 %v270_v15  ;;  %569 = vmatpush.msrb.mxu0 %v318_v16  ;;  %v334_v15 = vld [vmem:[%s1601_s1 + $0x2b0] sm:$0xff]  ;;  %v365_v16 = vld [vmem:[%s1601_s1 + $0x3a8] sm:$0xff] }
  0x3f   : > { %500 = vmatmul.f32.gmra.mxu2 %v196_v21  ;;  %686 = vmatpush.msrb.mxu3 %v372_v34  ;;  %v232_v21 = vld [vmem:[%s1133_s21 + $0x1c0] sm:$0xff]  ;;  %v361_v34 = vld [vmem:[%s1601_s1 + $0x388] sm:$0xff] }
  0x40   : > { %447 = vmatpush.msrb.mxu1 %v269_v19  ;;  %570 = vmatpush.msrb.mxu0 %v317_v20  ;;  %v333_v19 = vld [vmem:[%s1601_s1 + $0x2a8] sm:$0xff]  ;;  %v364_v20 = vld [vmem:[%s1601_s1 + $0x3a0] sm:$0xff] }
  0x41   : > { %646 = vmatpush.msrb.mxu2 %v355_v29  ;;  %541 = vmatmul.f32.gmra.mxu3 %v197_v38  ;;  %v384_v29 = vld [vmem:[%s1601_s1 + $0x440] sm:$0xff]  ;;  %v329_v38 = vld [vmem:[%s1601_s1 + $0x288] sm:$0xff] }
  0x42   : > { %448 = vmatpush.msrb.mxu1 %v268_v23  ;;  %571 = vmatpush.msrb.mxu0 %v316_v24  ;;  %v1441_v23 = vld [vmem:[%s1601_s1 + $0x448] sm:$0xff]  ;;  %v332_v24 = vld [vmem:[%s1601_s1 + $0x2a0] sm:$0xff] }
  0x43   : > { %433 = vmatmul.f32.gmra.mxu1 %v239_v25  ;;  %421 = vmatmul.f32.gmra.mxu0 %v203_v26  ;;  %v204_v25 = vld [vmem:[%s1133_s21 + $0xe0] sm:$0xff]  ;;  %v207_v26 = vld [vmem:[%s1133_s21 + $0xf8] sm:$0xff] }
  0x44   : > { %449 = vmatpush.msrb.mxu1 %v267_v27  ;;  %572 = vmatpush.msrb.mxu0 %v315_v28  ;;  %v344_v27 = vld [vmem:[%s1601_s1 + $0x300] sm:$0xff]  ;;  %v363_v28 = vld [vmem:[%s1601_s1 + $0x398] sm:$0xff] }
  0x45   : > { %647 = vmatpush.msrb.mxu2 %v354_v33  ;;  %687 = vmatpush.msrb.mxu3 %v371_v45  ;;  %v330_v33 = vld [vmem:[%s1601_s1 + $0x290] sm:$0xff] }
  0x46   : > { %450 = vmatpush.msrb.mxu1 %v266_v31  ;;  %573 = vmatpush.msrb.mxu0 %v314_v32  ;;  %v362_v31 = vld [vmem:[%s1601_s1 + $0x390] sm:$0xff]  ;;  %v383_v32 = vld [vmem:[%s1601_s1 + $0x438] sm:$0xff] }
  0x47   : > { %503 = vmatmul.f32.gmra.mxu2 %v205_v37  ;;  %688 = vmatpush.msrb.mxu3 %v370_v49  ;;  %v382_v37 = vld [vmem:[%s1601_s1 + $0x430] sm:$0xff]  ;;  %v225_v49 = vld [vmem:[%s1133_s21 + $0x188] sm:$0xff] }
  0x48   : > { %451 = vmatpush.msrb.mxu1 %v265_v35  ;;  %574 = vmatpush.msrb.mxu0 %v313_v36  ;;  %v241_v35 = vld [vmem:[%s1133_s21 + $0x208] sm:$0xff]  ;;  %v182_v45 = vld [vmem:[%s1133_s21 + $0x30] sm:$0xff] }
  0x49   : > { %648 = vmatpush.msrb.mxu2 %v353_v44  ;;  %544 = vmatmul.f32.gmra.mxu3 %v206_v54  ;;  %v233_v36 = vld [vmem:[%s1133_s21 + $0x1c8] sm:$0xff]  ;;  %v380_v44 = vld [vmem:[%s1601_s1 + $0x420] sm:$0xff]  ;;  %v183_v54 = vld [vmem:[%s1133_s21 + $0x38] sm:$0xff] }
  0x4a   : > { %452 = vmatpush.msrb.mxu1 %v264_v39  ;;  %575 = vmatpush.msrb.mxu0 %v312_v40  ;;  %v213_v39 = vld [vmem:[%s1133_s21 + $0x128] sm:$0xff]  ;;  %v216_v40 = vld [vmem:[%s1133_s21 + $0x140] sm:$0xff] }
  0x4b   : > { %453 = vmatmul.f32.vlgmr.msrb.gmra.mxu1 %v177_v41  ;;  %576 = vmatmul.f32.vlgmr.msrb.gmra.mxu0 %v180_v42  ;;  %v360_v41 = vld [vmem:[%s1601_s1 + $0x380] sm:$0xff]  ;;  %v381_v42 = vld [vmem:[%s1601_s1 + $0x428] sm:$0xff] }
  0x4c   : > { %601 = vmatpush.msra.mxu1 %v343_v43  ;;  %724 = vmatpush.msra.mxu0 %v1320_v46  ;;  %v328_v43 = vld [vmem:[%s1601_s1 + $0x280] sm:$0xff] }
  0x4d   : > { %649 = vmatpush.msrb.mxu2 %v352_v48  ;;  %689 = vmatpush.msrb.mxu3 %v369_v60  ;;  %v222_v48 = vld [vmem:[%s1133_s21 + $0x170] sm:$0xff]  ;;  %v243_v60 = vld [vmem:[%s1133_s21 + $0x218] sm:$0xff] }
  0x4e   : > { %602 = vmatpush.msra.mxu1 %v342_v47  ;;  %725 = vmatpush.msra.mxu0 %v1334_v50  ;;  %v379_v47 = vld [vmem:[%s1601_s1 + $0x418] sm:$0xff] }
  0x4f   : > { %650 = vmatpush.msrb.mxu2 %v351_v52  ;;  %690 = vmatpush.msrb.mxu3 %v368_v0  ;;  %v376_v52 = vld [vmem:[%s1601_s1 + $0x400] sm:$0xff] }
  0x50   : > { %603 = vmatpush.msra.mxu1 %v341_v51  ;;  %506 = vmatmul.f32.gmra.mxu2 %v214_v53  ;;  %v377_v51 = vld [vmem:[%s1601_s1 + $0x408] sm:$0xff]  ;;  %v191_v53 = vld [vmem:[%s1133_s21 + $0x78] sm:$0xff]  ;;  %v184_v0 = vld [vmem:[%s1133_s21 + $0x40] sm:$0xff] }
  0x51   : > { %651 = vmatpush.msrb.mxu2 %v350_v56  ;;  %726 = vmatpush.msra.mxu0 %v1366_v62  ;;  %v234_v56 = vld [vmem:[%s1133_s21 + $0x1d0] sm:$0xff] }
  0x52   : > { %604 = vmatpush.msra.mxu1 %v340_v55  ;;  %691 = vmatpush.msrb.mxu3 %v367_v4  ;;  %v231_v55 = vld [vmem:[%s1133_s21 + $0x1b8] sm:$0xff]  ;;  %v193_v4 = vld [vmem:[%s1133_s21 + $0x88] sm:$0xff] }
  0x53   : > { %456 = vmatmul.f32.gmra.mxu1 %v186_v57  ;;  %579 = vmatmul.f32.gmra.mxu0 %v189_v58  ;;  %v200_v57 = vld [vmem:[%s1133_s21 + $0xc0] sm:$0xff] }
  0x54   : > { %605 = vmatpush.msra.mxu1 %v339_v59  ;;  %652 = vmatpush.msrb.mxu2 %v349_v61  ;;  %v192_v58 = vld [vmem:[%s1133_s21 + $0x80] sm:$0xff]  ;;  %v209_v61 = vld [vmem:[%s1133_s21 + $0x108] sm:$0xff] }
  0x55   : > { %727 = vmatpush.msra.mxu0 %v1380_v2  ;;  %547 = vmatmul.f32.gmra.mxu3 %v215_v6  ;;  %v240_v59 = vld [vmem:[%s1133_s21 + $0x200] sm:$0xff]  ;;  %v219_v6 = vld [vmem:[%s1133_s21 + $0x158] sm:$0xff] }
  0x56   : > { %606 = vmatpush.msra.mxu1 %v338_v63  ;;  %653 = vmatpush.msrb.mxu2 %v348_v1  ;;  %v181_v63 = vld [vmem:[%s1133_s21 + $0x28] sm:$0xff]  ;;  %v218_v1 = vld [vmem:[%s1133_s21 + $0x150] sm:$0xff] }
  0x57   : > { %692 = vmatpush.msrb.mxu3 %v366_v12  ;;  %728 = vmatpush.msra.mxu0 %v1409_v13  ;;  %v211_v12 = vld [vmem:[%s1133_s21 + $0x118] sm:$0xff] }
  0x58   : > { %607 = vmatpush.msra.mxu1 %v337_v3  ;;  %509 = vmatmul.f32.gmra.mxu2 %v223_v5  ;;  %v190_v3 = vld [vmem:[%s1133_s21 + $0x70] sm:$0xff]  ;;  %v227_v5 = vld [vmem:[%s1133_s21 + $0x198] sm:$0xff] }
  0x59   : > { %654 = vmatpush.msrb.mxu2 %v347_v8  ;;  %693 = vmatpush.msrb.mxu3 %v365_v16  ;;  %v202_v8 = vld [vmem:[%s1133_s21 + $0xd0] sm:$0xff]  ;;  %v217_v16 = vld [vmem:[%s1133_s21 + $0x148] sm:$0xff] }
  0x5a   : > { %608 = vmatpush.msra.mxu1 %v336_v7  ;;  %729 = vmatpush.msra.mxu0 %v1423_v17  ;;  %v199_v7 = vld [vmem:[%s1133_s21 + $0xb8] sm:$0xff] }
  0x5b   : > { %459 = vmatmul.f32.gmra.mxu1 %v195_v9  ;;  %582 = vmatmul.f32.gmra.mxu0 %v198_v10  ;;  %v236_v9 = vld [vmem:[%s1133_s21 + $0x1e0] sm:$0xff] }
  0x5c   : > { %609 = vmatpush.msra.mxu1 %v335_v11  ;;  %655 = vmatpush.msrb.mxu2 %v346_v14  ;;  %v228_v10 = vld [vmem:[%s1133_s21 + $0x1a0] sm:$0xff]  ;;  %v237_v14 = vld [vmem:[%s1133_s21 + $0x1e8] sm:$0xff] }
  0x5d   : > { %694 = vmatpush.msrb.mxu3 %v364_v20  ;;  %730 = vmatpush.msra.mxu0 %v1441_v23  ;;  %v208_v11 = vld [vmem:[%s1133_s21 + $0x100] sm:$0xff]  ;;  %v246_v20 = vld [vmem:[%s1133_s21 + $0x230] sm:$0xff] }
  0x5e   : > { %610 = vmatpush.msra.mxu1 %v334_v15  ;;  %656 = vmatpush.msrb.mxu2 %v345_v18  ;;  %v220_v18 = vld [vmem:[%s1133_s21 + $0x160] sm:$0xff] }
  0x5f   : > { %550 = vmatmul.f32.gmra.mxu3 %v224_v22  ;;  %731 = vmatpush.msra.mxu0 %v384_v29  ;;  %v226_v22 = vld [vmem:[%s1133_s21 + $0x190] sm:$0xff] }
  0x60   : > { %611 = vmatpush.msra.mxu1 %v333_v19  ;;  %512 = vmatmul.f32.gmra.mxu2 %v232_v21  ;;  %v238_v19 = vld [vmem:[%s1133_s21 + $0x1f0] sm:$0xff] }
  0x61   : > { %657 = vmatpush.msrb.mxu2 %v344_v27  ;;  %695 = vmatpush.msrb.mxu3 %v363_v28  ;;  %v235_v28 = vld [vmem:[%s1133_s21 + $0x1d8] sm:$0xff] }
  0x62   : > { %612 = vmatpush.msra.mxu1 %v332_v24  ;;  %732 = vmatpush.msra.mxu0 %v383_v32  ;;  %v229_v24 = vld [vmem:[%s1133_s21 + $0x1a8] sm:$0xff] }
  0x63   : > { %462 = vmatmul.f32.gmra.mxu1 %v204_v25  ;;  %585 = vmatmul.f32.gmra.mxu0 %v207_v26  ;;  %v247_v26 = vld [vmem:[%s1133_s21 + $0x238] sm:$0xff] }
  0x64   : > { %613 = vmatpush.msra.mxu1 %v331_v30  ;;  %936 = vmatpush.msra.mxu2 %v1320_v46  ;;  %v242_v46 = vld [vmem:[%s1133_s21 + $0x210] sm:$0xff] }
  0x65   : > { %696 = vmatpush.msrb.mxu3 %v362_v31  ;;  %733 = vmatpush.msra.mxu0 %v382_v37 }
  0x66   : > { %614 = vmatpush.msra.mxu1 %v330_v33  ;;  %937 = vmatpush.msra.mxu2 %v1334_v50  ;;  %v378_v50 = vld [vmem:[%s1601_s1 + $0x410] sm:$0xff]  ;;  %v244_v33 = vld [vmem:[%s1133_s21 + $0x220] sm:$0xff] }
  0x67   : > { %697 = vmatpush.msrb.mxu3 %v361_v34  ;;  %734 = vmatpush.msra.mxu0 %v381_v42 }
  0x68   : > { %515 = vmatmul.f32.gmra.mxu2 %v241_v35  ;;  %553 = vmatmul.f32.gmra.mxu3 %v233_v36 }
  0x69   : > { %615 = vmatpush.msra.mxu1 %v329_v38  ;;  %938 = vmatpush.msra.mxu2 %v1366_v62  ;;  %v201_v62 = vld [vmem:[%s1133_s21 + $0xc8] sm:$0xff] }
  0x6a   : > { %698 = vmatpush.msrb.mxu3 %v360_v41  ;;  %735 = vmatpush.msra.mxu0 %v380_v44 }
  0x6b   : > { %465 = vmatmul.f32.gmra.mxu1 %v213_v39  ;;  %588 = vmatmul.f32.gmra.mxu0 %v216_v40 }
  0x6c   : > { %616 = vmatpush.msra.mxu1 %v328_v43  ;;  %939 = vmatpush.msra.mxu2 %v1380_v2  ;;  %v210_v2 = vld [vmem:[%s1133_s21 + $0x110] sm:$0xff] }
  0x6d   : > { %736 = vmatpush.msra.mxu0 %v379_v47 }
  0x6e   : > { %940 = vmatpush.msra.mxu2 %v1409_v13  ;;  %v245_v13 = vld [vmem:[%s1133_s21 + $0x228] sm:$0xff]  ;;  %s919_s21 = sshll.u32 %s1608_s13, 6 }
  0x6f   : > { %737 = vmatpush.msra.mxu0 %v378_v50  ;;  %s175_s22 = scalar_lea.vmem %s1603_s3, %s919_s21 }
  0x70   : > { %658 = vmatmul.f32.vlgmr.msrb.gmra.mxu2 %v182_v45  ;;  %556 = vmatmul.f32.gmra.mxu3 %v242_v46 }
  0x71   : > { %941 = vmatpush.msra.mxu2 %v1423_v17  ;;  %738 = vmatpush.msra.mxu0 %v377_v51 }
  0x73   : > { %468 = vmatmul.f32.gmra.mxu1 %v222_v48  ;;  %591 = vmatmul.f32.gmra.mxu0 %v225_v49 }
  0x74   : > { %942 = vmatpush.msra.mxu2 %v1441_v23  ;;  %739 = vmatpush.msra.mxu0 %v376_v52 }
  0x76   : > { %943 = vmatpush.msra.mxu2 %v384_v29 }
  0x78   : > { %944 = vmatpush.msra.mxu2 %v383_v32  ;;  %699 = vmatmul.f32.vlgmr.msrb.gmra.mxu3 %v183_v54 }
  0x79   : > { %661 = vmatmul.f32.gmra.mxu2 %v191_v53 }
  0x7a   : > { %945 = vmatpush.msra.mxu2 %v382_v37  ;;  %v962_v37 = vld [vmem:[%s1602_s2] ss:$0 sm:$0xff] }
  0x7b   : > { %471 = vmatmul.f32.gmra.mxu1 %v231_v55  ;;  %594 = vmatmul.f32.gmra.mxu0 %v234_v56 }
  0x7c   : > { %946 = vmatpush.msra.mxu2 %v381_v42 }
  0x7e   : > { %947 = vmatpush.msra.mxu2 %v380_v44 }
  0x80   : > { %948 = vmatpush.msra.mxu2 %v379_v47  ;;  %702 = vmatmul.f32.gmra.mxu3 %v192_v58 }
  0x81   : > { %664 = vmatmul.f32.gmra.mxu2 %v200_v57 }
  0x82   : > { %949 = vmatpush.msra.mxu2 %v378_v50 }
  0x83   : > { %474 = vmatmul.f32.gmra.mxu1 %v240_v59  ;;  %597 = vmatmul.f32.gmra.mxu0 %v243_v60 }
  0x84   : > { %950 = vmatpush.msra.mxu2 %v377_v51 }
  0x86   : > { %951 = vmatpush.msra.mxu2 %v376_v52 }
  0x88   : > { %705 = vmatmul.f32.gmra.mxu3 %v201_v62 }
  0x89   : > { %667 = vmatmul.f32.gmra.mxu2 %v209_v61 }
  0x8b   : > { %617 = vmatmul.f32.vlgmr.msra.gmra.mxu1 %v181_v63  ;;  %740 = vmatmul.f32.vlgmr.msra.gmra.mxu0 %v184_v0 }
  0x90   : > { %708 = vmatmul.f32.gmra.mxu3 %v210_v2 }
  0x91   : > { %670 = vmatmul.f32.gmra.mxu2 %v218_v1 }
  0x93   : > { %620 = vmatmul.f32.gmra.mxu1 %v190_v3  ;;  %743 = vmatmul.f32.gmra.mxu0 %v193_v4 }
  0x98   : > { %711 = vmatmul.f32.gmra.mxu3 %v219_v6 }
  0x99   : > { %673 = vmatmul.f32.gmra.mxu2 %v227_v5 }
  0x9b   : > { %623 = vmatmul.f32.gmra.mxu1 %v199_v7  ;;  %746 = vmatmul.f32.gmra.mxu0 %v202_v8 }
  0xa0   : > { %714 = vmatmul.f32.gmra.mxu3 %v228_v10 }
  0xa1   : > { %676 = vmatmul.f32.gmra.mxu2 %v236_v9 }
  0xa3   : > { %626 = vmatmul.f32.gmra.mxu1 %v208_v11  ;;  %749 = vmatmul.f32.gmra.mxu0 %v211_v12 }
  0xa8   : > { %v1544_v15 = vpop.f32.mrf.mxu1  ;;  %v413_v17 = vpop.f32.mrf.mxu0  ;;  %717 = vmatmul.f32.gmra.mxu3 %v237_v14 }
  0xa9   : > { %679 = vmatmul.f32.gmra.mxu2 %v245_v13  ;;  %v414_v38 = vadd.f32 %v962_v37, %v413_v17  ;;  %v426_v9 = vadd.f32 %v962_v37, %v1544_v15 }
  0xab   : > { %629 = vmatmul.f32.gmra.mxu1 %v217_v16  ;;  %752 = vmatmul.f32.gmra.mxu0 %v220_v18 }
  0xb0   : > { %v1550_v21 = vpop.f32.mrf.mxu1  ;;  %v416_v23 = vpop.f32.mrf.mxu0  ;;  %720 = vmatmul.f32.gmra.mxu3 %v246_v20 }
  0xb1   : > { %758 = vmatmul.f32.vlgmr.msra.gmra.mxu2 %v238_v19  ;;  %v417_v46 = vadd.f32 %v962_v37, %v416_v23  ;;  %v429_v19 = vadd.f32 %v962_v37, %v1550_v21 }
  0xb2   : > { %v495_v25 = vpop.f32.mrf.mxu2 }
  0xb3   : > { %632 = vmatmul.f32.gmra.mxu1 %v226_v22  ;;  %755 = vmatmul.f32.gmra.mxu0 %v229_v24 }
  0xb4   : > { %v536_v31 = vpop.f32.mrf.mxu3 }
  0xb8   : > { %v1555_v27 = vpop.f32.mrf.mxu1  ;;  %v419_v29 = vpop.f32.mrf.mxu0 }
  0xb9   : > { %761 = vmatmul.f32.gmra.mxu2 %v247_v26  ;;  %v420_v55 = vadd.f32 %v962_v37, %v419_v29  ;;  %v432_v15 = vadd.f32 %v962_v37, %v1555_v27 }
  0xba   : > { %v498_v30 = vpop.f32.mrf.mxu2 }
  0xbb   : > { %635 = vmatmul.f32.gmra.mxu1 %v235_v28 }
  0xbc   : > { %v539_v36 = vpop.f32.mrf.mxu3 }
  0xc0   : > { %v1558_v32 = vpop.f32.mrf.mxu1  ;;  %v422_v34 = vpop.f32.mrf.mxu0 }
  0xc1   : > { %v423_v0 = vadd.f32 %v962_v37, %v422_v34 }
  0xc2   : > { %v501_v35 = vpop.f32.mrf.mxu2 }
  0xc3   : > { %638 = vmatmul.f32.gmra.mxu1 %v244_v33 }
  0xc4   : > { %v542_v44 = vpop.f32.mrf.mxu3 }
  0xc8   : > { %v454_v39 = vpop.f32.mrf.mxu1  ;;  %v577_v40 = vpop.f32.mrf.mxu0 }
  0xc9   : > { %v455_v41 = vadd.f32 %v454_v39, %v414_v38 }
  0xca   : > { %v504_v43 = vpop.f32.mrf.mxu2 }
  0xcb   : > { %v496_v42 = vadd.f32 %v495_v25, %v455_v41 }
  0xcc   : > { %v545_v53 = vpop.f32.mrf.mxu3 }
  0xcd   : > { %v537_v45 = vadd.f32 %v536_v31, %v496_v42 }
  0xcf   : > { %v578_v47 = vadd.f32 %v577_v40, %v537_v45 }
  0xd0   : > { %v457_v48 = vpop.f32.mrf.mxu1  ;;  %v580_v49 = vpop.f32.mrf.mxu0 }
  0xd1   : > { %v458_v50 = vadd.f32 %v457_v48, %v417_v46 }
  0xd3   : > { %v499_v51 = vadd.f32 %v498_v30, %v458_v50  ;;  %v507_v52 = vpop.f32.mrf.mxu2 }
  0xd5   : > { %v540_v54 = vadd.f32 %v539_v36, %v499_v51  ;;  %v435_v36 = vadd.f32 %v962_v37, %v1558_v32 }
  0xd7   : > { %v581_v56 = vadd.f32 %v580_v49, %v540_v54 }
  0xd8   : > { %v460_v57 = vpop.f32.mrf.mxu1  ;;  %v583_v58 = vpop.f32.mrf.mxu0 }
  0xd9   : > { %v461_v59 = vadd.f32 %v460_v57, %v420_v55  ;;  %v548_v62 = vpop.f32.mrf.mxu3 }
  0xdb   : > { %v502_v60 = vadd.f32 %v501_v35, %v461_v59  ;;  %v510_v61 = vpop.f32.mrf.mxu2 }
  0xdd   : > { %v543_v63 = vadd.f32 %v542_v44, %v502_v60 }
  0xdf   : > { %v584_v1 = vadd.f32 %v583_v58, %v543_v63 }
  0xe0   : > { %v463_v2 = vpop.f32.mrf.mxu1  ;;  %v586_v3 = vpop.f32.mrf.mxu0 }
  0xe1   : > { %v464_v4 = vadd.f32 %v463_v2, %v423_v0 }
  0xe2   : > { %v551_v7 = vpop.f32.mrf.mxu3 }
  0xe3   : > { %v505_v5 = vadd.f32 %v504_v43, %v464_v4  ;;  %v513_v6 = vpop.f32.mrf.mxu2 }
  0xe5   : > { %v546_v8 = vadd.f32 %v545_v53, %v505_v5 }
  0xe7   : > { %v587_v10 = vadd.f32 %v586_v3, %v546_v8 }
  0xe8   : > { %v466_v11 = vpop.f32.mrf.mxu1  ;;  %v589_v12 = vpop.f32.mrf.mxu0 }
  0xe9   : > { %v467_v13 = vadd.f32 %v466_v11, %v426_v9 }
  0xeb   : > { %v508_v14 = vadd.f32 %v507_v52, %v467_v13  ;;  %v516_v16 = vpop.f32.mrf.mxu2  ;;  %v1565_v17 = vpop.f32.mrf.mxu3 }
  0xed   : > { %v549_v18 = vadd.f32 %v548_v62, %v508_v14 }
  0xef   : > { %v590_v9 = vadd.f32 %v589_v12, %v549_v18 }
  0xf0   : > { %v469_v20 = vpop.f32.mrf.mxu1  ;;  %v592_v22 = vpop.f32.mrf.mxu0 }
  0xf1   : > { %v470_v23 = vadd.f32 %v469_v20, %v429_v19 }
  0xf3   : > { %v511_v24 = vadd.f32 %v510_v61, %v470_v23  ;;  %v659_v25 = vpop.f32.mrf.mxu2  ;;  %v1568_v26 = vpop.f32.mrf.mxu3 }
  0xf5   : > { %v552_v28 = vadd.f32 %v551_v7, %v511_v24 }
  0xf7   : > { %v593_v24 = vadd.f32 %v592_v22, %v552_v28 }
  0xf8   : > { %v472_v29 = vpop.f32.mrf.mxu1  ;;  %v1571_v30 = vpop.f32.mrf.mxu0 }
  0xf9   : > { %v473_v31 = vadd.f32 %v472_v29, %v432_v15 }
  0xfb   : > { %v514_v33 = vadd.f32 %v513_v6, %v473_v31  ;;  %v700_v35 = vpop.f32.mrf.mxu3 }
  0xfc   : > { %v662_v34 = vpop.f32.mrf.mxu2 }
 0x100   : > { %v475_v21 = vpop.f32.mrf.mxu1  ;;  %v1574_v38 = vpop.f32.mrf.mxu0 }
 0x101   : > { %v476_v39 = vadd.f32 %v475_v21, %v435_v36 }
 0x103   : > { %v517_v40 = vadd.f32 %v516_v16, %v476_v39  ;;  %v703_v42 = vpop.f32.mrf.mxu3 }
 0x104   : > { %v665_v41 = vpop.f32.mrf.mxu2 }
 0x105   : > { %v558_v22 = vadd.f32 %v1568_v26, %v517_v40 }
 0x108   : > { %v618_v43 = vpop.f32.mrf.mxu1  ;;  %v741_v44 = vpop.f32.mrf.mxu0 }
 0x109   : > { %v619_v45 = vadd.f32 %v618_v43, %v578_v47 }
 0x10b   : > { %v660_v46 = vadd.f32 %v659_v25, %v619_v45  ;;  %v706_v48 = vpop.f32.mrf.mxu3  ;;  %v975_v45 = vmov 64.0  }
 0x10c   : > { %v668_v27 = vpop.f32.mrf.mxu2  ;;  %963 = vrcp.f32 %v975_v45 }
 0x10d   : > { %v701_v52 = vadd.f32 %v700_v35, %v660_v46  ;;  %v599_v46 = vadd.f32 %v1574_v38, %v558_v22 }
 0x10f   : > { %v1576_v37 = vadd.f32 %v741_v44, %v701_v52 }
 0x110   : > { %v621_v49 = vpop.f32.mrf.mxu1  ;;  %v744_v50 = vpop.f32.mrf.mxu0 }
 0x111   : > { %v622_v51 = vadd.f32 %v621_v49, %v581_v56 }
 0x113   : > { %v663_v53 = vadd.f32 %v662_v34, %v622_v51  ;;  %v709_v60 = vpop.f32.mrf.mxu3 }
 0x114   : > { %v671_v54 = vpop.f32.mrf.mxu2 }
 0x115   : > { %v704_v32 = vadd.f32 %v703_v42, %v663_v53 }
 0x117   : > { %v1578_v55 = vadd.f32 %v744_v50, %v704_v32 }
 0x118   : > { %v624_v57 = vpop.f32.mrf.mxu1  ;;  %v747_v58 = vpop.f32.mrf.mxu0 }
 0x119   : > { %v765_v59 = vadd.f32 %v1578_v55, %v1576_v37  ;;  %v625_v47 = vadd.f32 %v624_v57, %v584_v1 }
 0x11b   : > { %v666_v61 = vadd.f32 %v665_v41, %v625_v47  ;;  %v712_v6 = vpop.f32.mrf.mxu3 }
 0x11c   : > { %v674_v62 = vpop.f32.mrf.mxu2 }
 0x11d   : > { %v707_v63 = vadd.f32 %v706_v48, %v666_v61  ;;  %v964_v48 = vpop.eup %963 }
 0x11e   : > { %v780_v53 = vmul.f32 64.0, %v964_v48  ;;  %vm784_vm0 = vweird.f32 %v964_v48 }
 0x11f   : > { %v1582_v0 = vadd.f32 %v747_v58, %v707_v63 }
 0x120   : > { %v627_v56 = vpop.f32.mrf.mxu1  ;;  %v750_v2 = vpop.f32.mrf.mxu0  ;;  %v781_v57 = vsub.f32 1.0, %v780_v53 }
 0x121   : > { %v766_v3 = vadd.f32 %v765_v59, %v1582_v0  ;;  %v628_v4 = vadd.f32 %v627_v56, %v587_v10  ;;  %v555_v10 = vadd.f32 %v1565_v17, %v514_v33 }
 0x122   : > { %v782_v40 = vmul.f32 %v964_v48, %v781_v57 }
 0x123   : > { %v669_v5 = vadd.f32 %v668_v27, %v628_v4  ;;  %v715_v23 = vpop.f32.mrf.mxu3  ;;  %v596_v12 = vadd.f32 %v1571_v30, %v555_v10 }
 0x124   : > { %v677_v8 = vpop.f32.mrf.mxu2 }
 0x125   : > { %v710_v7 = vadd.f32 %v709_v60, %v669_v5  ;;  %v783_v60 = vadd.f32 %v964_v48, %v782_v40 }
 0x127   : > { %v751_v11 = vadd.f32 %v750_v2, %v710_v7 }
 0x128   : > { %v630_v13 = vpop.f32.mrf.mxu1  ;;  %v753_v16 = vpop.f32.mrf.mxu0 }
 0x129   : > { %v767_v14 = vadd.f32 %v766_v3, %v751_v11  ;;  %v631_v1 = vadd.f32 %v630_v13, %v590_v9 }
 0x12b   : > { %v672_v19 = vadd.f32 %v671_v54, %v631_v1  ;;  %v718_v41 = vpop.f32.mrf.mxu3 }
 0x12c   : > { %v680_v29 = vpop.f32.mrf.mxu2 }
 0x12d   : > { %v713_v20 = vadd.f32 %v712_v6, %v672_v19 }
 0x12f   : > { %v754_v25 = vadd.f32 %v753_v16, %v713_v20 }
 0x130   : > { %v633_v15 = vpop.f32.mrf.mxu1  ;;  %v756_v36 = vpop.f32.mrf.mxu0 }
 0x131   : > { %v768_v31 = vadd.f32 %v767_v14, %v754_v25  ;;  %v634_v34 = vadd.f32 %v633_v15, %v593_v24 }
 0x133   : > { %v675_v35 = vadd.f32 %v674_v62, %v634_v34  ;;  %v721_v30 = vpop.f32.mrf.mxu3  ;;  %v785_v62 = vsel %vm784_vm0, %v964_v48, %v783_v60 }
 0x134   : > { %v759_v44 = vpop.f32.mrf.mxu2 }
 0x135   : > { %v716_v21 = vadd.f32 %v715_v23, %v675_v35 }
 0x137   : > { %v757_v18 = vadd.f32 %v756_v36, %v716_v21 }
 0x138   : > { %v636_v39 = vpop.f32.mrf.mxu1 }
 0x139   : > { %v769_v42 = vadd.f32 %v768_v31, %v757_v18  ;;  %v637_v43 = vadd.f32 %v636_v39, %v596_v12 }
 0x13b   : > { %v678_v28 = vadd.f32 %v677_v8, %v637_v43 }
 0x13c   : > { %v762_v52 = vpop.f32.mrf.mxu2 }
 0x13d   : > { %v719_v27 = vadd.f32 %v718_v41, %v678_v28 }
 0x13f   : > { %v760_v17 = vadd.f32 %v759_v44, %v719_v27 }
 0x140   : > { %v639_v33 = vpop.f32.mrf.mxu1 }
 0x141   : > { %v770_v49 = vadd.f32 %v769_v42, %v760_v17  ;;  %v640_v50 = vadd.f32 %v639_v33, %v599_v46 }
 0x143   : > { %v681_v51 = vadd.f32 %v680_v29, %v640_v50 }
 0x145   : > { %v722_v54 = vadd.f32 %v721_v30, %v681_v51 }
 0x147   : > { %v763_v32 = vadd.f32 %v762_v52, %v722_v54 }
 0x149   : > { %v771_v58 = vadd.f32 %v770_v49, %v763_v32 }
 0x14b   : > { %v772_v26 = vrot.slane %v771_v58, 4 }
 0x14d   : > { %v773_v59 = vadd.f32 %v772_v26, %v771_v58 }
 0x14f   : > { %v774_v47 = vrot.slane %v773_v59, 2 }
 0x151   : > { %v775_v61 = vadd.f32 %v774_v47, %v773_v59 }
 0x153   : > { %v776_v38 = vrot.slane %v775_v61, 1 }
 0x155   : > { %v777_v63 = vadd.f32 %v776_v38, %v775_v61 }
 0x157   : > { %v786_v56 = vmul.f32 %v785_v62, %v777_v63 }
 0x159   : > { %v787_v2 = vsub.f32 %v1576_v37, %v786_v56  ;;  %v788_v3 = vsub.f32 %v1578_v55, %v786_v56  ;;  %v789_v4 = vsub.f32 %v1582_v0, %v786_v56  ;;  %v790_v5 = vsub.f32 %v751_v11, %v786_v56 }
 0x15a   : > { %v791_v6 = vsub.f32 %v754_v25, %v786_v56  ;;  %v792_v7 = vsub.f32 %v757_v18, %v786_v56  ;;  %v793_v8 = vsub.f32 %v760_v17, %v786_v56  ;;  %v794_v9 = vsub.f32 %v763_v32, %v786_v56 }
 0x15b   : > { %v795_v13 = vmul.f32 %v787_v2, %v787_v2  ;;  %v796_v14 = vmul.f32 %v788_v3, %v788_v3  ;;  %v797_v1 = vmul.f32 %v789_v4, %v789_v4  ;;  %v798_v19 = vmul.f32 %v790_v5, %v790_v5 }
 0x15c   : > { %v799_v23 = vmul.f32 %v791_v6, %v791_v6  ;;  %v800_v15 = vmul.f32 %v792_v7, %v792_v7  ;;  %v801_v37 = vmul.f32 %v793_v8, %v793_v8  ;;  %v802_v31 = vmul.f32 %v794_v9, %v794_v9 }
 0x15d   : > { %v803_v16 = vadd.f32 %v796_v14, %v795_v13 }
 0x15f   : > { %v804_v20 = vadd.f32 %v803_v16, %v797_v1 }
 0x161   : > { %v805_v24 = vadd.f32 %v804_v20, %v798_v19 }
 0x163   : > { %v806_v29 = vadd.f32 %v805_v24, %v799_v23 }
 0x165   : > { %v807_v55 = vadd.f32 %v806_v29, %v800_v15 }
 0x167   : > { %v808_v0 = vadd.f32 %v807_v55, %v801_v37 }
 0x169   : > { %v809_v11 = vadd.f32 %v808_v0, %v802_v31 }
 0x16b   : > { %v810_v25 = vrot.slane %v809_v11, 4 }
 0x16d   : > { %v811_v34 = vadd.f32 %v810_v25, %v809_v11 }
 0x16f   : > { %v812_v10 = vrot.slane %v811_v34, 2 }
 0x171   : > { %v813_v35 = vadd.f32 %v812_v10, %v811_v34 }
 0x173   : > { %v814_v36 = vrot.slane %v813_v35, 1 }
 0x175   : > { %v815_v21 = vadd.f32 %v814_v36, %v813_v35 }
 0x177   : > { %v817_v12 = vmul.f32 %v815_v21, %v785_v62 }
 0x179   : > { %v818_v18 = vadd.f32 1e-05, %v817_v12 }
 0x17b   : > { %965 = vrsqrt.f32 %v818_v18  ;;  %vm825_vm2 = vweird.f32 %v818_v18 }
 0x181   : > { %v966_v39 = vpop.eup %965 }
 0x182   : > { %v820_v41 = vmul.f32 %v966_v39, %v818_v18  ;;  %vm826_vm1 = vweird.f32 %v966_v39 }
 0x183   : > { %vm827_vm3 = vmor %vm825_vm2, %vm826_vm1 }
 0x184   : > { %v821_v42 = vmul.f32 %v966_v39, %v820_v41 }
 0x186   : > { %v822_v43 = vmul.f32 0.5, %v821_v42 }
 0x188   : > { %v823_v44 = vsub.f32 1.5, %v822_v43 }
 0x18a   : > { %v824_v22 = vmul.f32 %v966_v39, %v823_v44 }
 0x18c   : > { %v828_v28 = vsel %vm827_vm3, %v966_v39, %v824_v22 }
 0x18d   : > { %v829_v45 = vmul.f32 %v828_v28, %v787_v2  ;;  %v830_v27 = vmul.f32 %v828_v28, %v788_v3  ;;  %v831_v46 = vmul.f32 %v828_v28, %v789_v4  ;;  %v832_v17 = vmul.f32 %v828_v28, %v790_v5 }
 0x18e   : > { %v833_v33 = vmul.f32 %v828_v28, %v791_v6  ;;  %v834_v48 = vmul.f32 %v828_v28, %v792_v7  ;;  %v835_v49 = vmul.f32 %v828_v28, %v793_v8  ;;  %v836_v50 = vmul.f32 %v828_v28, %v794_v9 }
 0x18f   : > { %v837_v30 = vmax.f32 %v829_v45, 0.0  ;;  %v838_v51 = vmax.f32 %v830_v27, 0.0  ;;  %v839_v52 = vmax.f32 %v831_v46, 0.0  ;;  %v840_v53 = vmax.f32 %v832_v17, 0.0 }
 0x190   : > { %v841_v54 = vmax.f32 %v833_v33, 0.0  ;;  %v842_v32 = vmax.f32 %v834_v48, 0.0  ;;  %v843_v57 = vmax.f32 %v835_v49, 0.0  ;;  %v844_v58 = vmax.f32 %v836_v50, 0.0 }
 0x191   : > { %845 = vst [vmem:[%s175_s22] sm:$0xff] %v837_v30 }
 0x192   : > { %846 = vst [vmem:[%s175_s22 + $0x8] sm:$0xff] %v838_v51 }
 0x193   : > { %847 = vst [vmem:[%s175_s22 + $0x10] sm:$0xff] %v839_v52 }
 0x194   : > { %848 = vst [vmem:[%s175_s22 + $0x18] sm:$0xff] %v840_v53 }
 0x195   : > { %849 = vst [vmem:[%s175_s22 + $0x20] sm:$0xff] %v841_v54 }
 0x196   : > { %850 = vst [vmem:[%s175_s22 + $0x28] sm:$0xff] %v842_v32 }
 0x197   : > { %851 = vst [vmem:[%s175_s22 + $0x30] sm:$0xff] %v843_v57 }
 0x198   : > { %852 = vst [vmem:[%s175_s22 + $0x38] sm:$0xff] %v844_v58 }
 0x199 PF: > { %s13_s12 = sadd.s32 1, %s973_s12  }
 0x19a   : > { %p10_p5 = scmp.ge.s32.totalorder %s13_s12, 4  }
 0x19c   :  { %12 = sbr.rel (!%p10_p5) target bundleno = 1 (0x1), region = 62 }

// kernel: generator_forward.11
= control target key start
LH: loop header
LB: loop body
LE: loop exit
PB: predicated region body
PF: predicated region fallthrough
CT: control target
= control target key end

     0   :  { %s1053_s12 = smov 0   ;;  %s1973_s0 = inlined_call_operand.vmem [shape: f32[32,512], index: 0, kind: input, shape index: {}]   ;;  %s1974_s1 = inlined_call_operand.vmem [shape: f32[512,512], index: 1, kind: input, shape index: {}]   ;;  %s1975_s2 = inlined_call_operand.vmem [shape: f32[1,512], index: 2, kind: input, shape index: {}]   ;;  %s1976_s3 = inlined_call_operand.vmem [shape: f32[2,16,512], index: 3, kind: output, shape index: {}]  }
   0x1 LB: > { %s1059_s13 = sadd.s32 4294967295, %s1030_s12   ;;  %p1001_p0 = scmp.ge.s32.totalorder %s1030_s12, 1  ;;  %s1030_s12 = sphi %s1053_s12, %s13_s12  }
   0x2   : > { %p139_p1 = scmp.lt.s32.totalorder %s1030_s12, 3 }
   0x4   : > { %p140_p2 = pnand %p1001_p0, %p139_p1 }
   0x5   : > { %s1002_s7 = sshll.u32 (!%p140_p2), %s1059_s13, 1  ;;  %p171_p4 = scmp.lt.s32.totalorder (!%p140_p2), %s1059_s13, 1 }
   0x6   : > { %143 = sbr.rel (%p140_p2) target bundleno = 401 (0x191), region = 32  ;;  %p1264_p3 = scmp.lt.s32.totalorder (!%p140_p2), %s1002_s7, 3 }
   0xb   : > { %v372_v0 = vld [vmem:[%s1974_s1 + $0x5e0] sm:$0xff]  ;;  %v373_v62 = vld [vmem:[%s1974_s1 + $0x5e8] sm:$0xff]  ;;  %s1979_s7 = smov (!%p1264_p3, %s1002_s7), 3  ;;  %s1981_s13 = smov (!%p171_p4, %s1059_s13), 1 }
   0xc   : > { %v244_v1 = vld [vmem:[%s1974_s1 + $0x1e0] sm:$0xff]  ;;  %496 = vmatpush.msra.mxu2 %v372_v0  ;;  %v245_v0 = vld [vmem:[%s1974_s1 + $0x1e8] sm:$0xff]  ;;  %s1009_s4 = sshll.u32 %s1979_s7, 5 }
   0xd   : > { %v368_v2 = vld [vmem:[%s1974_s1 + $0x5c0] sm:$0xff]  ;;  %450 = vmatpush.msra.mxu0 %v244_v1  ;;  %v437_v1 = vld [vmem:[%s1974_s1 + $0x7e8] sm:$0xff]  ;;  %s1344_s21 = scalar_lea.vmem %s1973_s0, %s1009_s4 }
   0xe   : > { %v436_v3 = vld [vmem:[%s1974_s1 + $0x7e0] sm:$0xff]  ;;  %497 = vmatpush.msra.mxu2 %v368_v2  ;;  %v369_v2 = vld [vmem:[%s1974_s1 + $0x5c8] sm:$0xff] }
   0xf   : > { %v240_v4 = vld [vmem:[%s1974_s1 + $0x1c0] sm:$0xff]  ;;  %519 = vmatpush.msra.mxu3 %v436_v3 }
  0x10   : > { %v308_v5 = vld [vmem:[%s1974_s1 + $0x3e0] sm:$0xff]  ;;  %451 = vmatpush.msra.mxu0 %v240_v4  ;;  %v241_v4 = vld [vmem:[%s1974_s1 + $0x1c8] sm:$0xff] }
  0x11   : > { %473 = vmatpush.msra.mxu1 %v308_v5  ;;  %v364_v6 = vld [vmem:[%s1974_s1 + $0x5a0] sm:$0xff]  ;;  %v309_v5 = vld [vmem:[%s1974_s1 + $0x3e8] sm:$0xff] }
  0x12   : > { %v432_v7 = vld [vmem:[%s1974_s1 + $0x7c0] sm:$0xff]  ;;  %498 = vmatpush.msra.mxu2 %v364_v6  ;;  %v365_v6 = vld [vmem:[%s1974_s1 + $0x5a8] sm:$0xff] }
  0x13   : > { %v236_v8 = vld [vmem:[%s1974_s1 + $0x1a0] sm:$0xff]  ;;  %520 = vmatpush.msra.mxu3 %v432_v7  ;;  %v433_v7 = vld [vmem:[%s1974_s1 + $0x7c8] sm:$0xff] }
  0x14   : > { %v304_v9 = vld [vmem:[%s1974_s1 + $0x3c0] sm:$0xff]  ;;  %452 = vmatpush.msra.mxu0 %v236_v8  ;;  %v237_v8 = vld [vmem:[%s1974_s1 + $0x1a8] sm:$0xff] }
  0x15   : > { %v428_v10 = vld [vmem:[%s1974_s1 + $0x7a0] sm:$0xff]  ;;  %474 = vmatpush.msra.mxu1 %v304_v9  ;;  %v305_v9 = vld [vmem:[%s1974_s1 + $0x3c8] sm:$0xff] }
  0x16   : > { %v360_v11 = vld [vmem:[%s1974_s1 + $0x580] sm:$0xff]  ;;  %521 = vmatpush.msra.mxu3 %v428_v10  ;;  %v361_v10 = vld [vmem:[%s1974_s1 + $0x588] sm:$0xff] }
  0x17   : > { %v232_v12 = vld [vmem:[%s1974_s1 + $0x180] sm:$0xff]  ;;  %499 = vmatpush.msra.mxu2 %v360_v11  ;;  %v429_v11 = vld [vmem:[%s1974_s1 + $0x7a8] sm:$0xff] }
  0x18   : > { %v300_v13 = vld [vmem:[%s1974_s1 + $0x3a0] sm:$0xff]  ;;  %453 = vmatpush.msra.mxu0 %v232_v12  ;;  %v233_v12 = vld [vmem:[%s1974_s1 + $0x188] sm:$0xff] }
  0x19   : > { %v424_v14 = vld [vmem:[%s1974_s1 + $0x780] sm:$0xff]  ;;  %475 = vmatpush.msra.mxu1 %v300_v13  ;;  %v301_v13 = vld [vmem:[%s1974_s1 + $0x3a8] sm:$0xff] }
  0x1a   : > { %v296_v15 = vld [vmem:[%s1974_s1 + $0x380] sm:$0xff]  ;;  %522 = vmatpush.msra.mxu3 %v424_v14  ;;  %v357_v14 = vld [vmem:[%s1974_s1 + $0x568] sm:$0xff] }
  0x1b   : > { %v356_v16 = vld [vmem:[%s1974_s1 + $0x560] sm:$0xff]  ;;  %476 = vmatpush.msra.mxu1 %v296_v15  ;;  %v425_v15 = vld [vmem:[%s1974_s1 + $0x788] sm:$0xff] }
  0x1c   : > { %v228_v17 = vld [vmem:[%s1974_s1 + $0x160] sm:$0xff]  ;;  %500 = vmatpush.msra.mxu2 %v356_v16  ;;  %v229_v16 = vld [vmem:[%s1974_s1 + $0x168] sm:$0xff] }
  0x1d   : > { %v420_v18 = vld [vmem:[%s1974_s1 + $0x760] sm:$0xff]  ;;  %454 = vmatpush.msra.mxu0 %v228_v17  ;;  %v297_v17 = vld [vmem:[%s1974_s1 + $0x388] sm:$0xff] }
  0x1e   : > { %v292_v19 = vld [vmem:[%s1974_s1 + $0x360] sm:$0xff]  ;;  %523 = vmatpush.msra.mxu3 %v420_v18  ;;  %v353_v18 = vld [vmem:[%s1974_s1 + $0x548] sm:$0xff] }
  0x1f   : > { %v352_v20 = vld [vmem:[%s1974_s1 + $0x540] sm:$0xff]  ;;  %477 = vmatpush.msra.mxu1 %v292_v19  ;;  %v421_v19 = vld [vmem:[%s1974_s1 + $0x768] sm:$0xff] }
  0x20   : > { %v224_v21 = vld [vmem:[%s1974_s1 + $0x140] sm:$0xff]  ;;  %501 = vmatpush.msra.mxu2 %v352_v20  ;;  %v225_v20 = vld [vmem:[%s1974_s1 + $0x148] sm:$0xff] }
  0x21   : > { %v416_v22 = vld [vmem:[%s1974_s1 + $0x740] sm:$0xff]  ;;  %455 = vmatpush.msra.mxu0 %v224_v21  ;;  %v293_v21 = vld [vmem:[%s1974_s1 + $0x368] sm:$0xff] }
  0x22   : > { %v288_v23 = vld [vmem:[%s1974_s1 + $0x340] sm:$0xff]  ;;  %524 = vmatpush.msra.mxu3 %v416_v22  ;;  %v349_v22 = vld [vmem:[%s1974_s1 + $0x528] sm:$0xff] }
  0x23   : > { %v348_v24 = vld [vmem:[%s1974_s1 + $0x520] sm:$0xff]  ;;  %478 = vmatpush.msra.mxu1 %v288_v23  ;;  %v417_v23 = vld [vmem:[%s1974_s1 + $0x748] sm:$0xff] }
  0x24   : > { %v220_v25 = vld [vmem:[%s1974_s1 + $0x120] sm:$0xff]  ;;  %502 = vmatpush.msra.mxu2 %v348_v24  ;;  %v221_v24 = vld [vmem:[%s1974_s1 + $0x128] sm:$0xff] }
  0x25   : > { %v412_v26 = vld [vmem:[%s1974_s1 + $0x720] sm:$0xff]  ;;  %456 = vmatpush.msra.mxu0 %v220_v25  ;;  %v289_v25 = vld [vmem:[%s1974_s1 + $0x348] sm:$0xff] }
  0x26   : > { %v284_v27 = vld [vmem:[%s1974_s1 + $0x320] sm:$0xff]  ;;  %525 = vmatpush.msra.mxu3 %v412_v26  ;;  %v345_v26 = vld [vmem:[%s1974_s1 + $0x508] sm:$0xff] }
  0x27   : > { %v344_v28 = vld [vmem:[%s1974_s1 + $0x500] sm:$0xff]  ;;  %479 = vmatpush.msra.mxu1 %v284_v27  ;;  %v413_v27 = vld [vmem:[%s1974_s1 + $0x728] sm:$0xff] }
  0x28   : > { %v216_v29 = vld [vmem:[%s1974_s1 + $0x100] sm:$0xff]  ;;  %503 = vmatpush.msra.mxu2 %v344_v28  ;;  %v1359_v28 = vld [vmem:[%s1344_s21 + $0x10] sm:$0xff] }
  0x29   : > { %v408_v30 = vld [vmem:[%s1974_s1 + $0x700] sm:$0xff]  ;;  %457 = vmatpush.msra.mxu0 %v216_v29  ;;  %v217_v29 = vld [vmem:[%s1974_s1 + $0x108] sm:$0xff] }
  0x2a   : > { %v280_v31 = vld [vmem:[%s1974_s1 + $0x300] sm:$0xff]  ;;  %526 = vmatpush.msra.mxu3 %v408_v30  ;;  %v285_v30 = vld [vmem:[%s1974_s1 + $0x328] sm:$0xff] }
  0x2b   : > { %v340_v32 = vld [vmem:[%s1974_s1 + $0x4e0] sm:$0xff]  ;;  %480 = vmatpush.msra.mxu1 %v280_v31  ;;  %v341_v31 = vld [vmem:[%s1974_s1 + $0x4e8] sm:$0xff] }
  0x2c   : > { %v212_v33 = vld [vmem:[%s1974_s1 + $0xe0] sm:$0xff]  ;;  %504 = vmatpush.msra.mxu2 %v340_v32  ;;  %v409_v32 = vld [vmem:[%s1974_s1 + $0x708] sm:$0xff] }
  0x2d   : > { %v404_v34 = vld [vmem:[%s1974_s1 + $0x6e0] sm:$0xff]  ;;  %458 = vmatpush.msra.mxu0 %v212_v33 }
  0x2e   : > { %v276_v35 = vld [vmem:[%s1974_s1 + $0x2e0] sm:$0xff]  ;;  %527 = vmatpush.msra.mxu3 %v404_v34  ;;  %v1378_v34 = vld [vmem:[%s1344_s21 + $0x18] sm:$0xff] }
  0x2f   : > { %v336_v36 = vld [vmem:[%s1974_s1 + $0x4c0] sm:$0xff]  ;;  %481 = vmatpush.msra.mxu1 %v276_v35  ;;  %v213_v35 = vld [vmem:[%s1974_s1 + $0xe8] sm:$0xff] }
  0x30   : > { %v208_v37 = vld [vmem:[%s1974_s1 + $0xc0] sm:$0xff]  ;;  %505 = vmatpush.msra.mxu2 %v336_v36  ;;  %v281_v36 = vld [vmem:[%s1974_s1 + $0x308] sm:$0xff] }
  0x31   : > { %v400_v38 = vld [vmem:[%s1974_s1 + $0x6c0] sm:$0xff]  ;;  %459 = vmatpush.msra.mxu0 %v208_v37  ;;  %v337_v37 = vld [vmem:[%s1974_s1 + $0x4c8] sm:$0xff] }
  0x32   : > { %v272_v39 = vld [vmem:[%s1974_s1 + $0x2c0] sm:$0xff]  ;;  %528 = vmatpush.msra.mxu3 %v400_v38  ;;  %v405_v38 = vld [vmem:[%s1974_s1 + $0x6e8] sm:$0xff] }
  0x33   : > { %v332_v40 = vld [vmem:[%s1974_s1 + $0x4a0] sm:$0xff]  ;;  %482 = vmatpush.msra.mxu1 %v272_v39  ;;  %v1394_v39 = vld [vmem:[%s1344_s21 + $0x8] sm:$0xff] }
  0x34   : > { %v204_v41 = vld [vmem:[%s1974_s1 + $0xa0] sm:$0xff]  ;;  %506 = vmatpush.msra.mxu2 %v332_v40  ;;  %v209_v40 = vld [vmem:[%s1974_s1 + $0xc8] sm:$0xff] }
  0x35   : > { %v396_v42 = vld [vmem:[%s1974_s1 + $0x6a0] sm:$0xff]  ;;  %460 = vmatpush.msra.mxu0 %v204_v41  ;;  %v277_v41 = vld [vmem:[%s1974_s1 + $0x2e8] sm:$0xff] }
  0x36   : > { %v268_v43 = vld [vmem:[%s1974_s1 + $0x2a0] sm:$0xff]  ;;  %529 = vmatpush.msra.mxu3 %v396_v42  ;;  %v333_v42 = vld [vmem:[%s1974_s1 + $0x4a8] sm:$0xff] }
  0x37   : > { %v328_v44 = vld [vmem:[%s1974_s1 + $0x480] sm:$0xff]  ;;  %483 = vmatpush.msra.mxu1 %v268_v43  ;;  %v401_v43 = vld [vmem:[%s1974_s1 + $0x6c8] sm:$0xff] }
  0x38   : > { %v200_v45 = vld [vmem:[%s1974_s1 + $0x80] sm:$0xff]  ;;  %507 = vmatpush.msra.mxu2 %v328_v44  ;;  %v205_v44 = vld [vmem:[%s1974_s1 + $0xa8] sm:$0xff] }
  0x39   : > { %v392_v46 = vld [vmem:[%s1974_s1 + $0x680] sm:$0xff]  ;;  %461 = vmatpush.msra.mxu0 %v200_v45  ;;  %v273_v45 = vld [vmem:[%s1974_s1 + $0x2c8] sm:$0xff] }
  0x3a   : > { %v264_v47 = vld [vmem:[%s1974_s1 + $0x280] sm:$0xff]  ;;  %530 = vmatpush.msra.mxu3 %v392_v46  ;;  %v329_v46 = vld [vmem:[%s1974_s1 + $0x488] sm:$0xff] }
  0x3b   : > { %v324_v48 = vld [vmem:[%s1974_s1 + $0x460] sm:$0xff]  ;;  %484 = vmatpush.msra.mxu1 %v264_v47  ;;  %v397_v47 = vld [vmem:[%s1974_s1 + $0x6a8] sm:$0xff] }
  0x3c   : > { %v196_v49 = vld [vmem:[%s1974_s1 + $0x60] sm:$0xff]  ;;  %508 = vmatpush.msra.mxu2 %v324_v48  ;;  %v1423_v48 = vld [vmem:[%s1344_s21 + $0x30] sm:$0xff] }
  0x3d   : > { %v388_v50 = vld [vmem:[%s1974_s1 + $0x660] sm:$0xff]  ;;  %462 = vmatpush.msra.mxu0 %v196_v49  ;;  %v201_v49 = vld [vmem:[%s1974_s1 + $0x88] sm:$0xff] }
  0x3e   : > { %v260_v51 = vld [vmem:[%s1974_s1 + $0x260] sm:$0xff]  ;;  %531 = vmatpush.msra.mxu3 %v388_v50  ;;  %v269_v50 = vld [vmem:[%s1974_s1 + $0x2a8] sm:$0xff] }
  0x3f   : > { %v320_v52 = vld [vmem:[%s1974_s1 + $0x440] sm:$0xff]  ;;  %485 = vmatpush.msra.mxu1 %v260_v51  ;;  %v325_v51 = vld [vmem:[%s1974_s1 + $0x468] sm:$0xff] }
  0x40   : > { %v192_v53 = vld [vmem:[%s1974_s1 + $0x40] sm:$0xff]  ;;  %509 = vmatpush.msra.mxu2 %v320_v52  ;;  %v393_v52 = vld [vmem:[%s1974_s1 + $0x688] sm:$0xff] }
  0x41   : > { %v384_v54 = vld [vmem:[%s1974_s1 + $0x640] sm:$0xff]  ;;  %463 = vmatpush.msra.mxu0 %v192_v53 }
  0x42   : > { %v256_v55 = vld [vmem:[%s1974_s1 + $0x240] sm:$0xff]  ;;  %532 = vmatpush.msra.mxu3 %v384_v54  ;;  %v1442_v54 = vld [vmem:[%s1344_s21 + $0x38] sm:$0xff] }
  0x43   : > { %v316_v56 = vld [vmem:[%s1974_s1 + $0x420] sm:$0xff]  ;;  %486 = vmatpush.msra.mxu1 %v256_v55  ;;  %v197_v55 = vld [vmem:[%s1974_s1 + $0x68] sm:$0xff] }
  0x44   : > { %v188_v57 = vld [vmem:[%s1974_s1 + $0x20] sm:$0xff]  ;;  %510 = vmatpush.msra.mxu2 %v316_v56  ;;  %v265_v56 = vld [vmem:[%s1974_s1 + $0x288] sm:$0xff] }
  0x45   : > { %v380_v58 = vld [vmem:[%s1974_s1 + $0x620] sm:$0xff]  ;;  %464 = vmatpush.msra.mxu0 %v188_v57  ;;  %v321_v57 = vld [vmem:[%s1974_s1 + $0x448] sm:$0xff] }
  0x46   : > { %v252_v59 = vld [vmem:[%s1974_s1 + $0x220] sm:$0xff]  ;;  %533 = vmatpush.msra.mxu3 %v380_v58  ;;  %v389_v58 = vld [vmem:[%s1974_s1 + $0x668] sm:$0xff] }
  0x47   : > { %v312_v60 = vld [vmem:[%s1974_s1 + $0x400] sm:$0xff]  ;;  %487 = vmatpush.msra.mxu1 %v252_v59  ;;  %v1458_v59 = vld [vmem:[%s1344_s21 + $0x28] sm:$0xff] }
  0x48   : > { %v184_v61 = vld [vmem:[%s1974_s1] sm:$0xff]  ;;  %511 = vmatpush.msra.mxu2 %v312_v60  ;;  %v193_v60 = vld [vmem:[%s1974_s1 + $0x48] sm:$0xff] }
  0x49   : > { %v376_v63 = vld [vmem:[%s1974_s1 + $0x600] sm:$0xff]  ;;  %465 = vmatpush.msra.mxu0 %v184_v61  ;;  %512 = vmatmul.f32.vlgmr.msra.gmra.mxu2 %v1359_v28  ;;  %v261_v61 = vld [vmem:[%s1974_s1 + $0x268] sm:$0xff] }
  0x4a   : > { %v248_v3 = vld [vmem:[%s1974_s1 + $0x200] sm:$0xff]  ;;  %588 = vmatpush.msrb.mxu2 %v373_v62  ;;  %534 = vmatpush.msra.mxu3 %v376_v63  ;;  %v317_v62 = vld [vmem:[%s1974_s1 + $0x428] sm:$0xff] }
  0x4b   : > { %542 = vmatpush.msrb.mxu0 %v245_v0  ;;  %488 = vmatpush.msra.mxu1 %v248_v3  ;;  %v1374_v33 = vld [vmem:[%s1344_s21] sm:$0xff]  ;;  %v385_v63 = vld [vmem:[%s1974_s1 + $0x648] sm:$0xff] }
  0x4c   : > { %611 = vmatpush.msrb.mxu3 %v437_v1  ;;  %589 = vmatpush.msrb.mxu2 %v369_v2  ;;  %v1438_v53 = vld [vmem:[%s1344_s21 + $0x20] sm:$0xff]  ;;  %v189_v0 = vld [vmem:[%s1974_s1 + $0x28] sm:$0xff]  ;;  %s1010_s21 = sshll.u32 %s1981_s13, 6 }
  0x4d   : > { %543 = vmatpush.msrb.mxu0 %v241_v4  ;;  %565 = vmatpush.msrb.mxu1 %v309_v5  ;;  %v257_v1 = vld [vmem:[%s1974_s1 + $0x248] sm:$0xff]  ;;  %v374_v5 = vld [vmem:[%s1974_s1 + $0x5f0] sm:$0xff]  ;;  %s175_s15 = scalar_lea.vmem %s1976_s3, %s1010_s21 }
  0x4e   : > { %590 = vmatpush.msrb.mxu2 %v365_v6  ;;  %612 = vmatpush.msrb.mxu3 %v433_v7  ;;  %v313_v2 = vld [vmem:[%s1974_s1 + $0x408] sm:$0xff] }
  0x4f   : > { %544 = vmatpush.msrb.mxu0 %v237_v8  ;;  %566 = vmatpush.msrb.mxu1 %v305_v9  ;;  %v381_v3 = vld [vmem:[%s1974_s1 + $0x628] sm:$0xff]  ;;  %v246_v8 = vld [vmem:[%s1974_s1 + $0x1f0] sm:$0xff] }
  0x50   : > { %591 = vmatpush.msrb.mxu2 %v361_v10  ;;  %613 = vmatpush.msrb.mxu3 %v429_v11  ;;  %v185_v4 = vld [vmem:[%s1974_s1 + $0x8] sm:$0xff]  ;;  %v370_v9 = vld [vmem:[%s1974_s1 + $0x5d0] sm:$0xff] }
  0x51   : > { %545 = vmatpush.msrb.mxu0 %v233_v12  ;;  %567 = vmatpush.msrb.mxu1 %v301_v13  ;;  %v253_v6 = vld [vmem:[%s1974_s1 + $0x228] sm:$0xff]  ;;  %v438_v10 = vld [vmem:[%s1974_s1 + $0x7f0] sm:$0xff] }
  0x52   : > { %592 = vmatpush.msrb.mxu2 %v357_v14  ;;  %614 = vmatpush.msrb.mxu3 %v425_v15  ;;  %v377_v7 = vld [vmem:[%s1974_s1 + $0x608] sm:$0xff]  ;;  %v242_v12 = vld [vmem:[%s1974_s1 + $0x1d0] sm:$0xff] }
  0x53   : > { %546 = vmatpush.msrb.mxu0 %v229_v16  ;;  %568 = vmatpush.msrb.mxu1 %v297_v17  ;;  %v249_v11 = vld [vmem:[%s1974_s1 + $0x208] sm:$0xff]  ;;  %v366_v13 = vld [vmem:[%s1974_s1 + $0x5b0] sm:$0xff] }
  0x54   : > { %593 = vmatpush.msrb.mxu2 %v353_v18  ;;  %615 = vmatpush.msrb.mxu3 %v421_v19  ;;  %v310_v14 = vld [vmem:[%s1974_s1 + $0x3f0] sm:$0xff] }
  0x55   : > { %547 = vmatpush.msrb.mxu0 %v225_v20  ;;  %569 = vmatpush.msrb.mxu1 %v293_v21  ;;  %v434_v15 = vld [vmem:[%s1974_s1 + $0x7d0] sm:$0xff] }
  0x56   : > { %594 = vmatpush.msrb.mxu2 %v349_v22  ;;  %616 = vmatpush.msrb.mxu3 %v417_v23  ;;  %v238_v16 = vld [vmem:[%s1974_s1 + $0x1b0] sm:$0xff] }
  0x57   : > { %548 = vmatpush.msrb.mxu0 %v221_v24  ;;  %570 = vmatpush.msrb.mxu1 %v289_v25  ;;  %v362_v17 = vld [vmem:[%s1974_s1 + $0x590] sm:$0xff] }
  0x58   : > { %595 = vmatpush.msrb.mxu2 %v345_v26  ;;  %617 = vmatpush.msrb.mxu3 %v413_v27  ;;  %v306_v18 = vld [vmem:[%s1974_s1 + $0x3d0] sm:$0xff] }
  0x59   : > { %549 = vmatpush.msrb.mxu0 %v217_v29  ;;  %571 = vmatpush.msrb.mxu1 %v285_v30  ;;  %v430_v19 = vld [vmem:[%s1974_s1 + $0x7b0] sm:$0xff] }
  0x5a   : > { %596 = vmatpush.msrb.mxu2 %v341_v31  ;;  %618 = vmatpush.msrb.mxu3 %v409_v32  ;;  %v234_v20 = vld [vmem:[%s1974_s1 + $0x190] sm:$0xff] }
  0x5b   : > { %466 = vmatmul.f32.vlgmr.msra.gmra.mxu0 %v1374_v33  ;;  %535 = vmatmul.f32.vlgmr.msra.gmra.mxu3 %v1378_v34  ;;  %v302_v21 = vld [vmem:[%s1974_s1 + $0x3b0] sm:$0xff] }
  0x5c   : > { %550 = vmatpush.msrb.mxu0 %v213_v35  ;;  %572 = vmatpush.msrb.mxu1 %v281_v36  ;;  %v358_v22 = vld [vmem:[%s1974_s1 + $0x570] sm:$0xff] }
  0x5d   : > { %597 = vmatpush.msrb.mxu2 %v337_v37  ;;  %619 = vmatpush.msrb.mxu3 %v405_v38  ;;  %v426_v23 = vld [vmem:[%s1974_s1 + $0x790] sm:$0xff] }
  0x5e   : > { %489 = vmatmul.f32.vlgmr.msra.gmra.mxu1 %v1394_v39  ;;  %551 = vmatpush.msrb.mxu0 %v209_v40  ;;  %v230_v24 = vld [vmem:[%s1974_s1 + $0x170] sm:$0xff] }
  0x5f   : > { %573 = vmatpush.msrb.mxu1 %v277_v41  ;;  %598 = vmatpush.msrb.mxu2 %v333_v42  ;;  %v298_v25 = vld [vmem:[%s1974_s1 + $0x390] sm:$0xff] }
  0x60   : > { %620 = vmatpush.msrb.mxu3 %v401_v43  ;;  %552 = vmatpush.msrb.mxu0 %v205_v44  ;;  %v354_v26 = vld [vmem:[%s1974_s1 + $0x550] sm:$0xff] }
  0x61   : > { %574 = vmatpush.msrb.mxu1 %v273_v45  ;;  %599 = vmatpush.msrb.mxu2 %v329_v46  ;;  %v422_v27 = vld [vmem:[%s1974_s1 + $0x770] sm:$0xff] }
  0x62   : > { %621 = vmatpush.msrb.mxu3 %v397_v47  ;;  %515 = vmatmul.f32.gmra.mxu2 %v1423_v48  ;;  %v226_v29 = vld [vmem:[%s1974_s1 + $0x150] sm:$0xff] }
  0x63   : > { %553 = vmatpush.msrb.mxu0 %v201_v49  ;;  %575 = vmatpush.msrb.mxu1 %v269_v50  ;;  %v294_v30 = vld [vmem:[%s1974_s1 + $0x370] sm:$0xff] }
  0x64   : > { %600 = vmatpush.msrb.mxu2 %v325_v51  ;;  %622 = vmatpush.msrb.mxu3 %v393_v52  ;;  %v350_v31 = vld [vmem:[%s1974_s1 + $0x530] sm:$0xff] }
  0x65   : > { %469 = vmatmul.f32.gmra.mxu0 %v1438_v53  ;;  %538 = vmatmul.f32.gmra.mxu3 %v1442_v54  ;;  %v418_v32 = vld [vmem:[%s1974_s1 + $0x750] sm:$0xff] }
  0x66   : > { %554 = vmatpush.msrb.mxu0 %v197_v55  ;;  %576 = vmatpush.msrb.mxu1 %v265_v56  ;;  %v222_v35 = vld [vmem:[%s1974_s1 + $0x130] sm:$0xff] }
  0x67   : > { %601 = vmatpush.msrb.mxu2 %v321_v57  ;;  %623 = vmatpush.msrb.mxu3 %v389_v58  ;;  %v290_v36 = vld [vmem:[%s1974_s1 + $0x350] sm:$0xff] }
  0x68   : > { %492 = vmatmul.f32.gmra.mxu1 %v1458_v59  ;;  %555 = vmatpush.msrb.mxu0 %v193_v60  ;;  %v346_v37 = vld [vmem:[%s1974_s1 + $0x510] sm:$0xff] }
  0x69   : > { %577 = vmatpush.msrb.mxu1 %v261_v61  ;;  %602 = vmatpush.msrb.mxu2 %v317_v62  ;;  %v414_v38 = vld [vmem:[%s1974_s1 + $0x730] sm:$0xff] }
  0x6a   : > { %624 = vmatpush.msrb.mxu3 %v385_v63  ;;  %556 = vmatpush.msrb.mxu0 %v189_v0  ;;  %v218_v40 = vld [vmem:[%s1974_s1 + $0x110] sm:$0xff] }
  0x6b   : > { %578 = vmatpush.msrb.mxu1 %v257_v1  ;;  %603 = vmatpush.msrb.mxu2 %v313_v2  ;;  %v286_v41 = vld [vmem:[%s1974_s1 + $0x330] sm:$0xff] }
  0x6c   : > { %625 = vmatpush.msrb.mxu3 %v381_v3  ;;  %604 = vmatmul.f32.vlgmr.msrb.gmra.mxu2 %v1359_v28  ;;  %v342_v42 = vld [vmem:[%s1974_s1 + $0x4f0] sm:$0xff] }
  0x6d   : > { %557 = vmatpush.msrb.mxu0 %v185_v4  ;;  %680 = vmatpush.msra.mxu2 %v374_v5  ;;  %v410_v43 = vld [vmem:[%s1974_s1 + $0x710] sm:$0xff] }
  0x6e   : > { %579 = vmatpush.msrb.mxu1 %v253_v6  ;;  %626 = vmatpush.msrb.mxu3 %v377_v7  ;;  %v214_v44 = vld [vmem:[%s1974_s1 + $0xf0] sm:$0xff] }
  0x6f   : > { %558 = vmatmul.f32.vlgmr.msrb.gmra.mxu0 %v1374_v33  ;;  %627 = vmatmul.f32.vlgmr.msrb.gmra.mxu3 %v1378_v34  ;;  %v282_v45 = vld [vmem:[%s1974_s1 + $0x310] sm:$0xff] }
  0x70   : > { %634 = vmatpush.msra.mxu0 %v246_v8  ;;  %681 = vmatpush.msra.mxu2 %v370_v9  ;;  %v338_v46 = vld [vmem:[%s1974_s1 + $0x4d0] sm:$0xff] }
  0x71   : > { %703 = vmatpush.msra.mxu3 %v438_v10  ;;  %580 = vmatpush.msrb.mxu1 %v249_v11  ;;  %v406_v47 = vld [vmem:[%s1974_s1 + $0x6f0] sm:$0xff] }
  0x72   : > { %635 = vmatpush.msra.mxu0 %v242_v12  ;;  %581 = vmatmul.f32.vlgmr.msrb.gmra.mxu1 %v1394_v39  ;;  %v210_v49 = vld [vmem:[%s1974_s1 + $0xd0] sm:$0xff] }
  0x73   : > { %682 = vmatpush.msra.mxu2 %v366_v13  ;;  %657 = vmatpush.msra.mxu1 %v310_v14  ;;  %v278_v50 = vld [vmem:[%s1974_s1 + $0x2f0] sm:$0xff]  ;;  %v375_v13 = vld [vmem:[%s1974_s1 + $0x5f8] sm:$0xff] }
  0x74   : > { %704 = vmatpush.msra.mxu3 %v434_v15  ;;  %636 = vmatpush.msra.mxu0 %v238_v16  ;;  %v334_v51 = vld [vmem:[%s1974_s1 + $0x4b0] sm:$0xff]  ;;  %v247_v16 = vld [vmem:[%s1974_s1 + $0x1f8] sm:$0xff] }
  0x75   : > { %683 = vmatpush.msra.mxu2 %v362_v17  ;;  %658 = vmatpush.msra.mxu1 %v306_v18  ;;  %v402_v52 = vld [vmem:[%s1974_s1 + $0x6d0] sm:$0xff]  ;;  %v371_v17 = vld [vmem:[%s1974_s1 + $0x5d8] sm:$0xff] }
  0x76   : > { %705 = vmatpush.msra.mxu3 %v430_v19  ;;  %607 = vmatmul.f32.gmra.mxu2 %v1423_v48  ;;  %v206_v55 = vld [vmem:[%s1974_s1 + $0xb0] sm:$0xff]  ;;  %v439_v18 = vld [vmem:[%s1974_s1 + $0x7f8] sm:$0xff] }
  0x77   : > { %637 = vmatpush.msra.mxu0 %v234_v20  ;;  %659 = vmatpush.msra.mxu1 %v302_v21  ;;  %v274_v56 = vld [vmem:[%s1974_s1 + $0x2d0] sm:$0xff]  ;;  %v243_v20 = vld [vmem:[%s1974_s1 + $0x1d8] sm:$0xff] }
  0x78   : > { %684 = vmatpush.msra.mxu2 %v358_v22  ;;  %706 = vmatpush.msra.mxu3 %v426_v23  ;;  %v330_v57 = vld [vmem:[%s1974_s1 + $0x490] sm:$0xff]  ;;  %v367_v21 = vld [vmem:[%s1974_s1 + $0x5b8] sm:$0xff] }
  0x79   : > { %561 = vmatmul.f32.gmra.mxu0 %v1438_v53  ;;  %630 = vmatmul.f32.gmra.mxu3 %v1442_v54  ;;  %v398_v58 = vld [vmem:[%s1974_s1 + $0x6b0] sm:$0xff]  ;;  %v311_v22 = vld [vmem:[%s1974_s1 + $0x3f8] sm:$0xff] }
  0x7a   : > { %638 = vmatpush.msra.mxu0 %v230_v24  ;;  %660 = vmatpush.msra.mxu1 %v298_v25  ;;  %v202_v60 = vld [vmem:[%s1974_s1 + $0x90] sm:$0xff]  ;;  %v435_v23 = vld [vmem:[%s1974_s1 + $0x7d8] sm:$0xff] }
  0x7b   : > { %685 = vmatpush.msra.mxu2 %v354_v26  ;;  %707 = vmatpush.msra.mxu3 %v422_v27  ;;  %v270_v61 = vld [vmem:[%s1974_s1 + $0x2b0] sm:$0xff]  ;;  %v239_v24 = vld [vmem:[%s1974_s1 + $0x1b8] sm:$0xff] }
  0x7c   : > { %584 = vmatmul.f32.gmra.mxu1 %v1458_v59  ;;  %639 = vmatpush.msra.mxu0 %v226_v29  ;;  %v326_v62 = vld [vmem:[%s1974_s1 + $0x470] sm:$0xff]  ;;  %v363_v25 = vld [vmem:[%s1974_s1 + $0x598] sm:$0xff] }
  0x7d   : > { %661 = vmatpush.msra.mxu1 %v294_v30  ;;  %686 = vmatpush.msra.mxu2 %v350_v31  ;;  %v394_v63 = vld [vmem:[%s1974_s1 + $0x690] sm:$0xff]  ;;  %v307_v26 = vld [vmem:[%s1974_s1 + $0x3d8] sm:$0xff] }
  0x7e   : > { %708 = vmatpush.msra.mxu3 %v418_v32  ;;  %640 = vmatpush.msra.mxu0 %v222_v35  ;;  %v198_v0 = vld [vmem:[%s1974_s1 + $0x70] sm:$0xff]  ;;  %v431_v27 = vld [vmem:[%s1974_s1 + $0x7b8] sm:$0xff] }
  0x7f   : > { %662 = vmatpush.msra.mxu1 %v290_v36  ;;  %687 = vmatpush.msra.mxu2 %v346_v37  ;;  %v266_v1 = vld [vmem:[%s1974_s1 + $0x290] sm:$0xff]  ;;  %v235_v29 = vld [vmem:[%s1974_s1 + $0x198] sm:$0xff] }
  0x80   : > { %709 = vmatpush.msra.mxu3 %v414_v38  ;;  %641 = vmatpush.msra.mxu0 %v218_v40  ;;  %v322_v2 = vld [vmem:[%s1974_s1 + $0x450] sm:$0xff]  ;;  %v303_v30 = vld [vmem:[%s1974_s1 + $0x3b8] sm:$0xff] }
  0x81   : > { %663 = vmatpush.msra.mxu1 %v286_v41  ;;  %688 = vmatpush.msra.mxu2 %v342_v42  ;;  %v390_v3 = vld [vmem:[%s1974_s1 + $0x670] sm:$0xff]  ;;  %v359_v31 = vld [vmem:[%s1974_s1 + $0x578] sm:$0xff] }
  0x82   : > { %710 = vmatpush.msra.mxu3 %v410_v43  ;;  %642 = vmatpush.msra.mxu0 %v214_v44  ;;  %v194_v4 = vld [vmem:[%s1974_s1 + $0x50] sm:$0xff]  ;;  %v427_v32 = vld [vmem:[%s1974_s1 + $0x798] sm:$0xff] }
  0x83   : > { %664 = vmatpush.msra.mxu1 %v282_v45  ;;  %689 = vmatpush.msra.mxu2 %v338_v46  ;;  %v262_v5 = vld [vmem:[%s1974_s1 + $0x270] sm:$0xff]  ;;  %v231_v35 = vld [vmem:[%s1974_s1 + $0x178] sm:$0xff] }
  0x84   : > { %711 = vmatpush.msra.mxu3 %v406_v47  ;;  %643 = vmatpush.msra.mxu0 %v210_v49  ;;  %v318_v6 = vld [vmem:[%s1974_s1 + $0x430] sm:$0xff]  ;;  %v299_v36 = vld [vmem:[%s1974_s1 + $0x398] sm:$0xff] }
  0x85   : > { %665 = vmatpush.msra.mxu1 %v278_v50  ;;  %690 = vmatpush.msra.mxu2 %v334_v51  ;;  %v386_v7 = vld [vmem:[%s1974_s1 + $0x650] sm:$0xff]  ;;  %v355_v37 = vld [vmem:[%s1974_s1 + $0x558] sm:$0xff] }
  0x86   : > { %712 = vmatpush.msra.mxu3 %v402_v52  ;;  %644 = vmatpush.msra.mxu0 %v206_v55  ;;  %v190_v8 = vld [vmem:[%s1974_s1 + $0x30] sm:$0xff]  ;;  %v423_v38 = vld [vmem:[%s1974_s1 + $0x778] sm:$0xff] }
  0x87   : > { %666 = vmatpush.msra.mxu1 %v274_v56  ;;  %691 = vmatpush.msra.mxu2 %v330_v57  ;;  %v258_v9 = vld [vmem:[%s1974_s1 + $0x250] sm:$0xff]  ;;  %v227_v40 = vld [vmem:[%s1974_s1 + $0x158] sm:$0xff] }
  0x88   : > { %713 = vmatpush.msra.mxu3 %v398_v58  ;;  %645 = vmatpush.msra.mxu0 %v202_v60  ;;  %v314_v10 = vld [vmem:[%s1974_s1 + $0x410] sm:$0xff]  ;;  %v295_v41 = vld [vmem:[%s1974_s1 + $0x378] sm:$0xff] }
  0x89   : > { %667 = vmatpush.msra.mxu1 %v270_v61  ;;  %692 = vmatpush.msra.mxu2 %v326_v62  ;;  %v382_v11 = vld [vmem:[%s1974_s1 + $0x630] sm:$0xff]  ;;  %v351_v42 = vld [vmem:[%s1974_s1 + $0x538] sm:$0xff] }
  0x8a   : > { %714 = vmatpush.msra.mxu3 %v394_v63  ;;  %646 = vmatpush.msra.mxu0 %v198_v0  ;;  %v186_v12 = vld [vmem:[%s1974_s1 + $0x10] sm:$0xff]  ;;  %v419_v43 = vld [vmem:[%s1974_s1 + $0x758] sm:$0xff] }
  0x8b   : > { %668 = vmatpush.msra.mxu1 %v266_v1  ;;  %693 = vmatpush.msra.mxu2 %v322_v2  ;;  %v254_v14 = vld [vmem:[%s1974_s1 + $0x230] sm:$0xff]  ;;  %v223_v44 = vld [vmem:[%s1974_s1 + $0x138] sm:$0xff] }
  0x8c   : > { %715 = vmatpush.msra.mxu3 %v390_v3  ;;  %647 = vmatpush.msra.mxu0 %v194_v4  ;;  %v378_v15 = vld [vmem:[%s1974_s1 + $0x610] sm:$0xff]  ;;  %v291_v45 = vld [vmem:[%s1974_s1 + $0x358] sm:$0xff] }
  0x8d   : > { %669 = vmatpush.msra.mxu1 %v262_v5  ;;  %694 = vmatpush.msra.mxu2 %v318_v6  ;;  %v250_v19 = vld [vmem:[%s1974_s1 + $0x210] sm:$0xff]  ;;  %v347_v46 = vld [vmem:[%s1974_s1 + $0x518] sm:$0xff] }
  0x8e   : > { %716 = vmatpush.msra.mxu3 %v386_v7  ;;  %648 = vmatpush.msra.mxu0 %v190_v8  ;;  %v415_v47 = vld [vmem:[%s1974_s1 + $0x738] sm:$0xff] }
  0x8f   : > { %670 = vmatpush.msra.mxu1 %v258_v9  ;;  %695 = vmatpush.msra.mxu2 %v314_v10  ;;  %v219_v49 = vld [vmem:[%s1974_s1 + $0x118] sm:$0xff] }
  0x90   : > { %717 = vmatpush.msra.mxu3 %v382_v11  ;;  %696 = vmatmul.f32.vlgmr.msra.gmra.mxu2 %v1359_v28  ;;  %v287_v50 = vld [vmem:[%s1974_s1 + $0x338] sm:$0xff] }
  0x91   : > { %649 = vmatpush.msra.mxu0 %v186_v12  ;;  %772 = vmatpush.msrb.mxu2 %v375_v13  ;;  %v343_v51 = vld [vmem:[%s1974_s1 + $0x4f8] sm:$0xff] }
  0x92   : > { %671 = vmatpush.msra.mxu1 %v254_v14  ;;  %718 = vmatpush.msra.mxu3 %v378_v15  ;;  %v411_v52 = vld [vmem:[%s1974_s1 + $0x718] sm:$0xff] }
  0x93   : > { %650 = vmatmul.f32.vlgmr.msra.gmra.mxu0 %v1374_v33  ;;  %719 = vmatmul.f32.vlgmr.msra.gmra.mxu3 %v1378_v34  ;;  %v215_v55 = vld [vmem:[%s1974_s1 + $0xf8] sm:$0xff] }
  0x94   : > { %726 = vmatpush.msrb.mxu0 %v247_v16  ;;  %773 = vmatpush.msrb.mxu2 %v371_v17  ;;  %v283_v56 = vld [vmem:[%s1974_s1 + $0x318] sm:$0xff] }
  0x95   : > { %795 = vmatpush.msrb.mxu3 %v439_v18  ;;  %672 = vmatpush.msra.mxu1 %v250_v19  ;;  %v339_v57 = vld [vmem:[%s1974_s1 + $0x4d8] sm:$0xff] }
  0x96   : > { %727 = vmatpush.msrb.mxu0 %v243_v20  ;;  %673 = vmatmul.f32.vlgmr.msra.gmra.mxu1 %v1394_v39  ;;  %v407_v58 = vld [vmem:[%s1974_s1 + $0x6f8] sm:$0xff] }
  0x97   : > { %774 = vmatpush.msrb.mxu2 %v367_v21  ;;  %749 = vmatpush.msrb.mxu1 %v311_v22  ;;  %v211_v60 = vld [vmem:[%s1974_s1 + $0xd8] sm:$0xff] }
  0x98   : > { %796 = vmatpush.msrb.mxu3 %v435_v23  ;;  %728 = vmatpush.msrb.mxu0 %v239_v24  ;;  %v279_v61 = vld [vmem:[%s1974_s1 + $0x2f8] sm:$0xff] }
  0x99   : > { %775 = vmatpush.msrb.mxu2 %v363_v25  ;;  %750 = vmatpush.msrb.mxu1 %v307_v26  ;;  %v335_v62 = vld [vmem:[%s1974_s1 + $0x4b8] sm:$0xff] }
  0x9a   : > { %797 = vmatpush.msrb.mxu3 %v431_v27  ;;  %699 = vmatmul.f32.gmra.mxu2 %v1423_v48  ;;  %v403_v63 = vld [vmem:[%s1974_s1 + $0x6d8] sm:$0xff] }
  0x9b   : > { %729 = vmatpush.msrb.mxu0 %v235_v29  ;;  %751 = vmatpush.msrb.mxu1 %v303_v30  ;;  %v207_v0 = vld [vmem:[%s1974_s1 + $0xb8] sm:$0xff] }
  0x9c   : > { %776 = vmatpush.msrb.mxu2 %v359_v31  ;;  %798 = vmatpush.msrb.mxu3 %v427_v32  ;;  %v275_v1 = vld [vmem:[%s1974_s1 + $0x2d8] sm:$0xff] }
  0x9d   : > { %653 = vmatmul.f32.gmra.mxu0 %v1438_v53  ;;  %722 = vmatmul.f32.gmra.mxu3 %v1442_v54  ;;  %v331_v2 = vld [vmem:[%s1974_s1 + $0x498] sm:$0xff] }
  0x9e   : > { %730 = vmatpush.msrb.mxu0 %v231_v35  ;;  %752 = vmatpush.msrb.mxu1 %v299_v36  ;;  %v399_v3 = vld [vmem:[%s1974_s1 + $0x6b8] sm:$0xff] }
  0x9f   : > { %777 = vmatpush.msrb.mxu2 %v355_v37  ;;  %799 = vmatpush.msrb.mxu3 %v423_v38  ;;  %v203_v4 = vld [vmem:[%s1974_s1 + $0x98] sm:$0xff] }
  0xa0   : > { %676 = vmatmul.f32.gmra.mxu1 %v1458_v59  ;;  %731 = vmatpush.msrb.mxu0 %v227_v40  ;;  %v271_v5 = vld [vmem:[%s1974_s1 + $0x2b8] sm:$0xff] }
  0xa1   : > { %753 = vmatpush.msrb.mxu1 %v295_v41  ;;  %778 = vmatpush.msrb.mxu2 %v351_v42  ;;  %v327_v6 = vld [vmem:[%s1974_s1 + $0x478] sm:$0xff] }
  0xa2   : > { %800 = vmatpush.msrb.mxu3 %v419_v43  ;;  %732 = vmatpush.msrb.mxu0 %v223_v44  ;;  %v395_v7 = vld [vmem:[%s1974_s1 + $0x698] sm:$0xff] }
  0xa3   : > { %754 = vmatpush.msrb.mxu1 %v291_v45  ;;  %779 = vmatpush.msrb.mxu2 %v347_v46  ;;  %v199_v8 = vld [vmem:[%s1974_s1 + $0x78] sm:$0xff] }
  0xa4   : > { %801 = vmatpush.msrb.mxu3 %v415_v47  ;;  %733 = vmatpush.msrb.mxu0 %v219_v49  ;;  %v267_v9 = vld [vmem:[%s1974_s1 + $0x298] sm:$0xff] }
  0xa5   : > { %755 = vmatpush.msrb.mxu1 %v287_v50  ;;  %780 = vmatpush.msrb.mxu2 %v343_v51  ;;  %v323_v10 = vld [vmem:[%s1974_s1 + $0x458] sm:$0xff] }
  0xa6   : > { %802 = vmatpush.msrb.mxu3 %v411_v52  ;;  %734 = vmatpush.msrb.mxu0 %v215_v55  ;;  %v391_v11 = vld [vmem:[%s1974_s1 + $0x678] sm:$0xff] }
  0xa7   : > { %756 = vmatpush.msrb.mxu1 %v283_v56  ;;  %781 = vmatpush.msrb.mxu2 %v339_v57  ;;  %v195_v12 = vld [vmem:[%s1974_s1 + $0x58] sm:$0xff] }
  0xa8   : > { %803 = vmatpush.msrb.mxu3 %v407_v58  ;;  %735 = vmatpush.msrb.mxu0 %v211_v60  ;;  %v263_v13 = vld [vmem:[%s1974_s1 + $0x278] sm:$0xff] }
  0xa9   : > { %757 = vmatpush.msrb.mxu1 %v279_v61  ;;  %782 = vmatpush.msrb.mxu2 %v335_v62  ;;  %v319_v14 = vld [vmem:[%s1974_s1 + $0x438] sm:$0xff] }
  0xaa   : > { %804 = vmatpush.msrb.mxu3 %v403_v63  ;;  %736 = vmatpush.msrb.mxu0 %v207_v0  ;;  %v387_v15 = vld [vmem:[%s1974_s1 + $0x658] sm:$0xff] }
  0xab   : > { %758 = vmatpush.msrb.mxu1 %v275_v1  ;;  %783 = vmatpush.msrb.mxu2 %v331_v2  ;;  %v191_v16 = vld [vmem:[%s1974_s1 + $0x38] sm:$0xff] }
  0xac   : > { %805 = vmatpush.msrb.mxu3 %v399_v3  ;;  %737 = vmatpush.msrb.mxu0 %v203_v4  ;;  %v259_v17 = vld [vmem:[%s1974_s1 + $0x258] sm:$0xff] }
  0xad   : > { %759 = vmatpush.msrb.mxu1 %v271_v5  ;;  %784 = vmatpush.msrb.mxu2 %v327_v6  ;;  %v315_v18 = vld [vmem:[%s1974_s1 + $0x418] sm:$0xff] }
  0xae   : > { %806 = vmatpush.msrb.mxu3 %v395_v7  ;;  %738 = vmatpush.msrb.mxu0 %v199_v8  ;;  %v383_v19 = vld [vmem:[%s1974_s1 + $0x638] sm:$0xff] }
  0xaf   : > { %760 = vmatpush.msrb.mxu1 %v267_v9  ;;  %785 = vmatpush.msrb.mxu2 %v323_v10  ;;  %v187_v20 = vld [vmem:[%s1974_s1 + $0x18] sm:$0xff] }
  0xb0   : > { %807 = vmatpush.msrb.mxu3 %v391_v11  ;;  %739 = vmatpush.msrb.mxu0 %v195_v12  ;;  %v255_v21 = vld [vmem:[%s1974_s1 + $0x238] sm:$0xff] }
  0xb1   : > { %761 = vmatpush.msrb.mxu1 %v263_v13  ;;  %786 = vmatpush.msrb.mxu2 %v319_v14  ;;  %v379_v22 = vld [vmem:[%s1974_s1 + $0x618] sm:$0xff] }
  0xb2   : > { %808 = vmatpush.msrb.mxu3 %v387_v15  ;;  %740 = vmatpush.msrb.mxu0 %v191_v16  ;;  %v251_v23 = vld [vmem:[%s1974_s1 + $0x218] sm:$0xff] }
  0xb3   : > { %762 = vmatpush.msrb.mxu1 %v259_v17  ;;  %787 = vmatpush.msrb.mxu2 %v315_v18 }
  0xb4   : > { %809 = vmatpush.msrb.mxu3 %v383_v19  ;;  %788 = vmatmul.f32.vlgmr.msrb.gmra.mxu2 %v1359_v28 }
  0xb5   : > { %741 = vmatpush.msrb.mxu0 %v187_v20  ;;  %763 = vmatpush.msrb.mxu1 %v255_v21 }
  0xb6   : > { %810 = vmatpush.msrb.mxu3 %v379_v22  ;;  %742 = vmatmul.f32.vlgmr.msrb.gmra.mxu0 %v1374_v33 }
  0xb7   : > { %811 = vmatmul.f32.vlgmr.msrb.gmra.mxu3 %v1378_v34  ;;  %764 = vmatpush.msrb.mxu1 %v251_v23  ;;  %v1032_v23 = vmov 64.0  }
  0xb8   : > { %765 = vmatmul.f32.vlgmr.msrb.gmra.mxu1 %v1394_v39  ;;  %1020 = vrcp.f32 %v1032_v23 }
  0xbc   : > { %791 = vmatmul.f32.gmra.mxu2 %v1423_v48 }
  0xbe   : > { %745 = vmatmul.f32.gmra.mxu0 %v1438_v53 }
  0xbf   : > { %814 = vmatmul.f32.gmra.mxu3 %v1442_v54 }
  0xc0   : > { %768 = vmatmul.f32.gmra.mxu1 %v1458_v59  ;;  %v440_v59 = vld [vmem:[%s1975_s2] sm:$0xf] }
  0xc1   : > { %v443_v38 = vperm.slane %v440_v59, 1  ;;  %v442_v41 = vperm.slane %v440_v59, 0  ;;  %v444_v42 = vperm.slane %v440_v59, 2  ;;  %v445_v13 = vperm.slane %v440_v59, 3 }
  0xcc   : > { %v513_v25 = vpop.f32.mrf.mxu2 }
  0xd8   : > { %v467_v28 = vpop.f32.mrf.mxu0 }
  0xd9   : > { %v468_v47 = vadd.f32 %v467_v28, %v442_v41 }
  0xdb   : > { %v490_v24 = vpop.f32.mrf.mxu1 }
  0xdc   : > { %v491_v57 = vadd.f32 %v490_v24, %v468_v47 }
  0xde   : > { %v536_v27 = vpop.f32.mrf.mxu3  ;;  %v514_v1 = vadd.f32 %v513_v25, %v491_v57 }
  0xe0   : > { %v537_v8 = vadd.f32 %v536_v27, %v514_v1 }
  0xe2   : > { %v470_v26 = vpop.f32.mrf.mxu0 }
  0xe3   : > { %v471_v49 = vadd.f32 %v470_v26, %v442_v41 }
  0xe5   : > { %v493_v29 = vpop.f32.mrf.mxu1  ;;  %v516_v33 = vpop.f32.mrf.mxu2 }
  0xe6   : > { %v494_v58 = vadd.f32 %v493_v29, %v471_v49 }
  0xe8   : > { %v539_v34 = vpop.f32.mrf.mxu3  ;;  %v517_v2 = vadd.f32 %v516_v33, %v494_v58 }
  0xea   : > { %v540_v9 = vadd.f32 %v539_v34, %v517_v2  ;;  %v1021_v34 = vpop.eup %1020 }
  0xeb   : > { %vm855_vm0 = vweird.f32 %v1021_v34 }
  0xec   : > { %v559_v30 = vpop.f32.mrf.mxu0  ;;  %v818_v15 = vadd.f32 %v540_v9, %v537_v8 }
  0xed   : > { %v560_v44 = vadd.f32 %v559_v30, %v443_v38 }
  0xee   : > { %v819_v21 = vrot.slane %v818_v15, 4 }
  0xef   : > { %v582_v31 = vpop.f32.mrf.mxu1  ;;  %v605_v32 = vpop.f32.mrf.mxu2 }
  0xf0   : > { %v583_v55 = vadd.f32 %v582_v31, %v560_v44  ;;  %v820_v27 = vadd.f32 %v819_v21, %v818_v15 }
  0xf2   : > { %v628_v35 = vpop.f32.mrf.mxu3  ;;  %v606_v63 = vadd.f32 %v605_v32, %v583_v55 }
  0xf4   : > { %v1909_v6 = vadd.f32 %v628_v35, %v606_v63 }
  0xf6   : > { %v562_v39 = vpop.f32.mrf.mxu0 }
  0xf7   : > { %v563_v45 = vadd.f32 %v562_v39, %v443_v38 }
  0xf9   : > { %v585_v48 = vpop.f32.mrf.mxu1  ;;  %v608_v36 = vpop.f32.mrf.mxu2 }
  0xfa   : > { %v586_v56 = vadd.f32 %v585_v48, %v563_v45  ;;  %v821_v48 = vrot.slane %v820_v27, 2 }
  0xfc   : > { %v631_v37 = vpop.f32.mrf.mxu3  ;;  %v609_v0 = vadd.f32 %v608_v36, %v586_v56  ;;  %v822_v41 = vadd.f32 %v821_v48, %v820_v27 }
  0xfe   : > { %v1911_v7 = vadd.f32 %v631_v37, %v609_v0  ;;  %v823_v47 = vrot.slane %v822_v41, 1 }
 0x100   : > { %v826_v12 = vadd.f32 %v1911_v7, %v1909_v6  ;;  %v824_v56 = vadd.f32 %v823_v47, %v822_v41 }
 0x102   : > { %v827_v18 = vrot.slane %v826_v12, 4 }
 0x104   : > { %v828_v24 = vadd.f32 %v827_v18, %v826_v12 }
 0x106   : > { %v829_v31 = vrot.slane %v828_v24, 2 }
 0x108   : > { %v830_v59 = vadd.f32 %v829_v31, %v828_v24 }
 0x10a   : > { %v831_v45 = vrot.slane %v830_v59, 1 }
 0x110   : > { %v651_v53 = vpop.f32.mrf.mxu0 }
 0x111   : > { %v652_v50 = vadd.f32 %v651_v53, %v444_v42 }
 0x113   : > { %v674_v54 = vpop.f32.mrf.mxu1  ;;  %v697_v40 = vpop.f32.mrf.mxu2 }
 0x114   : > { %v675_v60 = vadd.f32 %v674_v54, %v652_v50  ;;  %v851_v54 = vmul.f32 64.0, %v1021_v34 }
 0x116   : > { %v720_v46 = vpop.f32.mrf.mxu3  ;;  %v698_v3 = vadd.f32 %v697_v40, %v675_v60  ;;  %v852_v44 = vsub.f32 1.0, %v851_v54 }
 0x118   : > { %v1913_v10 = vadd.f32 %v720_v46, %v698_v3 }
 0x11a   : > { %v654_v43 = vpop.f32.mrf.mxu0 }
 0x11b   : > { %v655_v51 = vadd.f32 %v654_v43, %v444_v42 }
 0x11d   : > { %v677_v52 = vpop.f32.mrf.mxu1  ;;  %v700_v62 = vpop.f32.mrf.mxu2 }
 0x11e   : > { %v678_v61 = vadd.f32 %v677_v52, %v655_v51  ;;  %v853_v51 = vmul.f32 %v1021_v34, %v852_v44  ;;  %v832_v52 = vadd.f32 %v831_v45, %v830_v59 }
 0x120   : > { %v701_v4 = vadd.f32 %v700_v62, %v678_v61  ;;  %v723_v5 = vpop.f32.mrf.mxu3  ;;  %v854_v60 = vadd.f32 %v1021_v34, %v853_v51  ;;  %v833_v61 = vadd.f32 %v832_v52, %v824_v56 }
 0x122   : > { %v1915_v11 = vadd.f32 %v723_v5, %v701_v4  ;;  %v856_v1 = vsel %vm855_vm0, %v1021_v34, %v854_v60 }
 0x124   : > { %v834_v16 = vadd.f32 %v1915_v11, %v1913_v10 }
 0x126   : > { %v835_v22 = vrot.slane %v834_v16, 4 }
 0x128   : > { %v836_v29 = vadd.f32 %v835_v22, %v834_v16 }
 0x12a   : > { %v837_v36 = vrot.slane %v836_v29, 2 }
 0x12c   : > { %v838_v42 = vadd.f32 %v837_v36, %v836_v29 }
 0x12e   : > { %v839_v49 = vrot.slane %v838_v42, 1 }
 0x130   : > { %v840_v57 = vadd.f32 %v839_v49, %v838_v42 }
 0x132   : > { %v841_v63 = vadd.f32 %v840_v57, %v833_v61 }
 0x133   : > { %v743_v14 = vpop.f32.mrf.mxu0 }
 0x134   : > { %v744_v19 = vadd.f32 %v743_v14, %v445_v13 }
 0x135   : > { %v766_v17 = vpop.f32.mrf.mxu1 }
 0x136   : > { %v767_v25 = vadd.f32 %v766_v17, %v744_v19 }
 0x137   : > { %v789_v20 = vpop.f32.mrf.mxu2 }
 0x138   : > { %v790_v32 = vadd.f32 %v789_v20, %v767_v25 }
 0x13a   : > { %v812_v28 = vpop.f32.mrf.mxu3 }
 0x13b   : > { %v746_v26 = vpop.f32.mrf.mxu0  ;;  %v813_v38 = vadd.f32 %v812_v28, %v790_v32 }
 0x13c   : > { %v747_v33 = vadd.f32 %v746_v26, %v445_v13 }
 0x13d   : > { %v769_v30 = vpop.f32.mrf.mxu1 }
 0x13e   : > { %v770_v39 = vadd.f32 %v769_v30, %v747_v33 }
 0x13f   : > { %v792_v35 = vpop.f32.mrf.mxu2 }
 0x140   : > { %v793_v53 = vadd.f32 %v792_v35, %v770_v39 }
 0x142   : > { %v815_v37 = vpop.f32.mrf.mxu3 }
 0x143   : > { %v816_v40 = vadd.f32 %v815_v37, %v793_v53 }
 0x145   : > { %v842_v43 = vadd.f32 %v816_v40, %v813_v38 }
 0x147   : > { %v843_v46 = vrot.slane %v842_v43, 4 }
 0x149   : > { %v844_v50 = vadd.f32 %v843_v46, %v842_v43 }
 0x14b   : > { %v845_v55 = vrot.slane %v844_v50, 2 }
 0x14d   : > { %v846_v58 = vadd.f32 %v845_v55, %v844_v50 }
 0x14f   : > { %v847_v62 = vrot.slane %v846_v58, 1 }
 0x151   : > { %v848_v0 = vadd.f32 %v847_v62, %v846_v58 }
 0x153   : > { %v849_v2 = vadd.f32 %v848_v0, %v841_v63 }
 0x155   : > { %v857_v3 = vmul.f32 %v856_v1, %v849_v2 }
 0x157   : > { %v1921_v4 = vsub.f32 %v537_v8, %v857_v3  ;;  %v1923_v5 = vsub.f32 %v540_v9, %v857_v3  ;;  %v1926_v12 = vsub.f32 %v1909_v6, %v857_v3  ;;  %v1929_v13 = vsub.f32 %v1911_v7, %v857_v3 }
 0x158   : > { %v1932_v14 = vsub.f32 %v1913_v10, %v857_v3  ;;  %v1935_v15 = vsub.f32 %v1915_v11, %v857_v3  ;;  %v1937_v16 = vsub.f32 %v813_v38, %v857_v3  ;;  %v1939_v17 = vsub.f32 %v816_v40, %v857_v3 }
 0x159   : > { %v860_v8 = vmul.f32 %v1921_v4, %v1921_v4  ;;  %v861_v6 = vmul.f32 %v1923_v5, %v1923_v5  ;;  %v872_v7 = vmul.f32 %v1926_v12, %v1926_v12  ;;  %v873_v9 = vmul.f32 %v1929_v13, %v1929_v13 }
 0x15a   : > { %v884_v10 = vmul.f32 %v1932_v14, %v1932_v14  ;;  %v885_v11 = vmul.f32 %v1935_v15, %v1935_v15  ;;  %v896_v18 = vmul.f32 %v1937_v16, %v1937_v16  ;;  %v897_v19 = vmul.f32 %v1939_v17, %v1939_v17 }
 0x15b   : > { %v862_v20 = vadd.f32 %v861_v6, %v860_v8  ;;  %v874_v21 = vadd.f32 %v873_v9, %v872_v7 }
 0x15c   : > { %v886_v22 = vadd.f32 %v885_v11, %v884_v10  ;;  %v898_v23 = vadd.f32 %v897_v19, %v896_v18 }
 0x15d   : > { %v863_v28 = vrot.slane %v862_v20, 4  ;;  %v875_v24 = vrot.slane %v874_v21, 4 }
 0x15e   : > { %v887_v25 = vrot.slane %v886_v22, 4  ;;  %v899_v26 = vrot.slane %v898_v23, 4 }
 0x15f   : > { %v864_v27 = vadd.f32 %v863_v28, %v862_v20  ;;  %v876_v29 = vadd.f32 %v875_v24, %v874_v21 }
 0x160   : > { %v888_v33 = vadd.f32 %v887_v25, %v886_v22  ;;  %v900_v30 = vadd.f32 %v899_v26, %v898_v23 }
 0x161   : > { %v865_v34 = vrot.slane %v864_v27, 2  ;;  %v877_v31 = vrot.slane %v876_v29, 2 }
 0x162   : > { %v889_v32 = vrot.slane %v888_v33, 2  ;;  %v901_v39 = vrot.slane %v900_v30, 2 }
 0x163   : > { %v866_v35 = vadd.f32 %v865_v34, %v864_v27  ;;  %v878_v48 = vadd.f32 %v877_v31, %v876_v29 }
 0x164   : > { %v890_v36 = vadd.f32 %v889_v32, %v888_v33  ;;  %v902_v53 = vadd.f32 %v901_v39, %v900_v30 }
 0x165   : > { %v867_v37 = vrot.slane %v866_v35, 1  ;;  %v879_v54 = vrot.slane %v878_v48, 1 }
 0x166   : > { %v891_v59 = vrot.slane %v890_v36, 1  ;;  %v903_v41 = vrot.slane %v902_v53, 1 }
 0x167   : > { %v868_v38 = vadd.f32 %v867_v37, %v866_v35  ;;  %v880_v40 = vadd.f32 %v879_v54, %v878_v48 }
 0x168   : > { %v892_v43 = vadd.f32 %v891_v59, %v890_v36  ;;  %v904_v45 = vadd.f32 %v903_v41, %v902_v53 }
 0x169   : > { %v881_v42 = vadd.f32 %v880_v40, %v868_v38 }
 0x16b   : > { %v893_v44 = vadd.f32 %v892_v43, %v881_v42 }
 0x16d   : > { %v905_v46 = vadd.f32 %v904_v45, %v893_v44 }
 0x16f   : > { %v906_v47 = vmul.f32 %v905_v46, %v856_v1 }
 0x171   : > { %v907_v49 = vadd.f32 1e-05, %v906_v47 }
 0x173   : > { %1022 = vrsqrt.f32 %v907_v49  ;;  %vm914_vm2 = vweird.f32 %v907_v49 }
 0x179   : > { %v1023_v50 = vpop.eup %1022 }
 0x17a   : > { %v909_v51 = vmul.f32 %v1023_v50, %v907_v49  ;;  %vm915_vm1 = vweird.f32 %v1023_v50 }
 0x17b   : > { %vm916_vm3 = vmor %vm914_vm2, %vm915_vm1 }
 0x17c   : > { %v910_v52 = vmul.f32 %v1023_v50, %v909_v51 }
 0x17e   : > { %v911_v55 = vmul.f32 0.5, %v910_v52 }
 0x180   : > { %v912_v56 = vsub.f32 1.5, %v911_v55 }
 0x182   : > { %v913_v57 = vmul.f32 %v1023_v50, %v912_v56 }
 0x184   : > { %v917_v58 = vsel %vm916_vm3, %v1023_v50, %v913_v57 }
 0x185   : > { %v918_v60 = vmul.f32 %v917_v58, %v1921_v4  ;;  %v919_v61 = vmul.f32 %v917_v58, %v1923_v5  ;;  %v920_v62 = vmul.f32 %v917_v58, %v1926_v12  ;;  %v921_v63 = vmul.f32 %v917_v58, %v1929_v13 }
 0x186   : > { %v922_v0 = vmul.f32 %v917_v58, %v1932_v14  ;;  %v924_v1 = vmul.f32 %v917_v58, %v1937_v16  ;;  %v923_v2 = vmul.f32 %v917_v58, %v1935_v15  ;;  %v925_v4 = vmul.f32 %v917_v58, %v1939_v17 }
 0x187   : > { %v926_v3 = vmax.f32 %v918_v60, 0.0  ;;  %v927_v8 = vmax.f32 %v920_v62, 0.0  ;;  %v930_v7 = vmax.f32 %v919_v61, 0.0  ;;  %v931_v12 = vmax.f32 %v921_v63, 0.0 }
 0x188   : > { %v928_v6 = vmax.f32 %v922_v0, 0.0  ;;  %v929_v5 = vmax.f32 %v924_v1, 0.0  ;;  %v932_v9 = vmax.f32 %v923_v2, 0.0  ;;  %v933_v10 = vmax.f32 %v925_v4, 0.0 }
 0x189   : > { %934 = vst [vmem:[%s175_s15] sm:$0xff] %v926_v3 }
 0x18a   : > { %935 = vst [vmem:[%s175_s15 + $0x8] sm:$0xff] %v927_v8 }
 0x18b   : > { %936 = vst [vmem:[%s175_s15 + $0x10] sm:$0xff] %v928_v6 }
 0x18c   : > { %937 = vst [vmem:[%s175_s15 + $0x18] sm:$0xff] %v929_v5 }
 0x18d   : > { %938 = vst [vmem:[%s175_s15 + $0x20] sm:$0xff] %v930_v7 }
 0x18e   : > { %939 = vst [vmem:[%s175_s15 + $0x28] sm:$0xff] %v931_v12 }
 0x18f   : > { %940 = vst [vmem:[%s175_s15 + $0x30] sm:$0xff] %v932_v9 }
 0x190   : > { %941 = vst [vmem:[%s175_s15 + $0x38] sm:$0xff] %v933_v10 }
 0x191 PF: > { %s13_s12 = sadd.s32 1, %s1030_s12  }
 0x192   : > { %p10_p5 = scmp.ge.s32.totalorder %s13_s12, 4  }
 0x194   :  { %12 = sbr.rel (!%p10_p5) target bundleno = 1 (0x1), region = 62 }

// kernel: generator_forward.9
= control target key start
LH: loop header
LB: loop body
LE: loop exit
PB: predicated region body
PF: predicated region fallthrough
CT: control target
= control target key end

     0   :  { %s722_s12 = smov 0   ;;  %s1212_s0 = inlined_call_operand.vmem [shape: f32[32,1152], index: 0, kind: input, shape index: {}]   ;;  %s1213_s1 = inlined_call_operand.vmem [shape: f32[1152,128], index: 1, kind: input, shape index: {}]   ;;  %s1214_s2 = inlined_call_operand.vmem [shape: f32[1,128], index: 2, kind: input, shape index: {}]   ;;  %s1215_s3 = inlined_call_operand.vmem [shape: f32[2,16,128], index: 3, kind: output, shape index: {}]  }
   0x1 LB: > { %s728_s13 = sadd.s32 4294967295, %s699_s12   ;;  %p654_p0 = scmp.ge.s32.totalorder %s699_s12, 1  ;;  %s699_s12 = sphi %s722_s12, %s13_s12  }
   0x2   : > { %p139_p1 = scmp.lt.s32.totalorder %s699_s12, 3 }
   0x4   : > { %p140_p2 = pnand %p654_p0, %p139_p1 }
   0x5   : > { %s655_s15 = sshll.u32 (!%p140_p2), %s728_s13, 1  ;;  %p171_p4 = scmp.lt.s32.totalorder (!%p140_p2), %s728_s13, 1 }
   0x6   : > { %143 = sbr.rel (%p140_p2) target bundleno = 301 (0x12d), region = 32  ;;  %p942_p3 = scmp.lt.s32.totalorder (!%p140_p2), %s655_s15, 3 }
   0xb   : > { %v209_v0 = vld [vmem:[%s1213_s1 + $0x78] sm:$0xff]  ;;  %v208_v2 = vld [vmem:[%s1213_s1 + $0x70] sm:$0xff]  ;;  %v207_v5 = vld [vmem:[%s1213_s1 + $0x68] sm:$0xff]  ;;  %s1218_s15 = smov (!%p942_p3, %s655_s15), 3  ;;  %s1220_s13 = smov (!%p171_p4, %s728_s13), 1 }
   0xc   : > { %v225_v1 = vld [vmem:[%s1213_s1 + $0xf8] sm:$0xff]  ;;  %342 = vmatpush.msra.mxu0 %v209_v0  ;;  %v224_v3 = vld [vmem:[%s1213_s1 + $0xf0] sm:$0xff]  ;;  %v223_v6 = vld [vmem:[%s1213_s1 + $0xe8] sm:$0xff]  ;;  %s678_s10 = smul.u32 72, %s1218_s15 }
   0xd   : > { %365 = vmatpush.msra.mxu1 %v225_v1  ;;  %v241_v4 = vld [vmem:[%s1213_s1 + $0x178] sm:$0xff]  ;;  %v240_v7 = vld [vmem:[%s1213_s1 + $0x170] sm:$0xff]  ;;  %v239_v9 = vld [vmem:[%s1213_s1 + $0x168] sm:$0xff] }
   0xe   : > { %388 = vmatpush.msra.mxu2 %v241_v4  ;;  %v257_v8 = vld [vmem:[%s1213_s1 + $0x1f8] sm:$0xff]  ;;  %343 = vmatpush.msra.mxu0 %v208_v2  ;;  %v206_v10 = vld [vmem:[%s1213_s1 + $0x60] sm:$0xff]  ;;  %v256_v12 = vld [vmem:[%s1213_s1 + $0x1f0] sm:$0xff]  ;;  %s1028_s4 = scalar_lea.vmem %s1212_s0, %s678_s10 }
   0xf   : > { %366 = vmatpush.msra.mxu1 %v224_v3  ;;  %411 = vmatpush.msra.mxu3 %v257_v8  ;;  %v222_v11 = vld [vmem:[%s1213_s1 + $0xe0] sm:$0xff]  ;;  %v255_v14 = vld [vmem:[%s1213_s1 + $0x1e8] sm:$0xff]  ;;  %v205_v15 = vld [vmem:[%s1213_s1 + $0x58] sm:$0xff] }
  0x10   : > { %389 = vmatpush.msra.mxu2 %v240_v7  ;;  %344 = vmatpush.msra.mxu0 %v207_v5  ;;  %v238_v13 = vld [vmem:[%s1213_s1 + $0x160] sm:$0xff]  ;;  %v221_v16 = vld [vmem:[%s1213_s1 + $0xd8] sm:$0xff]  ;;  %v204_v19 = vld [vmem:[%s1213_s1 + $0x50] sm:$0xff] }
  0x11   : > { %367 = vmatpush.msra.mxu1 %v223_v6  ;;  %412 = vmatpush.msra.mxu3 %v256_v12  ;;  %v237_v17 = vld [vmem:[%s1213_s1 + $0x158] sm:$0xff]  ;;  %v254_v18 = vld [vmem:[%s1213_s1 + $0x1e0] sm:$0xff]  ;;  %v220_v20 = vld [vmem:[%s1213_s1 + $0xd0] sm:$0xff] }
  0x12   : > { %390 = vmatpush.msra.mxu2 %v239_v9  ;;  %345 = vmatpush.msra.mxu0 %v206_v10  ;;  %v236_v21 = vld [vmem:[%s1213_s1 + $0x150] sm:$0xff]  ;;  %v253_v22 = vld [vmem:[%s1213_s1 + $0x1d8] sm:$0xff]  ;;  %v203_v23 = vld [vmem:[%s1213_s1 + $0x48] sm:$0xff] }
  0x13   : > { %368 = vmatpush.msra.mxu1 %v222_v11  ;;  %413 = vmatpush.msra.mxu3 %v255_v14  ;;  %v219_v24 = vld [vmem:[%s1213_s1 + $0xc8] sm:$0xff]  ;;  %v252_v26 = vld [vmem:[%s1213_s1 + $0x1d0] sm:$0xff]  ;;  %v202_v27 = vld [vmem:[%s1213_s1 + $0x40] sm:$0xff] }
  0x14   : > { %391 = vmatpush.msra.mxu2 %v238_v13  ;;  %346 = vmatpush.msra.mxu0 %v205_v15  ;;  %v235_v25 = vld [vmem:[%s1213_s1 + $0x148] sm:$0xff]  ;;  %v218_v28 = vld [vmem:[%s1213_s1 + $0xc0] sm:$0xff]  ;;  %v201_v31 = vld [vmem:[%s1213_s1 + $0x38] sm:$0xff] }
  0x15   : > { %369 = vmatpush.msra.mxu1 %v221_v16  ;;  %414 = vmatpush.msra.mxu3 %v254_v18  ;;  %v234_v29 = vld [vmem:[%s1213_s1 + $0x140] sm:$0xff]  ;;  %v251_v30 = vld [vmem:[%s1213_s1 + $0x1c8] sm:$0xff]  ;;  %v217_v32 = vld [vmem:[%s1213_s1 + $0xb8] sm:$0xff] }
  0x16   : > { %392 = vmatpush.msra.mxu2 %v237_v17  ;;  %347 = vmatpush.msra.mxu0 %v204_v19  ;;  %v233_v33 = vld [vmem:[%s1213_s1 + $0x138] sm:$0xff]  ;;  %v250_v34 = vld [vmem:[%s1213_s1 + $0x1c0] sm:$0xff]  ;;  %v200_v35 = vld [vmem:[%s1213_s1 + $0x30] sm:$0xff] }
  0x17   : > { %370 = vmatpush.msra.mxu1 %v220_v20  ;;  %415 = vmatpush.msra.mxu3 %v253_v22  ;;  %v216_v36 = vld [vmem:[%s1213_s1 + $0xb0] sm:$0xff]  ;;  %v249_v38 = vld [vmem:[%s1213_s1 + $0x1b8] sm:$0xff]  ;;  %v199_v39 = vld [vmem:[%s1213_s1 + $0x28] sm:$0xff] }
  0x18   : > { %393 = vmatpush.msra.mxu2 %v236_v21  ;;  %348 = vmatpush.msra.mxu0 %v203_v23  ;;  %v232_v37 = vld [vmem:[%s1213_s1 + $0x130] sm:$0xff]  ;;  %v215_v40 = vld [vmem:[%s1213_s1 + $0xa8] sm:$0xff]  ;;  %v198_v43 = vld [vmem:[%s1213_s1 + $0x20] sm:$0xff] }
  0x19   : > { %371 = vmatpush.msra.mxu1 %v219_v24  ;;  %416 = vmatpush.msra.mxu3 %v252_v26  ;;  %v231_v41 = vld [vmem:[%s1213_s1 + $0x128] sm:$0xff]  ;;  %v248_v42 = vld [vmem:[%s1213_s1 + $0x1b0] sm:$0xff]  ;;  %v214_v44 = vld [vmem:[%s1213_s1 + $0xa0] sm:$0xff] }
  0x1a   : > { %394 = vmatpush.msra.mxu2 %v235_v25  ;;  %349 = vmatpush.msra.mxu0 %v202_v27  ;;  %v230_v45 = vld [vmem:[%s1213_s1 + $0x120] sm:$0xff]  ;;  %v247_v46 = vld [vmem:[%s1213_s1 + $0x1a8] sm:$0xff]  ;;  %v197_v47 = vld [vmem:[%s1213_s1 + $0x18] sm:$0xff] }
  0x1b   : > { %372 = vmatpush.msra.mxu1 %v218_v28  ;;  %417 = vmatpush.msra.mxu3 %v251_v30  ;;  %v213_v48 = vld [vmem:[%s1213_s1 + $0x98] sm:$0xff]  ;;  %v246_v50 = vld [vmem:[%s1213_s1 + $0x1a0] sm:$0xff]  ;;  %v196_v51 = vld [vmem:[%s1213_s1 + $0x10] sm:$0xff] }
  0x1c   : > { %395 = vmatpush.msra.mxu2 %v234_v29  ;;  %350 = vmatpush.msra.mxu0 %v201_v31  ;;  %v229_v49 = vld [vmem:[%s1213_s1 + $0x118] sm:$0xff]  ;;  %v212_v52 = vld [vmem:[%s1213_s1 + $0x90] sm:$0xff]  ;;  %v195_v55 = vld [vmem:[%s1213_s1 + $0x8] sm:$0xff] }
  0x1d   : > { %373 = vmatpush.msra.mxu1 %v217_v32  ;;  %418 = vmatpush.msra.mxu3 %v250_v34  ;;  %v228_v53 = vld [vmem:[%s1213_s1 + $0x110] sm:$0xff]  ;;  %v245_v54 = vld [vmem:[%s1213_s1 + $0x198] sm:$0xff]  ;;  %v211_v56 = vld [vmem:[%s1213_s1 + $0x88] sm:$0xff] }
  0x1e   : > { %396 = vmatpush.msra.mxu2 %v233_v33  ;;  %351 = vmatpush.msra.mxu0 %v200_v35  ;;  %v227_v57 = vld [vmem:[%s1213_s1 + $0x108] sm:$0xff]  ;;  %v244_v58 = vld [vmem:[%s1213_s1 + $0x190] sm:$0xff]  ;;  %v194_v59 = vld [vmem:[%s1213_s1] sm:$0xff] }
  0x1f   : > { %374 = vmatpush.msra.mxu1 %v216_v36  ;;  %419 = vmatpush.msra.mxu3 %v249_v38  ;;  %v210_v60 = vld [vmem:[%s1213_s1 + $0x80] sm:$0xff]  ;;  %v273_v61 = vld [vmem:[%s1213_s1 + $0x278] sm:$0xff]  ;;  %v243_v0 = vld [vmem:[%s1213_s1 + $0x188] sm:$0xff] }
  0x20   : > { %397 = vmatpush.msra.mxu2 %v232_v37  ;;  %352 = vmatpush.msra.mxu0 %v199_v39  ;;  %v289_v62 = vld [vmem:[%s1213_s1 + $0x2f8] sm:$0xff]  ;;  %v226_v63 = vld [vmem:[%s1213_s1 + $0x100] sm:$0xff]  ;;  %v272_v1 = vld [vmem:[%s1213_s1 + $0x270] sm:$0xff] }
  0x21   : > { %375 = vmatpush.msra.mxu1 %v215_v40  ;;  %420 = vmatpush.msra.mxu3 %v248_v42  ;;  %v288_v2 = vld [vmem:[%s1213_s1 + $0x2f0] sm:$0xff]  ;;  %v305_v3 = vld [vmem:[%s1213_s1 + $0x378] sm:$0xff]  ;;  %v242_v4 = vld [vmem:[%s1213_s1 + $0x180] sm:$0xff] }
  0x22   : > { %398 = vmatpush.msra.mxu2 %v231_v41  ;;  %353 = vmatpush.msra.mxu0 %v198_v43  ;;  %v271_v5 = vld [vmem:[%s1213_s1 + $0x268] sm:$0xff]  ;;  %v304_v7 = vld [vmem:[%s1213_s1 + $0x370] sm:$0xff]  ;;  %v321_v8 = vld [vmem:[%s1213_s1 + $0x3f8] sm:$0xff] }
  0x23   : > { %376 = vmatpush.msra.mxu1 %v214_v44  ;;  %421 = vmatpush.msra.mxu3 %v247_v46  ;;  %v287_v6 = vld [vmem:[%s1213_s1 + $0x2e8] sm:$0xff]  ;;  %v270_v9 = vld [vmem:[%s1213_s1 + $0x260] sm:$0xff]  ;;  %v320_v12 = vld [vmem:[%s1213_s1 + $0x3f0] sm:$0xff] }
  0x24   : > { %399 = vmatpush.msra.mxu2 %v230_v45  ;;  %354 = vmatpush.msra.mxu0 %v197_v47  ;;  %v286_v10 = vld [vmem:[%s1213_s1 + $0x2e0] sm:$0xff]  ;;  %v303_v11 = vld [vmem:[%s1213_s1 + $0x368] sm:$0xff]  ;;  %v269_v13 = vld [vmem:[%s1213_s1 + $0x258] sm:$0xff] }
  0x25   : > { %377 = vmatpush.msra.mxu1 %v213_v48  ;;  %422 = vmatpush.msra.mxu3 %v246_v50  ;;  %v285_v14 = vld [vmem:[%s1213_s1 + $0x2d8] sm:$0xff]  ;;  %v302_v15 = vld [vmem:[%s1213_s1 + $0x360] sm:$0xff]  ;;  %v319_v16 = vld [vmem:[%s1213_s1 + $0x3e8] sm:$0xff] }
  0x26   : > { %400 = vmatpush.msra.mxu2 %v229_v49  ;;  %355 = vmatpush.msra.mxu0 %v196_v51  ;;  %v268_v17 = vld [vmem:[%s1213_s1 + $0x250] sm:$0xff]  ;;  %v301_v19 = vld [vmem:[%s1213_s1 + $0x358] sm:$0xff]  ;;  %v318_v20 = vld [vmem:[%s1213_s1 + $0x3e0] sm:$0xff] }
  0x27   : > { %378 = vmatpush.msra.mxu1 %v212_v52  ;;  %423 = vmatpush.msra.mxu3 %v245_v54  ;;  %v284_v18 = vld [vmem:[%s1213_s1 + $0x2d0] sm:$0xff]  ;;  %v267_v21 = vld [vmem:[%s1213_s1 + $0x248] sm:$0xff]  ;;  %v317_v24 = vld [vmem:[%s1213_s1 + $0x3d8] sm:$0xff] }
  0x28   : > { %401 = vmatpush.msra.mxu2 %v228_v53  ;;  %356 = vmatpush.msra.mxu0 %v195_v55  ;;  %v283_v22 = vld [vmem:[%s1213_s1 + $0x2c8] sm:$0xff]  ;;  %v300_v23 = vld [vmem:[%s1213_s1 + $0x350] sm:$0xff]  ;;  %v266_v25 = vld [vmem:[%s1213_s1 + $0x240] sm:$0xff] }
  0x29   : > { %379 = vmatpush.msra.mxu1 %v211_v56  ;;  %424 = vmatpush.msra.mxu3 %v244_v58  ;;  %v282_v26 = vld [vmem:[%s1213_s1 + $0x2c0] sm:$0xff]  ;;  %v299_v27 = vld [vmem:[%s1213_s1 + $0x348] sm:$0xff]  ;;  %v316_v28 = vld [vmem:[%s1213_s1 + $0x3d0] sm:$0xff] }
  0x2a   : > { %402 = vmatpush.msra.mxu2 %v227_v57  ;;  %357 = vmatpush.msra.mxu0 %v194_v59  ;;  %v265_v29 = vld [vmem:[%s1213_s1 + $0x238] sm:$0xff]  ;;  %v298_v31 = vld [vmem:[%s1213_s1 + $0x340] sm:$0xff]  ;;  %v315_v32 = vld [vmem:[%s1213_s1 + $0x3c8] sm:$0xff] }
  0x2b   : > { %380 = vmatpush.msra.mxu1 %v210_v60  ;;  %425 = vmatpush.msra.mxu3 %v243_v0  ;;  %v281_v30 = vld [vmem:[%s1213_s1 + $0x2b8] sm:$0xff]  ;;  %v178_v33 = vld [vmem:[%s1028_s4 + $0x10] sm:$0xff]  ;;  %v314_v37 = vld [vmem:[%s1213_s1 + $0x3c0] sm:$0xff] }
  0x2c   : > { %434 = vmatpush.msrb.mxu0 %v273_v61  ;;  %403 = vmatpush.msra.mxu2 %v226_v63  ;;  %v264_v34 = vld [vmem:[%s1213_s1 + $0x230] sm:$0xff]  ;;  %v297_v36 = vld [vmem:[%s1213_s1 + $0x338] sm:$0xff]  ;;  %v176_v38 = vld [vmem:[%s1028_s4] sm:$0xff] }
  0x2d   : > { %457 = vmatpush.msrb.mxu1 %v289_v62  ;;  %426 = vmatpush.msra.mxu3 %v242_v4  ;;  %v280_v35 = vld [vmem:[%s1213_s1 + $0x2b0] sm:$0xff]  ;;  %v179_v39 = vld [vmem:[%s1028_s4 + $0x18] sm:$0xff]  ;;  %v263_v40 = vld [vmem:[%s1213_s1 + $0x228] sm:$0xff] }
  0x2e   : > { %435 = vmatpush.msrb.mxu0 %v272_v1  ;;  %480 = vmatpush.msrb.mxu2 %v305_v3  ;;  %v279_v41 = vld [vmem:[%s1213_s1 + $0x2a8] sm:$0xff]  ;;  %v296_v42 = vld [vmem:[%s1213_s1 + $0x330] sm:$0xff]  ;;  %v313_v43 = vld [vmem:[%s1213_s1 + $0x3b8] sm:$0xff] }
  0x2f   : > { %458 = vmatpush.msrb.mxu1 %v288_v2  ;;  %503 = vmatpush.msrb.mxu3 %v321_v8  ;;  %v177_v44 = vld [vmem:[%s1028_s4 + $0x8] sm:$0xff]  ;;  %v262_v45 = vld [vmem:[%s1213_s1 + $0x220] sm:$0xff]  ;;  %v312_v48 = vld [vmem:[%s1213_s1 + $0x3b0] sm:$0xff] }
  0x30   : > { %436 = vmatpush.msrb.mxu0 %v271_v5  ;;  %481 = vmatpush.msrb.mxu2 %v304_v7  ;;  %v278_v46 = vld [vmem:[%s1213_s1 + $0x2a0] sm:$0xff]  ;;  %v295_v47 = vld [vmem:[%s1213_s1 + $0x328] sm:$0xff]  ;;  %v261_v49 = vld [vmem:[%s1213_s1 + $0x218] sm:$0xff] }
  0x31   : > { %459 = vmatpush.msrb.mxu1 %v287_v6  ;;  %504 = vmatpush.msrb.mxu3 %v320_v12  ;;  %v277_v50 = vld [vmem:[%s1213_s1 + $0x298] sm:$0xff]  ;;  %v294_v51 = vld [vmem:[%s1213_s1 + $0x320] sm:$0xff]  ;;  %v311_v52 = vld [vmem:[%s1213_s1 + $0x3a8] sm:$0xff] }
  0x32   : > { %437 = vmatpush.msrb.mxu0 %v270_v9  ;;  %482 = vmatpush.msrb.mxu2 %v303_v11  ;;  %v187_v53 = vld [vmem:[%s1028_s4 + $0x58] sm:$0xff]  ;;  %v260_v54 = vld [vmem:[%s1213_s1 + $0x210] sm:$0xff]  ;;  %v310_v57 = vld [vmem:[%s1213_s1 + $0x3a0] sm:$0xff] }
  0x33   : > { %460 = vmatpush.msrb.mxu1 %v286_v10  ;;  %505 = vmatpush.msrb.mxu3 %v319_v16  ;;  %v276_v55 = vld [vmem:[%s1213_s1 + $0x290] sm:$0xff]  ;;  %v293_v56 = vld [vmem:[%s1213_s1 + $0x318] sm:$0xff]  ;;  %v185_v58 = vld [vmem:[%s1028_s4 + $0x48] sm:$0xff] }
  0x34   : > { %438 = vmatpush.msrb.mxu0 %v269_v13  ;;  %483 = vmatpush.msrb.mxu2 %v302_v15  ;;  %v188_v59 = vld [vmem:[%s1028_s4 + $0x60] sm:$0xff]  ;;  %v259_v60 = vld [vmem:[%s1213_s1 + $0x208] sm:$0xff]  ;;  %v292_v62 = vld [vmem:[%s1213_s1 + $0x310] sm:$0xff] }
  0x35   : > { %461 = vmatpush.msrb.mxu1 %v285_v14  ;;  %506 = vmatpush.msrb.mxu3 %v318_v20  ;;  %v275_v61 = vld [vmem:[%s1213_s1 + $0x288] sm:$0xff]  ;;  %v309_v63 = vld [vmem:[%s1213_s1 + $0x398] sm:$0xff]  ;;  %v186_v0 = vld [vmem:[%s1028_s4 + $0x50] sm:$0xff] }
  0x36   : > { %439 = vmatpush.msrb.mxu0 %v268_v17  ;;  %484 = vmatpush.msrb.mxu2 %v301_v19  ;;  %v258_v1 = vld [vmem:[%s1213_s1 + $0x200] sm:$0xff]  ;;  %v291_v3 = vld [vmem:[%s1213_s1 + $0x308] sm:$0xff]  ;;  %v308_v4 = vld [vmem:[%s1213_s1 + $0x390] sm:$0xff] }
  0x37   : > { %462 = vmatpush.msrb.mxu1 %v284_v18  ;;  %507 = vmatpush.msrb.mxu3 %v317_v24  ;;  %v274_v2 = vld [vmem:[%s1213_s1 + $0x280] sm:$0xff]  ;;  %v337_v5 = vld [vmem:[%s1213_s1 + $0x478] sm:$0xff]  ;;  %v307_v7 = vld [vmem:[%s1213_s1 + $0x388] sm:$0xff] }
  0x38   : > { %440 = vmatpush.msrb.mxu0 %v267_v21  ;;  %485 = vmatpush.msrb.mxu2 %v300_v23  ;;  %v290_v6 = vld [vmem:[%s1213_s1 + $0x300] sm:$0xff]  ;;  %v336_v8 = vld [vmem:[%s1213_s1 + $0x470] sm:$0xff]  ;;  %v335_v11 = vld [vmem:[%s1213_s1 + $0x468] sm:$0xff] }
  0x39   : > { %463 = vmatpush.msrb.mxu1 %v283_v22  ;;  %508 = vmatpush.msrb.mxu3 %v316_v28  ;;  %v182_v9 = vld [vmem:[%s1028_s4 + $0x30] sm:$0xff]  ;;  %v306_v10 = vld [vmem:[%s1213_s1 + $0x380] sm:$0xff]  ;;  %v183_v13 = vld [vmem:[%s1028_s4 + $0x38] sm:$0xff] }
  0x3a   : > { %441 = vmatpush.msrb.mxu0 %v266_v25  ;;  %486 = vmatpush.msrb.mxu2 %v299_v27  ;;  %v180_v12 = vld [vmem:[%s1028_s4 + $0x20] sm:$0xff]  ;;  %v181_v15 = vld [vmem:[%s1028_s4 + $0x28] sm:$0xff]  ;;  %v333_v16 = vld [vmem:[%s1213_s1 + $0x458] sm:$0xff] }
  0x3b   : > { %464 = vmatpush.msrb.mxu1 %v282_v26  ;;  %509 = vmatpush.msrb.mxu3 %v315_v32  ;;  %v334_v14 = vld [vmem:[%s1213_s1 + $0x460] sm:$0xff]  ;;  %v332_v17 = vld [vmem:[%s1213_s1 + $0x450] sm:$0xff]  ;;  %v191_v18 = vld [vmem:[%s1028_s4 + $0x78] sm:$0xff] }
  0x3c   : > { %442 = vmatpush.msrb.mxu0 %v265_v29  ;;  %487 = vmatpush.msrb.mxu2 %v298_v31  ;;  %v331_v19 = vld [vmem:[%s1213_s1 + $0x448] sm:$0xff]  ;;  %v192_v21 = vld [vmem:[%s1028_s4 + $0x80] sm:$0xff]  ;;  %v190_v23 = vld [vmem:[%s1028_s4 + $0x70] sm:$0xff] }
  0x3d   : > { %465 = vmatpush.msrb.mxu1 %v281_v30  ;;  %404 = vmatmul.f32.vlgmr.msra.gmra.mxu2 %v178_v33  ;;  %v189_v20 = vld [vmem:[%s1028_s4 + $0x68] sm:$0xff]  ;;  %v330_v22 = vld [vmem:[%s1213_s1 + $0x440] sm:$0xff]  ;;  %v329_v24 = vld [vmem:[%s1213_s1 + $0x438] sm:$0xff] }
  0x3e   : > { %443 = vmatpush.msrb.mxu0 %v264_v34  ;;  %488 = vmatpush.msrb.mxu2 %v297_v36  ;;  %v328_v25 = vld [vmem:[%s1213_s1 + $0x430] sm:$0xff]  ;;  %v327_v26 = vld [vmem:[%s1213_s1 + $0x428] sm:$0xff]  ;;  %v326_v27 = vld [vmem:[%s1213_s1 + $0x420] sm:$0xff] }
  0x3f   : > { %466 = vmatpush.msrb.mxu1 %v280_v35  ;;  %510 = vmatpush.msrb.mxu3 %v314_v37  ;;  %v325_v28 = vld [vmem:[%s1213_s1 + $0x418] sm:$0xff]  ;;  %v324_v29 = vld [vmem:[%s1213_s1 + $0x410] sm:$0xff]  ;;  %v323_v30 = vld [vmem:[%s1213_s1 + $0x408] sm:$0xff] }
  0x40   : > { %358 = vmatmul.f32.vlgmr.msra.gmra.mxu0 %v176_v38  ;;  %427 = vmatmul.f32.vlgmr.msra.gmra.mxu3 %v179_v39  ;;  %v322_v31 = vld [vmem:[%s1213_s1 + $0x400] sm:$0xff]  ;;  %v193_v33 = vld [vmem:[%s1028_s4 + $0x88] sm:$0xff] }
  0x41   : > { %444 = vmatpush.msrb.mxu0 %v263_v40  ;;  %467 = vmatpush.msrb.mxu1 %v279_v41  ;;  %v184_v32 = vld [vmem:[%s1028_s4 + $0x40] sm:$0xff]  ;;  %s661_s4 = sshll.u32 %s1220_s13, 4 }
  0x42   : > { %489 = vmatpush.msrb.mxu2 %v296_v42  ;;  %511 = vmatpush.msrb.mxu3 %v313_v43  ;;  %v688_v39 = vld [vmem:[%s1214_s2] ss:$0 sm:$0xff]  ;;  %s175_s18 = scalar_lea.vmem %s1215_s3, %s661_s4 }
  0x43   : > { %381 = vmatmul.f32.vlgmr.msra.gmra.mxu1 %v177_v44  ;;  %445 = vmatpush.msrb.mxu0 %v262_v45 }
  0x44   : > { %468 = vmatpush.msrb.mxu1 %v278_v46  ;;  %490 = vmatpush.msrb.mxu2 %v295_v47 }
  0x45   : > { %512 = vmatpush.msrb.mxu3 %v312_v48  ;;  %446 = vmatpush.msrb.mxu0 %v261_v49 }
  0x46   : > { %469 = vmatpush.msrb.mxu1 %v277_v50  ;;  %491 = vmatpush.msrb.mxu2 %v294_v51 }
  0x47   : > { %513 = vmatpush.msrb.mxu3 %v311_v52  ;;  %407 = vmatmul.f32.gmra.mxu2 %v187_v53 }
  0x48   : > { %447 = vmatpush.msrb.mxu0 %v260_v54  ;;  %470 = vmatpush.msrb.mxu1 %v276_v55 }
  0x49   : > { %492 = vmatpush.msrb.mxu2 %v293_v56  ;;  %514 = vmatpush.msrb.mxu3 %v310_v57 }
  0x4a   : > { %361 = vmatmul.f32.gmra.mxu0 %v185_v58  ;;  %430 = vmatmul.f32.gmra.mxu3 %v188_v59  ;;  %v701_v59 = vmov 16.0  }
  0x4b   : > { %448 = vmatpush.msrb.mxu0 %v259_v60  ;;  %471 = vmatpush.msrb.mxu1 %v275_v61  ;;  %689 = vrcp.f32 %v701_v59 }
  0x4c   : > { %493 = vmatpush.msrb.mxu2 %v292_v62  ;;  %515 = vmatpush.msrb.mxu3 %v309_v63 }
  0x4d   : > { %384 = vmatmul.f32.gmra.mxu1 %v186_v0  ;;  %449 = vmatpush.msrb.mxu0 %v258_v1 }
  0x4e   : > { %472 = vmatpush.msrb.mxu1 %v274_v2  ;;  %494 = vmatpush.msrb.mxu2 %v291_v3 }
  0x4f   : > { %516 = vmatpush.msrb.mxu3 %v308_v4  ;;  %526 = vmatpush.msra.mxu0 %v337_v5 }
  0x50   : > { %662 = vmatpush.msra.mxu1 %v337_v5  ;;  %495 = vmatpush.msrb.mxu2 %v290_v6 }
  0x51   : > { %517 = vmatpush.msrb.mxu3 %v307_v7  ;;  %527 = vmatpush.msra.mxu0 %v336_v8  ;;  %v690_v63 = vpop.eup %689 }
  0x52   : > { %663 = vmatpush.msra.mxu1 %v336_v8  ;;  %496 = vmatmul.f32.vlgmr.msrb.gmra.mxu2 %v182_v9  ;;  %v558_v3 = vmul.f32 16.0, %v690_v63  ;;  %vm562_vm0 = vweird.f32 %v690_v63 }
  0x53   : > { %518 = vmatpush.msrb.mxu3 %v306_v10  ;;  %528 = vmatpush.msra.mxu0 %v335_v11 }
  0x54   : > { %664 = vmatpush.msra.mxu1 %v335_v11  ;;  %450 = vmatmul.f32.vlgmr.msrb.gmra.mxu0 %v180_v12  ;;  %v559_v10 = vsub.f32 1.0, %v558_v3 }
  0x55   : > { %519 = vmatmul.f32.vlgmr.msrb.gmra.mxu3 %v183_v13  ;;  %529 = vmatpush.msra.mxu0 %v334_v14 }
  0x56   : > { %665 = vmatpush.msra.mxu1 %v334_v14  ;;  %v560_v13 = vmul.f32 %v690_v63, %v559_v10 }
  0x57   : > { %473 = vmatmul.f32.vlgmr.msrb.gmra.mxu1 %v181_v15  ;;  %530 = vmatpush.msra.mxu0 %v333_v16 }
  0x58   : > { %666 = vmatpush.msra.mxu1 %v333_v16  ;;  %v561_v16 = vadd.f32 %v690_v63, %v560_v13 }
  0x59   : > { %531 = vmatpush.msra.mxu0 %v332_v17 }
  0x5a   : > { %667 = vmatpush.msra.mxu1 %v332_v17  ;;  %499 = vmatmul.f32.gmra.mxu2 %v191_v18 }
  0x5b   : > { %532 = vmatpush.msra.mxu0 %v331_v19 }
  0x5c   : > { %668 = vmatpush.msra.mxu1 %v331_v19  ;;  %453 = vmatmul.f32.gmra.mxu0 %v189_v20  ;;  %v563_v19 = vsel %vm562_vm0, %v690_v63, %v561_v16 }
  0x5d   : > { %522 = vmatmul.f32.gmra.mxu3 %v192_v21  ;;  %533 = vmatpush.msra.mxu0 %v330_v22 }
  0x5e   : > { %669 = vmatpush.msra.mxu1 %v330_v22 }
  0x5f   : > { %476 = vmatmul.f32.gmra.mxu1 %v190_v23  ;;  %534 = vmatpush.msra.mxu0 %v329_v24 }
  0x60   : > { %670 = vmatpush.msra.mxu1 %v329_v24 }
  0x61   : > { %535 = vmatpush.msra.mxu0 %v328_v25 }
  0x62   : > { %671 = vmatpush.msra.mxu1 %v328_v25 }
  0x63   : > { %536 = vmatpush.msra.mxu0 %v327_v26 }
  0x64   : > { %672 = vmatpush.msra.mxu1 %v327_v26 }
  0x65   : > { %537 = vmatpush.msra.mxu0 %v326_v27 }
  0x66   : > { %673 = vmatpush.msra.mxu1 %v326_v27 }
  0x67   : > { %538 = vmatpush.msra.mxu0 %v325_v28 }
  0x68   : > { %674 = vmatpush.msra.mxu1 %v325_v28 }
  0x69   : > { %539 = vmatpush.msra.mxu0 %v324_v29 }
  0x6a   : > { %675 = vmatpush.msra.mxu1 %v324_v29 }
  0x6b   : > { %540 = vmatpush.msra.mxu0 %v323_v30 }
  0x6c   : > { %676 = vmatpush.msra.mxu1 %v323_v30 }
  0x6d   : > { %541 = vmatpush.msra.mxu0 %v322_v31 }
  0x6e   : > { %677 = vmatpush.msra.mxu1 %v322_v31  ;;  %542 = vmatmul.f32.vlgmr.msra.gmra.mxu0 %v184_v32 }
  0x6f   : > { %545 = vmatmul.f32.vlgmr.msra.gmra.mxu1 %v193_v33 }
  0xbd   : > { %v359_v34 = vpop.f32.mrf.mxu0 }
  0xbe   : > { %v360_v41 = vadd.f32 %v688_v39, %v359_v34 }
  0xc0   : > { %v382_v35 = vpop.f32.mrf.mxu1  ;;  %v405_v36 = vpop.f32.mrf.mxu2 }
  0xc1   : > { %v383_v45 = vadd.f32 %v382_v35, %v360_v41 }
  0xc3   : > { %v428_v38 = vpop.f32.mrf.mxu3  ;;  %v406_v49 = vadd.f32 %v405_v36, %v383_v45 }
  0xc5   : > { %v429_v52 = vadd.f32 %v428_v38, %v406_v49 }
  0xc7   : > { %v362_v37 = vpop.f32.mrf.mxu0 }
  0xc8   : > { %v363_v42 = vadd.f32 %v688_v39, %v362_v37 }
  0xca   : > { %v385_v40 = vpop.f32.mrf.mxu1  ;;  %v408_v43 = vpop.f32.mrf.mxu2 }
  0xcb   : > { %v386_v46 = vadd.f32 %v385_v40, %v363_v42 }
  0xcd   : > { %v431_v47 = vpop.f32.mrf.mxu3  ;;  %v409_v50 = vadd.f32 %v408_v43, %v386_v46 }
  0xcf   : > { %v432_v53 = vadd.f32 %v431_v47, %v409_v50 }
  0xd1   : > { %v451_v44 = vpop.f32.mrf.mxu0 }
  0xd2   : > { %v452_v56 = vadd.f32 %v451_v44, %v429_v52 }
  0xd4   : > { %v474_v48 = vpop.f32.mrf.mxu1 }
  0xd5   : > { %v497_v51 = vpop.f32.mrf.mxu2  ;;  %v475_v60 = vadd.f32 %v474_v48, %v452_v56 }
  0xd7   : > { %v498_v0 = vadd.f32 %v497_v51, %v475_v60 }
  0xd8   : > { %v520_v55 = vpop.f32.mrf.mxu3 }
  0xd9   : > { %v454_v54 = vpop.f32.mrf.mxu0  ;;  %v521_v4 = vadd.f32 %v520_v55, %v498_v0 }
  0xda   : > { %v455_v57 = vadd.f32 %v454_v54, %v432_v53 }
  0xdc   : > { %v477_v58 = vpop.f32.mrf.mxu1 }
  0xdd   : > { %v478_v61 = vadd.f32 %v477_v58, %v455_v57  ;;  %v500_v62 = vpop.f32.mrf.mxu2 }
  0xdf   : > { %v501_v1 = vadd.f32 %v500_v62, %v478_v61 }
  0xe0   : > { %v523_v2 = vpop.f32.mrf.mxu3 }
  0xe1   : > { %v524_v5 = vadd.f32 %v523_v2, %v501_v1 }
  0xeb   : > { %v543_v6 = vpop.f32.mrf.mxu0 }
  0xec   : > { %v546_v7 = vpop.f32.mrf.mxu1  ;;  %v544_v8 = vadd.f32 %v543_v6, %v521_v4 }
  0xed   : > { %v547_v9 = vadd.f32 %v546_v7, %v524_v5 }
  0xef   : > { %v549_v11 = vadd.f32 %v547_v9, %v544_v8 }
  0xf1   : > { %v550_v12 = vrot.slane %v549_v11, 4 }
  0xf3   : > { %v551_v14 = vadd.f32 %v550_v12, %v549_v11 }
  0xf5   : > { %v552_v15 = vrot.slane %v551_v14, 2 }
  0xf7   : > { %v553_v17 = vadd.f32 %v552_v15, %v551_v14 }
  0xf9   : > { %v554_v18 = vrot.slane %v553_v17, 1 }
  0xfb   : > { %v555_v20 = vadd.f32 %v554_v18, %v553_v17 }
  0xfd   : > { %v564_v21 = vmul.f32 %v563_v19, %v555_v20 }
  0xff   : > { %v565_v22 = vsub.f32 %v544_v8, %v564_v21  ;;  %v566_v23 = vsub.f32 %v547_v9, %v564_v21 }
 0x101   : > { %v567_v24 = vmul.f32 %v565_v22, %v565_v22  ;;  %v568_v25 = vmul.f32 %v566_v23, %v566_v23 }
 0x103   : > { %v569_v26 = vadd.f32 %v568_v25, %v567_v24 }
 0x105   : > { %v570_v27 = vrot.slane %v569_v26, 4 }
 0x107   : > { %v571_v28 = vadd.f32 %v570_v27, %v569_v26 }
 0x109   : > { %v572_v29 = vrot.slane %v571_v28, 2 }
 0x10b   : > { %v573_v30 = vadd.f32 %v572_v29, %v571_v28 }
 0x10d   : > { %v574_v31 = vrot.slane %v573_v30, 1 }
 0x10f   : > { %v575_v32 = vadd.f32 %v574_v31, %v573_v30 }
 0x111   : > { %v577_v33 = vmul.f32 %v575_v32, %v563_v19 }
 0x113   : > { %v578_v34 = vadd.f32 1e-05, %v577_v33 }
 0x115   : > { %691 = vrsqrt.f32 %v578_v34  ;;  %vm585_vm2 = vweird.f32 %v578_v34 }
 0x11b   : > { %v692_v35 = vpop.eup %691 }
 0x11c   : > { %v580_v36 = vmul.f32 %v692_v35, %v578_v34  ;;  %vm586_vm1 = vweird.f32 %v692_v35 }
 0x11d   : > { %vm587_vm3 = vmor %vm585_vm2, %vm586_vm1 }
 0x11e   : > { %v581_v37 = vmul.f32 %v692_v35, %v580_v36 }
 0x120   : > { %v582_v38 = vmul.f32 0.5, %v581_v37 }
 0x122   : > { %v583_v39 = vsub.f32 1.5, %v582_v38 }
 0x124   : > { %v584_v40 = vmul.f32 %v692_v35, %v583_v39 }
 0x126   : > { %v588_v41 = vsel %vm587_vm3, %v692_v35, %v584_v40 }
 0x127   : > { %v589_v42 = vmul.f32 %v588_v41, %v565_v22  ;;  %v590_v43 = vmul.f32 %v588_v41, %v566_v23 }
 0x129   : > { %v591_v44 = vmax.f32 %v589_v42, 0.0  ;;  %v592_v45 = vmax.f32 %v590_v43, 0.0 }
 0x12b   : > { %593 = vst [vmem:[%s175_s18] sm:$0xff] %v591_v44 }
 0x12c   : > { %594 = vst [vmem:[%s175_s18 + $0x8] sm:$0xff] %v592_v45 }
 0x12d PF: > { %s13_s12 = sadd.s32 1, %s699_s12  }
 0x12e   : > { %p10_p5 = scmp.ge.s32.totalorder %s13_s12, 4  }
 0x130   :  { %12 = sbr.rel (!%p10_p5) target bundleno = 1 (0x1), region = 62 }

// kernel: generator_forward.12
= control target key start
LH: loop header
LB: loop body
LE: loop exit
PB: predicated region body
PF: predicated region fallthrough
CT: control target
= control target key end

     0   :  { %s1552_s12 = smov 0   ;;  %s3042_s0 = inlined_call_operand.vmem [shape: f32[128,512], index: 0, kind: input, shape index: {}]   ;;  %s3043_s1 = inlined_call_operand.vmem [shape: f32[512,512], index: 1, kind: input, shape index: {}]   ;;  %s3044_s2 = inlined_call_operand.vmem [shape: f32[1,512], index: 2, kind: input, shape index: {}]   ;;  %s3045_s3 = inlined_call_operand.vmem [shape: f32[2,64,512], index: 3, kind: output, shape index: {}]  }
   0x1 LB: > { %s1558_s13 = sadd.s32 4294967295, %s1529_s12   ;;  %p1481_p0 = scmp.ge.s32.totalorder %s1529_s12, 1  ;;  %s1529_s12 = sphi %s1552_s12, %s13_s12  }
   0x2   : > { %p139_p1 = scmp.lt.s32.totalorder %s1529_s12, 3 }
   0x4   : > { %p140_p2 = pnand %p1481_p0, %p139_p1 }
   0x6   : > { %143 = sbr.rel (%p140_p2) target bundleno = 582 (0x246), region = 32 }
   0xb   : > { %v396_v0 = vld [vmem:[%s3043_s1 + $0x5e0] sm:$0xff]  ;;  %s1482_s24 = sshll.u32 %s1558_s13, 3  ;;  %p171_p4 = scmp.lt.s32.totalorder %s1558_s13, 1 }
   0xc   : > { %v268_v1 = vld [vmem:[%s3043_s1 + $0x1e0] sm:$0xff]  ;;  %556 = vmatpush.msra.mxu2 %v396_v0  ;;  %p1673_p3 = scmp.lt.s32.totalorder %s1482_s24, 15  ;;  %v397_v0 = vld [vmem:[%s3043_s1 + $0x5e8] sm:$0xff] }
   0xd   : > { %v392_v2 = vld [vmem:[%s3043_s1 + $0x5c0] sm:$0xff]  ;;  %474 = vmatpush.msra.mxu0 %v268_v1  ;;  %s3056_s13 = smov (!%p171_p4, %s1558_s13), 1 }
   0xe   : > { %v460_v3 = vld [vmem:[%s3043_s1 + $0x7e0] sm:$0xff]  ;;  %557 = vmatpush.msra.mxu2 %v392_v2  ;;  %s3054_s24 = smov (!%p1673_p3, %s1482_s24), 15 }
   0xf   : > { %v264_v4 = vld [vmem:[%s3043_s1 + $0x1c0] sm:$0xff]  ;;  %597 = vmatpush.msra.mxu3 %v460_v3  ;;  %s1489_s21 = sshll.u32 %s3054_s24, 5  ;;  %v269_v3 = vld [vmem:[%s3043_s1 + $0x1e8] sm:$0xff] }
  0x10   : > { %v332_v5 = vld [vmem:[%s3043_s1 + $0x3e0] sm:$0xff]  ;;  %475 = vmatpush.msra.mxu0 %v264_v4  ;;  %s1753_s9 = scalar_lea.vmem %s3042_s0, %s1489_s21  ;;  %v461_v4 = vld [vmem:[%s3043_s1 + $0x7e8] sm:$0xff] }
  0x11   : > { %515 = vmatpush.msra.mxu1 %v332_v5  ;;  %v388_v6 = vld [vmem:[%s3043_s1 + $0x5a0] sm:$0xff]  ;;  %v1768_v62 = vld [vmem:[%s1753_s9 + $0x10] sm:$0xff]  ;;  %v1780_v2 = vld [vmem:[%s1753_s9 + $0x18] sm:$0xff] }
  0x12   : > { %v456_v7 = vld [vmem:[%s3043_s1 + $0x7c0] sm:$0xff]  ;;  %558 = vmatpush.msra.mxu2 %v388_v6  ;;  %v1794_v6 = vld [vmem:[%s1753_s9 + $0x8] sm:$0xff] }
  0x13   : > { %v260_v8 = vld [vmem:[%s3043_s1 + $0x1a0] sm:$0xff]  ;;  %598 = vmatpush.msra.mxu3 %v456_v7  ;;  %v393_v7 = vld [vmem:[%s3043_s1 + $0x5c8] sm:$0xff] }
  0x14   : > { %v328_v9 = vld [vmem:[%s3043_s1 + $0x3c0] sm:$0xff]  ;;  %476 = vmatpush.msra.mxu0 %v260_v8  ;;  %v333_v8 = vld [vmem:[%s3043_s1 + $0x3e8] sm:$0xff] }
  0x15   : > { %v452_v10 = vld [vmem:[%s3043_s1 + $0x7a0] sm:$0xff]  ;;  %516 = vmatpush.msra.mxu1 %v328_v9  ;;  %v265_v9 = vld [vmem:[%s3043_s1 + $0x1c8] sm:$0xff] }
  0x16   : > { %v384_v11 = vld [vmem:[%s3043_s1 + $0x580] sm:$0xff]  ;;  %599 = vmatpush.msra.mxu3 %v452_v10  ;;  %v457_v10 = vld [vmem:[%s3043_s1 + $0x7c8] sm:$0xff] }
  0x17   : > { %v256_v12 = vld [vmem:[%s3043_s1 + $0x180] sm:$0xff]  ;;  %559 = vmatpush.msra.mxu2 %v384_v11  ;;  %v389_v11 = vld [vmem:[%s3043_s1 + $0x5a8] sm:$0xff] }
  0x18   : > { %v324_v13 = vld [vmem:[%s3043_s1 + $0x3a0] sm:$0xff]  ;;  %477 = vmatpush.msra.mxu0 %v256_v12  ;;  %v329_v12 = vld [vmem:[%s3043_s1 + $0x3c8] sm:$0xff] }
  0x19   : > { %v448_v14 = vld [vmem:[%s3043_s1 + $0x780] sm:$0xff]  ;;  %517 = vmatpush.msra.mxu1 %v324_v13  ;;  %v261_v13 = vld [vmem:[%s3043_s1 + $0x1a8] sm:$0xff] }
  0x1a   : > { %v320_v15 = vld [vmem:[%s3043_s1 + $0x380] sm:$0xff]  ;;  %600 = vmatpush.msra.mxu3 %v448_v14  ;;  %v1820_v14 = vld [vmem:[%s1753_s9 + $0x30] sm:$0xff] }
  0x1b   : > { %v380_v16 = vld [vmem:[%s3043_s1 + $0x560] sm:$0xff]  ;;  %518 = vmatpush.msra.mxu1 %v320_v15  ;;  %v453_v15 = vld [vmem:[%s3043_s1 + $0x7a8] sm:$0xff] }
  0x1c   : > { %v252_v17 = vld [vmem:[%s3043_s1 + $0x160] sm:$0xff]  ;;  %560 = vmatpush.msra.mxu2 %v380_v16 }
  0x1d   : > { %v444_v18 = vld [vmem:[%s3043_s1 + $0x760] sm:$0xff]  ;;  %478 = vmatpush.msra.mxu0 %v252_v17  ;;  %v325_v17 = vld [vmem:[%s3043_s1 + $0x3a8] sm:$0xff] }
  0x1e   : > { %v316_v19 = vld [vmem:[%s3043_s1 + $0x360] sm:$0xff]  ;;  %601 = vmatpush.msra.mxu3 %v444_v18  ;;  %v1832_v18 = vld [vmem:[%s1753_s9 + $0x38] sm:$0xff] }
  0x1f   : > { %v376_v20 = vld [vmem:[%s3043_s1 + $0x540] sm:$0xff]  ;;  %519 = vmatpush.msra.mxu1 %v316_v19  ;;  %v385_v19 = vld [vmem:[%s3043_s1 + $0x588] sm:$0xff] }
  0x20   : > { %v248_v21 = vld [vmem:[%s3043_s1 + $0x140] sm:$0xff]  ;;  %561 = vmatpush.msra.mxu2 %v376_v20  ;;  %v257_v20 = vld [vmem:[%s3043_s1 + $0x188] sm:$0xff] }
  0x21   : > { %v440_v22 = vld [vmem:[%s3043_s1 + $0x740] sm:$0xff]  ;;  %479 = vmatpush.msra.mxu0 %v248_v21  ;;  %v449_v21 = vld [vmem:[%s3043_s1 + $0x788] sm:$0xff] }
  0x22   : > { %v312_v23 = vld [vmem:[%s3043_s1 + $0x340] sm:$0xff]  ;;  %602 = vmatpush.msra.mxu3 %v440_v22  ;;  %v1846_v22 = vld [vmem:[%s1753_s9 + $0x28] sm:$0xff] }
  0x23   : > { %v372_v24 = vld [vmem:[%s3043_s1 + $0x520] sm:$0xff]  ;;  %520 = vmatpush.msra.mxu1 %v312_v23  ;;  %v381_v23 = vld [vmem:[%s3043_s1 + $0x568] sm:$0xff] }
  0x24   : > { %v244_v25 = vld [vmem:[%s3043_s1 + $0x120] sm:$0xff]  ;;  %562 = vmatpush.msra.mxu2 %v372_v24  ;;  %v321_v24 = vld [vmem:[%s3043_s1 + $0x388] sm:$0xff] }
  0x25   : > { %v436_v26 = vld [vmem:[%s3043_s1 + $0x720] sm:$0xff]  ;;  %480 = vmatpush.msra.mxu0 %v244_v25  ;;  %v253_v25 = vld [vmem:[%s3043_s1 + $0x168] sm:$0xff] }
  0x26   : > { %v308_v27 = vld [vmem:[%s3043_s1 + $0x320] sm:$0xff]  ;;  %603 = vmatpush.msra.mxu3 %v436_v26  ;;  %v445_v26 = vld [vmem:[%s3043_s1 + $0x768] sm:$0xff] }
  0x27   : > { %v368_v28 = vld [vmem:[%s3043_s1 + $0x500] sm:$0xff]  ;;  %521 = vmatpush.msra.mxu1 %v308_v27  ;;  %v377_v27 = vld [vmem:[%s3043_s1 + $0x548] sm:$0xff] }
  0x28   : > { %v240_v29 = vld [vmem:[%s3043_s1 + $0x100] sm:$0xff]  ;;  %563 = vmatpush.msra.mxu2 %v368_v28  ;;  %v317_v28 = vld [vmem:[%s3043_s1 + $0x368] sm:$0xff] }
  0x29   : > { %v432_v30 = vld [vmem:[%s3043_s1 + $0x700] sm:$0xff]  ;;  %481 = vmatpush.msra.mxu0 %v240_v29  ;;  %v249_v29 = vld [vmem:[%s3043_s1 + $0x148] sm:$0xff] }
  0x2a   : > { %v304_v31 = vld [vmem:[%s3043_s1 + $0x300] sm:$0xff]  ;;  %604 = vmatpush.msra.mxu3 %v432_v30  ;;  %v1872_v30 = vld [vmem:[%s1753_s9 + $0x50] sm:$0xff] }
  0x2b   : > { %v364_v32 = vld [vmem:[%s3043_s1 + $0x4e0] sm:$0xff]  ;;  %522 = vmatpush.msra.mxu1 %v304_v31  ;;  %v441_v31 = vld [vmem:[%s3043_s1 + $0x748] sm:$0xff] }
  0x2c   : > { %v236_v33 = vld [vmem:[%s3043_s1 + $0xe0] sm:$0xff]  ;;  %564 = vmatpush.msra.mxu2 %v364_v32 }
  0x2d   : > { %v428_v34 = vld [vmem:[%s3043_s1 + $0x6e0] sm:$0xff]  ;;  %482 = vmatpush.msra.mxu0 %v236_v33  ;;  %v313_v33 = vld [vmem:[%s3043_s1 + $0x348] sm:$0xff] }
  0x2e   : > { %v300_v35 = vld [vmem:[%s3043_s1 + $0x2e0] sm:$0xff]  ;;  %605 = vmatpush.msra.mxu3 %v428_v34  ;;  %v1884_v34 = vld [vmem:[%s1753_s9 + $0x58] sm:$0xff] }
  0x2f   : > { %v360_v36 = vld [vmem:[%s3043_s1 + $0x4c0] sm:$0xff]  ;;  %523 = vmatpush.msra.mxu1 %v300_v35  ;;  %v373_v35 = vld [vmem:[%s3043_s1 + $0x528] sm:$0xff] }
  0x30   : > { %v232_v37 = vld [vmem:[%s3043_s1 + $0xc0] sm:$0xff]  ;;  %565 = vmatpush.msra.mxu2 %v360_v36  ;;  %v245_v36 = vld [vmem:[%s3043_s1 + $0x128] sm:$0xff] }
  0x31   : > { %v424_v38 = vld [vmem:[%s3043_s1 + $0x6c0] sm:$0xff]  ;;  %483 = vmatpush.msra.mxu0 %v232_v37  ;;  %v437_v37 = vld [vmem:[%s3043_s1 + $0x728] sm:$0xff] }
  0x32   : > { %v296_v39 = vld [vmem:[%s3043_s1 + $0x2c0] sm:$0xff]  ;;  %606 = vmatpush.msra.mxu3 %v424_v38  ;;  %v1898_v38 = vld [vmem:[%s1753_s9 + $0x48] sm:$0xff] }
  0x33   : > { %v356_v40 = vld [vmem:[%s3043_s1 + $0x4a0] sm:$0xff]  ;;  %524 = vmatpush.msra.mxu1 %v296_v39  ;;  %v369_v39 = vld [vmem:[%s3043_s1 + $0x508] sm:$0xff] }
  0x34   : > { %v228_v41 = vld [vmem:[%s3043_s1 + $0xa0] sm:$0xff]  ;;  %566 = vmatpush.msra.mxu2 %v356_v40  ;;  %v309_v40 = vld [vmem:[%s3043_s1 + $0x328] sm:$0xff] }
  0x35   : > { %v420_v42 = vld [vmem:[%s3043_s1 + $0x6a0] sm:$0xff]  ;;  %484 = vmatpush.msra.mxu0 %v228_v41  ;;  %v241_v41 = vld [vmem:[%s3043_s1 + $0x108] sm:$0xff] }
  0x36   : > { %v292_v43 = vld [vmem:[%s3043_s1 + $0x2a0] sm:$0xff]  ;;  %607 = vmatpush.msra.mxu3 %v420_v42  ;;  %v433_v42 = vld [vmem:[%s3043_s1 + $0x708] sm:$0xff] }
  0x37   : > { %v352_v44 = vld [vmem:[%s3043_s1 + $0x480] sm:$0xff]  ;;  %525 = vmatpush.msra.mxu1 %v292_v43  ;;  %v365_v43 = vld [vmem:[%s3043_s1 + $0x4e8] sm:$0xff] }
  0x38   : > { %v224_v45 = vld [vmem:[%s3043_s1 + $0x80] sm:$0xff]  ;;  %567 = vmatpush.msra.mxu2 %v352_v44  ;;  %v305_v44 = vld [vmem:[%s3043_s1 + $0x308] sm:$0xff] }
  0x39   : > { %v416_v46 = vld [vmem:[%s3043_s1 + $0x680] sm:$0xff]  ;;  %485 = vmatpush.msra.mxu0 %v224_v45  ;;  %v237_v45 = vld [vmem:[%s3043_s1 + $0xe8] sm:$0xff] }
  0x3a   : > { %v288_v47 = vld [vmem:[%s3043_s1 + $0x280] sm:$0xff]  ;;  %608 = vmatpush.msra.mxu3 %v416_v46  ;;  %v1924_v46 = vld [vmem:[%s1753_s9 + $0x70] sm:$0xff] }
  0x3b   : > { %v348_v48 = vld [vmem:[%s3043_s1 + $0x460] sm:$0xff]  ;;  %526 = vmatpush.msra.mxu1 %v288_v47  ;;  %v429_v47 = vld [vmem:[%s3043_s1 + $0x6e8] sm:$0xff] }
  0x3c   : > { %v220_v49 = vld [vmem:[%s3043_s1 + $0x60] sm:$0xff]  ;;  %568 = vmatpush.msra.mxu2 %v348_v48 }
  0x3d   : > { %v412_v50 = vld [vmem:[%s3043_s1 + $0x660] sm:$0xff]  ;;  %486 = vmatpush.msra.mxu0 %v220_v49  ;;  %v301_v49 = vld [vmem:[%s3043_s1 + $0x2e8] sm:$0xff] }
  0x3e   : > { %v284_v51 = vld [vmem:[%s3043_s1 + $0x260] sm:$0xff]  ;;  %609 = vmatpush.msra.mxu3 %v412_v50  ;;  %v1936_v50 = vld [vmem:[%s1753_s9 + $0x78] sm:$0xff] }
  0x3f   : > { %v344_v52 = vld [vmem:[%s3043_s1 + $0x440] sm:$0xff]  ;;  %527 = vmatpush.msra.mxu1 %v284_v51  ;;  %v361_v51 = vld [vmem:[%s3043_s1 + $0x4c8] sm:$0xff] }
  0x40   : > { %v216_v53 = vld [vmem:[%s3043_s1 + $0x40] sm:$0xff]  ;;  %569 = vmatpush.msra.mxu2 %v344_v52  ;;  %v233_v52 = vld [vmem:[%s3043_s1 + $0xc8] sm:$0xff] }
  0x41   : > { %v408_v54 = vld [vmem:[%s3043_s1 + $0x640] sm:$0xff]  ;;  %487 = vmatpush.msra.mxu0 %v216_v53  ;;  %v425_v53 = vld [vmem:[%s3043_s1 + $0x6c8] sm:$0xff] }
  0x42   : > { %v280_v55 = vld [vmem:[%s3043_s1 + $0x240] sm:$0xff]  ;;  %610 = vmatpush.msra.mxu3 %v408_v54  ;;  %v1950_v54 = vld [vmem:[%s1753_s9 + $0x68] sm:$0xff] }
  0x43   : > { %v340_v56 = vld [vmem:[%s3043_s1 + $0x420] sm:$0xff]  ;;  %528 = vmatpush.msra.mxu1 %v280_v55  ;;  %v357_v55 = vld [vmem:[%s3043_s1 + $0x4a8] sm:$0xff] }
  0x44   : > { %v212_v57 = vld [vmem:[%s3043_s1 + $0x20] sm:$0xff]  ;;  %570 = vmatpush.msra.mxu2 %v340_v56  ;;  %v297_v56 = vld [vmem:[%s3043_s1 + $0x2c8] sm:$0xff] }
  0x45   : > { %v404_v58 = vld [vmem:[%s3043_s1 + $0x620] sm:$0xff]  ;;  %488 = vmatpush.msra.mxu0 %v212_v57  ;;  %v229_v57 = vld [vmem:[%s3043_s1 + $0xa8] sm:$0xff] }
  0x46   : > { %v276_v59 = vld [vmem:[%s3043_s1 + $0x220] sm:$0xff]  ;;  %611 = vmatpush.msra.mxu3 %v404_v58  ;;  %v421_v58 = vld [vmem:[%s3043_s1 + $0x6a8] sm:$0xff] }
  0x47   : > { %v336_v60 = vld [vmem:[%s3043_s1 + $0x400] sm:$0xff]  ;;  %529 = vmatpush.msra.mxu1 %v276_v59  ;;  %v353_v59 = vld [vmem:[%s3043_s1 + $0x488] sm:$0xff] }
  0x48   : > { %v208_v61 = vld [vmem:[%s3043_s1] sm:$0xff]  ;;  %571 = vmatpush.msra.mxu2 %v336_v60  ;;  %v293_v60 = vld [vmem:[%s3043_s1 + $0x2a8] sm:$0xff] }
  0x49   : > { %v400_v63 = vld [vmem:[%s3043_s1 + $0x600] sm:$0xff]  ;;  %489 = vmatpush.msra.mxu0 %v208_v61  ;;  %572 = vmatmul.f32.vlgmr.msra.gmra.mxu2 %v1768_v62  ;;  %v225_v61 = vld [vmem:[%s3043_s1 + $0x88] sm:$0xff] }
  0x4a   : > { %v1777_v1 = vld [vmem:[%s1753_s9] sm:$0xff]  ;;  %612 = vmatpush.msra.mxu3 %v400_v63  ;;  %720 = vmatpush.msrb.mxu2 %v397_v0  ;;  %v1976_v63 = vld [vmem:[%s1753_s9 + $0x90] sm:$0xff]  ;;  %v417_v0 = vld [vmem:[%s3043_s1 + $0x688] sm:$0xff] }
  0x4b   : > { %v272_v5 = vld [vmem:[%s3043_s1 + $0x200] sm:$0xff]  ;;  %490 = vmatmul.f32.vlgmr.msra.gmra.mxu0 %v1777_v1  ;;  %613 = vmatmul.f32.vlgmr.msra.gmra.mxu3 %v1780_v2 }
  0x4c   : > { %638 = vmatpush.msrb.mxu0 %v269_v3  ;;  %761 = vmatpush.msrb.mxu3 %v461_v4  ;;  %v1826_v16 = vld [vmem:[%s1753_s9 + $0x20] sm:$0xff]  ;;  %v289_v4 = vld [vmem:[%s3043_s1 + $0x288] sm:$0xff] }
  0x4d   : > { %530 = vmatpush.msra.mxu1 %v272_v5  ;;  %721 = vmatpush.msrb.mxu2 %v393_v7  ;;  %v1878_v32 = vld [vmem:[%s1753_s9 + $0x40] sm:$0xff]  ;;  %v1988_v5 = vld [vmem:[%s1753_s9 + $0x98] sm:$0xff]  ;;  %v349_v7 = vld [vmem:[%s3043_s1 + $0x468] sm:$0xff] }
  0x4e   : > { %531 = vmatmul.f32.vlgmr.msra.gmra.mxu1 %v1794_v6  ;;  %639 = vmatpush.msrb.mxu0 %v265_v9  ;;  %v1930_v48 = vld [vmem:[%s1753_s9 + $0x60] sm:$0xff]  ;;  %v413_v9 = vld [vmem:[%s3043_s1 + $0x668] sm:$0xff] }
  0x4f   : > { %679 = vmatpush.msrb.mxu1 %v333_v8  ;;  %762 = vmatpush.msrb.mxu3 %v457_v10  ;;  %v1982_v3 = vld [vmem:[%s1753_s9 + $0x80] sm:$0xff]  ;;  %v221_v8 = vld [vmem:[%s3043_s1 + $0x68] sm:$0xff] }
  0x50   : > { %722 = vmatpush.msrb.mxu2 %v389_v11  ;;  %640 = vmatpush.msrb.mxu0 %v261_v13  ;;  %v2002_v10 = vld [vmem:[%s1753_s9 + $0x88] sm:$0xff] }
  0x51   : > { %680 = vmatpush.msrb.mxu1 %v329_v12  ;;  %575 = vmatmul.f32.gmra.mxu2 %v1820_v14  ;;  %v345_v11 = vld [vmem:[%s3043_s1 + $0x448] sm:$0xff] }
  0x52   : > { %763 = vmatpush.msrb.mxu3 %v453_v15  ;;  %723 = vmatpush.msrb.mxu2 %v385_v19  ;;  %v285_v12 = vld [vmem:[%s3043_s1 + $0x268] sm:$0xff] }
  0x53   : > { %493 = vmatmul.f32.gmra.mxu0 %v1826_v16  ;;  %681 = vmatpush.msrb.mxu1 %v325_v17  ;;  %v217_v13 = vld [vmem:[%s3043_s1 + $0x48] sm:$0xff] }
  0x54   : > { %616 = vmatmul.f32.gmra.mxu3 %v1832_v18  ;;  %641 = vmatpush.msrb.mxu0 %v257_v20  ;;  %v409_v15 = vld [vmem:[%s3043_s1 + $0x648] sm:$0xff] }
  0x55   : > { %764 = vmatpush.msrb.mxu3 %v449_v21  ;;  %724 = vmatpush.msrb.mxu2 %v381_v23  ;;  %v341_v17 = vld [vmem:[%s3043_s1 + $0x428] sm:$0xff]  ;;  %v2028_v21 = vld [vmem:[%s1753_s9 + $0xb0] sm:$0xff] }
  0x56   : > { %534 = vmatmul.f32.gmra.mxu1 %v1846_v22  ;;  %642 = vmatpush.msrb.mxu0 %v253_v25  ;;  %v281_v19 = vld [vmem:[%s3043_s1 + $0x248] sm:$0xff] }
  0x57   : > { %682 = vmatpush.msrb.mxu1 %v321_v24  ;;  %765 = vmatpush.msrb.mxu3 %v445_v26  ;;  %v213_v20 = vld [vmem:[%s3043_s1 + $0x28] sm:$0xff]  ;;  %v2034_v24 = vld [vmem:[%s1753_s9 + $0xa0] sm:$0xff]  ;;  %v2040_v26 = vld [vmem:[%s1753_s9 + $0xb8] sm:$0xff] }
  0x58   : > { %725 = vmatpush.msrb.mxu2 %v377_v27  ;;  %643 = vmatpush.msrb.mxu0 %v249_v29  ;;  %v405_v23 = vld [vmem:[%s3043_s1 + $0x628] sm:$0xff] }
  0x59   : > { %683 = vmatpush.msrb.mxu1 %v317_v28  ;;  %578 = vmatmul.f32.gmra.mxu2 %v1872_v30  ;;  %v277_v25 = vld [vmem:[%s3043_s1 + $0x228] sm:$0xff] }
  0x5a   : > { %766 = vmatpush.msrb.mxu3 %v441_v31  ;;  %726 = vmatpush.msrb.mxu2 %v373_v35  ;;  %v337_v27 = vld [vmem:[%s3043_s1 + $0x408] sm:$0xff] }
  0x5b   : > { %496 = vmatmul.f32.gmra.mxu0 %v1878_v32  ;;  %684 = vmatpush.msrb.mxu1 %v313_v33  ;;  %v209_v28 = vld [vmem:[%s3043_s1 + $0x8] sm:$0xff]  ;;  %v398_v33 = vld [vmem:[%s3043_s1 + $0x5f0] sm:$0xff] }
  0x5c   : > { %619 = vmatmul.f32.gmra.mxu3 %v1884_v34  ;;  %644 = vmatpush.msrb.mxu0 %v245_v36  ;;  %v401_v29 = vld [vmem:[%s3043_s1 + $0x608] sm:$0xff]  ;;  %v270_v36 = vld [vmem:[%s3043_s1 + $0x1f0] sm:$0xff] }
  0x5d   : > { %767 = vmatpush.msrb.mxu3 %v437_v37  ;;  %727 = vmatpush.msrb.mxu2 %v369_v39  ;;  %v2054_v31 = vld [vmem:[%s1753_s9 + $0xa8] sm:$0xff]  ;;  %v462_v37 = vld [vmem:[%s3043_s1 + $0x7f0] sm:$0xff] }
  0x5e   : > { %537 = vmatmul.f32.gmra.mxu1 %v1898_v38  ;;  %645 = vmatpush.msrb.mxu0 %v241_v41  ;;  %v273_v35 = vld [vmem:[%s3043_s1 + $0x208] sm:$0xff]  ;;  %v334_v39 = vld [vmem:[%s3043_s1 + $0x3f0] sm:$0xff] }
  0x5f   : > { %685 = vmatpush.msrb.mxu1 %v309_v40  ;;  %768 = vmatpush.msrb.mxu3 %v433_v42  ;;  %v394_v40 = vld [vmem:[%s3043_s1 + $0x5d0] sm:$0xff] }
  0x60   : > { %728 = vmatpush.msrb.mxu2 %v365_v43  ;;  %646 = vmatpush.msrb.mxu0 %v237_v45  ;;  %v266_v41 = vld [vmem:[%s3043_s1 + $0x1d0] sm:$0xff] }
  0x61   : > { %686 = vmatpush.msrb.mxu1 %v305_v44  ;;  %581 = vmatmul.f32.gmra.mxu2 %v1924_v46  ;;  %v2080_v42 = vld [vmem:[%s1753_s9 + $0xd0] sm:$0xff]  ;;  %v2086_v44 = vld [vmem:[%s1753_s9 + $0xc0] sm:$0xff] }
  0x62   : > { %769 = vmatpush.msrb.mxu3 %v429_v47  ;;  %729 = vmatpush.msrb.mxu2 %v361_v51  ;;  %v458_v43 = vld [vmem:[%s3043_s1 + $0x7d0] sm:$0xff]  ;;  %v2092_v47 = vld [vmem:[%s1753_s9 + $0xd8] sm:$0xff] }
  0x63   : > { %499 = vmatmul.f32.gmra.mxu0 %v1930_v48  ;;  %687 = vmatpush.msrb.mxu1 %v301_v49  ;;  %v330_v45 = vld [vmem:[%s3043_s1 + $0x3d0] sm:$0xff] }
  0x64   : > { %622 = vmatmul.f32.gmra.mxu3 %v1936_v50  ;;  %647 = vmatpush.msrb.mxu0 %v233_v52  ;;  %v390_v49 = vld [vmem:[%s3043_s1 + $0x5b0] sm:$0xff] }
  0x65   : > { %770 = vmatpush.msrb.mxu3 %v425_v53  ;;  %730 = vmatpush.msrb.mxu2 %v357_v55  ;;  %v262_v51 = vld [vmem:[%s3043_s1 + $0x1b0] sm:$0xff]  ;;  %v2106_v53 = vld [vmem:[%s1753_s9 + $0xc8] sm:$0xff] }
  0x66   : > { %540 = vmatmul.f32.gmra.mxu1 %v1950_v54  ;;  %648 = vmatpush.msrb.mxu0 %v229_v57  ;;  %v454_v52 = vld [vmem:[%s3043_s1 + $0x7b0] sm:$0xff] }
  0x67   : > { %688 = vmatpush.msrb.mxu1 %v297_v56  ;;  %771 = vmatpush.msrb.mxu3 %v421_v58  ;;  %v386_v55 = vld [vmem:[%s3043_s1 + $0x590] sm:$0xff] }
  0x68   : > { %731 = vmatpush.msrb.mxu2 %v353_v59  ;;  %649 = vmatpush.msrb.mxu0 %v225_v61  ;;  %v326_v56 = vld [vmem:[%s3043_s1 + $0x3b0] sm:$0xff] }
  0x69   : > { %689 = vmatpush.msrb.mxu1 %v293_v60  ;;  %584 = vmatmul.f32.gmra.mxu2 %v1976_v63  ;;  %v258_v57 = vld [vmem:[%s3043_s1 + $0x190] sm:$0xff] }
  0x6a   : > { %772 = vmatpush.msrb.mxu3 %v417_v0  ;;  %732 = vmatpush.msrb.mxu2 %v349_v7  ;;  %v450_v58 = vld [vmem:[%s3043_s1 + $0x790] sm:$0xff]  ;;  %v2138_v7 = vld [vmem:[%s1753_s9 + $0xe0] sm:$0xff] }
  0x6b   : > { %502 = vmatmul.f32.gmra.mxu0 %v1982_v3  ;;  %690 = vmatpush.msrb.mxu1 %v289_v4  ;;  %v382_v59 = vld [vmem:[%s3043_s1 + $0x570] sm:$0xff] }
  0x6c   : > { %625 = vmatmul.f32.gmra.mxu3 %v1988_v5  ;;  %650 = vmatpush.msrb.mxu0 %v221_v8  ;;  %v322_v60 = vld [vmem:[%s3043_s1 + $0x390] sm:$0xff] }
  0x6d   : > { %773 = vmatpush.msrb.mxu3 %v413_v9  ;;  %733 = vmatpush.msrb.mxu2 %v345_v11  ;;  %v254_v61 = vld [vmem:[%s3043_s1 + $0x170] sm:$0xff]  ;;  %v2144_v9 = vld [vmem:[%s1753_s9 + $0xf8] sm:$0xff] }
  0x6e   : > { %543 = vmatmul.f32.gmra.mxu1 %v2002_v10  ;;  %651 = vmatpush.msrb.mxu0 %v217_v13  ;;  %v2132_v0 = vld [vmem:[%s1753_s9 + $0xf0] sm:$0xff] }
  0x6f   : > { %691 = vmatpush.msrb.mxu1 %v285_v12  ;;  %774 = vmatpush.msrb.mxu3 %v409_v15  ;;  %v446_v4 = vld [vmem:[%s3043_s1 + $0x770] sm:$0xff]  ;;  %v2158_v15 = vld [vmem:[%s1753_s9 + $0xe8] sm:$0xff] }
  0x70   : > { %734 = vmatpush.msrb.mxu2 %v341_v17  ;;  %652 = vmatpush.msrb.mxu0 %v213_v20  ;;  %v318_v8 = vld [vmem:[%s3043_s1 + $0x370] sm:$0xff] }
  0x71   : > { %692 = vmatpush.msrb.mxu1 %v281_v19  ;;  %587 = vmatmul.f32.gmra.mxu2 %v2028_v21  ;;  %v378_v11 = vld [vmem:[%s3043_s1 + $0x550] sm:$0xff] }
  0x72   : > { %775 = vmatpush.msrb.mxu3 %v405_v23  ;;  %735 = vmatpush.msrb.mxu2 %v337_v27  ;;  %v250_v12 = vld [vmem:[%s3043_s1 + $0x150] sm:$0xff] }
  0x73   : > { %505 = vmatmul.f32.gmra.mxu0 %v2034_v24  ;;  %693 = vmatpush.msrb.mxu1 %v277_v25  ;;  %v442_v13 = vld [vmem:[%s3043_s1 + $0x750] sm:$0xff] }
  0x74   : > { %628 = vmatmul.f32.gmra.mxu3 %v2040_v26  ;;  %653 = vmatpush.msrb.mxu0 %v209_v28  ;;  %v374_v17 = vld [vmem:[%s3043_s1 + $0x530] sm:$0xff] }
  0x75   : > { %776 = vmatpush.msrb.mxu3 %v401_v29  ;;  %884 = vmatpush.msra.mxu2 %v398_v33  ;;  %v314_v19 = vld [vmem:[%s3043_s1 + $0x350] sm:$0xff] }
  0x76   : > { %546 = vmatmul.f32.gmra.mxu1 %v2054_v31  ;;  %802 = vmatpush.msra.mxu0 %v270_v36  ;;  %v246_v20 = vld [vmem:[%s3043_s1 + $0x130] sm:$0xff] }
  0x77   : > { %694 = vmatpush.msrb.mxu1 %v273_v35  ;;  %925 = vmatpush.msra.mxu3 %v462_v37  ;;  %v438_v23 = vld [vmem:[%s3043_s1 + $0x730] sm:$0xff] }
  0x78   : > { %885 = vmatpush.msra.mxu2 %v394_v40  ;;  %803 = vmatpush.msra.mxu0 %v266_v41  ;;  %v310_v25 = vld [vmem:[%s3043_s1 + $0x330] sm:$0xff] }
  0x79   : > { %843 = vmatpush.msra.mxu1 %v334_v39  ;;  %590 = vmatmul.f32.gmra.mxu2 %v2080_v42  ;;  %v370_v27 = vld [vmem:[%s3043_s1 + $0x510] sm:$0xff] }
  0x7a   : > { %926 = vmatpush.msra.mxu3 %v458_v43  ;;  %886 = vmatpush.msra.mxu2 %v390_v49  ;;  %v242_v28 = vld [vmem:[%s3043_s1 + $0x110] sm:$0xff] }
  0x7b   : > { %508 = vmatmul.f32.gmra.mxu0 %v2086_v44  ;;  %844 = vmatpush.msra.mxu1 %v330_v45  ;;  %v434_v29 = vld [vmem:[%s3043_s1 + $0x710] sm:$0xff] }
  0x7c   : > { %631 = vmatmul.f32.gmra.mxu3 %v2092_v47  ;;  %804 = vmatpush.msra.mxu0 %v262_v51  ;;  %v306_v33 = vld [vmem:[%s3043_s1 + $0x310] sm:$0xff] }
  0x7d   : > { %927 = vmatpush.msra.mxu3 %v454_v52  ;;  %887 = vmatpush.msra.mxu2 %v386_v55  ;;  %v366_v35 = vld [vmem:[%s3043_s1 + $0x4f0] sm:$0xff] }
  0x7e   : > { %549 = vmatmul.f32.gmra.mxu1 %v2106_v53  ;;  %805 = vmatpush.msra.mxu0 %v258_v57  ;;  %v238_v36 = vld [vmem:[%s3043_s1 + $0xf0] sm:$0xff] }
  0x7f   : > { %845 = vmatpush.msra.mxu1 %v326_v56  ;;  %928 = vmatpush.msra.mxu3 %v450_v58  ;;  %v430_v37 = vld [vmem:[%s3043_s1 + $0x6f0] sm:$0xff] }
  0x80   : > { %888 = vmatpush.msra.mxu2 %v382_v59  ;;  %806 = vmatpush.msra.mxu0 %v254_v61  ;;  %v302_v39 = vld [vmem:[%s3043_s1 + $0x2f0] sm:$0xff] }
  0x81   : > { %846 = vmatpush.msra.mxu1 %v322_v60  ;;  %593 = vmatmul.f32.gmra.mxu2 %v2132_v0  ;;  %v362_v40 = vld [vmem:[%s3043_s1 + $0x4d0] sm:$0xff] }
  0x82   : > { %929 = vmatpush.msra.mxu3 %v446_v4  ;;  %889 = vmatpush.msra.mxu2 %v378_v11  ;;  %v234_v41 = vld [vmem:[%s3043_s1 + $0xd0] sm:$0xff] }
  0x83   : > { %511 = vmatmul.f32.gmra.mxu0 %v2138_v7  ;;  %847 = vmatpush.msra.mxu1 %v318_v8  ;;  %v426_v43 = vld [vmem:[%s3043_s1 + $0x6d0] sm:$0xff] }
  0x84   : > { %634 = vmatmul.f32.gmra.mxu3 %v2144_v9  ;;  %807 = vmatpush.msra.mxu0 %v250_v12  ;;  %v298_v45 = vld [vmem:[%s3043_s1 + $0x2d0] sm:$0xff] }
  0x85   : > { %930 = vmatpush.msra.mxu3 %v442_v13  ;;  %890 = vmatpush.msra.mxu2 %v374_v17  ;;  %v358_v49 = vld [vmem:[%s3043_s1 + $0x4b0] sm:$0xff] }
  0x86   : > { %552 = vmatmul.f32.gmra.mxu1 %v2158_v15  ;;  %808 = vmatpush.msra.mxu0 %v246_v20  ;;  %v230_v51 = vld [vmem:[%s3043_s1 + $0xb0] sm:$0xff] }
  0x87   : > { %848 = vmatpush.msra.mxu1 %v314_v19  ;;  %931 = vmatpush.msra.mxu3 %v438_v23  ;;  %v422_v52 = vld [vmem:[%s3043_s1 + $0x6b0] sm:$0xff] }
  0x88   : > { %891 = vmatpush.msra.mxu2 %v370_v27  ;;  %809 = vmatpush.msra.mxu0 %v242_v28  ;;  %v294_v55 = vld [vmem:[%s3043_s1 + $0x2b0] sm:$0xff] }
  0x89   : > { %849 = vmatpush.msra.mxu1 %v310_v25  ;;  %736 = vmatmul.f32.vlgmr.msrb.gmra.mxu2 %v1768_v62  ;;  %v354_v56 = vld [vmem:[%s3043_s1 + $0x490] sm:$0xff] }
  0x8a   : > { %932 = vmatpush.msra.mxu3 %v434_v29  ;;  %892 = vmatpush.msra.mxu2 %v366_v35  ;;  %v226_v57 = vld [vmem:[%s3043_s1 + $0x90] sm:$0xff]  ;;  %v399_v35 = vld [vmem:[%s3043_s1 + $0x5f8] sm:$0xff] }
  0x8b   : > { %654 = vmatmul.f32.vlgmr.msrb.gmra.mxu0 %v1777_v1  ;;  %850 = vmatpush.msra.mxu1 %v306_v33  ;;  %v418_v58 = vld [vmem:[%s3043_s1 + $0x690] sm:$0xff] }
  0x8c   : > { %777 = vmatmul.f32.vlgmr.msrb.gmra.mxu3 %v1780_v2  ;;  %810 = vmatpush.msra.mxu0 %v238_v36  ;;  %v290_v59 = vld [vmem:[%s3043_s1 + $0x290] sm:$0xff]  ;;  %v271_v36 = vld [vmem:[%s3043_s1 + $0x1f8] sm:$0xff] }
  0x8d   : > { %933 = vmatpush.msra.mxu3 %v430_v37  ;;  %851 = vmatpush.msra.mxu1 %v302_v39  ;;  %v350_v60 = vld [vmem:[%s3043_s1 + $0x470] sm:$0xff]  ;;  %v463_v37 = vld [vmem:[%s3043_s1 + $0x7f8] sm:$0xff] }
  0x8e   : > { %695 = vmatmul.f32.vlgmr.msrb.gmra.mxu1 %v1794_v6  ;;  %893 = vmatpush.msra.mxu2 %v362_v40  ;;  %v222_v61 = vld [vmem:[%s3043_s1 + $0x70] sm:$0xff]  ;;  %v335_v39 = vld [vmem:[%s3043_s1 + $0x3f8] sm:$0xff] }
  0x8f   : > { %811 = vmatpush.msra.mxu0 %v234_v41  ;;  %934 = vmatpush.msra.mxu3 %v426_v43  ;;  %v414_v4 = vld [vmem:[%s3043_s1 + $0x670] sm:$0xff]  ;;  %v395_v40 = vld [vmem:[%s3043_s1 + $0x5d8] sm:$0xff] }
  0x90   : > { %852 = vmatpush.msra.mxu1 %v298_v45  ;;  %894 = vmatpush.msra.mxu2 %v358_v49  ;;  %v286_v8 = vld [vmem:[%s3043_s1 + $0x270] sm:$0xff]  ;;  %v267_v41 = vld [vmem:[%s3043_s1 + $0x1d8] sm:$0xff] }
  0x91   : > { %739 = vmatmul.f32.gmra.mxu2 %v1820_v14  ;;  %812 = vmatpush.msra.mxu0 %v230_v51  ;;  %v346_v11 = vld [vmem:[%s3043_s1 + $0x450] sm:$0xff]  ;;  %v459_v43 = vld [vmem:[%s3043_s1 + $0x7d8] sm:$0xff] }
  0x92   : > { %935 = vmatpush.msra.mxu3 %v422_v52  ;;  %853 = vmatpush.msra.mxu1 %v294_v55  ;;  %v218_v12 = vld [vmem:[%s3043_s1 + $0x50] sm:$0xff]  ;;  %v331_v45 = vld [vmem:[%s3043_s1 + $0x3d8] sm:$0xff] }
  0x93   : > { %657 = vmatmul.f32.gmra.mxu0 %v1826_v16  ;;  %895 = vmatpush.msra.mxu2 %v354_v56  ;;  %v410_v13 = vld [vmem:[%s3043_s1 + $0x650] sm:$0xff]  ;;  %v391_v49 = vld [vmem:[%s3043_s1 + $0x5b8] sm:$0xff] }
  0x94   : > { %780 = vmatmul.f32.gmra.mxu3 %v1832_v18  ;;  %813 = vmatpush.msra.mxu0 %v226_v57  ;;  %v282_v17 = vld [vmem:[%s3043_s1 + $0x250] sm:$0xff]  ;;  %v263_v51 = vld [vmem:[%s3043_s1 + $0x1b8] sm:$0xff] }
  0x95   : > { %936 = vmatpush.msra.mxu3 %v418_v58  ;;  %854 = vmatpush.msra.mxu1 %v290_v59  ;;  %v342_v19 = vld [vmem:[%s3043_s1 + $0x430] sm:$0xff]  ;;  %v455_v52 = vld [vmem:[%s3043_s1 + $0x7b8] sm:$0xff] }
  0x96   : > { %698 = vmatmul.f32.gmra.mxu1 %v1846_v22  ;;  %896 = vmatpush.msra.mxu2 %v350_v60  ;;  %v214_v20 = vld [vmem:[%s3043_s1 + $0x30] sm:$0xff]  ;;  %v327_v55 = vld [vmem:[%s3043_s1 + $0x3b8] sm:$0xff] }
  0x97   : > { %814 = vmatpush.msra.mxu0 %v222_v61  ;;  %937 = vmatpush.msra.mxu3 %v414_v4  ;;  %v406_v23 = vld [vmem:[%s3043_s1 + $0x630] sm:$0xff]  ;;  %v387_v56 = vld [vmem:[%s3043_s1 + $0x598] sm:$0xff] }
  0x98   : > { %855 = vmatpush.msra.mxu1 %v286_v8  ;;  %897 = vmatpush.msra.mxu2 %v346_v11  ;;  %v278_v25 = vld [vmem:[%s3043_s1 + $0x230] sm:$0xff]  ;;  %v259_v57 = vld [vmem:[%s3043_s1 + $0x198] sm:$0xff] }
  0x99   : > { %742 = vmatmul.f32.gmra.mxu2 %v1872_v30  ;;  %815 = vmatpush.msra.mxu0 %v218_v12  ;;  %v338_v27 = vld [vmem:[%s3043_s1 + $0x410] sm:$0xff]  ;;  %v451_v58 = vld [vmem:[%s3043_s1 + $0x798] sm:$0xff]  ;;  %v2379_v12 = vld [vmem:[%s3044_s2] sm:$0xf] }
  0x9a   : > { %938 = vmatpush.msra.mxu3 %v410_v13  ;;  %856 = vmatpush.msra.mxu1 %v282_v17  ;;  %v210_v28 = vld [vmem:[%s3043_s1 + $0x10] sm:$0xff]  ;;  %v323_v59 = vld [vmem:[%s3043_s1 + $0x398] sm:$0xff] }
  0x9b   : > { %660 = vmatmul.f32.gmra.mxu0 %v1878_v32  ;;  %898 = vmatpush.msra.mxu2 %v342_v19  ;;  %v402_v29 = vld [vmem:[%s3043_s1 + $0x610] sm:$0xff]  ;;  %v383_v60 = vld [vmem:[%s3043_s1 + $0x578] sm:$0xff] }
  0x9c   : > { %783 = vmatmul.f32.gmra.mxu3 %v1884_v34  ;;  %816 = vmatpush.msra.mxu0 %v214_v20  ;;  %v274_v33 = vld [vmem:[%s3043_s1 + $0x210] sm:$0xff]  ;;  %v255_v61 = vld [vmem:[%s3043_s1 + $0x178] sm:$0xff] }
  0x9d   : > { %939 = vmatpush.msra.mxu3 %v406_v23  ;;  %857 = vmatpush.msra.mxu1 %v278_v25  ;;  %v447_v4 = vld [vmem:[%s3043_s1 + $0x778] sm:$0xff] }
  0x9e   : > { %701 = vmatmul.f32.gmra.mxu1 %v1898_v38  ;;  %899 = vmatpush.msra.mxu2 %v338_v27  ;;  %v319_v8 = vld [vmem:[%s3043_s1 + $0x378] sm:$0xff]  ;;  %v2403_v27 = vperm.slane %v2379_v12, 0 }
  0x9f   : > { %817 = vmatpush.msra.mxu0 %v210_v28  ;;  %940 = vmatpush.msra.mxu3 %v402_v29  ;;  %v379_v11 = vld [vmem:[%s3043_s1 + $0x558] sm:$0xff] }
  0xa0   : > { %858 = vmatpush.msra.mxu1 %v274_v33  ;;  %1048 = vmatpush.msrb.mxu2 %v399_v35  ;;  %v251_v13 = vld [vmem:[%s3043_s1 + $0x158] sm:$0xff] }
  0xa1   : > { %745 = vmatmul.f32.gmra.mxu2 %v1924_v46  ;;  %966 = vmatpush.msrb.mxu0 %v271_v36  ;;  %v443_v17 = vld [vmem:[%s3043_s1 + $0x758] sm:$0xff] }
  0xa2   : > { %1089 = vmatpush.msrb.mxu3 %v463_v37  ;;  %1007 = vmatpush.msrb.mxu1 %v335_v39  ;;  %v315_v19 = vld [vmem:[%s3043_s1 + $0x358] sm:$0xff] }
  0xa3   : > { %663 = vmatmul.f32.gmra.mxu0 %v1930_v48  ;;  %1049 = vmatpush.msrb.mxu2 %v395_v40  ;;  %v375_v20 = vld [vmem:[%s3043_s1 + $0x538] sm:$0xff] }
  0xa4   : > { %786 = vmatmul.f32.gmra.mxu3 %v1936_v50  ;;  %967 = vmatpush.msrb.mxu0 %v267_v41  ;;  %v247_v23 = vld [vmem:[%s3043_s1 + $0x138] sm:$0xff] }
  0xa5   : > { %1090 = vmatpush.msrb.mxu3 %v459_v43  ;;  %1008 = vmatpush.msrb.mxu1 %v331_v45  ;;  %v439_v25 = vld [vmem:[%s3043_s1 + $0x738] sm:$0xff] }
  0xa6   : > { %704 = vmatmul.f32.gmra.mxu1 %v1950_v54  ;;  %1050 = vmatpush.msrb.mxu2 %v391_v49  ;;  %v311_v28 = vld [vmem:[%s3043_s1 + $0x338] sm:$0xff] }
  0xa7   : > { %968 = vmatpush.msrb.mxu0 %v263_v51  ;;  %1091 = vmatpush.msrb.mxu3 %v455_v52  ;;  %v371_v29 = vld [vmem:[%s3043_s1 + $0x518] sm:$0xff] }
  0xa8   : > { %1009 = vmatpush.msrb.mxu1 %v327_v55  ;;  %1051 = vmatpush.msrb.mxu2 %v387_v56  ;;  %v243_v36 = vld [vmem:[%s3043_s1 + $0x118] sm:$0xff] }
  0xa9   : > { %748 = vmatmul.f32.gmra.mxu2 %v1976_v63  ;;  %1092 = vmatpush.msrb.mxu3 %v451_v58  ;;  %v435_v37 = vld [vmem:[%s3043_s1 + $0x718] sm:$0xff] }
  0xaa   : > { %969 = vmatpush.msrb.mxu0 %v259_v57  ;;  %1010 = vmatpush.msrb.mxu1 %v323_v59  ;;  %v307_v39 = vld [vmem:[%s3043_s1 + $0x318] sm:$0xff] }
  0xab   : > { %666 = vmatmul.f32.gmra.mxu0 %v1982_v3  ;;  %1052 = vmatpush.msrb.mxu2 %v383_v60  ;;  %v239_v43 = vld [vmem:[%s3043_s1 + $0xf8] sm:$0xff] }
  0xac   : > { %789 = vmatmul.f32.gmra.mxu3 %v1988_v5  ;;  %970 = vmatpush.msrb.mxu0 %v255_v61  ;;  %v431_v45 = vld [vmem:[%s3043_s1 + $0x6f8] sm:$0xff] }
  0xad   : > { %1093 = vmatpush.msrb.mxu3 %v447_v4  ;;  %1011 = vmatpush.msrb.mxu1 %v319_v8  ;;  %v363_v51 = vld [vmem:[%s3043_s1 + $0x4d8] sm:$0xff] }
  0xae   : > { %707 = vmatmul.f32.gmra.mxu1 %v2002_v10  ;;  %1053 = vmatpush.msrb.mxu2 %v379_v11  ;;  %v427_v58 = vld [vmem:[%s3043_s1 + $0x6d8] sm:$0xff] }
  0xaf   : > { %1094 = vmatpush.msrb.mxu3 %v443_v17  ;;  %971 = vmatpush.msrb.mxu0 %v251_v13  ;;  %v299_v59 = vld [vmem:[%s3043_s1 + $0x2d8] sm:$0xff] }
  0xb0   : > { %1012 = vmatpush.msrb.mxu1 %v315_v19  ;;  %1054 = vmatpush.msrb.mxu2 %v375_v20  ;;  %v231_v4 = vld [vmem:[%s3043_s1 + $0xb8] sm:$0xff] }
  0xb1   : > { %751 = vmatmul.f32.gmra.mxu2 %v2028_v21  ;;  %972 = vmatpush.msrb.mxu0 %v247_v23  ;;  %v423_v8 = vld [vmem:[%s3043_s1 + $0x6b8] sm:$0xff] }
  0xb2   : > { %1095 = vmatpush.msrb.mxu3 %v439_v25  ;;  %1013 = vmatpush.msrb.mxu1 %v311_v28  ;;  %v355_v13 = vld [vmem:[%s3043_s1 + $0x498] sm:$0xff] }
  0xb3   : > { %669 = vmatmul.f32.gmra.mxu0 %v2034_v24  ;;  %1055 = vmatpush.msrb.mxu2 %v371_v29  ;;  %v227_v25 = vld [vmem:[%s3043_s1 + $0x98] sm:$0xff] }
  0xb4   : > { %792 = vmatmul.f32.gmra.mxu3 %v2040_v26  ;;  %973 = vmatpush.msrb.mxu0 %v243_v36  ;;  %v419_v28 = vld [vmem:[%s3043_s1 + $0x698] sm:$0xff] }
  0xb5   : > { %1096 = vmatpush.msrb.mxu3 %v435_v37  ;;  %1014 = vmatpush.msrb.mxu1 %v307_v39  ;;  %v291_v29 = vld [vmem:[%s3043_s1 + $0x298] sm:$0xff] }
  0xb6   : > { %710 = vmatmul.f32.gmra.mxu1 %v2054_v31  ;;  %974 = vmatpush.msrb.mxu0 %v239_v43  ;;  %v223_v36 = vld [vmem:[%s3043_s1 + $0x78] sm:$0xff] }
  0xb7   : > { %1097 = vmatpush.msrb.mxu3 %v431_v45  ;;  %v415_v37 = vld [vmem:[%s3043_s1 + $0x678] sm:$0xff] }
  0xb9   : > { %754 = vmatmul.f32.gmra.mxu2 %v2080_v42  ;;  %1098 = vmatpush.msrb.mxu3 %v427_v58  ;;  %v339_v58 = vld [vmem:[%s3043_s1 + $0x418] sm:$0xff] }
  0xbb   : > { %672 = vmatmul.f32.gmra.mxu0 %v2086_v44  ;;  %1099 = vmatpush.msrb.mxu3 %v423_v8  ;;  %v403_v8 = vld [vmem:[%s3043_s1 + $0x618] sm:$0xff] }
  0xbc   : > { %795 = vmatmul.f32.gmra.mxu3 %v2092_v47 }
  0xbd   : > { %1100 = vmatpush.msrb.mxu3 %v419_v28 }
  0xbe   : > { %713 = vmatmul.f32.gmra.mxu1 %v2106_v53 }
  0xbf   : > { %1101 = vmatpush.msrb.mxu3 %v415_v37 }
  0xc1   : > { %757 = vmatmul.f32.gmra.mxu2 %v2132_v0 }
  0xc3   : > { %675 = vmatmul.f32.gmra.mxu0 %v2138_v7 }
  0xc4   : > { %798 = vmatmul.f32.gmra.mxu3 %v2144_v9 }
  0xc6   : > { %716 = vmatmul.f32.gmra.mxu1 %v2158_v15 }
  0xc8   : > { %v491_v33 = vpop.f32.mrf.mxu0 }
  0xc9   : > { %v492_v35 = vadd.f32 %v491_v33, %v2403_v27  ;;  %900 = vmatmul.f32.vlgmr.msra.gmra.mxu2 %v1768_v62  ;;  %v367_v62 = vld [vmem:[%s3043_s1 + $0x4f8] sm:$0xff] }
  0xca   : > { %1056 = vmatpush.msrb.mxu2 %v367_v62 }
  0xcb   : > { %v532_v40 = vpop.f32.mrf.mxu1  ;;  %818 = vmatmul.f32.vlgmr.msra.gmra.mxu0 %v1777_v1 }
  0xcc   : > { %v533_v41 = vadd.f32 %v532_v40, %v492_v35  ;;  %941 = vmatmul.f32.vlgmr.msra.gmra.mxu3 %v1780_v2  ;;  %v573_v49 = vpop.f32.mrf.mxu2  ;;  %v303_v2 = vld [vmem:[%s3043_s1 + $0x2f8] sm:$0xff]  ;;  %1057 = vmatpush.msrb.mxu2 %v363_v51 }
  0xcd   : > { %1015 = vmatpush.msrb.mxu1 %v303_v2  ;;  %v347_v40 = vld [vmem:[%s3043_s1 + $0x458] sm:$0xff] }
  0xce   : > { %v574_v1 = vadd.f32 %v573_v49, %v533_v41  ;;  %859 = vmatmul.f32.vlgmr.msra.gmra.mxu1 %v1794_v6  ;;  %v614_v52 = vpop.f32.mrf.mxu3  ;;  %v235_v6 = vld [vmem:[%s3043_s1 + $0xd8] sm:$0xff] }
  0xcf   : > { %975 = vmatpush.msrb.mxu0 %v235_v6  ;;  %1016 = vmatpush.msrb.mxu1 %v299_v59  ;;  %v219_v49 = vld [vmem:[%s3043_s1 + $0x58] sm:$0xff] }
  0xd0   : > { %v2441_v55 = vadd.f32 %v614_v52, %v574_v1  ;;  %v494_v56 = vpop.f32.mrf.mxu0  ;;  %v411_v1 = vld [vmem:[%s3043_s1 + $0x658] sm:$0xff] }
  0xd1   : > { %v495_v57 = vadd.f32 %v494_v56, %v2403_v27  ;;  %903 = vmatmul.f32.gmra.mxu2 %v1820_v14  ;;  %v359_v14 = vld [vmem:[%s3043_s1 + $0x4b8] sm:$0xff]  ;;  %976 = vmatpush.msrb.mxu0 %v231_v4 }
  0xd2   : > { %1058 = vmatpush.msrb.mxu2 %v359_v14  ;;  %v283_v2 = vld [vmem:[%s3043_s1 + $0x258] sm:$0xff]  ;;  %1102 = vmatpush.msrb.mxu3 %v411_v1 }
  0xd3   : > { %v535_v60 = vpop.f32.mrf.mxu1  ;;  %821 = vmatmul.f32.gmra.mxu0 %v1826_v16  ;;  %v215_v56 = vld [vmem:[%s3043_s1 + $0x38] sm:$0xff] }
  0xd4   : > { %v536_v61 = vadd.f32 %v535_v60, %v495_v57  ;;  %944 = vmatmul.f32.gmra.mxu3 %v1832_v18  ;;  %v576_v11 = vpop.f32.mrf.mxu2  ;;  %v295_v18 = vld [vmem:[%s3043_s1 + $0x2b8] sm:$0xff]  ;;  %1059 = vmatpush.msrb.mxu2 %v355_v13 }
  0xd5   : > { %1017 = vmatpush.msrb.mxu1 %v295_v18  ;;  %977 = vmatpush.msrb.mxu0 %v227_v25  ;;  %v407_v57 = vld [vmem:[%s3043_s1 + $0x638] sm:$0xff] }
  0xd6   : > { %v577_v16 = vadd.f32 %v576_v11, %v536_v61  ;;  %862 = vmatmul.f32.gmra.mxu1 %v1846_v22  ;;  %1103 = vmatpush.msrb.mxu3 %v407_v57  ;;  %v211_v4 = vld [vmem:[%s3043_s1 + $0x18] sm:$0xff] }
  0xd7   : > { %v617_v17 = vpop.f32.mrf.mxu3  ;;  %1018 = vmatpush.msrb.mxu1 %v291_v29  ;;  %978 = vmatpush.msrb.mxu0 %v223_v36 }
  0xd8   : > { %v2472_v19 = vadd.f32 %v617_v17, %v577_v16  ;;  %v497_v20 = vpop.f32.mrf.mxu0  ;;  %1104 = vmatpush.msrb.mxu3 %v403_v8  ;;  %v1507_v8 = vld [vmem:[%s1753_s9 + $0x8] sm:$0xff] }
  0xd9   : > { %v498_v23 = vadd.f32 %v497_v20, %v2403_v27  ;;  %906 = vmatmul.f32.gmra.mxu2 %v1872_v30  ;;  %v351_v30 = vld [vmem:[%s3043_s1 + $0x478] sm:$0xff]  ;;  %979 = vmatpush.msrb.mxu0 %v219_v49 }
  0xda   : > { %v1130_v22 = vadd.f32 %v2472_v19, %v2441_v55  ;;  %1060 = vmatpush.msrb.mxu2 %v351_v30 }
  0xdb   : > { %v538_v33 = vpop.f32.mrf.mxu1  ;;  %824 = vmatmul.f32.gmra.mxu0 %v1878_v32 }
  0xdc   : > { %v539_v35 = vadd.f32 %v538_v33, %v498_v23  ;;  %947 = vmatmul.f32.gmra.mxu3 %v1884_v34  ;;  %v579_v39 = vpop.f32.mrf.mxu2  ;;  %v287_v34 = vld [vmem:[%s3043_s1 + $0x278] sm:$0xff]  ;;  %1061 = vmatpush.msrb.mxu2 %v347_v40 }
  0xdd   : > { %1019 = vmatpush.msrb.mxu1 %v287_v34  ;;  %980 = vmatpush.msrb.mxu0 %v215_v56 }
  0xde   : > { %v580_v32 = vadd.f32 %v579_v39, %v539_v35  ;;  %865 = vmatmul.f32.gmra.mxu1 %v1898_v38 }
  0xdf   : > { %v620_v62 = vpop.f32.mrf.mxu3  ;;  %1020 = vmatpush.msrb.mxu1 %v283_v2  ;;  %981 = vmatpush.msrb.mxu0 %v211_v4 }
  0xe0   : > { %v2505_v41 = vadd.f32 %v620_v62, %v580_v32  ;;  %v500_v43 = vpop.f32.mrf.mxu0 }
  0xe1   : > { %v501_v45 = vadd.f32 %v500_v43, %v2403_v27  ;;  %909 = vmatmul.f32.gmra.mxu2 %v1924_v46  ;;  %v343_v46 = vld [vmem:[%s3043_s1 + $0x438] sm:$0xff] }
  0xe2   : > { %v1131_v38 = vadd.f32 %v1130_v22, %v2505_v41  ;;  %1062 = vmatpush.msrb.mxu2 %v343_v46  ;;  %v2578_v46 = vperm.slane %v2379_v12, 1 }
  0xe3   : > { %v541_v51 = vpop.f32.mrf.mxu1  ;;  %827 = vmatmul.f32.gmra.mxu0 %v1930_v48 }
  0xe4   : > { %v542_v52 = vadd.f32 %v541_v51, %v501_v45  ;;  %950 = vmatmul.f32.gmra.mxu3 %v1936_v50  ;;  %v582_v6 = vpop.f32.mrf.mxu2  ;;  %v279_v50 = vld [vmem:[%s3043_s1 + $0x238] sm:$0xff]  ;;  %1063 = vmatpush.msrb.mxu2 %v339_v58 }
  0xe5   : > { %1021 = vmatpush.msrb.mxu1 %v279_v50  ;;  %v1504_v50 = vld [vmem:[%s1753_s9 + $0x10] sm:$0xff] }
  0xe6   : > { %v583_v48 = vadd.f32 %v582_v6, %v542_v52  ;;  %868 = vmatmul.f32.gmra.mxu1 %v1950_v54 }
  0xe7   : > { %v623_v59 = vpop.f32.mrf.mxu3 }
  0xe8   : > { %v2537_v60 = vadd.f32 %v623_v59, %v583_v48  ;;  %v503_v14 = vpop.f32.mrf.mxu0  ;;  %v1505_v59 = vld [vmem:[%s1753_s9] sm:$0xff] }
  0xe9   : > { %v504_v61 = vadd.f32 %v503_v14, %v2403_v27  ;;  %912 = vmatmul.f32.gmra.mxu2 %v1976_v63  ;;  %v275_v63 = vld [vmem:[%s3043_s1 + $0x218] sm:$0xff] }
  0xea   : > { %v1132_v54 = vadd.f32 %v1131_v38, %v2537_v60  ;;  %1022 = vmatpush.msrb.mxu1 %v275_v63 }
  0xeb   : > { %v544_v11 = vpop.f32.mrf.mxu1  ;;  %830 = vmatmul.f32.gmra.mxu0 %v1982_v3 }
  0xec   : > { %v545_v16 = vadd.f32 %v544_v11, %v504_v61  ;;  %953 = vmatmul.f32.gmra.mxu3 %v1988_v5  ;;  %v585_v18 = vpop.f32.mrf.mxu2  ;;  %v1506_v61 = vld [vmem:[%s1753_s9 + $0x18] sm:$0xff] }
  0xee   : > { %v586_v13 = vadd.f32 %v585_v18, %v545_v16  ;;  %871 = vmatmul.f32.gmra.mxu1 %v2002_v10 }
  0xef   : > { %v626_v17 = vpop.f32.mrf.mxu3 }
  0xf0   : > { %v2554_v20 = vadd.f32 %v626_v17, %v586_v13  ;;  %v506_v23 = vpop.f32.mrf.mxu0  ;;  %v1508_v13 = vld [vmem:[%s1753_s9 + $0x30] sm:$0xff] }
  0xf1   : > { %v507_v3 = vadd.f32 %v506_v23, %v2403_v27  ;;  %915 = vmatmul.f32.gmra.mxu2 %v2028_v21  ;;  %v1509_v23 = vld [vmem:[%s1753_s9 + $0x20] sm:$0xff] }
  0xf2   : > { %v1133_v22 = vadd.f32 %v1132_v54, %v2554_v20 }
  0xf3   : > { %v547_v5 = vpop.f32.mrf.mxu1  ;;  %833 = vmatmul.f32.gmra.mxu0 %v2034_v24 }
  0xf4   : > { %v548_v25 = vadd.f32 %v547_v5, %v507_v3  ;;  %956 = vmatmul.f32.gmra.mxu3 %v2040_v26  ;;  %v588_v28 = vpop.f32.mrf.mxu2 }
  0xf6   : > { %v589_v29 = vadd.f32 %v588_v28, %v548_v25  ;;  %874 = vmatmul.f32.gmra.mxu1 %v2054_v31  ;;  %v1511_v28 = vld [vmem:[%s1753_s9 + $0x28] sm:$0xff] }
  0xf7   : > { %v629_v33 = vpop.f32.mrf.mxu3 }
  0xf8   : > { %v2562_v30 = vadd.f32 %v629_v33, %v589_v29  ;;  %v509_v35 = vpop.f32.mrf.mxu0 }
  0xf9   : > { %v510_v36 = vadd.f32 %v509_v35, %v2403_v27  ;;  %918 = vmatmul.f32.gmra.mxu2 %v2080_v42 }
  0xfa   : > { %v1134_v37 = vadd.f32 %v1133_v22, %v2562_v30  ;;  %v1510_v22 = vld [vmem:[%s1753_s9 + $0x38] sm:$0xff] }
  0xfb   : > { %v550_v39 = vpop.f32.mrf.mxu1  ;;  %836 = vmatmul.f32.gmra.mxu0 %v2086_v44 }
  0xfc   : > { %v551_v32 = vadd.f32 %v550_v39, %v510_v36  ;;  %959 = vmatmul.f32.gmra.mxu3 %v2092_v47  ;;  %v591_v34 = vpop.f32.mrf.mxu2  ;;  %v1512_v39 = vld [vmem:[%s1753_s9 + $0x50] sm:$0xff] }
  0xfe   : > { %v592_v40 = vadd.f32 %v591_v34, %v551_v32  ;;  %877 = vmatmul.f32.gmra.mxu1 %v2106_v53  ;;  %v1513_v34 = vld [vmem:[%s1753_s9 + $0x40] sm:$0xff] }
  0xff   : > { %v632_v62 = vpop.f32.mrf.mxu3 }
 0x100   : > { %v2570_v43 = vadd.f32 %v632_v62, %v592_v40  ;;  %v512_v45 = vpop.f32.mrf.mxu0  ;;  %v1514_v62 = vld [vmem:[%s1753_s9 + $0x58] sm:$0xff] }
 0x101   : > { %v513_v38 = vadd.f32 %v512_v45, %v2403_v27  ;;  %921 = vmatmul.f32.gmra.mxu2 %v2132_v0 }
 0x102   : > { %v1135_v49 = vadd.f32 %v1134_v37, %v2570_v43 }
 0x103   : > { %v553_v1 = vpop.f32.mrf.mxu1  ;;  %839 = vmatmul.f32.gmra.mxu0 %v2138_v7 }
 0x104   : > { %v554_v2 = vadd.f32 %v553_v1, %v513_v38  ;;  %962 = vmatmul.f32.gmra.mxu3 %v2144_v9  ;;  %v594_v51 = vpop.f32.mrf.mxu2 }
 0x106   : > { %v595_v52 = vadd.f32 %v594_v51, %v554_v2  ;;  %880 = vmatmul.f32.gmra.mxu1 %v2158_v15 }
 0x107   : > { %v635_v27 = vpop.f32.mrf.mxu3 }
 0x108   : > { %v2581_v56 = vadd.f32 %v635_v27, %v595_v52  ;;  %v655_v57 = vpop.f32.mrf.mxu0 }
 0x109   : > { %v656_v6 = vadd.f32 %v655_v57, %v2578_v46  ;;  %1064 = vmatmul.f32.vlgmr.msrb.gmra.mxu2 %v1504_v50  ;;  %v1516_v57 = vld [vmem:[%s1753_s9 + $0x70] sm:$0xff]  ;;  %v1517_v50 = vld [vmem:[%s1753_s9 + $0x60] sm:$0xff] }
 0x10a   : > { %v2585_v48 = vadd.f32 %v1135_v49, %v2581_v56  ;;  %v1515_v49 = vld [vmem:[%s1753_s9 + $0x48] sm:$0xff] }
 0x10b   : > { %v696_v58 = vpop.f32.mrf.mxu1  ;;  %982 = vmatmul.f32.vlgmr.msrb.gmra.mxu0 %v1505_v59  ;;  %v1518_v59 = vld [vmem:[%s1753_s9 + $0x78] sm:$0xff] }
 0x10c   : > { %v697_v14 = vadd.f32 %v696_v58, %v656_v6  ;;  %1105 = vmatmul.f32.vlgmr.msrb.gmra.mxu3 %v1506_v61  ;;  %v737_v54 = vpop.f32.mrf.mxu2 }
 0x10e   : > { %v738_v4 = vadd.f32 %v737_v54, %v697_v14  ;;  %1023 = vmatmul.f32.vlgmr.msrb.gmra.mxu1 %v1507_v8  ;;  %v1519_v54 = vld [vmem:[%s1753_s9 + $0x68] sm:$0xff] }
 0x10f   : > { %v778_v11 = vpop.f32.mrf.mxu3 }
 0x110   : > { %v2591_v16 = vadd.f32 %v778_v11, %v738_v4  ;;  %v658_v63 = vpop.f32.mrf.mxu0 }
 0x111   : > { %v659_v18 = vadd.f32 %v658_v63, %v2578_v46  ;;  %1067 = vmatmul.f32.gmra.mxu2 %v1508_v13  ;;  %v1520_v13 = vld [vmem:[%s1753_s9 + $0x90] sm:$0xff] }
 0x113   : > { %v699_v17 = vpop.f32.mrf.mxu1  ;;  %985 = vmatmul.f32.gmra.mxu0 %v1509_v23  ;;  %v1521_v23 = vld [vmem:[%s1753_s9 + $0x80] sm:$0xff] }
 0x114   : > { %v700_v3 = vadd.f32 %v699_v17, %v659_v18  ;;  %1108 = vmatmul.f32.gmra.mxu3 %v1510_v22  ;;  %v740_v5 = vpop.f32.mrf.mxu2  ;;  %v1522_v22 = vld [vmem:[%s1753_s9 + $0x98] sm:$0xff]  ;;  %s1490_s9 = sshll.u32 %s3056_s13, 8 }
 0x115   : > { %s2967_s28 = scalar_lea.vmem %s3045_s3, %s1490_s9 }
 0x116   : > { %v741_v25 = vadd.f32 %v740_v5, %v700_v3  ;;  %1026 = vmatmul.f32.gmra.mxu1 %v1511_v28 }
 0x117   : > { %v781_v29 = vpop.f32.mrf.mxu3 }
 0x118   : > { %v2598_v33 = vadd.f32 %v781_v29, %v741_v25  ;;  %v661_v35 = vpop.f32.mrf.mxu0 }
 0x119   : > { %v662_v36 = vadd.f32 %v661_v35, %v2578_v46  ;;  %1070 = vmatmul.f32.gmra.mxu2 %v1512_v39 }
 0x11a   : > { %v1144_v37 = vadd.f32 %v2598_v33, %v2591_v16 }
 0x11b   : > { %v702_v32 = vpop.f32.mrf.mxu1  ;;  %988 = vmatmul.f32.gmra.mxu0 %v1513_v34 }
 0x11c   : > { %v703_v40 = vadd.f32 %v702_v32, %v662_v36  ;;  %1111 = vmatmul.f32.gmra.mxu3 %v1514_v62  ;;  %v743_v45 = vpop.f32.mrf.mxu2 }
 0x11e   : > { %v744_v38 = vadd.f32 %v743_v45, %v703_v40  ;;  %1029 = vmatmul.f32.gmra.mxu1 %v1515_v49 }
 0x11f   : > { %v784_v1 = vpop.f32.mrf.mxu3 }
 0x120   : > { %v2607_v2 = vadd.f32 %v784_v1, %v744_v38  ;;  %v664_v51 = vpop.f32.mrf.mxu0 }
 0x121   : > { %v665_v52 = vadd.f32 %v664_v51, %v2578_v46  ;;  %1073 = vmatmul.f32.gmra.mxu2 %v1516_v57  ;;  %v1137_v57 = vrot.slane %v2585_v48, 4 }
 0x122   : > { %v1145_v27 = vadd.f32 %v1144_v37, %v2607_v2 }
 0x123   : > { %v705_v6 = vpop.f32.mrf.mxu1  ;;  %991 = vmatmul.f32.gmra.mxu0 %v1517_v50  ;;  %v1138_v50 = vadd.f32 %v1137_v57, %v2585_v48 }
 0x124   : > { %v706_v58 = vadd.f32 %v705_v6, %v665_v52  ;;  %1114 = vmatmul.f32.gmra.mxu3 %v1518_v59  ;;  %v746_v14 = vpop.f32.mrf.mxu2 }
 0x126   : > { %v747_v61 = vadd.f32 %v746_v14, %v706_v58  ;;  %1032 = vmatmul.f32.gmra.mxu1 %v1519_v54 }
 0x127   : > { %v787_v4 = vpop.f32.mrf.mxu3 }
 0x128   : > { %v2615_v8 = vadd.f32 %v787_v4, %v747_v61  ;;  %v667_v11 = vpop.f32.mrf.mxu0  ;;  %v1139_v61 = vrot.slane %v1138_v50, 2 }
 0x129   : > { %v668_v63 = vadd.f32 %v667_v11, %v2578_v46  ;;  %1076 = vmatmul.f32.gmra.mxu2 %v1520_v13 }
 0x12a   : > { %v1146_v18 = vadd.f32 %v1145_v27, %v2615_v8 }
 0x12b   : > { %v708_v17 = vpop.f32.mrf.mxu1  ;;  %994 = vmatmul.f32.gmra.mxu0 %v1521_v23 }
 0x12c   : > { %v709_v3 = vadd.f32 %v708_v17, %v668_v63  ;;  %1117 = vmatmul.f32.gmra.mxu3 %v1522_v22  ;;  %v749_v5 = vpop.f32.mrf.mxu2  ;;  %v1140_v63 = vadd.f32 %v1139_v61, %v1138_v50 }
 0x12e   : > { %v750_v25 = vadd.f32 %v749_v5, %v709_v3  ;;  %1035 = vmatmul.f32.gmra.mxu1 %v2002_v10  ;;  %v1141_v22 = vrot.slane %v1140_v63, 1 }
 0x12f   : > { %v790_v28 = vpop.f32.mrf.mxu3 }
 0x130   : > { %v2623_v29 = vadd.f32 %v790_v28, %v750_v25  ;;  %v670_v35 = vpop.f32.mrf.mxu0 }
 0x131   : > { %v671_v36 = vadd.f32 %v670_v35, %v2578_v46  ;;  %1079 = vmatmul.f32.gmra.mxu2 %v2028_v21 }
 0x132   : > { %v1147_v37 = vadd.f32 %v1146_v18, %v2623_v29 }
 0x133   : > { %v711_v39 = vpop.f32.mrf.mxu1  ;;  %997 = vmatmul.f32.gmra.mxu0 %v2034_v24 }
 0x134   : > { %v712_v32 = vadd.f32 %v711_v39, %v671_v36  ;;  %1120 = vmatmul.f32.gmra.mxu3 %v2040_v26  ;;  %v752_v34 = vpop.f32.mrf.mxu2 }
 0x136   : > { %v753_v40 = vadd.f32 %v752_v34, %v712_v32  ;;  %1038 = vmatmul.f32.gmra.mxu1 %v2054_v31 }
 0x137   : > { %v793_v10 = vpop.f32.mrf.mxu3 }
 0x138   : > { %v2631_v62 = vadd.f32 %v793_v10, %v753_v40  ;;  %v673_v45 = vpop.f32.mrf.mxu0 }
 0x139   : > { %v674_v38 = vadd.f32 %v673_v45, %v2578_v46  ;;  %1082 = vmatmul.f32.gmra.mxu2 %v2080_v42 }
 0x13a   : > { %v1148_v49 = vadd.f32 %v1147_v37, %v2631_v62  ;;  %v1142_v37 = vadd.f32 %v1141_v22, %v1140_v63 }
 0x13b   : > { %v714_v21 = vpop.f32.mrf.mxu1  ;;  %1000 = vmatmul.f32.gmra.mxu0 %v2086_v44 }
 0x13c   : > { %v715_v24 = vadd.f32 %v714_v21, %v674_v38  ;;  %1123 = vmatmul.f32.gmra.mxu3 %v2092_v47  ;;  %v755_v26 = vpop.f32.mrf.mxu2 }
 0x13e   : > { %v756_v1 = vadd.f32 %v755_v26, %v715_v24  ;;  %1041 = vmatmul.f32.gmra.mxu1 %v2106_v53  ;;  %v2648_v53 = vperm.slane %v2379_v12, 2 }
 0x13f   : > { %v796_v31 = vpop.f32.mrf.mxu3 }
 0x140   : > { %v2639_v51 = vadd.f32 %v796_v31, %v756_v1  ;;  %v676_v52 = vpop.f32.mrf.mxu0 }
 0x141   : > { %v677_v27 = vadd.f32 %v676_v52, %v2578_v46  ;;  %1085 = vmatmul.f32.gmra.mxu2 %v2132_v0 }
 0x142   : > { %v1149_v42 = vadd.f32 %v1148_v49, %v2639_v51 }
 0x143   : > { %v717_v44 = vpop.f32.mrf.mxu1  ;;  %1003 = vmatmul.f32.gmra.mxu0 %v2138_v7 }
 0x144   : > { %v718_v47 = vadd.f32 %v717_v44, %v677_v27  ;;  %1126 = vmatmul.f32.gmra.mxu3 %v2144_v9  ;;  %v758_v6 = vpop.f32.mrf.mxu2 }
 0x146   : > { %v759_v58 = vadd.f32 %v758_v6, %v718_v47  ;;  %1044 = vmatmul.f32.gmra.mxu1 %v2158_v15 }
 0x147   : > { %v799_v46 = vpop.f32.mrf.mxu3 }
 0x148   : > { %v2652_v59 = vadd.f32 %v799_v46, %v759_v58  ;;  %v819_v14 = vpop.f32.mrf.mxu0 }
 0x149   : > { %v820_v0 = vadd.f32 %v819_v14, %v2648_v53 }
 0x14a   : > { %v1150_v7 = vadd.f32 %v1149_v42, %v2652_v59 }
 0x14b   : > { %v860_v54 = vpop.f32.mrf.mxu1 }
 0x14c   : > { %v1151_v9 = vrot.slane %v1150_v7, 4  ;;  %v861_v4 = vadd.f32 %v860_v54, %v820_v0  ;;  %v901_v11 = vpop.f32.mrf.mxu2 }
 0x14e   : > { %v1152_v18 = vadd.f32 %v1151_v9, %v1150_v7  ;;  %v902_v13 = vadd.f32 %v901_v11, %v861_v4 }
 0x14f   : > { %v942_v48 = vpop.f32.mrf.mxu3 }
 0x150   : > { %v1153_v17 = vrot.slane %v1152_v18, 2  ;;  %v2656_v23 = vadd.f32 %v942_v48, %v902_v13  ;;  %v822_v15 = vpop.f32.mrf.mxu0 }
 0x151   : > { %v823_v3 = vadd.f32 %v822_v15, %v2648_v53 }
 0x152   : > { %v1154_v5 = vadd.f32 %v1153_v17, %v1152_v18 }
 0x153   : > { %v863_v25 = vpop.f32.mrf.mxu1 }
 0x154   : > { %v1155_v28 = vrot.slane %v1154_v5, 1  ;;  %v864_v35 = vadd.f32 %v863_v25, %v823_v3  ;;  %v904_v36 = vpop.f32.mrf.mxu2 }
 0x156   : > { %v1156_v39 = vadd.f32 %v1155_v28, %v1154_v5  ;;  %v905_v32 = vadd.f32 %v904_v36, %v864_v35 }
 0x157   : > { %v945_v34 = vpop.f32.mrf.mxu3 }
 0x158   : > { %v2659_v40 = vadd.f32 %v1156_v39, %v1142_v37  ;;  %v2661_v10 = vadd.f32 %v945_v34, %v905_v32  ;;  %v825_v45 = vpop.f32.mrf.mxu0 }
 0x159   : > { %v826_v38 = vadd.f32 %v825_v45, %v2648_v53 }
 0x15a   : > { %v1158_v49 = vadd.f32 %v2661_v10, %v2656_v23 }
 0x15b   : > { %v866_v21 = vpop.f32.mrf.mxu1 }
 0x15c   : > { %v867_v24 = vadd.f32 %v866_v21, %v826_v38  ;;  %v907_v26 = vpop.f32.mrf.mxu2 }
 0x15e   : > { %v908_v1 = vadd.f32 %v907_v26, %v867_v24 }
 0x15f   : > { %v948_v31 = vpop.f32.mrf.mxu3 }
 0x160   : > { %v2666_v52 = vadd.f32 %v948_v31, %v908_v1  ;;  %v828_v27 = vpop.f32.mrf.mxu0 }
 0x161   : > { %v829_v57 = vadd.f32 %v828_v27, %v2648_v53 }
 0x162   : > { %v1159_v42 = vadd.f32 %v1158_v49, %v2666_v52 }
 0x163   : > { %v869_v44 = vpop.f32.mrf.mxu1 }
 0x164   : > { %v870_v47 = vadd.f32 %v869_v44, %v829_v57  ;;  %v910_v6 = vpop.f32.mrf.mxu2 }
 0x166   : > { %v911_v50 = vadd.f32 %v910_v6, %v870_v47 }
 0x167   : > { %v951_v58 = vpop.f32.mrf.mxu3 }
 0x168   : > { %v2670_v46 = vadd.f32 %v951_v58, %v911_v50  ;;  %v831_v14 = vpop.f32.mrf.mxu0 }
 0x169   : > { %v832_v0 = vadd.f32 %v831_v14, %v2648_v53 }
 0x16a   : > { %v1160_v61 = vadd.f32 %v1159_v42, %v2670_v46 }
 0x16b   : > { %v872_v7 = vpop.f32.mrf.mxu1 }
 0x16c   : > { %v873_v54 = vadd.f32 %v872_v7, %v832_v0  ;;  %v913_v9 = vpop.f32.mrf.mxu2 }
 0x16e   : > { %v914_v4 = vadd.f32 %v913_v9, %v873_v54 }
 0x16f   : > { %v954_v11 = vpop.f32.mrf.mxu3 }
 0x170   : > { %v2674_v63 = vadd.f32 %v954_v11, %v914_v4  ;;  %v834_v18 = vpop.f32.mrf.mxu0 }
 0x171   : > { %v835_v13 = vadd.f32 %v834_v18, %v2648_v53 }
 0x172   : > { %v1161_v48 = vadd.f32 %v1160_v61, %v2674_v63 }
 0x173   : > { %v875_v17 = vpop.f32.mrf.mxu1 }
 0x174   : > { %v876_v15 = vadd.f32 %v875_v17, %v835_v13  ;;  %v916_v3 = vpop.f32.mrf.mxu2 }
 0x176   : > { %v917_v22 = vadd.f32 %v916_v3, %v876_v15 }
 0x177   : > { %v957_v5 = vpop.f32.mrf.mxu3 }
 0x178   : > { %v2678_v25 = vadd.f32 %v957_v5, %v917_v22  ;;  %v837_v28 = vpop.f32.mrf.mxu0 }
 0x179   : > { %v838_v35 = vadd.f32 %v837_v28, %v2648_v53 }
 0x17a   : > { %v1162_v36 = vadd.f32 %v1161_v48, %v2678_v25 }
 0x17b   : > { %v878_v37 = vpop.f32.mrf.mxu1 }
 0x17c   : > { %v879_v39 = vadd.f32 %v878_v37, %v838_v35  ;;  %v919_v32 = vpop.f32.mrf.mxu2 }
 0x17e   : > { %v920_v34 = vadd.f32 %v919_v32, %v879_v39  ;;  %v469_v39 = vperm.slane %v2379_v12, 3 }
 0x17f   : > { %v960_v45 = vpop.f32.mrf.mxu3 }
 0x180   : > { %v2682_v38 = vadd.f32 %v960_v45, %v920_v34  ;;  %v840_v49 = vpop.f32.mrf.mxu0 }
 0x181   : > { %v841_v21 = vadd.f32 %v840_v49, %v2648_v53 }
 0x182   : > { %3049 = vst [vmem:[#allocation2_spill] sm:$0xff] %v2682_v38  ;;  %v1163_v24 = vadd.f32 %v1162_v36, %v2682_v38 }
 0x183   : > { %v881_v26 = vpop.f32.mrf.mxu1 }
 0x184   : > { %v882_v1 = vadd.f32 %v881_v26, %v841_v21  ;;  %v922_v31 = vpop.f32.mrf.mxu2 }
 0x186   : > { %v923_v27 = vadd.f32 %v922_v31, %v882_v1 }
 0x187   : > { %v963_v57 = vpop.f32.mrf.mxu3 }
 0x188   : > { %v2686_v42 = vadd.f32 %v963_v57, %v923_v27  ;;  %v983_v44 = vpop.f32.mrf.mxu0 }
 0x189   : > { %v984_v49 = vadd.f32 %v983_v44, %v469_v39 }
 0x18a   : > { %3050 = vst [vmem:[#allocation3_spill] sm:$0xff] %v2686_v42  ;;  %v1164_v47 = vadd.f32 %v1163_v24, %v2686_v42 }
 0x18b   : > { %v1024_v6 = vpop.f32.mrf.mxu1 }
 0x18c   : > { %v1165_v50 = vrot.slane %v1164_v47, 4  ;;  %v1065_v58 = vpop.f32.mrf.mxu2  ;;  %v1025_v31 = vadd.f32 %v1024_v6, %v984_v49 }
 0x18e   : > { %v1166_v14 = vadd.f32 %v1165_v50, %v1164_v47 }
 0x18f   : > { %v1106_v0 = vpop.f32.mrf.mxu3 }
 0x190   : > { %v1167_v61 = vrot.slane %v1166_v14, 2  ;;  %v986_v7 = vpop.f32.mrf.mxu0 }
 0x191   : > { %v987_v34 = vadd.f32 %v986_v7, %v469_v39 }
 0x192   : > { %v1168_v53 = vadd.f32 %v1167_v61, %v1166_v14 }
 0x193   : > { %v1027_v54 = vpop.f32.mrf.mxu1 }
 0x194   : > { %v1169_v9 = vrot.slane %v1168_v53, 1  ;;  %v1068_v4 = vpop.f32.mrf.mxu2 }
 0x196   : > { %v1170_v11 = vadd.f32 %v1169_v9, %v1168_v53  ;;  %v1066_v9 = vadd.f32 %v1065_v58, %v1025_v31 }
 0x197   : > { %v1109_v18 = vpop.f32.mrf.mxu3 }
 0x198   : > { %v2690_v13 = vadd.f32 %v1170_v11, %v2659_v40  ;;  %v989_v48 = vpop.f32.mrf.mxu0  ;;  %v1028_v40 = vadd.f32 %v1027_v54, %v987_v34 }
 0x199   : > { %v990_v21 = vadd.f32 %v989_v48, %v469_v39 }
 0x19a   : > { %v1069_v50 = vadd.f32 %v1068_v4, %v1028_v40 }
 0x19b   : > { %v1030_v17 = vpop.f32.mrf.mxu1 }
 0x19c   : > { %v1071_v15 = vpop.f32.mrf.mxu2  ;;  %v1031_v27 = vadd.f32 %v1030_v17, %v990_v21  ;;  %v2693_v38 = vadd.f32 %v1109_v18, %v1069_v50 }
 0x19e   : > { %v1072_v11 = vadd.f32 %v1071_v15, %v1031_v27 }
 0x19f   : > { %v1112_v3 = vpop.f32.mrf.mxu3 }
 0x1a0   : > { %v992_v22 = vpop.f32.mrf.mxu0  ;;  %v2697_v6 = vadd.f32 %v1112_v3, %v1072_v11 }
 0x1a1   : > { %v993_v26 = vadd.f32 %v992_v22, %v469_v39  ;;  %v2695_v22 = vadd.f32 %v1106_v0, %v1066_v9 }
 0x1a3   : > { %v1033_v5 = vpop.f32.mrf.mxu1 }
 0x1a4   : > { %v1074_v28 = vpop.f32.mrf.mxu2  ;;  %v1034_v14 = vadd.f32 %v1033_v5, %v993_v26  ;;  %v1172_v5 = vadd.f32 %v2693_v38, %v2695_v22 }
 0x1a6   : > { %v1075_v44 = vadd.f32 %v1074_v28, %v1034_v14  ;;  %v1173_v18 = vadd.f32 %v1172_v5, %v2697_v6 }
 0x1a7   : > { %v1115_v35 = vpop.f32.mrf.mxu3 }
 0x1a8   : > { %v995_v36 = vpop.f32.mrf.mxu0  ;;  %v2701_v58 = vadd.f32 %v1115_v35, %v1075_v44 }
 0x1a9   : > { %v996_v57 = vadd.f32 %v995_v36, %v469_v39 }
 0x1ab   : > { %v1036_v37 = vpop.f32.mrf.mxu1 }
 0x1ac   : > { %v1077_v32 = vpop.f32.mrf.mxu2  ;;  %v1037_v12 = vadd.f32 %v1036_v37, %v996_v57  ;;  %v1531_v37 = vmov 256.0  }
 0x1ad   : > { %1500 = vrcp.f32 %v1531_v37 }
 0x1ae   : > { %v1078_v17 = vadd.f32 %v1077_v32, %v1037_v12  ;;  %v1174_v32 = vadd.f32 %v1173_v18, %v2701_v58 }
 0x1af   : > { %v1118_v45 = vpop.f32.mrf.mxu3 }
 0x1b0   : > { %v998_v24 = vpop.f32.mrf.mxu0  ;;  %v2704_v28 = vadd.f32 %v1118_v45, %v1078_v17 }
 0x1b1   : > { %v999_v61 = vadd.f32 %v998_v24, %v469_v39 }
 0x1b2   : > { %v1175_v35 = vadd.f32 %v1174_v32, %v2704_v28 }
 0x1b3   : > { %v1039_v1 = vpop.f32.mrf.mxu1  ;;  %v1501_v24 = vpop.eup %1500 }
 0x1b4   : > { %v1080_v47 = vpop.f32.mrf.mxu2  ;;  %v1040_v48 = vadd.f32 %v1039_v1, %v999_v61  ;;  %v1187_v57 = vmul.f32 256.0, %v1501_v24  ;;  %vm1191_vm0 = vweird.f32 %v1501_v24 }
 0x1b6   : > { %v1081_v15 = vadd.f32 %v1080_v47, %v1040_v48  ;;  %v1188_v14 = vsub.f32 1.0, %v1187_v57 }
 0x1b7   : > { %v1121_v53 = vpop.f32.mrf.mxu3 }
 0x1b8   : > { %v1001_v42 = vpop.f32.mrf.mxu0  ;;  %v2707_v49 = vadd.f32 %v1121_v53, %v1081_v15  ;;  %v1189_v9 = vmul.f32 %v1501_v24, %v1188_v14 }
 0x1b9   : > { %v1002_v7 = vadd.f32 %v1001_v42, %v469_v39 }
 0x1ba   : > { %v1176_v31 = vadd.f32 %v1175_v35, %v2707_v49 }
 0x1bb   : > { %v1042_v54 = vpop.f32.mrf.mxu1 }
 0x1bc   : > { %v1043_v36 = vadd.f32 %v1042_v54, %v1002_v7  ;;  %v1083_v4 = vpop.f32.mrf.mxu2  ;;  %v1190_v7 = vadd.f32 %v1501_v24, %v1189_v9 }
 0x1be   : > { %v1084_v0 = vadd.f32 %v1083_v4, %v1043_v36  ;;  %v2717_v54 = vsel %vm1191_vm0, %v1501_v24, %v1190_v7 }
 0x1bf   : > { %v1124_v42 = vpop.f32.mrf.mxu3 }
 0x1c0   : > { %v1004_v34 = vpop.f32.mrf.mxu0  ;;  %v2710_v40 = vadd.f32 %v1124_v42, %v1084_v0 }
 0x1c1   : > { %v1005_v3 = vadd.f32 %v1004_v34, %v469_v39 }
 0x1c2   : > { %v1177_v47 = vadd.f32 %v1176_v31, %v2710_v40 }
 0x1c3   : > { %v1045_v21 = vpop.f32.mrf.mxu1 }
 0x1c4   : > { %v1046_v26 = vadd.f32 %v1045_v21, %v1005_v3  ;;  %v1086_v1 = vpop.f32.mrf.mxu2 }
 0x1c6   : > { %v1087_v27 = vadd.f32 %v1086_v1, %v1046_v26 }
 0x1c7   : > { %v1127_v45 = vpop.f32.mrf.mxu3 }
 0x1c8   : > { %v2714_v39 = vadd.f32 %v1127_v45, %v1087_v27 }
 0x1ca   : > { %v1178_v50 = vadd.f32 %v1177_v47, %v2714_v39 }
 0x1cc   : > { %v1179_v61 = vrot.slane %v1178_v50, 4 }
 0x1ce   : > { %v1180_v53 = vadd.f32 %v1179_v61, %v1178_v50 }
 0x1d0   : > { %v1181_v11 = vrot.slane %v1180_v53, 2 }
 0x1d2   : > { %v1182_v12 = vadd.f32 %v1181_v11, %v1180_v53 }
 0x1d4   : > { %v1183_v44 = vrot.slane %v1182_v12, 1 }
 0x1d6   : > { %v1184_v48 = vadd.f32 %v1183_v44, %v1182_v12 }
 0x1d8   : > { %v1185_v17 = vadd.f32 %v1184_v48, %v2690_v13 }
 0x1da   : > { %v2721_v36 = vmul.f32 %v2717_v54, %v1185_v17 }
 0x1dc   : > { %v2725_v4 = vsub.f32 %v2441_v55, %v2721_v36  ;;  %v2729_v5 = vsub.f32 %v2472_v19, %v2721_v36  ;;  %v2733_v15 = vsub.f32 %v2505_v41, %v2721_v36  ;;  %v2737_v37 = vsub.f32 %v2537_v60, %v2721_v36 }
 0x1dd   : > { %v2741_v13 = vsub.f32 %v2554_v20, %v2721_v36  ;;  %v2745_v55 = vsub.f32 %v2562_v30, %v2721_v36  ;;  %v2749_v19 = vsub.f32 %v2570_v43, %v2721_v36  ;;  %v2753_v41 = vsub.f32 %v2581_v56, %v2721_v36 }
 0x1de   : > { %v1202_v60 = vmul.f32 %v2725_v4, %v2725_v4  ;;  %v1203_v42 = vmul.f32 %v2729_v5, %v2729_v5  ;;  %v1204_v20 = vmul.f32 %v2733_v15, %v2733_v15  ;;  %v1205_v30 = vmul.f32 %v2737_v37, %v2737_v37 }
 0x1df   : > { %v2765_v43 = vsub.f32 %v2591_v16, %v2721_v36  ;;  %v2769_v56 = vsub.f32 %v2598_v33, %v2721_v36  ;;  %v2773_v0 = vsub.f32 %v2607_v2, %v2721_v36  ;;  %v2777_v34 = vsub.f32 %v2615_v8, %v2721_v36 }
 0x1e0   : > { %v1210_v18 = vadd.f32 %v1203_v42, %v1202_v60  ;;  %v2781_v3 = vsub.f32 %v2623_v29, %v2721_v36  ;;  %v2785_v16 = vsub.f32 %v2631_v62, %v2721_v36  ;;  %v2789_v33 = vsub.f32 %v2639_v51, %v2721_v36 }
 0x1e1   : > { %v2793_v2 = vsub.f32 %v2652_v59, %v2721_v36  ;;  %v1232_v8 = vmul.f32 %v2765_v43, %v2765_v43  ;;  %v1233_v29 = vmul.f32 %v2769_v56, %v2769_v56  ;;  %v1206_v21 = vmul.f32 %v2741_v13, %v2741_v13 }
 0x1e2   : > { %v1211_v32 = vadd.f32 %v1210_v18, %v1204_v20  ;;  %v1207_v62 = vmul.f32 %v2745_v55, %v2745_v55  ;;  %v1234_v51 = vmul.f32 %v2773_v0, %v2773_v0  ;;  %v1235_v59 = vmul.f32 %v2777_v34, %v2777_v34 }
 0x1e3   : > { %v1240_v35 = vadd.f32 %v1233_v29, %v1232_v8  ;;  %v2809_v26 = vsub.f32 %v2656_v23, %v2721_v36  ;;  %v2813_v1 = vsub.f32 %v2661_v10, %v2721_v36  ;;  %v2817_v31 = vsub.f32 %v2666_v52, %v2721_v36  ;;  %v3051_v10 = vld [vmem:[#allocation2_spill] sm:$0xff] }
 0x1e4   : > { %v1212_v24 = vadd.f32 %v1211_v32, %v1205_v30  ;;  %v2821_v27 = vsub.f32 %v2670_v46, %v2721_v36  ;;  %v2825_v47 = vsub.f32 %v2674_v63, %v2721_v36  ;;  %v2829_v23 = vsub.f32 %v2678_v25, %v2721_v36 }
 0x1e5   : > { %v1241_v57 = vadd.f32 %v1240_v35, %v1234_v51  ;;  %v2833_v50 = vsub.f32 %v3051_v10, %v2721_v36  ;;  %v1262_v52 = vmul.f32 %v2809_v26, %v2809_v26  ;;  %v1263_v46 = vmul.f32 %v2813_v1, %v2813_v1  ;;  %v3052_v51 = vld [vmem:[#allocation3_spill] sm:$0xff] }
 0x1e6   : > { %v1213_v45 = vadd.f32 %v1212_v24, %v1206_v21  ;;  %v1208_v14 = vmul.f32 %v2749_v19, %v2749_v19  ;;  %v1236_v63 = vmul.f32 %v2781_v3, %v2781_v3  ;;  %v1209_v25 = vmul.f32 %v2753_v41, %v2753_v41 }
 0x1e7   : > { %v1242_v53 = vadd.f32 %v1241_v57, %v1235_v59  ;;  %v1237_v9 = vmul.f32 %v2785_v16, %v2785_v16  ;;  %v1264_v11 = vmul.f32 %v2817_v31, %v2817_v31  ;;  %v1270_v44 = vadd.f32 %v1263_v46, %v1262_v52 }
 0x1e8   : > { %v1214_v61 = vadd.f32 %v1213_v45, %v1207_v62  ;;  %v2851_v48 = vsub.f32 %v2695_v22, %v2721_v36  ;;  %v1238_v17 = vmul.f32 %v2789_v33, %v2789_v33  ;;  %v2857_v60 = vsub.f32 %v2693_v38, %v2721_v36 }
 0x1e9   : > { %v1243_v7 = vadd.f32 %v1242_v53, %v1236_v63  ;;  %v1265_v30 = vmul.f32 %v2821_v27, %v2821_v27  ;;  %v1271_v18 = vadd.f32 %v1270_v44, %v1264_v11  ;;  %v1239_v32 = vmul.f32 %v2793_v2, %v2793_v2 }
 0x1ea   : > { %v1215_v12 = vadd.f32 %v1214_v61, %v1208_v14  ;;  %v2865_v22 = vsub.f32 %v2697_v6, %v2721_v36  ;;  %v1292_v8 = vmul.f32 %v2851_v48, %v2851_v48  ;;  %v1293_v38 = vmul.f32 %v2857_v60, %v2857_v60 }
 0x1eb   : > { %v1244_v20 = vadd.f32 %v1243_v7, %v1237_v9  ;;  %v1266_v62 = vmul.f32 %v2825_v47, %v2825_v47  ;;  %v1272_v24 = vadd.f32 %v1271_v18, %v1265_v30  ;;  %v2875_v59 = vsub.f32 %v3052_v51, %v2721_v36 }
 0x1ec   : > { %v1216_v42 = vadd.f32 %v1215_v12, %v1209_v25  ;;  %v2879_v6 = vsub.f32 %v2701_v58, %v2721_v36  ;;  %v1267_v57 = vmul.f32 %v2829_v23, %v2829_v23  ;;  %v2885_v52 = vsub.f32 %v2704_v28, %v2721_v36 }
 0x1ed   : > { %v1245_v21 = vadd.f32 %v1244_v20, %v1238_v17  ;;  %v1273_v10 = vadd.f32 %v1272_v24, %v1266_v62  ;;  %v1294_v46 = vmul.f32 %v2865_v22, %v2865_v22  ;;  %v1300_v14 = vadd.f32 %v1293_v38, %v1292_v8 }
 0x1ee   : > { %v1217_v29 = vrot.slane %v1216_v42, 4  ;;  %v1268_v58 = vmul.f32 %v2833_v50, %v2833_v50  ;;  %v2893_v25 = vsub.f32 %v2707_v49, %v2721_v36  ;;  %v1295_v9 = vmul.f32 %v2879_v6, %v2879_v6 }
 0x1ef   : > { %v1246_v45 = vadd.f32 %v1245_v21, %v1239_v32  ;;  %v1274_v53 = vadd.f32 %v1273_v10, %v1267_v57  ;;  %v1301_v11 = vadd.f32 %v1300_v14, %v1294_v46  ;;  %v1269_v7 = vmul.f32 %v2875_v59, %v2875_v59 }
 0x1f0   : > { %v1218_v35 = vadd.f32 %v1217_v29, %v1216_v42  ;;  %v2901_v17 = vsub.f32 %v2710_v40, %v2721_v36  ;;  %v1296_v42 = vmul.f32 %v2885_v52, %v2885_v52  ;;  %v2907_v32 = vsub.f32 %v2714_v39, %v2721_v36 }
 0x1f1   : > { %v1247_v63 = vrot.slane %v1246_v45, 4  ;;  %v1275_v44 = vadd.f32 %v1274_v53, %v1268_v58  ;;  %v1302_v20 = vadd.f32 %v1301_v11, %v1295_v9  ;;  %v1297_v8 = vmul.f32 %v2893_v25, %v2893_v25 }
 0x1f2   : > { %v1219_v61 = vrot.slane %v1218_v35, 2  ;;  %v1298_v40 = vmul.f32 %v2901_v17, %v2901_v17 }
 0x1f3   : > { %v1248_v12 = vadd.f32 %v1247_v63, %v1246_v45  ;;  %v1276_v18 = vadd.f32 %v1275_v44, %v1269_v7  ;;  %v1303_v38 = vadd.f32 %v1302_v20, %v1296_v42  ;;  %v1299_v45 = vmul.f32 %v2907_v32, %v2907_v32 }
 0x1f4   : > { %v1220_v28 = vadd.f32 %v1219_v61, %v1218_v35 }
 0x1f5   : > { %v1249_v30 = vrot.slane %v1248_v12, 2  ;;  %v1277_v21 = vrot.slane %v1276_v18, 4  ;;  %v1304_v62 = vadd.f32 %v1303_v38, %v1297_v8 }
 0x1f6   : > { %v1221_v49 = vrot.slane %v1220_v28, 1 }
 0x1f7   : > { %v1250_v29 = vadd.f32 %v1249_v30, %v1248_v12  ;;  %v1278_v35 = vadd.f32 %v1277_v21, %v1276_v18  ;;  %v1305_v57 = vadd.f32 %v1304_v62, %v1298_v40 }
 0x1f8   : > { %v1222_v24 = vadd.f32 %v1221_v49, %v1220_v28 }
 0x1f9   : > { %v1251_v51 = vrot.slane %v1250_v29, 1  ;;  %v1279_v39 = vrot.slane %v1278_v35, 2  ;;  %v1306_v36 = vadd.f32 %v1305_v57, %v1299_v45 }
 0x1fb   : > { %v1252_v10 = vadd.f32 %v1251_v51, %v1250_v29  ;;  %v1280_v14 = vadd.f32 %v1279_v39, %v1278_v35  ;;  %v1307_v61 = vrot.slane %v1306_v36, 4 }
 0x1fd   : > { %v1253_v46 = vadd.f32 %v1252_v10, %v1222_v24  ;;  %v1281_v63 = vrot.slane %v1280_v14, 1  ;;  %v1308_v58 = vadd.f32 %v1307_v61, %v1306_v36 }
 0x1ff   : > { %v1282_v53 = vadd.f32 %v1281_v63, %v1280_v14  ;;  %v1309_v9 = vrot.slane %v1308_v58, 2 }
 0x201   : > { %v1283_v11 = vadd.f32 %v1282_v53, %v1253_v46  ;;  %v1310_v12 = vadd.f32 %v1309_v9, %v1308_v58 }
 0x203   : > { %v1311_v28 = vrot.slane %v1310_v12, 1 }
 0x205   : > { %v1312_v7 = vadd.f32 %v1311_v28, %v1310_v12 }
 0x207   : > { %v1313_v44 = vadd.f32 %v1312_v7, %v1283_v11 }
 0x209   : > { %v1314_v42 = vmul.f32 %v1313_v44, %v2717_v54 }
 0x20b   : > { %v1315_v20 = vadd.f32 1e-05, %v1314_v42 }
 0x20d   : > { %1502 = vrsqrt.f32 %v1315_v20  ;;  %vm1322_vm2 = vweird.f32 %v1315_v20 }
 0x213   : > { %v1503_v49 = vpop.eup %1502 }
 0x214   : > { %v1317_v30 = vmul.f32 %v1503_v49, %v1315_v20  ;;  %vm1323_vm1 = vweird.f32 %v1503_v49 }
 0x215   : > { %vm1324_vm3 = vmor %vm1322_vm2, %vm1323_vm1 }
 0x216   : > { %v1318_v18 = vmul.f32 %v1503_v49, %v1317_v30 }
 0x218   : > { %v1319_v8 = vmul.f32 0.5, %v1318_v18 }
 0x21a   : > { %v1320_v38 = vsub.f32 1.5, %v1319_v8 }
 0x21c   : > { %v1321_v29 = vmul.f32 %v1503_v49, %v1320_v38 }
 0x21e   : > { %v2917_v21 = vsel %vm1324_vm3, %v1503_v49, %v1321_v29 }
 0x21f   : > { %v1326_v40 = vmul.f32 %v2917_v21, %v2725_v4  ;;  %v1327_v54 = vmul.f32 %v2917_v21, %v2729_v5  ;;  %v1328_v62 = vmul.f32 %v2917_v21, %v2733_v15  ;;  %v1329_v24 = vmul.f32 %v2917_v21, %v2737_v37 }
 0x220   : > { %v1334_v51 = vmul.f32 %v2917_v21, %v2765_v43  ;;  %v1335_v35 = vmul.f32 %v2917_v21, %v2769_v56  ;;  %v1336_v45 = vmul.f32 %v2917_v21, %v2773_v0  ;;  %v1342_v4 = vmul.f32 %v2917_v21, %v2809_v26 }
 0x221   : > { %v1343_v5 = vmul.f32 %v2917_v21, %v2813_v1  ;;  %v1344_v15 = vmul.f32 %v2917_v21, %v2817_v31  ;;  %v1345_v37 = vmul.f32 %v2917_v21, %v2821_v27  ;;  %v1346_v43 = vmul.f32 %v2917_v21, %v2825_v47 }
 0x222   : > { %v2946_v56 = vmul.f32 %v2917_v21, %v2829_v23  ;;  %v2950_v0 = vmul.f32 %v2917_v21, %v2833_v50  ;;  %v2954_v26 = vmul.f32 %v2917_v21, %v2875_v59  ;;  %v1350_v1 = vmul.f32 %v2917_v21, %v2851_v48 }
 0x223   : > { %v1351_v31 = vmul.f32 %v2917_v21, %v2857_v60  ;;  %v1352_v27 = vmul.f32 %v2917_v21, %v2865_v22  ;;  %v1353_v47 = vmul.f32 %v2917_v21, %v2879_v6  ;;  %v1354_v23 = vmul.f32 %v2917_v21, %v2885_v52 }
 0x224   : > { %v2973_v50 = vmul.f32 %v2917_v21, %v2893_v25  ;;  %v2977_v48 = vmul.f32 %v2917_v21, %v2901_v17  ;;  %v2981_v60 = vmul.f32 %v2917_v21, %v2907_v32  ;;  %v1358_v22 = vmax.f32 %v1326_v40, 0.0 }
 0x225   : > { %v1359_v59 = vmax.f32 %v1334_v51, 0.0  ;;  %v1360_v6 = vmax.f32 %v1342_v4, 0.0  ;;  %v1361_v57 = vmax.f32 %v1350_v1, 0.0  ;;  %v1362_v52 = vmax.f32 %v1327_v54, 0.0 }
 0x226   : > { %1390 = vst [vmem:[%s2967_s28] sm:$0xff] %v1358_v22  ;;  %v1363_v25 = vmax.f32 %v1335_v35, 0.0  ;;  %v1364_v10 = vmax.f32 %v1343_v5, 0.0  ;;  %v1365_v17 = vmax.f32 %v1351_v31, 0.0  ;;  %v1366_v39 = vmax.f32 %v1328_v62, 0.0 }
 0x227   : > { %1391 = vst [vmem:[%s2967_s28 + $0x8] sm:$0xff] %v1359_v59  ;;  %v1337_v32 = vmul.f32 %v2917_v21, %v2777_v34  ;;  %v1367_v36 = vmax.f32 %v1336_v45, 0.0  ;;  %v1368_v46 = vmax.f32 %v1344_v15, 0.0  ;;  %v1369_v14 = vmax.f32 %v1352_v27, 0.0 }
 0x228   : > { %1392 = vst [vmem:[%s2967_s28 + $0x10] sm:$0xff] %v1360_v6  ;;  %v1330_v61 = vmul.f32 %v2917_v21, %v2741_v13  ;;  %v1370_v63 = vmax.f32 %v1329_v24, 0.0  ;;  %v1338_v58 = vmul.f32 %v2917_v21, %v2781_v3  ;;  %v1372_v53 = vmax.f32 %v1345_v37, 0.0 }
 0x229   : > { %1393 = vst [vmem:[%s2967_s28 + $0x18] sm:$0xff] %v1361_v57  ;;  %v1371_v34 = vmax.f32 %v1337_v32, 0.0  ;;  %v1373_v9 = vmax.f32 %v1353_v47, 0.0  ;;  %v1331_v11 = vmul.f32 %v2917_v21, %v2745_v55  ;;  %v1339_v13 = vmul.f32 %v2917_v21, %v2785_v16 }
 0x22a   : > { %1394 = vst [vmem:[%s2967_s28 + $0x20] sm:$0xff] %v1362_v52  ;;  %v1374_v12 = vmax.f32 %v1330_v61, 0.0  ;;  %v1375_v3 = vmax.f32 %v1338_v58, 0.0  ;;  %v1376_v28 = vmax.f32 %v1346_v43, 0.0  ;;  %v1377_v7 = vmax.f32 %v1354_v23, 0.0 }
 0x22b   : > { %1395 = vst [vmem:[%s2967_s28 + $0x28] sm:$0xff] %v1363_v25  ;;  %v1332_v44 = vmul.f32 %v2917_v21, %v2749_v19  ;;  %v1378_v42 = vmax.f32 %v1331_v11, 0.0  ;;  %v1340_v55 = vmul.f32 %v2917_v21, %v2789_v33  ;;  %v1379_v16 = vmax.f32 %v1339_v13, 0.0 }
 0x22c   : > { %1396 = vst [vmem:[%s2967_s28 + $0x30] sm:$0xff] %v1364_v10  ;;  %v1380_v20 = vmax.f32 %v2946_v56, 0.0  ;;  %v1381_v49 = vmax.f32 %v2973_v50, 0.0  ;;  %v1333_v19 = vmul.f32 %v2917_v21, %v2753_v41  ;;  %v1341_v33 = vmul.f32 %v2917_v21, %v2793_v2 }
 0x22d   : > { %1397 = vst [vmem:[%s2967_s28 + $0x38] sm:$0xff] %v1365_v17  ;;  %v1382_v30 = vmax.f32 %v1332_v44, 0.0  ;;  %v1383_v18 = vmax.f32 %v1340_v55, 0.0  ;;  %v1384_v8 = vmax.f32 %v2950_v0, 0.0  ;;  %v1385_v38 = vmax.f32 %v2977_v48, 0.0 }
 0x22e   : > { %1398 = vst [vmem:[%s2967_s28 + $0x40] sm:$0xff] %v1366_v39  ;;  %v1386_v29 = vmax.f32 %v1333_v19, 0.0  ;;  %v1387_v41 = vmax.f32 %v1341_v33, 0.0  ;;  %v1388_v40 = vmax.f32 %v2954_v26, 0.0  ;;  %v1389_v2 = vmax.f32 %v2981_v60, 0.0 }
 0x22f   : > { %1399 = vst [vmem:[%s2967_s28 + $0x48] sm:$0xff] %v1367_v36 }
 0x230   : > { %1400 = vst [vmem:[%s2967_s28 + $0x50] sm:$0xff] %v1368_v46 }
 0x231   : > { %1401 = vst [vmem:[%s2967_s28 + $0x58] sm:$0xff] %v1369_v14 }
 0x232   : > { %1402 = vst [vmem:[%s2967_s28 + $0x60] sm:$0xff] %v1370_v63 }
 0x233   : > { %1403 = vst [vmem:[%s2967_s28 + $0x68] sm:$0xff] %v1371_v34 }
 0x234   : > { %1404 = vst [vmem:[%s2967_s28 + $0x70] sm:$0xff] %v1372_v53 }
 0x235   : > { %1405 = vst [vmem:[%s2967_s28 + $0x78] sm:$0xff] %v1373_v9 }
 0x236   : > { %1406 = vst [vmem:[%s2967_s28 + $0x80] sm:$0xff] %v1374_v12 }
 0x237   : > { %1407 = vst [vmem:[%s2967_s28 + $0x88] sm:$0xff] %v1375_v3 }
 0x238   : > { %1408 = vst [vmem:[%s2967_s28 + $0x90] sm:$0xff] %v1376_v28 }
 0x239   : > { %1409 = vst [vmem:[%s2967_s28 + $0x98] sm:$0xff] %v1377_v7 }
 0x23a   : > { %1410 = vst [vmem:[%s2967_s28 + $0xa0] sm:$0xff] %v1378_v42 }
 0x23b   : > { %1411 = vst [vmem:[%s2967_s28 + $0xa8] sm:$0xff] %v1379_v16 }
 0x23c   : > { %1412 = vst [vmem:[%s2967_s28 + $0xb0] sm:$0xff] %v1380_v20 }
 0x23d   : > { %1413 = vst [vmem:[%s2967_s28 + $0xb8] sm:$0xff] %v1381_v49 }
 0x23e   : > { %1414 = vst [vmem:[%s2967_s28 + $0xc0] sm:$0xff] %v1382_v30 }
 0x23f   : > { %1415 = vst [vmem:[%s2967_s28 + $0xc8] sm:$0xff] %v1383_v18 }
 0x240   : > { %1416 = vst [vmem:[%s2967_s28 + $0xd0] sm:$0xff] %v1384_v8 }
 0x241   : > { %1417 = vst [vmem:[%s2967_s28 + $0xd8] sm:$0xff] %v1385_v38 }
 0x242   : > { %1418 = vst [vmem:[%s2967_s28 + $0xe0] sm:$0xff] %v1386_v29 }
 0x243   : > { %1419 = vst [vmem:[%s2967_s28 + $0xe8] sm:$0xff] %v1387_v41 }
 0x244   : > { %1420 = vst [vmem:[%s2967_s28 + $0xf0] sm:$0xff] %v1388_v40 }
 0x245   : > { %1421 = vst [vmem:[%s2967_s28 + $0xf8] sm:$0xff] %v1389_v2 }
 0x246 PF: > { %s13_s12 = sadd.s32 1, %s1529_s12  }
 0x247   : > { %p10_p5 = scmp.ge.s32.totalorder %s13_s12, 4  }
 0x249   :  { %12 = sbr.rel (!%p10_p5) target bundleno = 1 (0x1), region = 62 }

// kernel: generator_forward.10
= control target key start
LH: loop header
LB: loop body
LE: loop exit
PB: predicated region body
PF: predicated region fallthrough
CT: control target
= control target key end

     0   :  { %s2136_s21 = smov 0   ;;  %s2952_s0 = inlined_call_operand.vmem [shape: f32[2,16,128], index: 0, kind: input, shape index: {}]   ;;  %s2953_s1 = inlined_call_operand.vmem [shape: f32[144,16], index: 1, kind: input, shape index: {}]   ;;  %s2954_s2 = inlined_call_operand.vmem [shape: f32[3,2,9,128], index: 2, kind: input, shape index: {}]   ;;  %s2955_s3 = inlined_call_operand.vmem [shape: f32[3,2,1,128], index: 3, kind: input, shape index: {}]   ;;  %s2956_s4 = inlined_call_operand.vmem [shape: f32[3,2,128,128], index: 4, kind: input, shape index: {}]   ;;  %s2957_s5 = inlined_call_operand.vmem [shape: f32[3,2,1,128], index: 5, kind: input, shape index: {}]   ;;  %s2958_s6 = inlined_call_operand.vmem [shape: f32[2,16,128], index: 6, kind: output, shape index: {}]  }
   0x1 LB: > { %s1802_s22 = sadd.s32 4294967295, %s2099_s21   ;;  %p1806_p0 = scmp.ge.s32.totalorder %s2099_s21, 1  ;;  %s2099_s21 = sphi %s2136_s21, %s16_s21  }
   0x2   : > { %p212_p1 = scmp.lt.s32.totalorder %s2099_s21, 3 }
   0x4   : > { %p213_p2 = pnand %p1806_p0, %p212_p1 }
   0x5   : > { %p242_p3 = scmp.lt.s32.totalorder (!%p213_p2), %s1802_s22, 1 }
   0x6   : > { %216 = sbr.rel (%p213_p2) target bundleno = 3141 (0xc45), region = 44 }
   0xb   : > { %s2960_s22 = smov (!%p242_p3, %s1802_s22), 1  ;;  %v2155_v0 = vld [vmem:[%s2953_s1] sm:$0xff]  ;;  %vm272_vm0 = vcmask 130048   ;;  %v2168_v3 = vld [vmem:[%s2953_s1 + $0x8] sm:$0xff]  ;;  %v2175_v4 = vld [vmem:[%s2953_s1 + $0x10] sm:$0xff] }
   0xc   : > { %s2021_s23 = sshll.u32 %s2960_s22, 4  ;;  %v2182_v5 = vld [vmem:[%s2953_s1 + $0x18] sm:$0xff]  ;;  %v2189_v6 = vld [vmem:[%s2953_s1 + $0x20] sm:$0xff]  ;;  %v2196_v7 = vld [vmem:[%s2953_s1 + $0x28] sm:$0xff] }
   0xd   : > { %s246_s26 = scalar_lea.vmem %s2952_s0, %s2021_s23  ;;  %v2203_v8 = vld [vmem:[%s2953_s1 + $0x30] sm:$0xff]  ;;  %v2210_v9 = vld [vmem:[%s2953_s1 + $0x38] sm:$0xff]  ;;  %v2217_v10 = vld [vmem:[%s2953_s1 + $0x40] sm:$0xff] }
   0xe   : > { %v2157_v1 = vld [vmem:[%s246_s26 + $0x8] sm:$0xff]  ;;  %v2159_v2 = vld [vmem:[%s246_s26] sm:$0xff]  ;;  %v2231_v12 = vld [vmem:[%s2953_s1 + $0x50] sm:$0xff]  ;;  %s251_s26 = scalar_lea.vmem %s2958_s6, %s2021_s23 }
   0xf   : > { %341 = vmatpush.msra.mxu0 %v2157_v1  ;;  %v2224_v11 = vld [vmem:[%s2953_s1 + $0x48] sm:$0xff]  ;;  %v2238_v13 = vld [vmem:[%s2953_s1 + $0x58] sm:$0xff]  ;;  %v2245_v14 = vld [vmem:[%s2953_s1 + $0x60] sm:$0xff] }
  0x10   : > { %v2252_v15 = vld [vmem:[%s2953_s1 + $0x68] sm:$0xff]  ;;  %v2259_v16 = vld [vmem:[%s2953_s1 + $0x70] sm:$0xff]  ;;  %v2266_v17 = vld [vmem:[%s2953_s1 + $0x78] sm:$0xff] }
  0x11   : > { %342 = vmatpush.msra.mxu0 %v2159_v2  ;;  %v2273_v19 = vld [vmem:[%s2953_s1 + $0x80] sm:$0xff]  ;;  %v2280_v21 = vld [vmem:[%s2953_s1 + $0x88] sm:$0xff]  ;;  %v497_v57 = vld [vmem:[%s2956_s4 + $0x78] sm:$0xff] }
  0x12   : > { %1811 = vmatmul.msk.f32.vlgmr.msra.gmra.mxu0 %vm272_vm0, %v2155_v0  ;;  %v2285_v22 = vld [vmem:[%s2954_s2] sm:$0xff]  ;;  %v496_v58 = vld [vmem:[%s2956_s4 + $0x70] sm:$0xff]  ;;  %502 = vmatpush.msra.mxu1 %v497_v57  ;;  %v495_v59 = vld [vmem:[%s2956_s4 + $0x68] sm:$0xff] }
  0x13   : > { %v400_v23 = vperm.slane %v2285_v22, 0  ;;  %v403_v24 = vperm.slane %v2285_v22, 1  ;;  %v408_v33 = vperm.slane %v2285_v22, 2  ;;  %v413_v40 = vperm.slane %v2285_v22, 3  ;;  %v494_v60 = vld [vmem:[%s2956_s4 + $0x60] sm:$0xff]  ;;  %v493_v62 = vld [vmem:[%s2956_s4 + $0x58] sm:$0xff] }
  0x14   : > { %v418_v47 = vperm.slane %v2285_v22, 4  ;;  %503 = vmatpush.msra.mxu1 %v496_v58  ;;  %v423_v63 = vperm.slane %v2285_v22, 5  ;;  %v482_v57 = vld [vmem:[%s2956_s4] sm:$0xff] }
  0x16   : > { %504 = vmatpush.msra.mxu1 %v495_v59 }
  0x18   : > { %505 = vmatpush.msra.mxu1 %v494_v60 }
  0x1a   : > { %1812 = vmatmul.msk.f32.gmra.mxu0 %vm272_vm0, %v2168_v3  ;;  %506 = vmatpush.msra.mxu1 %v493_v62 }
  0x22   : > { %1813 = vmatmul.msk.f32.gmra.mxu0 %vm272_vm0, %v2175_v4 }
  0x2a   : > { %1814 = vmatmul.msk.f32.gmra.mxu0 %vm272_vm0, %v2182_v5 }
  0x32   : > { %1815 = vmatmul.msk.f32.gmra.mxu0 %vm272_vm0, %v2189_v6 }
  0x3a   : > { %1816 = vmatmul.msk.f32.gmra.mxu0 %vm272_vm0, %v2196_v7 }
  0x42   : > { %1817 = vmatmul.msk.f32.gmra.mxu0 %vm272_vm0, %v2203_v8 }
  0x4a   : > { %1818 = vmatmul.msk.f32.gmra.mxu0 %vm272_vm0, %v2210_v9 }
  0x52   : > { %1819 = vmatmul.msk.f32.gmra.mxu0 %vm272_vm0, %v2217_v10 }
  0x5a   : > { %1820 = vmatmul.msk.f32.gmra.mxu0 %vm272_vm0, %v2224_v11 }
  0x62   : > { %1821 = vmatmul.msk.f32.gmra.mxu0 %vm272_vm0, %v2231_v12 }
  0x6a   : > { %1822 = vmatmul.msk.f32.gmra.mxu0 %vm272_vm0, %v2238_v13 }
  0x72   : > { %1823 = vmatmul.msk.f32.gmra.mxu0 %vm272_vm0, %v2245_v14 }
  0x7a   : > { %1824 = vmatmul.msk.f32.gmra.mxu0 %vm272_vm0, %v2252_v15 }
  0x82   : > { %1825 = vmatmul.msk.f32.gmra.mxu0 %vm272_vm0, %v2259_v16 }
  0x8a   : > { %1826 = vmatmul.msk.f32.gmra.mxu0 %vm272_vm0, %v2266_v17 }
  0x8f   : > { %v344_v18 = vpop.f32.mrf.mxu0 }
  0x90   : > { %v401_v26 = vmul.f32 %v400_v23, %v344_v18  ;;  %v492_v18 = vld [vmem:[%s2956_s4 + $0x50] sm:$0xff] }
  0x91   : > { %507 = vmatpush.msra.mxu1 %v492_v18 }
  0x92   : > { %1827 = vmatmul.msk.f32.gmra.mxu0 %vm272_vm0, %v2273_v19 }
  0x97   : > { %v347_v20 = vpop.f32.mrf.mxu0 }
  0x98   : > { %v402_v30 = vmul.f32 %v400_v23, %v347_v20  ;;  %v428_v20 = vperm.slane %v2285_v22, 6  ;;  %v491_v23 = vld [vmem:[%s2956_s4 + $0x48] sm:$0xff] }
  0x99   : > { %508 = vmatpush.msra.mxu1 %v491_v23 }
  0x9a   : > { %1828 = vmatmul.msk.f32.gmra.mxu0 %vm272_vm0, %v2280_v21 }
  0x9f   : > { %v350_v25 = vpop.f32.mrf.mxu0 }
  0xa0   : > { %v404_v27 = vmul.f32 %v403_v24, %v350_v25 }
  0xa2   : > { %v406_v28 = vadd.f32 %v404_v27, %v401_v26  ;;  %v433_v26 = vperm.slane %v2285_v22, 7  ;;  %v490_v27 = vld [vmem:[%s2956_s4 + $0x40] sm:$0xff] }
  0xa3   : > { %509 = vmatpush.msra.mxu1 %v490_v27 }
  0xa7   : > { %v353_v29 = vpop.f32.mrf.mxu0 }
  0xa8   : > { %v405_v31 = vmul.f32 %v403_v24, %v353_v29 }
  0xaa   : > { %v407_v32 = vadd.f32 %v405_v31, %v402_v30  ;;  %v2033_v31 = vld [vmem:[%s2954_s2 + $0x8] ss:$0 sm:$0xff] }
  0xaf   : > { %v356_v34 = vpop.f32.mrf.mxu0 }
  0xb0   : > { %v409_v35 = vmul.f32 %v408_v33, %v356_v34 }
  0xb2   : > { %v411_v36 = vadd.f32 %v409_v35, %v406_v28 }
  0xb7   : > { %v359_v37 = vpop.f32.mrf.mxu0 }
  0xb8   : > { %v410_v38 = vmul.f32 %v408_v33, %v359_v37 }
  0xba   : > { %v412_v39 = vadd.f32 %v410_v38, %v407_v32  ;;  %v489_v32 = vld [vmem:[%s2956_s4 + $0x38] sm:$0xff] }
  0xbb   : > { %510 = vmatpush.msra.mxu1 %v489_v32 }
  0xbf   : > { %v362_v41 = vpop.f32.mrf.mxu0 }
  0xc0   : > { %v414_v42 = vmul.f32 %v413_v40, %v362_v41  ;;  %v487_v41 = vld [vmem:[%s2956_s4 + $0x28] sm:$0xff] }
  0xc2   : > { %v416_v43 = vadd.f32 %v414_v42, %v411_v36  ;;  %v488_v36 = vld [vmem:[%s2956_s4 + $0x30] sm:$0xff] }
  0xc3   : > { %511 = vmatpush.msra.mxu1 %v488_v36 }
  0xc5   : > { %512 = vmatpush.msra.mxu1 %v487_v41 }
  0xc7   : > { %v365_v44 = vpop.f32.mrf.mxu0 }
  0xc8   : > { %v415_v45 = vmul.f32 %v413_v40, %v365_v44  ;;  %v486_v44 = vld [vmem:[%s2956_s4 + $0x20] sm:$0xff] }
  0xc9   : > { %513 = vmatpush.msra.mxu1 %v486_v44  ;;  %v2035_v44 = vld [vmem:[%s2957_s5] ss:$0 sm:$0xff] }
  0xca   : > { %v417_v46 = vadd.f32 %v415_v45, %v412_v39 }
  0xcf   : > { %v368_v48 = vpop.f32.mrf.mxu0 }
  0xd0   : > { %v419_v49 = vmul.f32 %v418_v47, %v368_v48  ;;  %v2034_v48 = vld [vmem:[%s2955_s3] ss:$0 sm:$0xff] }
  0xd2   : > { %v421_v50 = vadd.f32 %v419_v49, %v416_v43 }
  0xd7   : > { %v371_v51 = vpop.f32.mrf.mxu0 }
  0xd8   : > { %v420_v24 = vmul.f32 %v418_v47, %v371_v51 }
  0xda   : > { %v422_v33 = vadd.f32 %v420_v24, %v417_v46 }
  0xdf   : > { %v374_v52 = vpop.f32.mrf.mxu0 }
  0xe0   : > { %v424_v25 = vmul.f32 %v423_v63, %v374_v52  ;;  %v484_v52 = vld [vmem:[%s2956_s4 + $0x10] sm:$0xff] }
  0xe2   : > { %v426_v34 = vadd.f32 %v424_v25, %v421_v50  ;;  %v485_v50 = vld [vmem:[%s2956_s4 + $0x18] sm:$0xff] }
  0xe3   : > { %514 = vmatpush.msra.mxu1 %v485_v50 }
  0xe5   : > { %515 = vmatpush.msra.mxu1 %v484_v52 }
  0xe7   : > { %v377_v53 = vpop.f32.mrf.mxu0 }
  0xe8   : > { %v425_v29 = vmul.f32 %v423_v63, %v377_v53 }
  0xea   : > { %v427_v37 = vadd.f32 %v425_v29, %v422_v33 }
  0xef   : > { %v380_v54 = vpop.f32.mrf.mxu0 }
  0xf0   : > { %v429_v30 = vmul.f32 %v428_v20, %v380_v54 }
  0xf2   : > { %v431_v38 = vadd.f32 %v429_v30, %v426_v34 }
  0xf7   : > { %v383_v55 = vpop.f32.mrf.mxu0 }
  0xf8   : > { %v430_v22 = vmul.f32 %v428_v20, %v383_v55  ;;  %v483_v55 = vld [vmem:[%s2956_s4 + $0x8] sm:$0xff] }
  0xf9   : > { %516 = vmatpush.msra.mxu1 %v483_v55 }
  0xfa   : > { %v432_v42 = vadd.f32 %v430_v22, %v427_v37 }
  0xfb   : > { %517 = vmatpush.msra.mxu1 %v482_v57 }
  0xff   : > { %v386_v56 = vpop.f32.mrf.mxu0 }
 0x100   : > { %v434_v35 = vmul.f32 %v433_v26, %v386_v56 }
 0x102   : > { %v436_v43 = vadd.f32 %v434_v35, %v431_v38 }
 0x107   : > { %v389_v61 = vpop.f32.mrf.mxu0 }
 0x108   : > { %v435_v39 = vmul.f32 %v433_v26, %v389_v61 }
 0x10a   : > { %v437_v46 = vadd.f32 %v435_v39, %v432_v42 }
 0x10f   : > { %v392_v28 = vpop.f32.mrf.mxu0 }
 0x110   : > { %v439_v40 = vmul.f32 %v2033_v31, %v392_v28 }
 0x112   : > { %v441_v47 = vadd.f32 %v439_v40, %v436_v43 }
 0x114   : > { %v447_v53 = vadd.f32 %v2034_v48, %v441_v47 }
 0x117   : > { %v395_v45 = vpop.f32.mrf.mxu0 }
 0x118   : > { %v440_v49 = vmul.f32 %v2033_v31, %v395_v45 }
 0x11a   : > { %v442_v51 = vadd.f32 %v440_v49, %v437_v46 }
 0x11c   : > { %v448_v54 = vadd.f32 %v2034_v48, %v442_v51 }
 0x11e   : > { %v449_v56 = vadd.f32 %v448_v54, %v447_v53 }
 0x120   : > { %v450_v58 = vrot.slane %v449_v56, 4 }
 0x122   : > { %v451_v59 = vadd.f32 %v450_v58, %v449_v56 }
 0x124   : > { %v452_v60 = vrot.slane %v451_v59, 2 }
 0x126   : > { %v453_v61 = vadd.f32 %v452_v60, %v451_v59 }
 0x128   : > { %v454_v62 = vrot.slane %v453_v61, 1 }
 0x12a   : > { %v455_v63 = vadd.f32 %v454_v62, %v453_v61 }
 0x12c   : > { %v456_v18 = vmul.f32 0.0625, %v455_v63 }
 0x12e   : > { %v457_v20 = vsub.f32 %v447_v53, %v456_v18  ;;  %v458_v23 = vsub.f32 %v448_v54, %v456_v18 }
 0x130   : > { %v459_v24 = vmul.f32 %v457_v20, %v457_v20  ;;  %v460_v25 = vmul.f32 %v458_v23, %v458_v23 }
 0x132   : > { %v461_v26 = vadd.f32 %v460_v25, %v459_v24 }
 0x134   : > { %v462_v27 = vrot.slane %v461_v26, 4 }
 0x136   : > { %v463_v28 = vadd.f32 %v462_v27, %v461_v26 }
 0x138   : > { %v464_v29 = vrot.slane %v463_v28, 2 }
 0x13a   : > { %v465_v30 = vadd.f32 %v464_v29, %v463_v28 }
 0x13c   : > { %v466_v31 = vrot.slane %v465_v30, 1 }
 0x13e   : > { %v467_v32 = vadd.f32 %v466_v31, %v465_v30 }
 0x140   : > { %v468_v33 = vmul.f32 0.0625, %v467_v32 }
 0x142   : > { %v469_v34 = vadd.f32 1e-05, %v468_v33 }
 0x144   : > { %2051 = vrsqrt.f32 %v469_v34  ;;  %vm476_vm2 = vweird.f32 %v469_v34 }
 0x14a   : > { %v2052_v22 = vpop.eup %2051 }
 0x14b   : > { %v471_v35 = vmul.f32 %v2052_v22, %v469_v34  ;;  %vm477_vm1 = vweird.f32 %v2052_v22 }
 0x14c   : > { %vm478_vm3 = vmor %vm476_vm2, %vm477_vm1 }
 0x14d   : > { %v472_v36 = vmul.f32 %v2052_v22, %v471_v35 }
 0x14f   : > { %v473_v37 = vmul.f32 0.5, %v472_v36 }
 0x151   : > { %v474_v38 = vsub.f32 1.5, %v473_v37 }
 0x153   : > { %v475_v39 = vmul.f32 %v2052_v22, %v474_v38 }
 0x155   : > { %v479_v40 = vsel %vm478_vm3, %v2052_v22, %v475_v39 }
 0x156   : > { %v480_v41 = vmul.f32 %v479_v40, %v457_v20  ;;  %v481_v42 = vmul.f32 %v479_v40, %v458_v23 }
 0x158   : > { %518 = vmatmul.f32.vlgmr.msra.gmra.mxu1 %v480_v41 }
 0x160   : > { %521 = vmatmul.f32.gmra.mxu1 %v481_v42 }
 0x1d5   : > { %v519_v43 = vpop.f32.mrf.mxu1 }
 0x1d6   : > { %v520_v46 = vadd.f32 %v2035_v44, %v519_v43 }
 0x1dd   : > { %v522_v45 = vpop.f32.mrf.mxu1 }
 0x1de   : > { %v523_v47 = vadd.f32 %v2035_v44, %v522_v45 }
 0x1e0   : > { %v525_v48 = vadd.f32 %v523_v47, %v520_v46 }
 0x1e2   : > { %v526_v49 = vrot.slane %v525_v48, 4 }
 0x1e4   : > { %v527_v50 = vadd.f32 %v526_v49, %v525_v48 }
 0x1e6   : > { %v528_v51 = vrot.slane %v527_v50, 2 }
 0x1e8   : > { %v529_v52 = vadd.f32 %v528_v51, %v527_v50  ;;  %v1847_v51 = vld [vmem:[%s2954_s2 + $0x10] sm:$0xff] }
 0x1ea   : > { %v530_v53 = vrot.slane %v529_v52, 1 }
 0x1ec   : > { %v531_v54 = vadd.f32 %v530_v53, %v529_v52  ;;  %v637_v52 = vperm.slane %v1847_v51, 1  ;;  %v1865_v53 = vld [vmem:[%s2956_s4 + $0xf8] sm:$0xff] }
 0x1ed   : > { %739 = vmatpush.msra.mxu3 %v1865_v53  ;;  %v2036_v53 = vld [vmem:[%s2954_s2 + $0x18] ss:$0 sm:$0xff] }
 0x1ee   : > { %v532_v55 = vmul.f32 0.0625, %v531_v54  ;;  %v1864_v54 = vld [vmem:[%s2956_s4 + $0xf0] sm:$0xff] }
 0x1ef   : > { %740 = vmatpush.msra.mxu3 %v1864_v54 }
 0x1f0   : > { %v533_v56 = vsub.f32 %v520_v46, %v532_v55  ;;  %v534_v57 = vsub.f32 %v523_v47, %v532_v55  ;;  %v634_v55 = vperm.slane %v1847_v51, 0 }
 0x1f2   : > { %v535_v58 = vmul.f32 %v533_v56, %v533_v56  ;;  %v536_v59 = vmul.f32 %v534_v57, %v534_v57 }
 0x1f4   : > { %v537_v60 = vadd.f32 %v536_v59, %v535_v58  ;;  %v647_v59 = vperm.slane %v1847_v51, 3 }
 0x1f6   : > { %v538_v61 = vrot.slane %v537_v60, 4 }
 0x1f8   : > { %v539_v62 = vadd.f32 %v538_v61, %v537_v60  ;;  %v1862_v60 = vld [vmem:[%s2956_s4 + $0xe0] sm:$0xff] }
 0x1fa   : > { %v540_v63 = vrot.slane %v539_v62, 2 }
 0x1fc   : > { %v541_v18 = vadd.f32 %v540_v63, %v539_v62 }
 0x1fe   : > { %v542_v20 = vrot.slane %v541_v18, 1 }
 0x200   : > { %v543_v23 = vadd.f32 %v542_v20, %v541_v18  ;;  %v652_v20 = vperm.slane %v1847_v51, 4 }
 0x202   : > { %v544_v24 = vmul.f32 0.0625, %v543_v23  ;;  %v1861_v23 = vld [vmem:[%s2956_s4 + $0xd8] sm:$0xff] }
 0x204   : > { %v545_v25 = vadd.f32 1e-05, %v544_v24 }
 0x206   : > { %2053 = vrsqrt.f32 %v545_v25  ;;  %vm552_vm5 = vweird.f32 %v545_v25 }
 0x20c   : > { %v2054_v26 = vpop.eup %2053 }
 0x20d   : > { %v547_v27 = vmul.f32 %v2054_v26, %v545_v25  ;;  %vm553_vm4 = vweird.f32 %v2054_v26 }
 0x20e   : > { %vm554_vm6 = vmor %vm552_vm5, %vm553_vm4 }
 0x20f   : > { %v548_v28 = vmul.f32 %v2054_v26, %v547_v27 }
 0x211   : > { %v549_v29 = vmul.f32 0.5, %v548_v28  ;;  %v657_v28 = vperm.slane %v1847_v51, 5 }
 0x213   : > { %v550_v30 = vsub.f32 1.5, %v549_v29  ;;  %v1860_v29 = vld [vmem:[%s2956_s4 + $0xd0] sm:$0xff] }
 0x215   : > { %v551_v31 = vmul.f32 %v2054_v26, %v550_v30 }
 0x217   : > { %v555_v32 = vsel %vm554_vm6, %v2054_v26, %v551_v31 }
 0x218   : > { %v557_v33 = vmul.f32 %v555_v32, %v534_v57  ;;  %v556_v34 = vmul.f32 %v555_v32, %v533_v56  ;;  %v642_v56 = vperm.slane %v1847_v51, 2  ;;  %v1863_v57 = vld [vmem:[%s2956_s4 + $0xe8] sm:$0xff] }
 0x219   : > { %741 = vmatpush.msra.mxu3 %v1863_v57 }
 0x21a   : > { %v559_v22 = vmax.f32 %v557_v33, 0.0  ;;  %v558_v35 = vmax.f32 %v556_v34, 0.0  ;;  %v662_v34 = vperm.slane %v1847_v51, 6 }
 0x21b   : > { %742 = vmatpush.msra.mxu3 %v1862_v60 }
 0x21c   : > { %574 = vmatpush.msra.mxu2 %v559_v22  ;;  %v1859_v22 = vld [vmem:[%s2956_s4 + $0xc8] sm:$0xff] }
 0x21d   : > { %743 = vmatpush.msra.mxu3 %v1861_v23  ;;  %v1853_v23 = vld [vmem:[%s2956_s4 + $0x98] sm:$0xff] }
 0x21e   : > { %575 = vmatpush.msra.mxu2 %v558_v35 }
 0x21f   : > { %1829 = vmatmul.msk.f32.vlgmr.msra.gmra.mxu2 %vm272_vm0, %v2155_v0  ;;  %744 = vmatpush.msra.mxu3 %v1860_v29 }
 0x221   : > { %745 = vmatpush.msra.mxu3 %v1859_v22 }
 0x227   : > { %1830 = vmatmul.msk.f32.gmra.mxu2 %vm272_vm0, %v2168_v3 }
 0x22f   : > { %1831 = vmatmul.msk.f32.gmra.mxu2 %vm272_vm0, %v2175_v4 }
 0x237   : > { %1832 = vmatmul.msk.f32.gmra.mxu2 %vm272_vm0, %v2182_v5 }
 0x23f   : > { %1833 = vmatmul.msk.f32.gmra.mxu2 %vm272_vm0, %v2189_v6 }
 0x247   : > { %1834 = vmatmul.msk.f32.gmra.mxu2 %vm272_vm0, %v2196_v7 }
 0x24f   : > { %1835 = vmatmul.msk.f32.gmra.mxu2 %vm272_vm0, %v2203_v8 }
 0x257   : > { %1836 = vmatmul.msk.f32.gmra.mxu2 %vm272_vm0, %v2210_v9 }
 0x25f   : > { %1837 = vmatmul.msk.f32.gmra.mxu2 %vm272_vm0, %v2217_v10 }
 0x267   : > { %1838 = vmatmul.msk.f32.gmra.mxu2 %vm272_vm0, %v2224_v11 }
 0x26f   : > { %1839 = vmatmul.msk.f32.gmra.mxu2 %vm272_vm0, %v2231_v12 }
 0x277   : > { %1840 = vmatmul.msk.f32.gmra.mxu2 %vm272_vm0, %v2238_v13 }
 0x27f   : > { %1841 = vmatmul.msk.f32.gmra.mxu2 %vm272_vm0, %v2245_v14 }
 0x287   : > { %1842 = vmatmul.msk.f32.gmra.mxu2 %vm272_vm0, %v2252_v15 }
 0x28f   : > { %1843 = vmatmul.msk.f32.gmra.mxu2 %vm272_vm0, %v2259_v16 }
 0x297   : > { %1844 = vmatmul.msk.f32.gmra.mxu2 %vm272_vm0, %v2266_v17 }
 0x29f   : > { %1845 = vmatmul.msk.f32.gmra.mxu2 %vm272_vm0, %v2273_v19 }
 0x2a2   : > { %v577_v36 = vpop.f32.mrf.mxu2 }
 0x2a3   : > { %v635_v63 = vmul.f32 %v634_v55, %v577_v36 }
 0x2a7   : > { %1846 = vmatmul.msk.f32.gmra.mxu2 %vm272_vm0, %v2280_v21 }
 0x2aa   : > { %v580_v37 = vpop.f32.mrf.mxu2 }
 0x2ab   : > { %v636_v24 = vmul.f32 %v634_v55, %v580_v37 }
 0x2b2   : > { %v583_v38 = vpop.f32.mrf.mxu2 }
 0x2b3   : > { %v638_v58 = vmul.f32 %v637_v52, %v583_v38 }
 0x2b5   : > { %v640_v26 = vadd.f32 %v638_v58, %v635_v63 }
 0x2ba   : > { %v586_v39 = vpop.f32.mrf.mxu2 }
 0x2bb   : > { %v639_v61 = vmul.f32 %v637_v52, %v586_v39  ;;  %v667_v39 = vperm.slane %v1847_v51, 7 }
 0x2bd   : > { %v641_v30 = vadd.f32 %v639_v61, %v636_v24 }
 0x2c2   : > { %v589_v40 = vpop.f32.mrf.mxu2 }
 0x2c3   : > { %v643_v18 = vmul.f32 %v642_v56, %v589_v40  ;;  %v1858_v40 = vld [vmem:[%s2956_s4 + $0xc0] sm:$0xff] }
 0x2c4   : > { %746 = vmatpush.msra.mxu3 %v1858_v40 }
 0x2c5   : > { %v645_v31 = vadd.f32 %v643_v18, %v640_v26 }
 0x2ca   : > { %v592_v41 = vpop.f32.mrf.mxu2 }
 0x2cb   : > { %v644_v25 = vmul.f32 %v642_v56, %v592_v41  ;;  %v1856_v56 = vld [vmem:[%s2956_s4 + $0xb0] sm:$0xff] }
 0x2cd   : > { %v646_v35 = vadd.f32 %v644_v25, %v641_v30  ;;  %v1852_v25 = vld [vmem:[%s2956_s4 + $0x90] sm:$0xff]  ;;  %v1850_v30 = vld [vmem:[%s2956_s4 + $0x80] sm:$0xff] }
 0x2d2   : > { %v595_v42 = vpop.f32.mrf.mxu2 }
 0x2d3   : > { %v648_v27 = vmul.f32 %v647_v59, %v595_v42 }
 0x2d5   : > { %v650_v36 = vadd.f32 %v648_v27, %v645_v31 }
 0x2da   : > { %v598_v43 = vpop.f32.mrf.mxu2 }
 0x2db   : > { %v649_v32 = vmul.f32 %v647_v59, %v598_v43  ;;  %v1855_v59 = vld [vmem:[%s2956_s4 + $0xa8] sm:$0xff] }
 0x2dd   : > { %v651_v42 = vadd.f32 %v649_v32, %v646_v35 }
 0x2e2   : > { %v601_v44 = vpop.f32.mrf.mxu2 }
 0x2e3   : > { %v653_v33 = vmul.f32 %v652_v20, %v601_v44 }
 0x2e5   : > { %v655_v43 = vadd.f32 %v653_v33, %v650_v36 }
 0x2ea   : > { %v604_v45 = vpop.f32.mrf.mxu2 }
 0x2eb   : > { %v654_v37 = vmul.f32 %v652_v20, %v604_v45  ;;  %v1857_v45 = vld [vmem:[%s2956_s4 + $0xb8] sm:$0xff] }
 0x2ec   : > { %747 = vmatpush.msra.mxu3 %v1857_v45 }
 0x2ee   : > { %748 = vmatpush.msra.mxu3 %v1856_v56 }
 0x2f0   : > { %749 = vmatpush.msra.mxu3 %v1855_v59 }
 0x2f2   : > { %v607_v46 = vpop.f32.mrf.mxu2 }
 0x2f3   : > { %v658_v38 = vmul.f32 %v657_v28, %v607_v46  ;;  %v656_v46 = vadd.f32 %v654_v37, %v651_v42 }
 0x2f5   : > { %v660_v51 = vadd.f32 %v658_v38, %v655_v43 }
 0x2fa   : > { %v610_v47 = vpop.f32.mrf.mxu2 }
 0x2fb   : > { %v659_v44 = vmul.f32 %v657_v28, %v610_v47  ;;  %v1851_v28 = vld [vmem:[%s2956_s4 + $0x88] sm:$0xff] }
 0x2fd   : > { %v661_v47 = vadd.f32 %v659_v44, %v656_v46 }
 0x302   : > { %v613_v48 = vpop.f32.mrf.mxu2 }
 0x303   : > { %v663_v52 = vmul.f32 %v662_v34, %v613_v48 }
 0x305   : > { %v665_v48 = vadd.f32 %v663_v52, %v660_v51 }
 0x30a   : > { %v616_v49 = vpop.f32.mrf.mxu2 }
 0x30b   : > { %v664_v54 = vmul.f32 %v662_v34, %v616_v49  ;;  %v1854_v49 = vld [vmem:[%s2956_s4 + $0xa0] sm:$0xff] }
 0x30c   : > { %750 = vmatpush.msra.mxu3 %v1854_v49  ;;  %v2038_v49 = vld [vmem:[%s2957_s5 + $0x1] ss:$0 sm:$0xff] }
 0x30d   : > { %v666_v60 = vadd.f32 %v664_v54, %v661_v47 }
 0x30e   : > { %751 = vmatpush.msra.mxu3 %v1853_v23 }
 0x310   : > { %752 = vmatpush.msra.mxu3 %v1852_v25 }
 0x312   : > { %v619_v50 = vpop.f32.mrf.mxu2  ;;  %753 = vmatpush.msra.mxu3 %v1851_v28 }
 0x313   : > { %v668_v55 = vmul.f32 %v667_v39, %v619_v50 }
 0x314   : > { %754 = vmatpush.msra.mxu3 %v1850_v30 }
 0x315   : > { %v670_v61 = vadd.f32 %v668_v55, %v665_v48 }
 0x31a   : > { %v622_v62 = vpop.f32.mrf.mxu2 }
 0x31b   : > { %v669_v57 = vmul.f32 %v667_v39, %v622_v62  ;;  %v2037_v62 = vld [vmem:[%s2955_s3 + $0x1] ss:$0 sm:$0xff] }
 0x31d   : > { %v671_v63 = vadd.f32 %v669_v57, %v666_v60 }
 0x322   : > { %v625_v41 = vpop.f32.mrf.mxu2 }
 0x323   : > { %v673_v58 = vmul.f32 %v2036_v53, %v625_v41 }
 0x325   : > { %v675_v18 = vadd.f32 %v673_v58, %v670_v61 }
 0x327   : > { %v682_v26 = vadd.f32 %v2037_v62, %v675_v18 }
 0x32a   : > { %v628_v50 = vpop.f32.mrf.mxu2 }
 0x32b   : > { %v674_v20 = vmul.f32 %v2036_v53, %v628_v50 }
 0x32d   : > { %v676_v24 = vadd.f32 %v674_v20, %v671_v63 }
 0x32f   : > { %v683_v27 = vadd.f32 %v2037_v62, %v676_v24 }
 0x331   : > { %v684_v29 = vadd.f32 %v683_v27, %v682_v26 }
 0x333   : > { %v685_v31 = vrot.slane %v684_v29, 4 }
 0x335   : > { %v686_v32 = vadd.f32 %v685_v31, %v684_v29 }
 0x337   : > { %v687_v33 = vrot.slane %v686_v32, 2 }
 0x339   : > { %v688_v34 = vadd.f32 %v687_v33, %v686_v32 }
 0x33b   : > { %v689_v22 = vrot.slane %v688_v34, 1 }
 0x33d   : > { %v690_v35 = vadd.f32 %v689_v22, %v688_v34 }
 0x33f   : > { %v691_v36 = vmul.f32 0.0625, %v690_v35 }
 0x341   : > { %v692_v37 = vsub.f32 %v682_v26, %v691_v36  ;;  %v693_v38 = vsub.f32 %v683_v27, %v691_v36 }
 0x343   : > { %v694_v39 = vmul.f32 %v692_v37, %v692_v37  ;;  %v695_v40 = vmul.f32 %v693_v38, %v693_v38 }
 0x345   : > { %v696_v41 = vadd.f32 %v695_v40, %v694_v39 }
 0x347   : > { %v697_v42 = vrot.slane %v696_v41, 4 }
 0x349   : > { %v698_v43 = vadd.f32 %v697_v42, %v696_v41 }
 0x34b   : > { %v699_v44 = vrot.slane %v698_v43, 2 }
 0x34d   : > { %v700_v52 = vadd.f32 %v699_v44, %v698_v43 }
 0x34f   : > { %v701_v53 = vrot.slane %v700_v52, 1 }
 0x351   : > { %v702_v45 = vadd.f32 %v701_v53, %v700_v52 }
 0x353   : > { %v703_v46 = vmul.f32 0.0625, %v702_v45 }
 0x355   : > { %v704_v51 = vadd.f32 1e-05, %v703_v46 }
 0x357   : > { %2055 = vrsqrt.f32 %v704_v51  ;;  %vm711_vm8 = vweird.f32 %v704_v51 }
 0x35d   : > { %v2056_v54 = vpop.eup %2055 }
 0x35e   : > { %v706_v55 = vmul.f32 %v2056_v54, %v704_v51  ;;  %vm712_vm7 = vweird.f32 %v2056_v54 }
 0x35f   : > { %vm713_vm9 = vmor %vm711_vm8, %vm712_vm7 }
 0x360   : > { %v707_v56 = vmul.f32 %v2056_v54, %v706_v55 }
 0x362   : > { %v708_v47 = vmul.f32 0.5, %v707_v56 }
 0x364   : > { %v709_v48 = vsub.f32 1.5, %v708_v47 }
 0x366   : > { %v710_v57 = vmul.f32 %v2056_v54, %v709_v48 }
 0x368   : > { %v714_v58 = vsel %vm713_vm9, %v2056_v54, %v710_v57 }
 0x369   : > { %v715_v59 = vmul.f32 %v714_v58, %v692_v37  ;;  %v716_v60 = vmul.f32 %v714_v58, %v693_v38 }
 0x36b   : > { %755 = vmatmul.f32.vlgmr.msra.gmra.mxu3 %v715_v59 }
 0x373   : > { %758 = vmatmul.f32.gmra.mxu3 %v716_v60 }
 0x3ee   : > { %v756_v61 = vpop.f32.mrf.mxu3 }
 0x3ef   : > { %v757_v63 = vadd.f32 %v2038_v49, %v756_v61 }
 0x3f6   : > { %v759_v50 = vpop.f32.mrf.mxu3 }
 0x3f7   : > { %v760_v18 = vadd.f32 %v2038_v49, %v759_v50 }
 0x3f9   : > { %v762_v62 = vadd.f32 %v760_v18, %v757_v63 }
 0x3fb   : > { %v763_v20 = vrot.slane %v762_v62, 4 }
 0x3fd   : > { %v764_v23 = vadd.f32 %v763_v20, %v762_v62 }
 0x3ff   : > { %v765_v24 = vrot.slane %v764_v23, 2 }
 0x401   : > { %v766_v25 = vadd.f32 %v765_v24, %v764_v23 }
 0x403   : > { %v767_v26 = vrot.slane %v766_v25, 1 }
 0x405   : > { %v768_v27 = vadd.f32 %v767_v26, %v766_v25 }
 0x407   : > { %v769_v28 = vmul.f32 0.0625, %v768_v27 }
 0x409   : > { %v770_v29 = vsub.f32 %v757_v63, %v769_v28  ;;  %v771_v30 = vsub.f32 %v760_v18, %v769_v28 }
 0x40b   : > { %v772_v31 = vmul.f32 %v770_v29, %v770_v29  ;;  %v773_v32 = vmul.f32 %v771_v30, %v771_v30 }
 0x40d   : > { %v774_v33 = vadd.f32 %v773_v32, %v772_v31 }
 0x40f   : > { %v775_v34 = vrot.slane %v774_v33, 4 }
 0x411   : > { %v776_v22 = vadd.f32 %v775_v34, %v774_v33 }
 0x413   : > { %v777_v35 = vrot.slane %v776_v22, 2 }
 0x415   : > { %v778_v36 = vadd.f32 %v777_v35, %v776_v22  ;;  %v2039_v35 = vld [vmem:[%s2954_s2 + $0x28] ss:$0 sm:$0xff] }
 0x417   : > { %v779_v37 = vrot.slane %v778_v36, 1 }
 0x419   : > { %v780_v38 = vadd.f32 %v779_v37, %v778_v36  ;;  %v1903_v36 = vld [vmem:[%s2956_s4 + $0x178] sm:$0xff]  ;;  %v1902_v37 = vld [vmem:[%s2956_s4 + $0x170] sm:$0xff] }
 0x41b   : > { %v781_v39 = vmul.f32 0.0625, %v780_v38 }
 0x41d   : > { %v782_v40 = vadd.f32 1e-05, %v781_v39 }
 0x41f   : > { %2057 = vrsqrt.f32 %v782_v40  ;;  %vm789_vm11 = vweird.f32 %v782_v40 }
 0x425   : > { %v2058_v41 = vpop.eup %2057 }
 0x426   : > { %v784_v42 = vmul.f32 %v2058_v41, %v782_v40  ;;  %vm790_vm10 = vweird.f32 %v2058_v41 }
 0x427   : > { %vm791_vm12 = vmor %vm789_vm11, %vm790_vm10 }
 0x428   : > { %v785_v43 = vmul.f32 %v2058_v41, %v784_v42 }
 0x42a   : > { %v786_v44 = vmul.f32 0.5, %v785_v43 }
 0x42c   : > { %v787_v52 = vsub.f32 1.5, %v786_v44 }
 0x42e   : > { %v788_v53 = vmul.f32 %v2058_v41, %v787_v52 }
 0x430   : > { %v792_v45 = vsel %vm791_vm12, %v2058_v41, %v788_v53  ;;  %v1901_v41 = vld [vmem:[%s2956_s4 + $0x168] sm:$0xff] }
 0x431   : > { %v794_v46 = vmul.f32 %v792_v45, %v771_v30  ;;  %v793_v51 = vmul.f32 %v792_v45, %v770_v29  ;;  %v1900_v45 = vld [vmem:[%s2956_s4 + $0x160] sm:$0xff] }
 0x433   : > { %v2451_v54 = vadd.f32 %v794_v46, %v2157_v1  ;;  %v2456_v55 = vadd.f32 %v793_v51, %v2159_v2 }
 0x435   : > { %811 = vmatpush.msrb.mxu1 %v2451_v54  ;;  %2023 = vmatpush.msrb.mxu3 %v2451_v54 }
 0x437   : > { %812 = vmatpush.msrb.mxu1 %v2456_v55  ;;  %2024 = vmatpush.msrb.mxu3 %v2456_v55 }
 0x438   : > { %1867 = vmatmul.msk.f32.vlgmr.msrb.gmra.mxu1 %vm272_vm0, %v2155_v0  ;;  %1877 = vmatmul.msk.f32.vlgmr.msrb.gmra.mxu3 %vm272_vm0, %v2231_v12 }
 0x439   : > { %976 = vmatpush.msra.mxu3 %v1903_v36 }
 0x43b   : > { %977 = vmatpush.msra.mxu3 %v1902_v37 }
 0x43d   : > { %978 = vmatpush.msra.mxu3 %v1901_v41 }
 0x43f   : > { %979 = vmatpush.msra.mxu3 %v1900_v45 }
 0x440   : > { %1868 = vmatmul.msk.f32.gmra.mxu1 %vm272_vm0, %v2168_v3  ;;  %1878 = vmatmul.msk.f32.gmra.mxu3 %vm272_vm0, %v2238_v13 }
 0x448   : > { %1869 = vmatmul.msk.f32.gmra.mxu1 %vm272_vm0, %v2175_v4  ;;  %1879 = vmatmul.msk.f32.gmra.mxu3 %vm272_vm0, %v2245_v14  ;;  %v1885_v14 = vld [vmem:[%s2954_s2 + $0x20] sm:$0xff] }
 0x449   : > { %v889_v58 = vperm.slane %v1885_v14, 4  ;;  %v894_v59 = vperm.slane %v1885_v14, 5  ;;  %v899_v24 = vperm.slane %v1885_v14, 6  ;;  %v904_v31 = vperm.slane %v1885_v14, 7 }
 0x450   : > { %1870 = vmatmul.msk.f32.gmra.mxu1 %vm272_vm0, %v2182_v5  ;;  %1880 = vmatmul.msk.f32.gmra.mxu3 %vm272_vm0, %v2252_v15  ;;  %v871_v15 = vperm.slane %v1885_v14, 0 }
 0x458   : > { %1871 = vmatmul.msk.f32.gmra.mxu1 %vm272_vm0, %v2189_v6  ;;  %1881 = vmatmul.msk.f32.gmra.mxu3 %vm272_vm0, %v2259_v16  ;;  %v879_v16 = vperm.slane %v1885_v14, 2 }
 0x460   : > { %1872 = vmatmul.msk.f32.gmra.mxu1 %vm272_vm0, %v2196_v7  ;;  %1882 = vmatmul.msk.f32.gmra.mxu3 %vm272_vm0, %v2266_v17 }
 0x468   : > { %1873 = vmatmul.msk.f32.gmra.mxu1 %vm272_vm0, %v2203_v8  ;;  %1883 = vmatmul.msk.f32.gmra.mxu3 %vm272_vm0, %v2273_v19 }
 0x470   : > { %1874 = vmatmul.msk.f32.gmra.mxu1 %vm272_vm0, %v2210_v9  ;;  %1884 = vmatmul.msk.f32.gmra.mxu3 %vm272_vm0, %v2280_v21  ;;  %v884_v21 = vperm.slane %v1885_v14, 3 }
 0x478   : > { %1875 = vmatmul.msk.f32.gmra.mxu1 %vm272_vm0, %v2217_v10  ;;  %v874_v10 = vperm.slane %v1885_v14, 1  ;;  %v1895_v14 = vld [vmem:[%s2956_s4 + $0x138] sm:$0xff] }
 0x480   : > { %1876 = vmatmul.msk.f32.gmra.mxu1 %vm272_vm0, %v2224_v11 }
 0x4b5   : > { %v814_v0 = vpop.f32.mrf.mxu1 }
 0x4b6   : > { %v872_v56 = vmul.f32 %v871_v15, %v814_v0 }
 0x4bb   : > { %v844_v1 = vpop.f32.mrf.mxu3 }
 0x4bc   : > { %v895_v18 = vmul.f32 %v894_v59, %v844_v1  ;;  %v1899_v1 = vld [vmem:[%s2956_s4 + $0x158] sm:$0xff] }
 0x4bd   : > { %v817_v2 = vpop.f32.mrf.mxu1  ;;  %980 = vmatpush.msra.mxu3 %v1899_v1 }
 0x4be   : > { %v873_v20 = vmul.f32 %v871_v15, %v817_v2  ;;  %v1894_v15 = vld [vmem:[%s2956_s4 + $0x130] sm:$0xff] }
 0x4c3   : > { %v847_v4 = vpop.f32.mrf.mxu3 }
 0x4c4   : > { %v896_v38 = vmul.f32 %v894_v59, %v847_v4 }
 0x4c5   : > { %v820_v3 = vpop.f32.mrf.mxu1 }
 0x4c6   : > { %v875_v19 = vmul.f32 %v874_v10, %v820_v3  ;;  %v2040_v3 = vld [vmem:[%s2955_s3 + $0x2] ss:$0 sm:$0xff] }
 0x4c8   : > { %v877_v48 = vadd.f32 %v875_v19, %v872_v56  ;;  %v1892_v19 = vld [vmem:[%s2956_s4 + $0x120] sm:$0xff]  ;;  %v1891_v56 = vld [vmem:[%s2956_s4 + $0x118] sm:$0xff] }
 0x4cb   : > { %v850_v6 = vpop.f32.mrf.mxu3 }
 0x4cc   : > { %v900_v30 = vmul.f32 %v899_v24, %v850_v6 }
 0x4cd   : > { %v823_v5 = vpop.f32.mrf.mxu1 }
 0x4ce   : > { %v876_v49 = vmul.f32 %v874_v10, %v823_v5  ;;  %v1898_v5 = vld [vmem:[%s2956_s4 + $0x150] sm:$0xff] }
 0x4cf   : > { %981 = vmatpush.msra.mxu3 %v1898_v5 }
 0x4d0   : > { %v878_v26 = vadd.f32 %v876_v49, %v873_v20 }
 0x4d3   : > { %v853_v8 = vpop.f32.mrf.mxu3 }
 0x4d4   : > { %v901_v43 = vmul.f32 %v899_v24, %v853_v8 }
 0x4d5   : > { %v826_v7 = vpop.f32.mrf.mxu1 }
 0x4d6   : > { %v880_v47 = vmul.f32 %v879_v16, %v826_v7  ;;  %v1897_v7 = vld [vmem:[%s2956_s4 + $0x148] sm:$0xff] }
 0x4d7   : > { %982 = vmatpush.msra.mxu3 %v1897_v7 }
 0x4d8   : > { %v882_v60 = vadd.f32 %v880_v47, %v877_v48  ;;  %v1890_v48 = vld [vmem:[%s2956_s4 + $0x110] sm:$0xff] }
 0x4db   : > { %v856_v9 = vpop.f32.mrf.mxu3 }
 0x4dc   : > { %v905_v39 = vmul.f32 %v904_v31, %v856_v9  ;;  %v1896_v9 = vld [vmem:[%s2956_s4 + $0x140] sm:$0xff] }
 0x4dd   : > { %v829_v12 = vpop.f32.mrf.mxu1  ;;  %983 = vmatpush.msra.mxu3 %v1896_v9 }
 0x4de   : > { %v881_v23 = vmul.f32 %v879_v16, %v829_v12 }
 0x4df   : > { %984 = vmatpush.msra.mxu3 %v1895_v14 }
 0x4e0   : > { %v883_v29 = vadd.f32 %v881_v23, %v878_v26 }
 0x4e1   : > { %985 = vmatpush.msra.mxu3 %v1894_v15 }
 0x4e3   : > { %v859_v17 = vpop.f32.mrf.mxu3 }
 0x4e4   : > { %v906_v46 = vmul.f32 %v904_v31, %v859_v17 }
 0x4e5   : > { %v832_v13 = vpop.f32.mrf.mxu1 }
 0x4e6   : > { %v885_v57 = vmul.f32 %v884_v21, %v832_v13 }
 0x4e8   : > { %v887_v50 = vadd.f32 %v885_v57, %v882_v60  ;;  %v1888_v60 = vld [vmem:[%s2956_s4 + $0x100] sm:$0xff] }
 0x4eb   : > { %v862_v62 = vpop.f32.mrf.mxu3 }
 0x4ec   : > { %v910_v53 = vmul.f32 %v2039_v35, %v862_v62 }
 0x4ed   : > { %v835_v11 = vpop.f32.mrf.mxu1 }
 0x4ee   : > { %v886_v27 = vmul.f32 %v884_v21, %v835_v11  ;;  %v1893_v11 = vld [vmem:[%s2956_s4 + $0x128] sm:$0xff] }
 0x4ef   : > { %986 = vmatpush.msra.mxu3 %v1893_v11 }
 0x4f0   : > { %v888_v33 = vadd.f32 %v886_v27, %v883_v29 }
 0x4f1   : > { %987 = vmatpush.msra.mxu3 %v1892_v19 }
 0x4f3   : > { %v865_v42 = vpop.f32.mrf.mxu3  ;;  %988 = vmatpush.msra.mxu3 %v1891_v56 }
 0x4f4   : > { %v911_v0 = vmul.f32 %v2039_v35, %v865_v42 }
 0x4f5   : > { %v838_v61 = vpop.f32.mrf.mxu1  ;;  %989 = vmatpush.msra.mxu3 %v1890_v48 }
 0x4f6   : > { %v890_v63 = vmul.f32 %v889_v58, %v838_v61 }
 0x4f8   : > { %v892_v25 = vadd.f32 %v890_v63, %v887_v50 }
 0x4fa   : > { %v897_v28 = vadd.f32 %v895_v18, %v892_v25 }
 0x4fc   : > { %v902_v22 = vadd.f32 %v900_v30, %v897_v28 }
 0x4fd   : > { %v841_v32 = vpop.f32.mrf.mxu1 }
 0x4fe   : > { %v891_v34 = vmul.f32 %v889_v58, %v841_v32  ;;  %v907_v52 = vadd.f32 %v905_v39, %v902_v22  ;;  %v1889_v58 = vld [vmem:[%s2956_s4 + $0x108] sm:$0xff] }
 0x4ff   : > { %990 = vmatpush.msra.mxu3 %v1889_v58  ;;  %v2559_v58 = vld [vmem:[%s2953_s1] sm:$0xff] }
 0x500   : > { %v893_v40 = vadd.f32 %v891_v34, %v888_v33  ;;  %v912_v2 = vadd.f32 %v910_v53, %v907_v52 }
 0x501   : > { %991 = vmatpush.msra.mxu3 %v1888_v60  ;;  %v2573_v60 = vld [vmem:[%s2953_s1 + $0x10] sm:$0xff] }
 0x502   : > { %v898_v44 = vadd.f32 %v896_v38, %v893_v40  ;;  %v919_v8 = vadd.f32 %v2040_v3, %v912_v2  ;;  %v2041_v38 = vld [vmem:[%s2957_s5 + $0x2] ss:$0 sm:$0xff] }
 0x504   : > { %v903_v51 = vadd.f32 %v901_v43, %v898_v44 }
 0x506   : > { %v908_v4 = vadd.f32 %v906_v46, %v903_v51 }
 0x508   : > { %v913_v6 = vadd.f32 %v911_v0, %v908_v4 }
 0x50a   : > { %v920_v12 = vadd.f32 %v2040_v3, %v913_v6 }
 0x50c   : > { %v921_v13 = vadd.f32 %v920_v12, %v919_v8 }
 0x50e   : > { %v922_v10 = vrot.slane %v921_v13, 4 }
 0x510   : > { %v923_v16 = vadd.f32 %v922_v10, %v921_v13 }
 0x512   : > { %v924_v17 = vrot.slane %v923_v16, 2 }
 0x514   : > { %v925_v21 = vadd.f32 %v924_v17, %v923_v16 }
 0x516   : > { %v926_v47 = vrot.slane %v925_v21, 1 }
 0x518   : > { %v927_v57 = vadd.f32 %v926_v47, %v925_v21 }
 0x51a   : > { %v928_v59 = vmul.f32 0.0625, %v927_v57 }
 0x51c   : > { %v930_v61 = vsub.f32 %v920_v12, %v928_v59  ;;  %v929_v49 = vsub.f32 %v919_v8, %v928_v59  ;;  %v2566_v59 = vld [vmem:[%s2953_s1 + $0x8] sm:$0xff] }
 0x51e   : > { %v932_v50 = vmul.f32 %v930_v61, %v930_v61  ;;  %v931_v63 = vmul.f32 %v929_v49, %v929_v49 }
 0x520   : > { %v933_v18 = vadd.f32 %v932_v50, %v931_v63  ;;  %v2594_v50 = vld [vmem:[%s2953_s1 + $0x28] sm:$0xff]  ;;  %v2601_v63 = vld [vmem:[%s2953_s1 + $0x30] sm:$0xff] }
 0x522   : > { %v934_v62 = vrot.slane %v933_v18, 4 }
 0x524   : > { %v935_v20 = vadd.f32 %v934_v62, %v933_v18  ;;  %v2608_v18 = vld [vmem:[%s2953_s1 + $0x38] sm:$0xff]  ;;  %v2615_v62 = vld [vmem:[%s2953_s1 + $0x40] sm:$0xff] }
 0x526   : > { %v936_v23 = vrot.slane %v935_v20, 2 }
 0x528   : > { %v937_v24 = vadd.f32 %v936_v23, %v935_v20  ;;  %v2622_v20 = vld [vmem:[%s2953_s1 + $0x48] sm:$0xff]  ;;  %v2629_v23 = vld [vmem:[%s2953_s1 + $0x50] sm:$0xff] }
 0x52a   : > { %v938_v25 = vrot.slane %v937_v24, 1 }
 0x52c   : > { %v939_v26 = vadd.f32 %v938_v25, %v937_v24  ;;  %v2636_v24 = vld [vmem:[%s2953_s1 + $0x58] sm:$0xff]  ;;  %v2643_v25 = vld [vmem:[%s2953_s1 + $0x60] sm:$0xff] }
 0x52e   : > { %v940_v27 = vmul.f32 0.0625, %v939_v26  ;;  %v2650_v26 = vld [vmem:[%s2953_s1 + $0x68] sm:$0xff] }
 0x530   : > { %v941_v28 = vadd.f32 1e-05, %v940_v27  ;;  %v2657_v27 = vld [vmem:[%s2953_s1 + $0x70] sm:$0xff] }
 0x532   : > { %2059 = vrsqrt.f32 %v941_v28  ;;  %vm948_vm14 = vweird.f32 %v941_v28 }
 0x538   : > { %v2060_v29 = vpop.eup %2059 }
 0x539   : > { %v943_v30 = vmul.f32 %v2060_v29, %v941_v28  ;;  %vm949_vm13 = vweird.f32 %v2060_v29  ;;  %v2664_v28 = vld [vmem:[%s2953_s1 + $0x78] sm:$0xff] }
 0x53a   : > { %vm950_vm15 = vmor %vm948_vm14, %vm949_vm13 }
 0x53b   : > { %v944_v31 = vmul.f32 %v2060_v29, %v943_v30 }
 0x53d   : > { %v945_v32 = vmul.f32 0.5, %v944_v31  ;;  %v2678_v31 = vld [vmem:[%s2953_s1 + $0x88] sm:$0xff] }
 0x53f   : > { %v946_v33 = vsub.f32 1.5, %v945_v32 }
 0x541   : > { %v947_v34 = vmul.f32 %v2060_v29, %v946_v33  ;;  %v1923_v33 = vld [vmem:[%s2954_s2 + $0x30] sm:$0xff] }
 0x543   : > { %v951_v22 = vsel %vm950_vm15, %v2060_v29, %v947_v34  ;;  %v2671_v29 = vld [vmem:[%s2953_s1 + $0x80] sm:$0xff]  ;;  %v1108_v34 = vperm.slane %v1923_v33, 0 }
 0x544   : > { %v952_v35 = vmul.f32 %v951_v22, %v929_v49  ;;  %v953_v36 = vmul.f32 %v951_v22, %v930_v61  ;;  %v2580_v61 = vld [vmem:[%s2953_s1 + $0x18] sm:$0xff]  ;;  %v2587_v49 = vld [vmem:[%s2953_s1 + $0x20] sm:$0xff]  ;;  %v1111_v22 = vperm.slane %v1923_v33, 1 }
 0x546   : > { %992 = vmatmul.f32.vlgmr.msra.gmra.mxu3 %v952_v35 }
 0x54e   : > { %995 = vmatmul.f32.gmra.mxu3 %v953_v36 }
 0x5c9   : > { %v993_v37 = vpop.f32.mrf.mxu3 }
 0x5ca   : > { %v994_v40 = vadd.f32 %v2041_v38, %v993_v37 }
 0x5d1   : > { %v996_v39 = vpop.f32.mrf.mxu3 }
 0x5d2   : > { %v997_v41 = vadd.f32 %v2041_v38, %v996_v39 }
 0x5d4   : > { %v999_v42 = vadd.f32 %v997_v41, %v994_v40 }
 0x5d6   : > { %v1000_v43 = vrot.slane %v999_v42, 4 }
 0x5d8   : > { %v1001_v44 = vadd.f32 %v1000_v43, %v999_v42  ;;  %v1116_v43 = vperm.slane %v1923_v33, 2 }
 0x5da   : > { %v1002_v52 = vrot.slane %v1001_v44, 2 }
 0x5dc   : > { %v1003_v53 = vadd.f32 %v1002_v52, %v1001_v44 }
 0x5de   : > { %v1004_v45 = vrot.slane %v1003_v53, 1 }
 0x5e0   : > { %v1005_v46 = vadd.f32 %v1004_v45, %v1003_v53 }
 0x5e2   : > { %v1006_v51 = vmul.f32 0.0625, %v1005_v46 }
 0x5e4   : > { %v1007_v0 = vsub.f32 %v994_v40, %v1006_v51  ;;  %v1008_v1 = vsub.f32 %v997_v41, %v1006_v51 }
 0x5e6   : > { %v1009_v2 = vmul.f32 %v1007_v0, %v1007_v0  ;;  %v1010_v3 = vmul.f32 %v1008_v1, %v1008_v1 }
 0x5e8   : > { %v1011_v4 = vadd.f32 %v1010_v3, %v1009_v2 }
 0x5ea   : > { %v1012_v5 = vrot.slane %v1011_v4, 4 }
 0x5ec   : > { %v1013_v6 = vadd.f32 %v1012_v5, %v1011_v4 }
 0x5ee   : > { %v1014_v7 = vrot.slane %v1013_v6, 2 }
 0x5f0   : > { %v1015_v8 = vadd.f32 %v1014_v7, %v1013_v6  ;;  %v1126_v7 = vperm.slane %v1923_v33, 4 }
 0x5f2   : > { %v1016_v12 = vrot.slane %v1015_v8, 1 }
 0x5f4   : > { %v1017_v9 = vadd.f32 %v1016_v12, %v1015_v8 }
 0x5f6   : > { %v1018_v13 = vmul.f32 0.0625, %v1017_v9 }
 0x5f8   : > { %v1019_v14 = vadd.f32 1e-05, %v1018_v13 }
 0x5fa   : > { %2061 = vrsqrt.f32 %v1019_v14  ;;  %vm1026_vm2 = vweird.f32 %v1019_v14 }
 0x600   : > { %v2062_v10 = vpop.eup %2061 }
 0x601   : > { %v1021_v15 = vmul.f32 %v2062_v10, %v1019_v14  ;;  %vm1027_vm1 = vweird.f32 %v2062_v10 }
 0x602   : > { %vm1028_vm3 = vmor %vm1026_vm2, %vm1027_vm1 }
 0x603   : > { %v1022_v16 = vmul.f32 %v2062_v10, %v1021_v15 }
 0x605   : > { %v1023_v11 = vmul.f32 0.5, %v1022_v16 }
 0x607   : > { %v1024_v17 = vsub.f32 1.5, %v1023_v11 }
 0x609   : > { %v1025_v19 = vmul.f32 %v2062_v10, %v1024_v17 }
 0x60b   : > { %v1029_v21 = vsel %vm1028_vm3, %v2062_v10, %v1025_v19  ;;  %v1131_v19 = vperm.slane %v1923_v33, 5 }
 0x60c   : > { %v1031_v56 = vmul.f32 %v1029_v21, %v1008_v1  ;;  %v1030_v47 = vmul.f32 %v1029_v21, %v1007_v0  ;;  %v1121_v0 = vperm.slane %v1923_v33, 3  ;;  %v1136_v21 = vperm.slane %v1923_v33, 6 }
 0x60e   : > { %v1033_v48 = vmax.f32 %v1031_v56, 0.0  ;;  %v1032_v57 = vmax.f32 %v1030_v47, 0.0 }
 0x610   : > { %1048 = vmatpush.msrb.mxu3 %v1033_v48  ;;  %v1141_v48 = vperm.slane %v1923_v33, 7 }
 0x612   : > { %1049 = vmatpush.msrb.mxu3 %v1032_v57 }
 0x613   : > { %1905 = vmatmul.msk.f32.vlgmr.msrb.gmra.mxu3 %vm272_vm0, %v2559_v58 }
 0x61b   : > { %1906 = vmatmul.msk.f32.gmra.mxu3 %vm272_vm0, %v2566_v59 }
 0x623   : > { %1907 = vmatmul.msk.f32.gmra.mxu3 %vm272_vm0, %v2573_v60 }
 0x62b   : > { %1908 = vmatmul.msk.f32.gmra.mxu3 %vm272_vm0, %v2580_v61 }
 0x633   : > { %1909 = vmatmul.msk.f32.gmra.mxu3 %vm272_vm0, %v2587_v49 }
 0x63b   : > { %1910 = vmatmul.msk.f32.gmra.mxu3 %vm272_vm0, %v2594_v50 }
 0x643   : > { %1911 = vmatmul.msk.f32.gmra.mxu3 %vm272_vm0, %v2601_v63 }
 0x64b   : > { %1912 = vmatmul.msk.f32.gmra.mxu3 %vm272_vm0, %v2608_v18 }
 0x653   : > { %1913 = vmatmul.msk.f32.gmra.mxu3 %vm272_vm0, %v2615_v62 }
 0x65b   : > { %1914 = vmatmul.msk.f32.gmra.mxu3 %vm272_vm0, %v2622_v20 }
 0x663   : > { %1915 = vmatmul.msk.f32.gmra.mxu3 %vm272_vm0, %v2629_v23 }
 0x66b   : > { %1916 = vmatmul.msk.f32.gmra.mxu3 %vm272_vm0, %v2636_v24 }
 0x673   : > { %1917 = vmatmul.msk.f32.gmra.mxu3 %vm272_vm0, %v2643_v25 }
 0x67b   : > { %1918 = vmatmul.msk.f32.gmra.mxu3 %vm272_vm0, %v2650_v26 }
 0x683   : > { %1919 = vmatmul.msk.f32.gmra.mxu3 %vm272_vm0, %v2657_v27 }
 0x68b   : > { %1920 = vmatmul.msk.f32.gmra.mxu3 %vm272_vm0, %v2664_v28 }
 0x693   : > { %1921 = vmatmul.msk.f32.gmra.mxu3 %vm272_vm0, %v2671_v29 }
 0x696   : > { %v1051_v30 = vpop.f32.mrf.mxu3 }
 0x697   : > { %v1109_v36 = vmul.f32 %v1108_v34, %v1051_v30 }
 0x69b   : > { %1922 = vmatmul.msk.f32.gmra.mxu3 %vm272_vm0, %v2678_v31 }
 0x69e   : > { %v1054_v32 = vpop.f32.mrf.mxu3 }
 0x69f   : > { %v1110_v40 = vmul.f32 %v1108_v34, %v1054_v32  ;;  %v2042_v34 = vld [vmem:[%s2954_s2 + $0x38] ss:$0 sm:$0xff] }
 0x6a6   : > { %v1057_v35 = vpop.f32.mrf.mxu3 }
 0x6a7   : > { %v1112_v37 = vmul.f32 %v1111_v22, %v1057_v35  ;;  %v1940_v35 = vld [vmem:[%s2956_s4 + $0x1f0] sm:$0xff] }
 0x6a9   : > { %v1114_v38 = vadd.f32 %v1112_v37, %v1109_v36 }
 0x6ae   : > { %v1060_v39 = vpop.f32.mrf.mxu3 }
 0x6af   : > { %v1113_v41 = vmul.f32 %v1111_v22, %v1060_v39  ;;  %v1941_v22 = vld [vmem:[%s2956_s4 + $0x1f8] sm:$0xff]  ;;  %v1939_v39 = vld [vmem:[%s2956_s4 + $0x1e8] sm:$0xff] }
 0x6b0   : > { %1213 = vmatpush.msrb.mxu0 %v1941_v22 }
 0x6b1   : > { %v1115_v42 = vadd.f32 %v1113_v41, %v1110_v40 }
 0x6b2   : > { %1214 = vmatpush.msrb.mxu0 %v1940_v35 }
 0x6b4   : > { %1215 = vmatpush.msrb.mxu0 %v1939_v39 }
 0x6b6   : > { %v1063_v44 = vpop.f32.mrf.mxu3 }
 0x6b7   : > { %v1117_v52 = vmul.f32 %v1116_v43, %v1063_v44  ;;  %v1938_v44 = vld [vmem:[%s2956_s4 + $0x1e0] sm:$0xff] }
 0x6b8   : > { %1216 = vmatpush.msrb.mxu0 %v1938_v44 }
 0x6b9   : > { %v1119_v53 = vadd.f32 %v1117_v52, %v1114_v38 }
 0x6be   : > { %v1066_v45 = vpop.f32.mrf.mxu3 }
 0x6bf   : > { %v1118_v46 = vmul.f32 %v1116_v43, %v1066_v45  ;;  %v1937_v45 = vld [vmem:[%s2956_s4 + $0x1d8] sm:$0xff] }
 0x6c0   : > { %1217 = vmatpush.msrb.mxu0 %v1937_v45 }
 0x6c1   : > { %v1120_v51 = vadd.f32 %v1118_v46, %v1115_v42 }
 0x6c6   : > { %v1069_v1 = vpop.f32.mrf.mxu3 }
 0x6c7   : > { %v1122_v2 = vmul.f32 %v1121_v0, %v1069_v1  ;;  %v2043_v1 = vld [vmem:[%s2955_s3 + $0x3] ss:$0 sm:$0xff] }
 0x6c9   : > { %v1124_v3 = vadd.f32 %v1122_v2, %v1119_v53 }
 0x6ce   : > { %v1072_v4 = vpop.f32.mrf.mxu3 }
 0x6cf   : > { %v1123_v5 = vmul.f32 %v1121_v0, %v1072_v4 }
 0x6d1   : > { %v1125_v6 = vadd.f32 %v1123_v5, %v1120_v51  ;;  %v1935_v5 = vld [vmem:[%s2956_s4 + $0x1c8] sm:$0xff] }
 0x6d6   : > { %v1075_v8 = vpop.f32.mrf.mxu3 }
 0x6d7   : > { %v1127_v12 = vmul.f32 %v1126_v7, %v1075_v8  ;;  %v1934_v8 = vld [vmem:[%s2956_s4 + $0x1c0] sm:$0xff] }
 0x6d9   : > { %v1129_v9 = vadd.f32 %v1127_v12, %v1124_v3  ;;  %v1936_v3 = vld [vmem:[%s2956_s4 + $0x1d0] sm:$0xff] }
 0x6da   : > { %1218 = vmatpush.msrb.mxu0 %v1936_v3 }
 0x6dc   : > { %1219 = vmatpush.msrb.mxu0 %v1935_v5 }
 0x6de   : > { %v1078_v13 = vpop.f32.mrf.mxu3  ;;  %1220 = vmatpush.msrb.mxu0 %v1934_v8 }
 0x6df   : > { %v1128_v56 = vmul.f32 %v1126_v7, %v1078_v13 }
 0x6e1   : > { %v1130_v36 = vadd.f32 %v1128_v56, %v1125_v6  ;;  %v1928_v56 = vld [vmem:[%s2956_s4 + $0x190] sm:$0xff] }
 0x6e6   : > { %v1081_v14 = vpop.f32.mrf.mxu3 }
 0x6e7   : > { %v1132_v47 = vmul.f32 %v1131_v19, %v1081_v14  ;;  %v1932_v14 = vld [vmem:[%s2956_s4 + $0x1b0] sm:$0xff] }
 0x6e9   : > { %v1134_v37 = vadd.f32 %v1132_v47, %v1129_v9  ;;  %v1933_v9 = vld [vmem:[%s2956_s4 + $0x1b8] sm:$0xff] }
 0x6ea   : > { %1221 = vmatpush.msrb.mxu0 %v1933_v9 }
 0x6ec   : > { %1222 = vmatpush.msrb.mxu0 %v1932_v14 }
 0x6ee   : > { %v1084_v10 = vpop.f32.mrf.mxu3 }
 0x6ef   : > { %v1133_v30 = vmul.f32 %v1131_v19, %v1084_v10  ;;  %v1929_v19 = vld [vmem:[%s2956_s4 + $0x198] sm:$0xff] }
 0x6f1   : > { %v1135_v40 = vadd.f32 %v1133_v30, %v1130_v36  ;;  %v1926_v30 = vld [vmem:[%s2956_s4 + $0x180] sm:$0xff] }
 0x6f6   : > { %v1087_v15 = vpop.f32.mrf.mxu3 }
 0x6f7   : > { %v1137_v32 = vmul.f32 %v1136_v21, %v1087_v15  ;;  %v1931_v15 = vld [vmem:[%s2956_s4 + $0x1a8] sm:$0xff] }
 0x6f8   : > { %1223 = vmatpush.msrb.mxu0 %v1931_v15 }
 0x6f9   : > { %v1139_v41 = vadd.f32 %v1137_v32, %v1134_v37 }
 0x6fe   : > { %v1090_v16 = vpop.f32.mrf.mxu3 }
 0x6ff   : > { %v1138_v38 = vmul.f32 %v1136_v21, %v1090_v16 }
 0x701   : > { %v1140_v52 = vadd.f32 %v1138_v38, %v1135_v40 }
 0x706   : > { %v1093_v11 = vpop.f32.mrf.mxu3 }
 0x707   : > { %v1142_v33 = vmul.f32 %v1141_v48, %v1093_v11  ;;  %v1930_v11 = vld [vmem:[%s2956_s4 + $0x1a0] sm:$0xff] }
 0x708   : > { %1224 = vmatpush.msrb.mxu0 %v1930_v11 }
 0x709   : > { %v1144_v53 = vadd.f32 %v1142_v33, %v1139_v41 }
 0x70a   : > { %1225 = vmatpush.msrb.mxu0 %v1929_v19 }
 0x70c   : > { %1226 = vmatpush.msrb.mxu0 %v1928_v56 }
 0x70e   : > { %v1096_v17 = vpop.f32.mrf.mxu3 }
 0x70f   : > { %v1143_v42 = vmul.f32 %v1141_v48, %v1096_v17  ;;  %v1927_v48 = vld [vmem:[%s2956_s4 + $0x188] sm:$0xff] }
 0x710   : > { %1227 = vmatpush.msrb.mxu0 %v1927_v48 }
 0x711   : > { %v1145_v51 = vadd.f32 %v1143_v42, %v1140_v52 }
 0x712   : > { %1228 = vmatpush.msrb.mxu0 %v1926_v30 }
 0x716   : > { %v1099_v57 = vpop.f32.mrf.mxu3 }
 0x717   : > { %v1147_v43 = vmul.f32 %v2042_v34, %v1099_v57 }
 0x719   : > { %v1149_v0 = vadd.f32 %v1147_v43, %v1144_v53 }
 0x71b   : > { %v1156_v6 = vadd.f32 %v2043_v1, %v1149_v0 }
 0x71e   : > { %v1102_v46 = vpop.f32.mrf.mxu3 }
 0x71f   : > { %v1148_v2 = vmul.f32 %v2042_v34, %v1102_v46 }
 0x721   : > { %v1150_v4 = vadd.f32 %v1148_v2, %v1145_v51 }
 0x723   : > { %v1157_v7 = vadd.f32 %v2043_v1, %v1150_v4  ;;  %v2044_v4 = vld [vmem:[%s2957_s5 + $0x3] ss:$0 sm:$0xff] }
 0x725   : > { %v1158_v12 = vadd.f32 %v1157_v7, %v1156_v6 }
 0x727   : > { %v1159_v13 = vrot.slane %v1158_v12, 4 }
 0x729   : > { %v1160_v10 = vadd.f32 %v1159_v13, %v1158_v12 }
 0x72b   : > { %v1161_v16 = vrot.slane %v1160_v10, 2 }
 0x72d   : > { %v1162_v17 = vadd.f32 %v1161_v16, %v1160_v10 }
 0x72f   : > { %v1163_v21 = vrot.slane %v1162_v17, 1 }
 0x731   : > { %v1164_v47 = vadd.f32 %v1163_v21, %v1162_v17 }
 0x733   : > { %v1165_v57 = vmul.f32 0.0625, %v1164_v47 }
 0x735   : > { %v1167_v32 = vsub.f32 %v1157_v7, %v1165_v57  ;;  %v1166_v34 = vsub.f32 %v1156_v6, %v1165_v57 }
 0x737   : > { %v1169_v22 = vmul.f32 %v1167_v32, %v1167_v32  ;;  %v1168_v35 = vmul.f32 %v1166_v34, %v1166_v34 }
 0x739   : > { %v1170_v36 = vadd.f32 %v1169_v22, %v1168_v35 }
 0x73b   : > { %v1171_v37 = vrot.slane %v1170_v36, 4 }
 0x73d   : > { %v1172_v38 = vadd.f32 %v1171_v37, %v1170_v36 }
 0x73f   : > { %v1173_v33 = vrot.slane %v1172_v38, 2 }
 0x741   : > { %v1174_v39 = vadd.f32 %v1173_v33, %v1172_v38 }
 0x743   : > { %v1175_v40 = vrot.slane %v1174_v39, 1 }
 0x745   : > { %v1176_v41 = vadd.f32 %v1175_v40, %v1174_v39 }
 0x747   : > { %v1177_v42 = vmul.f32 0.0625, %v1176_v41 }
 0x749   : > { %v1178_v43 = vadd.f32 1e-05, %v1177_v42 }
 0x74b   : > { %2063 = vrsqrt.f32 %v1178_v43  ;;  %vm1185_vm5 = vweird.f32 %v1178_v43 }
 0x751   : > { %v2064_v44 = vpop.eup %2063 }
 0x752   : > { %v1180_v52 = vmul.f32 %v2064_v44, %v1178_v43  ;;  %vm1186_vm4 = vweird.f32 %v2064_v44 }
 0x753   : > { %vm1187_vm6 = vmor %vm1185_vm5, %vm1186_vm4 }
 0x754   : > { %v1181_v53 = vmul.f32 %v2064_v44, %v1180_v52 }
 0x756   : > { %v1182_v45 = vmul.f32 0.5, %v1181_v53  ;;  %v1961_v53 = vld [vmem:[%s2954_s2 + $0x40] sm:$0xff] }
 0x758   : > { %v1183_v46 = vsub.f32 1.5, %v1182_v45  ;;  %v1345_v45 = vperm.slane %v1961_v53, 0 }
 0x75a   : > { %v1184_v51 = vmul.f32 %v2064_v44, %v1183_v46  ;;  %v1348_v46 = vperm.slane %v1961_v53, 1 }
 0x75c   : > { %v1188_v0 = vsel %vm1187_vm6, %v2064_v44, %v1184_v51 }
 0x75d   : > { %v1189_v1 = vmul.f32 %v1188_v0, %v1166_v34  ;;  %v1190_v2 = vmul.f32 %v1188_v0, %v1167_v32 }
 0x75f   : > { %1229 = vmatmul.f32.vlgmr.msrb.gmra.mxu0 %v1189_v1 }
 0x767   : > { %1232 = vmatmul.f32.gmra.mxu0 %v1190_v2 }
 0x7dc   : > { %v1230_v3 = vpop.f32.mrf.mxu0 }
 0x7dd   : > { %v1231_v6 = vadd.f32 %v2044_v4, %v1230_v3 }
 0x7e4   : > { %v1233_v5 = vpop.f32.mrf.mxu0 }
 0x7e5   : > { %v1234_v7 = vadd.f32 %v2044_v4, %v1233_v5 }
 0x7e7   : > { %v1236_v8 = vadd.f32 %v1234_v7, %v1231_v6 }
 0x7e9   : > { %v1237_v12 = vrot.slane %v1236_v8, 4 }
 0x7eb   : > { %v1238_v9 = vadd.f32 %v1237_v12, %v1236_v8 }
 0x7ed   : > { %v1239_v13 = vrot.slane %v1238_v9, 2 }
 0x7ef   : > { %v1240_v14 = vadd.f32 %v1239_v13, %v1238_v9 }
 0x7f1   : > { %v1241_v10 = vrot.slane %v1240_v14, 1 }
 0x7f3   : > { %v1242_v15 = vadd.f32 %v1241_v10, %v1240_v14 }
 0x7f5   : > { %v1243_v16 = vmul.f32 0.0625, %v1242_v15  ;;  %v1358_v15 = vperm.slane %v1961_v53, 3 }
 0x7f7   : > { %v1244_v11 = vsub.f32 %v1231_v6, %v1243_v16  ;;  %v1245_v17 = vsub.f32 %v1234_v7, %v1243_v16  ;;  %v1353_v7 = vperm.slane %v1961_v53, 2 }
 0x7f9   : > { %v1246_v19 = vmul.f32 %v1244_v11, %v1244_v11  ;;  %v1247_v21 = vmul.f32 %v1245_v17, %v1245_v17 }
 0x7fb   : > { %v1248_v56 = vadd.f32 %v1247_v21, %v1246_v19 }
 0x7fd   : > { %v1249_v47 = vrot.slane %v1248_v56, 4 }
 0x7ff   : > { %v1250_v48 = vadd.f32 %v1249_v47, %v1248_v56  ;;  %v1363_v47 = vperm.slane %v1961_v53, 4 }
 0x801   : > { %v1251_v57 = vrot.slane %v1250_v48, 2 }
 0x803   : > { %v1252_v30 = vadd.f32 %v1251_v57, %v1250_v48 }
 0x805   : > { %v1253_v32 = vrot.slane %v1252_v30, 1 }
 0x807   : > { %v1254_v34 = vadd.f32 %v1253_v32, %v1252_v30 }
 0x809   : > { %v1255_v22 = vmul.f32 0.0625, %v1254_v34 }
 0x80b   : > { %v1256_v35 = vadd.f32 1e-05, %v1255_v22 }
 0x80d   : > { %2065 = vrsqrt.f32 %v1256_v35  ;;  %vm1263_vm8 = vweird.f32 %v1256_v35 }
 0x813   : > { %v2066_v36 = vpop.eup %2065 }
 0x814   : > { %v1258_v37 = vmul.f32 %v2066_v36, %v1256_v35  ;;  %vm1264_vm7 = vweird.f32 %v2066_v36 }
 0x815   : > { %vm1265_vm9 = vmor %vm1263_vm8, %vm1264_vm7 }
 0x816   : > { %v1259_v38 = vmul.f32 %v2066_v36, %v1258_v37 }
 0x818   : > { %v1260_v33 = vmul.f32 0.5, %v1259_v38 }
 0x81a   : > { %v1261_v39 = vsub.f32 1.5, %v1260_v33  ;;  %v1368_v33 = vperm.slane %v1961_v53, 5 }
 0x81c   : > { %v1262_v40 = vmul.f32 %v2066_v36, %v1261_v39  ;;  %v1373_v39 = vperm.slane %v1961_v53, 6 }
 0x81e   : > { %v1266_v41 = vsel %vm1265_vm9, %v2066_v36, %v1262_v40 }
 0x81f   : > { %v1268_v42 = vmul.f32 %v1266_v41, %v1245_v17  ;;  %v1267_v43 = vmul.f32 %v1266_v41, %v1244_v11 }
 0x821   : > { %v2743_v44 = vadd.f32 %v1268_v42, %v2451_v54  ;;  %v2747_v52 = vadd.f32 %v1267_v43, %v2456_v55  ;;  %v1378_v42 = vperm.slane %v1961_v53, 7 }
 0x823   : > { %1285 = vmatpush.msrb.mxu2 %v2743_v44 }
 0x825   : > { %1286 = vmatpush.msrb.mxu2 %v2747_v52 }
 0x826   : > { %1943 = vmatmul.msk.f32.vlgmr.msrb.gmra.mxu2 %vm272_vm0, %v2559_v58 }
 0x82e   : > { %1944 = vmatmul.msk.f32.gmra.mxu2 %vm272_vm0, %v2566_v59 }
 0x836   : > { %1945 = vmatmul.msk.f32.gmra.mxu2 %vm272_vm0, %v2573_v60 }
 0x83e   : > { %1946 = vmatmul.msk.f32.gmra.mxu2 %vm272_vm0, %v2580_v61 }
 0x846   : > { %1947 = vmatmul.msk.f32.gmra.mxu2 %vm272_vm0, %v2587_v49 }
 0x84e   : > { %1948 = vmatmul.msk.f32.gmra.mxu2 %vm272_vm0, %v2594_v50 }
 0x856   : > { %1949 = vmatmul.msk.f32.gmra.mxu2 %vm272_vm0, %v2601_v63 }
 0x85e   : > { %1950 = vmatmul.msk.f32.gmra.mxu2 %vm272_vm0, %v2608_v18 }
 0x866   : > { %1951 = vmatmul.msk.f32.gmra.mxu2 %vm272_vm0, %v2615_v62 }
 0x86e   : > { %1952 = vmatmul.msk.f32.gmra.mxu2 %vm272_vm0, %v2622_v20 }
 0x876   : > { %1953 = vmatmul.msk.f32.gmra.mxu2 %vm272_vm0, %v2629_v23 }
 0x87e   : > { %1954 = vmatmul.msk.f32.gmra.mxu2 %vm272_vm0, %v2636_v24 }
 0x886   : > { %1955 = vmatmul.msk.f32.gmra.mxu2 %vm272_vm0, %v2643_v25 }
 0x88e   : > { %1956 = vmatmul.msk.f32.gmra.mxu2 %vm272_vm0, %v2650_v26 }
 0x896   : > { %1957 = vmatmul.msk.f32.gmra.mxu2 %vm272_vm0, %v2657_v27 }
 0x89e   : > { %1958 = vmatmul.msk.f32.gmra.mxu2 %vm272_vm0, %v2664_v28 }
 0x8a6   : > { %1959 = vmatmul.msk.f32.gmra.mxu2 %vm272_vm0, %v2671_v29 }
 0x8a9   : > { %v1288_v54 = vpop.f32.mrf.mxu2 }
 0x8aa   : > { %v1346_v0 = vmul.f32 %v1345_v45, %v1288_v54 }
 0x8ae   : > { %1960 = vmatmul.msk.f32.gmra.mxu2 %vm272_vm0, %v2678_v31 }
 0x8b1   : > { %v1291_v55 = vpop.f32.mrf.mxu2 }
 0x8b2   : > { %v1347_v4 = vmul.f32 %v1345_v45, %v1291_v55  ;;  %v2045_v45 = vld [vmem:[%s2954_s2 + $0x48] ss:$0 sm:$0xff] }
 0x8b9   : > { %v1294_v51 = vpop.f32.mrf.mxu2 }
 0x8ba   : > { %v1349_v1 = vmul.f32 %v1348_v46, %v1294_v51  ;;  %v1978_v51 = vld [vmem:[%s2956_s4 + $0x270] sm:$0xff] }
 0x8bc   : > { %v1351_v2 = vadd.f32 %v1349_v1, %v1346_v0 }
 0x8c1   : > { %v1297_v3 = vpop.f32.mrf.mxu2 }
 0x8c2   : > { %v1350_v5 = vmul.f32 %v1348_v46, %v1297_v3  ;;  %v1979_v46 = vld [vmem:[%s2956_s4 + $0x278] sm:$0xff]  ;;  %v1977_v3 = vld [vmem:[%s2956_s4 + $0x268] sm:$0xff] }
 0x8c3   : > { %1450 = vmatpush.msra.mxu0 %v1979_v46 }
 0x8c4   : > { %v1352_v6 = vadd.f32 %v1350_v5, %v1347_v4 }
 0x8c5   : > { %1451 = vmatpush.msra.mxu0 %v1978_v51 }
 0x8c7   : > { %1452 = vmatpush.msra.mxu0 %v1977_v3 }
 0x8c9   : > { %v1300_v8 = vpop.f32.mrf.mxu2 }
 0x8ca   : > { %v1354_v12 = vmul.f32 %v1353_v7, %v1300_v8  ;;  %v1976_v8 = vld [vmem:[%s2956_s4 + $0x260] sm:$0xff] }
 0x8cb   : > { %1453 = vmatpush.msra.mxu0 %v1976_v8 }
 0x8cc   : > { %v1356_v9 = vadd.f32 %v1354_v12, %v1351_v2 }
 0x8d1   : > { %v1303_v13 = vpop.f32.mrf.mxu2 }
 0x8d2   : > { %v1355_v14 = vmul.f32 %v1353_v7, %v1303_v13  ;;  %v1975_v13 = vld [vmem:[%s2956_s4 + $0x258] sm:$0xff] }
 0x8d3   : > { %1454 = vmatpush.msra.mxu0 %v1975_v13 }
 0x8d4   : > { %v1357_v10 = vadd.f32 %v1355_v14, %v1352_v6 }
 0x8d9   : > { %v1306_v16 = vpop.f32.mrf.mxu2 }
 0x8da   : > { %v1359_v11 = vmul.f32 %v1358_v15, %v1306_v16  ;;  %v2046_v16 = vld [vmem:[%s2955_s3 + $0x4] ss:$0 sm:$0xff] }
 0x8dc   : > { %v1361_v17 = vadd.f32 %v1359_v11, %v1356_v9 }
 0x8e1   : > { %v1309_v19 = vpop.f32.mrf.mxu2 }
 0x8e2   : > { %v1360_v21 = vmul.f32 %v1358_v15, %v1309_v19 }
 0x8e4   : > { %v1362_v56 = vadd.f32 %v1360_v21, %v1357_v10  ;;  %v1973_v21 = vld [vmem:[%s2956_s4 + $0x248] sm:$0xff] }
 0x8e9   : > { %v1312_v48 = vpop.f32.mrf.mxu2 }
 0x8ea   : > { %v1364_v57 = vmul.f32 %v1363_v47, %v1312_v48  ;;  %v1972_v48 = vld [vmem:[%s2956_s4 + $0x240] sm:$0xff] }
 0x8ec   : > { %v1366_v30 = vadd.f32 %v1364_v57, %v1361_v17  ;;  %v1974_v17 = vld [vmem:[%s2956_s4 + $0x250] sm:$0xff] }
 0x8ed   : > { %1455 = vmatpush.msra.mxu0 %v1974_v17 }
 0x8ef   : > { %1456 = vmatpush.msra.mxu0 %v1973_v21 }
 0x8f1   : > { %v1315_v32 = vpop.f32.mrf.mxu2  ;;  %1457 = vmatpush.msra.mxu0 %v1972_v48 }
 0x8f2   : > { %v1365_v40 = vmul.f32 %v1363_v47, %v1315_v32 }
 0x8f4   : > { %v1367_v0 = vadd.f32 %v1365_v40, %v1362_v56  ;;  %v1966_v40 = vld [vmem:[%s2956_s4 + $0x210] sm:$0xff] }
 0x8f9   : > { %v1318_v34 = vpop.f32.mrf.mxu2 }
 0x8fa   : > { %v1369_v41 = vmul.f32 %v1368_v33, %v1318_v34  ;;  %v1970_v34 = vld [vmem:[%s2956_s4 + $0x230] sm:$0xff] }
 0x8fc   : > { %v1371_v1 = vadd.f32 %v1369_v41, %v1366_v30  ;;  %v1971_v30 = vld [vmem:[%s2956_s4 + $0x238] sm:$0xff] }
 0x8fd   : > { %1458 = vmatpush.msra.mxu0 %v1971_v30 }
 0x8ff   : > { %1459 = vmatpush.msra.mxu0 %v1970_v34 }
 0x901   : > { %v1321_v22 = vpop.f32.mrf.mxu2 }
 0x902   : > { %v1370_v54 = vmul.f32 %v1368_v33, %v1321_v22  ;;  %v1967_v33 = vld [vmem:[%s2956_s4 + $0x218] sm:$0xff] }
 0x904   : > { %v1372_v4 = vadd.f32 %v1370_v54, %v1367_v0  ;;  %v1964_v54 = vld [vmem:[%s2956_s4 + $0x200] sm:$0xff] }
 0x909   : > { %v1324_v35 = vpop.f32.mrf.mxu2 }
 0x90a   : > { %v1374_v55 = vmul.f32 %v1373_v39, %v1324_v35  ;;  %v1969_v35 = vld [vmem:[%s2956_s4 + $0x228] sm:$0xff] }
 0x90b   : > { %1460 = vmatpush.msra.mxu0 %v1969_v35 }
 0x90c   : > { %v1376_v5 = vadd.f32 %v1374_v55, %v1371_v1 }
 0x911   : > { %v1327_v36 = vpop.f32.mrf.mxu2 }
 0x912   : > { %v1375_v2 = vmul.f32 %v1373_v39, %v1327_v36 }
 0x914   : > { %v1377_v12 = vadd.f32 %v1375_v2, %v1372_v4 }
 0x919   : > { %v1330_v37 = vpop.f32.mrf.mxu2 }
 0x91a   : > { %v1379_v53 = vmul.f32 %v1378_v42, %v1330_v37  ;;  %v1968_v37 = vld [vmem:[%s2956_s4 + $0x220] sm:$0xff] }
 0x91b   : > { %1461 = vmatpush.msra.mxu0 %v1968_v37 }
 0x91c   : > { %v1381_v9 = vadd.f32 %v1379_v53, %v1376_v5 }
 0x91d   : > { %1462 = vmatpush.msra.mxu0 %v1967_v33 }
 0x91f   : > { %1463 = vmatpush.msra.mxu0 %v1966_v40 }
 0x921   : > { %v1333_v38 = vpop.f32.mrf.mxu2 }
 0x922   : > { %v1380_v6 = vmul.f32 %v1378_v42, %v1333_v38  ;;  %v1965_v42 = vld [vmem:[%s2956_s4 + $0x208] sm:$0xff] }
 0x923   : > { %1464 = vmatpush.msra.mxu0 %v1965_v42 }
 0x924   : > { %v1382_v10 = vadd.f32 %v1380_v6, %v1377_v12 }
 0x925   : > { %1465 = vmatpush.msra.mxu0 %v1964_v54 }
 0x929   : > { %v1336_v43 = vpop.f32.mrf.mxu2 }
 0x92a   : > { %v1384_v7 = vmul.f32 %v2045_v45, %v1336_v43 }
 0x92c   : > { %v1386_v15 = vadd.f32 %v1384_v7, %v1381_v9 }
 0x92e   : > { %v1393_v56 = vadd.f32 %v2046_v16, %v1386_v15 }
 0x931   : > { %v1339_v14 = vpop.f32.mrf.mxu2 }
 0x932   : > { %v1385_v11 = vmul.f32 %v2045_v45, %v1339_v14 }
 0x934   : > { %v1387_v19 = vadd.f32 %v1385_v11, %v1382_v10 }
 0x936   : > { %v1394_v47 = vadd.f32 %v2046_v16, %v1387_v19  ;;  %v2047_v19 = vld [vmem:[%s2957_s5 + $0x4] ss:$0 sm:$0xff] }
 0x938   : > { %v1395_v57 = vadd.f32 %v1394_v47, %v1393_v56 }
 0x93a   : > { %v1396_v32 = vrot.slane %v1395_v57, 4 }
 0x93c   : > { %v1397_v22 = vadd.f32 %v1396_v32, %v1395_v57 }
 0x93e   : > { %v1398_v36 = vrot.slane %v1397_v22, 2 }
 0x940   : > { %v1399_v38 = vadd.f32 %v1398_v36, %v1397_v22 }
 0x942   : > { %v1400_v39 = vrot.slane %v1399_v38, 1 }
 0x944   : > { %v1401_v41 = vadd.f32 %v1400_v39, %v1399_v38 }
 0x946   : > { %v1402_v43 = vmul.f32 0.0625, %v1401_v41 }
 0x948   : > { %v1404_v55 = vsub.f32 %v1394_v47, %v1402_v43  ;;  %v1403_v45 = vsub.f32 %v1393_v56, %v1402_v43 }
 0x94a   : > { %v1406_v46 = vmul.f32 %v1404_v55, %v1404_v55  ;;  %v1405_v51 = vmul.f32 %v1403_v45, %v1403_v45 }
 0x94c   : > { %v1407_v0 = vadd.f32 %v1406_v46, %v1405_v51 }
 0x94e   : > { %v1408_v1 = vrot.slane %v1407_v0, 4 }
 0x950   : > { %v1409_v2 = vadd.f32 %v1408_v1, %v1407_v0 }
 0x952   : > { %v1410_v53 = vrot.slane %v1409_v2, 2 }
 0x954   : > { %v1411_v3 = vadd.f32 %v1410_v53, %v1409_v2 }
 0x956   : > { %v1412_v4 = vrot.slane %v1411_v3, 1 }
 0x958   : > { %v1413_v5 = vadd.f32 %v1412_v4, %v1411_v3 }
 0x95a   : > { %v1414_v6 = vmul.f32 0.0625, %v1413_v5 }
 0x95c   : > { %v1415_v7 = vadd.f32 1e-05, %v1414_v6 }
 0x95e   : > { %2067 = vrsqrt.f32 %v1415_v7  ;;  %vm1422_vm11 = vweird.f32 %v1415_v7 }
 0x964   : > { %v2068_v8 = vpop.eup %2067 }
 0x965   : > { %v1417_v12 = vmul.f32 %v2068_v8, %v1415_v7  ;;  %vm1423_vm10 = vweird.f32 %v2068_v8 }
 0x966   : > { %vm1424_vm12 = vmor %vm1422_vm11, %vm1423_vm10 }
 0x967   : > { %v1418_v9 = vmul.f32 %v2068_v8, %v1417_v12 }
 0x969   : > { %v1419_v13 = vmul.f32 0.5, %v1418_v9 }
 0x96b   : > { %v1420_v14 = vsub.f32 1.5, %v1419_v13 }
 0x96d   : > { %v1421_v10 = vmul.f32 %v2068_v8, %v1420_v14 }
 0x96f   : > { %v1425_v15 = vsel %vm1424_vm12, %v2068_v8, %v1421_v10 }
 0x970   : > { %v1426_v16 = vmul.f32 %v1425_v15, %v1403_v45  ;;  %v1427_v11 = vmul.f32 %v1425_v15, %v1404_v55 }
 0x972   : > { %1466 = vmatmul.f32.vlgmr.msra.gmra.mxu0 %v1426_v16 }
 0x97a   : > { %1469 = vmatmul.f32.gmra.mxu0 %v1427_v11 }
 0x9ef   : > { %v1467_v17 = vpop.f32.mrf.mxu0 }
 0x9f0   : > { %v1468_v56 = vadd.f32 %v2047_v19, %v1467_v17 }
 0x9f7   : > { %v1470_v21 = vpop.f32.mrf.mxu0 }
 0x9f8   : > { %v1471_v47 = vadd.f32 %v2047_v19, %v1470_v21 }
 0x9fa   : > { %v1473_v48 = vadd.f32 %v1471_v47, %v1468_v56 }
 0x9fc   : > { %v1474_v57 = vrot.slane %v1473_v48, 4 }
 0x9fe   : > { %v1475_v30 = vadd.f32 %v1474_v57, %v1473_v48 }
 0xa00   : > { %v1476_v32 = vrot.slane %v1475_v30, 2 }
 0xa02   : > { %v1477_v34 = vadd.f32 %v1476_v32, %v1475_v30 }
 0xa04   : > { %v1478_v22 = vrot.slane %v1477_v34, 1 }
 0xa06   : > { %v1479_v35 = vadd.f32 %v1478_v22, %v1477_v34 }
 0xa08   : > { %v1480_v36 = vmul.f32 0.0625, %v1479_v35 }
 0xa0a   : > { %v1481_v37 = vsub.f32 %v1468_v56, %v1480_v36  ;;  %v1482_v38 = vsub.f32 %v1471_v47, %v1480_v36 }
 0xa0c   : > { %v1483_v33 = vmul.f32 %v1481_v37, %v1481_v37  ;;  %v1484_v39 = vmul.f32 %v1482_v38, %v1482_v38 }
 0xa0e   : > { %v1485_v40 = vadd.f32 %v1484_v39, %v1483_v33 }
 0xa10   : > { %v1486_v41 = vrot.slane %v1485_v40, 4 }
 0xa12   : > { %v1487_v42 = vadd.f32 %v1486_v41, %v1485_v40 }
 0xa14   : > { %v1488_v43 = vrot.slane %v1487_v42, 2 }
 0xa16   : > { %v1489_v54 = vadd.f32 %v1488_v43, %v1487_v42 }
 0xa18   : > { %v1490_v55 = vrot.slane %v1489_v54, 1 }
 0xa1a   : > { %v1491_v45 = vadd.f32 %v1490_v55, %v1489_v54  ;;  %v2048_v54 = vld [vmem:[%s2954_s2 + $0x58] ss:$0 sm:$0xff] }
 0xa1b   : > { %v2017_v55 = vld [vmem:[%s2956_s4 + $0x2f8] sm:$0xff] }
 0xa1c   : > { %v1492_v46 = vmul.f32 0.0625, %v1491_v45  ;;  %v2016_v45 = vld [vmem:[%s2956_s4 + $0x2f0] sm:$0xff]  ;;  %1687 = vmatpush.msrb.mxu0 %v2017_v55 }
 0xa1e   : > { %v1493_v51 = vadd.f32 1e-05, %v1492_v46  ;;  %1688 = vmatpush.msrb.mxu0 %v2016_v45 }
 0xa20   : > { %2069 = vrsqrt.f32 %v1493_v51  ;;  %vm1500_vm14 = vweird.f32 %v1493_v51 }
 0xa26   : > { %v2070_v0 = vpop.eup %2069 }
 0xa27   : > { %v1495_v1 = vmul.f32 %v2070_v0, %v1493_v51  ;;  %vm1501_vm13 = vweird.f32 %v2070_v0 }
 0xa28   : > { %vm1502_vm15 = vmor %vm1500_vm14, %vm1501_vm13 }
 0xa29   : > { %v1496_v2 = vmul.f32 %v2070_v0, %v1495_v1 }
 0xa2b   : > { %v1497_v53 = vmul.f32 0.5, %v1496_v2  ;;  %v2015_v2 = vld [vmem:[%s2956_s4 + $0x2e8] sm:$0xff] }
 0xa2c   : > { %1689 = vmatpush.msrb.mxu0 %v2015_v2 }
 0xa2d   : > { %v1498_v3 = vsub.f32 1.5, %v1497_v53 }
 0xa2f   : > { %v1499_v4 = vmul.f32 %v2070_v0, %v1498_v3 }
 0xa31   : > { %v1503_v5 = vsel %vm1502_vm15, %v2070_v0, %v1499_v4 }
 0xa32   : > { %v1505_v6 = vmul.f32 %v1503_v5, %v1482_v38  ;;  %v1504_v7 = vmul.f32 %v1503_v5, %v1481_v37 }
 0xa34   : > { %v1507_v8 = vmax.f32 %v1505_v6, 0.0  ;;  %v1506_v12 = vmax.f32 %v1504_v7, 0.0  ;;  %v2014_v6 = vld [vmem:[%s2956_s4 + $0x2e0] sm:$0xff] }
 0xa35   : > { %1690 = vmatpush.msrb.mxu0 %v2014_v6 }
 0xa36   : > { %1522 = vmatpush.msra.mxu1 %v1507_v8 }
 0xa38   : > { %1523 = vmatpush.msra.mxu1 %v1506_v12  ;;  %v2013_v12 = vld [vmem:[%s2956_s4 + $0x2d8] sm:$0xff] }
 0xa39   : > { %1981 = vmatmul.msk.f32.vlgmr.msra.gmra.mxu1 %vm272_vm0, %v2559_v58  ;;  %1691 = vmatpush.msrb.mxu0 %v2013_v12 }
 0xa41   : > { %1982 = vmatmul.msk.f32.gmra.mxu1 %vm272_vm0, %v2566_v59 }
 0xa49   : > { %1983 = vmatmul.msk.f32.gmra.mxu1 %vm272_vm0, %v2573_v60  ;;  %v1999_v60 = vld [vmem:[%s2954_s2 + $0x50] sm:$0xff] }
 0xa4a   : > { %v1595_v10 = vperm.slane %v1999_v60, 3  ;;  %v1600_v21 = vperm.slane %v1999_v60, 4  ;;  %v1605_v37 = vperm.slane %v1999_v60, 5  ;;  %v1610_v38 = vperm.slane %v1999_v60, 6 }
 0xa4b   : > { %v1615_v40 = vperm.slane %v1999_v60, 7 }
 0xa51   : > { %1984 = vmatmul.msk.f32.gmra.mxu1 %vm272_vm0, %v2580_v61  ;;  %v1582_v61 = vperm.slane %v1999_v60, 0 }
 0xa59   : > { %1985 = vmatmul.msk.f32.gmra.mxu1 %vm272_vm0, %v2587_v49  ;;  %v1585_v49 = vperm.slane %v1999_v60, 1 }
 0xa61   : > { %1986 = vmatmul.msk.f32.gmra.mxu1 %vm272_vm0, %v2594_v50 }
 0xa69   : > { %1987 = vmatmul.msk.f32.gmra.mxu1 %vm272_vm0, %v2601_v63 }
 0xa71   : > { %1988 = vmatmul.msk.f32.gmra.mxu1 %vm272_vm0, %v2608_v18 }
 0xa79   : > { %1989 = vmatmul.msk.f32.gmra.mxu1 %vm272_vm0, %v2615_v62 }
 0xa81   : > { %1990 = vmatmul.msk.f32.gmra.mxu1 %vm272_vm0, %v2622_v20 }
 0xa89   : > { %1991 = vmatmul.msk.f32.gmra.mxu1 %vm272_vm0, %v2629_v23 }
 0xa91   : > { %1992 = vmatmul.msk.f32.gmra.mxu1 %vm272_vm0, %v2636_v24 }
 0xa99   : > { %1993 = vmatmul.msk.f32.gmra.mxu1 %vm272_vm0, %v2643_v25 }
 0xaa1   : > { %1994 = vmatmul.msk.f32.gmra.mxu1 %vm272_vm0, %v2650_v26  ;;  %v1590_v26 = vperm.slane %v1999_v60, 2 }
 0xaa9   : > { %1995 = vmatmul.msk.f32.gmra.mxu1 %vm272_vm0, %v2657_v27 }
 0xab1   : > { %1996 = vmatmul.msk.f32.gmra.mxu1 %vm272_vm0, %v2664_v28 }
 0xab6   : > { %v1525_v58 = vpop.f32.mrf.mxu1 }
 0xab7   : > { %v1583_v63 = vmul.f32 %v1582_v61, %v1525_v58 }
 0xab9   : > { %1997 = vmatmul.msk.f32.gmra.mxu1 %vm272_vm0, %v2671_v29 }
 0xabe   : > { %v1528_v59 = vpop.f32.mrf.mxu1 }
 0xabf   : > { %v1584_v23 = vmul.f32 %v1582_v61, %v1528_v59  ;;  %v2049_v61 = vld [vmem:[%s2955_s3 + $0x5] ss:$0 sm:$0xff] }
 0xac1   : > { %1998 = vmatmul.msk.f32.gmra.mxu1 %vm272_vm0, %v2678_v31 }
 0xac6   : > { %v1531_v50 = vpop.f32.mrf.mxu1 }
 0xac7   : > { %v1586_v18 = vmul.f32 %v1585_v49, %v1531_v50  ;;  %v2012_v50 = vld [vmem:[%s2956_s4 + $0x2d0] sm:$0xff] }
 0xac8   : > { %1692 = vmatpush.msrb.mxu0 %v2012_v50 }
 0xac9   : > { %v1588_v62 = vadd.f32 %v1586_v18, %v1583_v63  ;;  %v2011_v18 = vld [vmem:[%s2956_s4 + $0x2c8] sm:$0xff] }
 0xaca   : > { %1693 = vmatpush.msrb.mxu0 %v2011_v18 }
 0xace   : > { %v1534_v20 = vpop.f32.mrf.mxu1 }
 0xacf   : > { %v1587_v24 = vmul.f32 %v1585_v49, %v1534_v20 }
 0xad1   : > { %v1589_v25 = vadd.f32 %v1587_v24, %v1584_v23  ;;  %v2010_v23 = vld [vmem:[%s2956_s4 + $0x2c0] sm:$0xff] }
 0xad2   : > { %1694 = vmatpush.msrb.mxu0 %v2010_v23 }
 0xad6   : > { %v1537_v27 = vpop.f32.mrf.mxu1 }
 0xad7   : > { %v1591_v28 = vmul.f32 %v1590_v26, %v1537_v27  ;;  %v2008_v27 = vld [vmem:[%s2956_s4 + $0x2b0] sm:$0xff] }
 0xad9   : > { %v1593_v29 = vadd.f32 %v1591_v28, %v1588_v62 }
 0xade   : > { %v1540_v9 = vpop.f32.mrf.mxu1 }
 0xadf   : > { %v1592_v13 = vmul.f32 %v1590_v26, %v1540_v9 }
 0xae1   : > { %v1594_v14 = vadd.f32 %v1592_v13, %v1589_v25  ;;  %v2009_v25 = vld [vmem:[%s2956_s4 + $0x2b8] sm:$0xff]  ;;  %v2006_v13 = vld [vmem:[%s2956_s4 + $0x2a0] sm:$0xff] }
 0xae2   : > { %1695 = vmatpush.msrb.mxu0 %v2009_v25 }
 0xae4   : > { %1696 = vmatpush.msrb.mxu0 %v2008_v27 }
 0xae6   : > { %v1543_v15 = vpop.f32.mrf.mxu1 }
 0xae7   : > { %v1596_v31 = vmul.f32 %v1595_v10, %v1543_v15 }
 0xae9   : > { %v1598_v16 = vadd.f32 %v1596_v31, %v1593_v29  ;;  %v2007_v29 = vld [vmem:[%s2956_s4 + $0x2a8] sm:$0xff]  ;;  %v2004_v31 = vld [vmem:[%s2956_s4 + $0x290] sm:$0xff] }
 0xaea   : > { %1697 = vmatpush.msrb.mxu0 %v2007_v29 }
 0xaec   : > { %1698 = vmatpush.msrb.mxu0 %v2006_v13 }
 0xaee   : > { %v1546_v11 = vpop.f32.mrf.mxu1 }
 0xaef   : > { %v1597_v17 = vmul.f32 %v1595_v10, %v1546_v11  ;;  %v2005_v10 = vld [vmem:[%s2956_s4 + $0x298] sm:$0xff]  ;;  %v2003_v11 = vld [vmem:[%s2956_s4 + $0x288] sm:$0xff] }
 0xaf0   : > { %1699 = vmatpush.msrb.mxu0 %v2005_v10 }
 0xaf1   : > { %v1599_v19 = vadd.f32 %v1597_v17, %v1594_v14 }
 0xaf2   : > { %1700 = vmatpush.msrb.mxu0 %v2004_v31 }
 0xaf4   : > { %1701 = vmatpush.msrb.mxu0 %v2003_v11 }
 0xaf6   : > { %v1549_v56 = vpop.f32.mrf.mxu1 }
 0xaf7   : > { %v1601_v47 = vmul.f32 %v1600_v21, %v1549_v56 }
 0xaf9   : > { %v1603_v48 = vadd.f32 %v1601_v47, %v1598_v16 }
 0xafe   : > { %v1552_v57 = vpop.f32.mrf.mxu1 }
 0xaff   : > { %v1602_v33 = vmul.f32 %v1600_v21, %v1552_v57 }
 0xb01   : > { %v1604_v46 = vadd.f32 %v1602_v33, %v1599_v19  ;;  %v2002_v19 = vld [vmem:[%s2956_s4 + $0x280] sm:$0xff] }
 0xb02   : > { %1702 = vmatpush.msrb.mxu0 %v2002_v19 }
 0xb06   : > { %v1555_v30 = vpop.f32.mrf.mxu1 }
 0xb07   : > { %v1606_v39 = vmul.f32 %v1605_v37, %v1555_v30 }
 0xb09   : > { %v1608_v51 = vadd.f32 %v1606_v39, %v1603_v48 }
 0xb0e   : > { %v1558_v32 = vpop.f32.mrf.mxu1 }
 0xb0f   : > { %v1607_v42 = vmul.f32 %v1605_v37, %v1558_v32 }
 0xb11   : > { %v1609_v53 = vadd.f32 %v1607_v42, %v1604_v46 }
 0xb16   : > { %v1561_v34 = vpop.f32.mrf.mxu1 }
 0xb17   : > { %v1611_v43 = vmul.f32 %v1610_v38, %v1561_v34 }
 0xb19   : > { %v1613_v3 = vadd.f32 %v1611_v43, %v1608_v51  ;;  %v2050_v51 = vld [vmem:[%s2957_s5 + $0x5] ss:$0 sm:$0xff] }
 0xb1e   : > { %v1564_v22 = vpop.f32.mrf.mxu1 }
 0xb1f   : > { %v1612_v0 = vmul.f32 %v1610_v38, %v1564_v22 }
 0xb21   : > { %v1614_v7 = vadd.f32 %v1612_v0, %v1609_v53 }
 0xb26   : > { %v1567_v35 = vpop.f32.mrf.mxu1 }
 0xb27   : > { %v1616_v1 = vmul.f32 %v1615_v40, %v1567_v35 }
 0xb29   : > { %v1618_v8 = vadd.f32 %v1616_v1, %v1613_v3 }
 0xb2e   : > { %v1570_v36 = vpop.f32.mrf.mxu1 }
 0xb2f   : > { %v1617_v4 = vmul.f32 %v1615_v40, %v1570_v36 }
 0xb31   : > { %v1619_v59 = vadd.f32 %v1617_v4, %v1614_v7 }
 0xb36   : > { %v1573_v41 = vpop.f32.mrf.mxu1 }
 0xb37   : > { %v1621_v5 = vmul.f32 %v2048_v54, %v1573_v41 }
 0xb39   : > { %v1623_v60 = vadd.f32 %v1621_v5, %v1618_v8 }
 0xb3b   : > { %v1630_v62 = vadd.f32 %v2049_v61, %v1623_v60 }
 0xb3e   : > { %v1576_v58 = vpop.f32.mrf.mxu1 }
 0xb3f   : > { %v1622_v49 = vmul.f32 %v2048_v54, %v1576_v58 }
 0xb41   : > { %v1624_v63 = vadd.f32 %v1622_v49, %v1619_v59 }
 0xb43   : > { %v1631_v20 = vadd.f32 %v2049_v61, %v1624_v63 }
 0xb45   : > { %v1632_v24 = vadd.f32 %v1631_v20, %v1630_v62 }
 0xb47   : > { %v1633_v26 = vrot.slane %v1632_v24, 4 }
 0xb49   : > { %v1634_v28 = vadd.f32 %v1633_v26, %v1632_v24 }
 0xb4b   : > { %v1635_v9 = vrot.slane %v1634_v28, 2 }
 0xb4d   : > { %v1636_v14 = vadd.f32 %v1635_v9, %v1634_v28 }
 0xb4f   : > { %v1637_v15 = vrot.slane %v1636_v14, 1 }
 0xb51   : > { %v1638_v16 = vadd.f32 %v1637_v15, %v1636_v14 }
 0xb53   : > { %v1639_v17 = vmul.f32 0.0625, %v1638_v16 }
 0xb55   : > { %v1641_v21 = vsub.f32 %v1631_v20, %v1639_v17  ;;  %v1640_v56 = vsub.f32 %v1630_v62, %v1639_v17 }
 0xb57   : > { %v1643_v47 = vmul.f32 %v1641_v21, %v1641_v21  ;;  %v1642_v48 = vmul.f32 %v1640_v56, %v1640_v56 }
 0xb59   : > { %v1644_v57 = vadd.f32 %v1643_v47, %v1642_v48 }
 0xb5b   : > { %v1645_v30 = vrot.slane %v1644_v57, 4 }
 0xb5d   : > { %v1646_v32 = vadd.f32 %v1645_v30, %v1644_v57 }
 0xb5f   : > { %v1647_v34 = vrot.slane %v1646_v32, 2 }
 0xb61   : > { %v1648_v22 = vadd.f32 %v1647_v34, %v1646_v32 }
 0xb63   : > { %v1649_v35 = vrot.slane %v1648_v22, 1 }
 0xb65   : > { %v1650_v36 = vadd.f32 %v1649_v35, %v1648_v22 }
 0xb67   : > { %v1651_v37 = vmul.f32 0.0625, %v1650_v36 }
 0xb69   : > { %v1652_v38 = vadd.f32 1e-05, %v1651_v37 }
 0xb6b   : > { %2071 = vrsqrt.f32 %v1652_v38  ;;  %vm1659_vm1 = vweird.f32 %v1652_v38 }
 0xb71   : > { %v2072_v33 = vpop.eup %2071 }
 0xb72   : > { %v1654_v39 = vmul.f32 %v2072_v33, %v1652_v38  ;;  %vm1660_vm0 = vweird.f32 %v2072_v33 }
 0xb73   : > { %vm1661_vm2 = vmor %vm1659_vm1, %vm1660_vm0 }
 0xb74   : > { %v1655_v40 = vmul.f32 %v2072_v33, %v1654_v39 }
 0xb76   : > { %v1656_v41 = vmul.f32 0.5, %v1655_v40 }
 0xb78   : > { %v1657_v42 = vsub.f32 1.5, %v1656_v41 }
 0xb7a   : > { %v1658_v43 = vmul.f32 %v2072_v33, %v1657_v42 }
 0xb7c   : > { %v1662_v54 = vsel %vm1661_vm2, %v2072_v33, %v1658_v43 }
 0xb7d   : > { %v1663_v55 = vmul.f32 %v1662_v54, %v1640_v56  ;;  %v1664_v45 = vmul.f32 %v1662_v54, %v1641_v21 }
 0xb7f   : > { %1703 = vmatmul.f32.vlgmr.msrb.gmra.mxu0 %v1663_v55 }
 0xb87   : > { %1706 = vmatmul.f32.gmra.mxu0 %v1664_v45 }
 0xbfc   : > { %v1704_v46 = vpop.f32.mrf.mxu0 }
 0xbfd   : > { %v1705_v1 = vadd.f32 %v2050_v51, %v1704_v46 }
 0xc04   : > { %v1707_v0 = vpop.f32.mrf.mxu0 }
 0xc05   : > { %v1708_v2 = vadd.f32 %v2050_v51, %v1707_v0 }
 0xc07   : > { %v1710_v53 = vadd.f32 %v1708_v2, %v1705_v1 }
 0xc09   : > { %v1711_v3 = vrot.slane %v1710_v53, 4 }
 0xc0b   : > { %v1712_v4 = vadd.f32 %v1711_v3, %v1710_v53 }
 0xc0d   : > { %v1713_v5 = vrot.slane %v1712_v4, 2 }
 0xc0f   : > { %v1714_v6 = vadd.f32 %v1713_v5, %v1712_v4 }
 0xc11   : > { %v1715_v7 = vrot.slane %v1714_v6, 1 }
 0xc13   : > { %v1716_v8 = vadd.f32 %v1715_v7, %v1714_v6 }
 0xc15   : > { %v1717_v12 = vmul.f32 0.0625, %v1716_v8 }
 0xc17   : > { %v1718_v58 = vsub.f32 %v1705_v1, %v1717_v12  ;;  %v1719_v59 = vsub.f32 %v1708_v2, %v1717_v12 }
 0xc19   : > { %v1720_v60 = vmul.f32 %v1718_v58, %v1718_v58  ;;  %v1721_v61 = vmul.f32 %v1719_v59, %v1719_v59 }
 0xc1b   : > { %v1722_v49 = vadd.f32 %v1721_v61, %v1720_v60 }
 0xc1d   : > { %v1723_v50 = vrot.slane %v1722_v49, 4 }
 0xc1f   : > { %v1724_v63 = vadd.f32 %v1723_v50, %v1722_v49 }
 0xc21   : > { %v1725_v18 = vrot.slane %v1724_v63, 2 }
 0xc23   : > { %v1726_v62 = vadd.f32 %v1725_v18, %v1724_v63 }
 0xc25   : > { %v1727_v20 = vrot.slane %v1726_v62, 1 }
 0xc27   : > { %v1728_v23 = vadd.f32 %v1727_v20, %v1726_v62 }
 0xc29   : > { %v1729_v24 = vmul.f32 0.0625, %v1728_v23 }
 0xc2b   : > { %v1730_v25 = vadd.f32 1e-05, %v1729_v24 }
 0xc2d   : > { %2073 = vrsqrt.f32 %v1730_v25  ;;  %vm1737_vm4 = vweird.f32 %v1730_v25 }
 0xc33   : > { %v2074_v26 = vpop.eup %2073 }
 0xc34   : > { %v1732_v27 = vmul.f32 %v2074_v26, %v1730_v25  ;;  %vm1738_vm3 = vweird.f32 %v2074_v26 }
 0xc35   : > { %vm1739_vm5 = vmor %vm1737_vm4, %vm1738_vm3 }
 0xc36   : > { %v1733_v28 = vmul.f32 %v2074_v26, %v1732_v27 }
 0xc38   : > { %v1734_v29 = vmul.f32 0.5, %v1733_v28 }
 0xc3a   : > { %v1735_v9 = vsub.f32 1.5, %v1734_v29 }
 0xc3c   : > { %v1736_v13 = vmul.f32 %v2074_v26, %v1735_v9 }
 0xc3e   : > { %v1740_v14 = vsel %vm1739_vm5, %v2074_v26, %v1736_v13 }
 0xc3f   : > { %v1741_v10 = vmul.f32 %v1740_v14, %v1718_v58  ;;  %v1742_v15 = vmul.f32 %v1740_v14, %v1719_v59 }
 0xc41   : > { %v1743_v31 = vadd.f32 %v1741_v10, %v2747_v52  ;;  %v1744_v16 = vadd.f32 %v1742_v15, %v2743_v44 }
 0xc43   : > { %1745 = vst [vmem:[%s251_s26] sm:$0xff] %v1743_v31 }
 0xc44   : > { %1746 = vst [vmem:[%s251_s26 + $0x8] sm:$0xff] %v1744_v16 }
 0xc45 PF: > { %s16_s21 = sadd.s32 1, %s2099_s21  }
 0xc46   : > { %p13_p4 = scmp.ge.s32.totalorder %s16_s21, 4  }
 0xc48   :  { %15 = sbr.rel (!%p13_p4) target bundleno = 1 (0x1), region = 94 }

// kernel: generator_forward.13
= control target key start
LH: loop header
LB: loop body
LE: loop exit
PB: predicated region body
PF: predicated region fallthrough
CT: control target
= control target key end

     0   :  { %s1058_s12 = smov 0   ;;  %s1486_s0 = inlined_call_operand.vmem [shape: f32[512,512], index: 0, kind: input, shape index: {}]   ;;  %s1487_s1 = inlined_call_operand.vmem [shape: f32[512,128], index: 1, kind: input, shape index: {}]   ;;  %s1488_s2 = inlined_call_operand.vmem [shape: f32[1,128], index: 2, kind: input, shape index: {}]   ;;  %s1489_s3 = inlined_call_operand.vmem [shape: f32[2,256,128], index: 3, kind: output, shape index: {}]  }
   0x1 LB: > { %s1064_s13 = sadd.s32 4294967295, %s1036_s12   ;;  %p947_p0 = scmp.ge.s32.totalorder %s1036_s12, 1  ;;  %s1036_s12 = sphi %s1058_s12, %s13_s12  }
   0x2   : > { %p139_p1 = scmp.lt.s32.totalorder %s1036_s12, 3 }
   0x4   : > { %p140_p2 = pnand %p947_p0, %p139_p1 }
   0x5   : > { %s948_s24 = sshll.u32 (!%p140_p2), %s1064_s13, 5  ;;  %p171_p4 = scmp.lt.s32.totalorder (!%p140_p2), %s1064_s13, 1 }
   0x6   : > { %143 = sbr.rel (%p140_p2) target bundleno = 436 (0x1b4), region = 32  ;;  %p1179_p3 = scmp.lt.s32.totalorder (!%p140_p2), %s948_s24, 63 }
   0xb   : > { %v351_v0 = vld [vmem:[%s1487_s1 + $0x178] sm:$0xff]  ;;  %v350_v2 = vld [vmem:[%s1487_s1 + $0x170] sm:$0xff]  ;;  %v349_v6 = vld [vmem:[%s1487_s1 + $0x168] sm:$0xff]  ;;  %s1492_s24 = smov (!%p1179_p3, %s948_s24), 63  ;;  %s1494_s13 = smov (!%p171_p4, %s1064_s13), 1 }
   0xc   : > { %v319_v1 = vld [vmem:[%s1487_s1 + $0x78] sm:$0xff]  ;;  %598 = vmatpush.msra.mxu2 %v351_v0  ;;  %v318_v4 = vld [vmem:[%s1487_s1 + $0x70] sm:$0xff]  ;;  %v317_v8 = vld [vmem:[%s1487_s1 + $0x68] sm:$0xff]  ;;  %s955_s21 = sshll.u32 %s1492_s24, 5  ;;  %s956_s27 = sshll.u32 %s1494_s13, 8 }
   0xd   : > { %372 = vmatpush.msra.mxu0 %v319_v1  ;;  %v367_v3 = vld [vmem:[%s1487_s1 + $0x1f8] sm:$0xff]  ;;  %v366_v7 = vld [vmem:[%s1487_s1 + $0x1f0] sm:$0xff]  ;;  %v365_v10 = vld [vmem:[%s1487_s1 + $0x1e8] sm:$0xff]  ;;  %s1259_s9 = scalar_lea.vmem %s1486_s0, %s955_s21  ;;  %s1363_s30 = scalar_lea.vmem %s1489_s3, %s956_s27 }
   0xe   : > { %v335_v5 = vld [vmem:[%s1487_s1 + $0xf8] sm:$0xff]  ;;  %711 = vmatpush.msra.mxu3 %v367_v3  ;;  %599 = vmatpush.msra.mxu2 %v350_v2  ;;  %v334_v9 = vld [vmem:[%s1487_s1 + $0xf0] sm:$0xff]  ;;  %v348_v11 = vld [vmem:[%s1487_s1 + $0x160] sm:$0xff] }
   0xf   : > { %485 = vmatpush.msra.mxu1 %v335_v5  ;;  %373 = vmatpush.msra.mxu0 %v318_v4  ;;  %v316_v12 = vld [vmem:[%s1487_s1 + $0x60] sm:$0xff]  ;;  %v333_v13 = vld [vmem:[%s1487_s1 + $0xe8] sm:$0xff]  ;;  %v347_v16 = vld [vmem:[%s1487_s1 + $0x158] sm:$0xff] }
  0x10   : > { %712 = vmatpush.msra.mxu3 %v366_v7  ;;  %600 = vmatpush.msra.mxu2 %v349_v6  ;;  %v364_v14 = vld [vmem:[%s1487_s1 + $0x1e0] sm:$0xff]  ;;  %v315_v17 = vld [vmem:[%s1487_s1 + $0x58] sm:$0xff]  ;;  %v346_v20 = vld [vmem:[%s1487_s1 + $0x150] sm:$0xff] }
  0x11   : > { %486 = vmatpush.msra.mxu1 %v334_v9  ;;  %374 = vmatpush.msra.mxu0 %v317_v8  ;;  %v332_v15 = vld [vmem:[%s1487_s1 + $0xe0] sm:$0xff]  ;;  %v363_v18 = vld [vmem:[%s1487_s1 + $0x1d8] sm:$0xff]  ;;  %v314_v21 = vld [vmem:[%s1487_s1 + $0x50] sm:$0xff] }
  0x12   : > { %713 = vmatpush.msra.mxu3 %v365_v10  ;;  %601 = vmatpush.msra.mxu2 %v348_v11  ;;  %v331_v19 = vld [vmem:[%s1487_s1 + $0xd8] sm:$0xff]  ;;  %v362_v22 = vld [vmem:[%s1487_s1 + $0x1d0] sm:$0xff]  ;;  %v345_v24 = vld [vmem:[%s1487_s1 + $0x148] sm:$0xff] }
  0x13   : > { %487 = vmatpush.msra.mxu1 %v333_v13  ;;  %375 = vmatpush.msra.mxu0 %v316_v12  ;;  %v330_v23 = vld [vmem:[%s1487_s1 + $0xd0] sm:$0xff]  ;;  %v313_v25 = vld [vmem:[%s1487_s1 + $0x48] sm:$0xff]  ;;  %v344_v28 = vld [vmem:[%s1487_s1 + $0x140] sm:$0xff] }
  0x14   : > { %714 = vmatpush.msra.mxu3 %v364_v14  ;;  %602 = vmatpush.msra.mxu2 %v347_v16  ;;  %v361_v26 = vld [vmem:[%s1487_s1 + $0x1c8] sm:$0xff]  ;;  %v312_v29 = vld [vmem:[%s1487_s1 + $0x40] sm:$0xff]  ;;  %v343_v32 = vld [vmem:[%s1487_s1 + $0x138] sm:$0xff] }
  0x15   : > { %488 = vmatpush.msra.mxu1 %v332_v15  ;;  %376 = vmatpush.msra.mxu0 %v315_v17  ;;  %v329_v27 = vld [vmem:[%s1487_s1 + $0xc8] sm:$0xff]  ;;  %v360_v30 = vld [vmem:[%s1487_s1 + $0x1c0] sm:$0xff]  ;;  %v311_v33 = vld [vmem:[%s1487_s1 + $0x38] sm:$0xff] }
  0x16   : > { %715 = vmatpush.msra.mxu3 %v363_v18  ;;  %603 = vmatpush.msra.mxu2 %v346_v20  ;;  %v328_v31 = vld [vmem:[%s1487_s1 + $0xc0] sm:$0xff]  ;;  %v359_v34 = vld [vmem:[%s1487_s1 + $0x1b8] sm:$0xff]  ;;  %v342_v36 = vld [vmem:[%s1487_s1 + $0x130] sm:$0xff] }
  0x17   : > { %489 = vmatpush.msra.mxu1 %v331_v19  ;;  %377 = vmatpush.msra.mxu0 %v314_v21  ;;  %v327_v35 = vld [vmem:[%s1487_s1 + $0xb8] sm:$0xff]  ;;  %v310_v37 = vld [vmem:[%s1487_s1 + $0x30] sm:$0xff]  ;;  %v341_v40 = vld [vmem:[%s1487_s1 + $0x128] sm:$0xff] }
  0x18   : > { %716 = vmatpush.msra.mxu3 %v362_v22  ;;  %604 = vmatpush.msra.mxu2 %v345_v24  ;;  %v358_v38 = vld [vmem:[%s1487_s1 + $0x1b0] sm:$0xff]  ;;  %v309_v41 = vld [vmem:[%s1487_s1 + $0x28] sm:$0xff]  ;;  %v340_v44 = vld [vmem:[%s1487_s1 + $0x120] sm:$0xff] }
  0x19   : > { %490 = vmatpush.msra.mxu1 %v330_v23  ;;  %378 = vmatpush.msra.mxu0 %v313_v25  ;;  %v326_v39 = vld [vmem:[%s1487_s1 + $0xb0] sm:$0xff]  ;;  %v357_v42 = vld [vmem:[%s1487_s1 + $0x1a8] sm:$0xff]  ;;  %v308_v45 = vld [vmem:[%s1487_s1 + $0x20] sm:$0xff] }
  0x1a   : > { %717 = vmatpush.msra.mxu3 %v361_v26  ;;  %605 = vmatpush.msra.mxu2 %v344_v28  ;;  %v325_v43 = vld [vmem:[%s1487_s1 + $0xa8] sm:$0xff]  ;;  %v356_v46 = vld [vmem:[%s1487_s1 + $0x1a0] sm:$0xff]  ;;  %v339_v48 = vld [vmem:[%s1487_s1 + $0x118] sm:$0xff] }
  0x1b   : > { %491 = vmatpush.msra.mxu1 %v329_v27  ;;  %379 = vmatpush.msra.mxu0 %v312_v29  ;;  %v324_v47 = vld [vmem:[%s1487_s1 + $0xa0] sm:$0xff]  ;;  %v307_v49 = vld [vmem:[%s1487_s1 + $0x18] sm:$0xff]  ;;  %v338_v52 = vld [vmem:[%s1487_s1 + $0x110] sm:$0xff] }
  0x1c   : > { %718 = vmatpush.msra.mxu3 %v360_v30  ;;  %606 = vmatpush.msra.mxu2 %v343_v32  ;;  %v355_v50 = vld [vmem:[%s1487_s1 + $0x198] sm:$0xff]  ;;  %v306_v53 = vld [vmem:[%s1487_s1 + $0x10] sm:$0xff]  ;;  %v337_v56 = vld [vmem:[%s1487_s1 + $0x108] sm:$0xff] }
  0x1d   : > { %492 = vmatpush.msra.mxu1 %v328_v31  ;;  %380 = vmatpush.msra.mxu0 %v311_v33  ;;  %v323_v51 = vld [vmem:[%s1487_s1 + $0x98] sm:$0xff]  ;;  %v354_v54 = vld [vmem:[%s1487_s1 + $0x190] sm:$0xff]  ;;  %v305_v57 = vld [vmem:[%s1487_s1 + $0x8] sm:$0xff] }
  0x1e   : > { %719 = vmatpush.msra.mxu3 %v359_v34  ;;  %607 = vmatpush.msra.mxu2 %v342_v36  ;;  %v322_v55 = vld [vmem:[%s1487_s1 + $0x90] sm:$0xff]  ;;  %v353_v58 = vld [vmem:[%s1487_s1 + $0x188] sm:$0xff]  ;;  %v336_v60 = vld [vmem:[%s1487_s1 + $0x100] sm:$0xff] }
  0x1f   : > { %493 = vmatpush.msra.mxu1 %v327_v35  ;;  %381 = vmatpush.msra.mxu0 %v310_v37  ;;  %v321_v59 = vld [vmem:[%s1487_s1 + $0x88] sm:$0xff]  ;;  %v304_v61 = vld [vmem:[%s1487_s1] sm:$0xff]  ;;  %v178_v62 = vld [vmem:[%s1259_s9 + $0x10] sm:$0xff] }
  0x20   : > { %720 = vmatpush.msra.mxu3 %v358_v38  ;;  %608 = vmatpush.msra.mxu2 %v341_v40  ;;  %v352_v63 = vld [vmem:[%s1487_s1 + $0x180] sm:$0xff]  ;;  %v179_v1 = vld [vmem:[%s1259_s9 + $0x18] sm:$0xff]  ;;  %v177_v3 = vld [vmem:[%s1259_s9 + $0x8] sm:$0xff] }
  0x21   : > { %494 = vmatpush.msra.mxu1 %v326_v39  ;;  %382 = vmatpush.msra.mxu0 %v309_v41  ;;  %v176_v0 = vld [vmem:[%s1259_s9] sm:$0xff]  ;;  %v182_v4 = vld [vmem:[%s1259_s9 + $0x30] sm:$0xff]  ;;  %v183_v6 = vld [vmem:[%s1259_s9 + $0x38] sm:$0xff] }
  0x22   : > { %721 = vmatpush.msra.mxu3 %v357_v42  ;;  %609 = vmatpush.msra.mxu2 %v340_v44  ;;  %v320_v2 = vld [vmem:[%s1487_s1 + $0x80] sm:$0xff]  ;;  %v181_v7 = vld [vmem:[%s1259_s9 + $0x28] sm:$0xff]  ;;  %v186_v8 = vld [vmem:[%s1259_s9 + $0x50] sm:$0xff] }
  0x23   : > { %495 = vmatpush.msra.mxu1 %v325_v43  ;;  %383 = vmatpush.msra.mxu0 %v308_v45  ;;  %v180_v5 = vld [vmem:[%s1259_s9 + $0x20] sm:$0xff]  ;;  %v187_v10 = vld [vmem:[%s1259_s9 + $0x58] sm:$0xff]  ;;  %v185_v11 = vld [vmem:[%s1259_s9 + $0x48] sm:$0xff] }
  0x24   : > { %722 = vmatpush.msra.mxu3 %v356_v46  ;;  %610 = vmatpush.msra.mxu2 %v339_v48  ;;  %v184_v9 = vld [vmem:[%s1259_s9 + $0x40] sm:$0xff]  ;;  %v190_v12 = vld [vmem:[%s1259_s9 + $0x70] sm:$0xff]  ;;  %v191_v14 = vld [vmem:[%s1259_s9 + $0x78] sm:$0xff] }
  0x25   : > { %496 = vmatpush.msra.mxu1 %v324_v47  ;;  %384 = vmatpush.msra.mxu0 %v307_v49  ;;  %v188_v13 = vld [vmem:[%s1259_s9 + $0x60] sm:$0xff]  ;;  %v189_v15 = vld [vmem:[%s1259_s9 + $0x68] sm:$0xff]  ;;  %v194_v16 = vld [vmem:[%s1259_s9 + $0x90] sm:$0xff] }
  0x26   : > { %723 = vmatpush.msra.mxu3 %v355_v50  ;;  %611 = vmatpush.msra.mxu2 %v338_v52  ;;  %v192_v17 = vld [vmem:[%s1259_s9 + $0x80] sm:$0xff]  ;;  %v195_v18 = vld [vmem:[%s1259_s9 + $0x98] sm:$0xff]  ;;  %v193_v19 = vld [vmem:[%s1259_s9 + $0x88] sm:$0xff] }
  0x27   : > { %497 = vmatpush.msra.mxu1 %v323_v51  ;;  %385 = vmatpush.msra.mxu0 %v306_v53  ;;  %v198_v20 = vld [vmem:[%s1259_s9 + $0xb0] sm:$0xff]  ;;  %v196_v21 = vld [vmem:[%s1259_s9 + $0xa0] sm:$0xff]  ;;  %v199_v22 = vld [vmem:[%s1259_s9 + $0xb8] sm:$0xff] }
  0x28   : > { %724 = vmatpush.msra.mxu3 %v354_v54  ;;  %612 = vmatpush.msra.mxu2 %v337_v56  ;;  %v197_v23 = vld [vmem:[%s1259_s9 + $0xa8] sm:$0xff]  ;;  %v202_v24 = vld [vmem:[%s1259_s9 + $0xd0] sm:$0xff]  ;;  %v200_v25 = vld [vmem:[%s1259_s9 + $0xc0] sm:$0xff] }
  0x29   : > { %498 = vmatpush.msra.mxu1 %v322_v55  ;;  %386 = vmatpush.msra.mxu0 %v305_v57  ;;  %v203_v26 = vld [vmem:[%s1259_s9 + $0xd8] sm:$0xff]  ;;  %v201_v27 = vld [vmem:[%s1259_s9 + $0xc8] sm:$0xff]  ;;  %v206_v28 = vld [vmem:[%s1259_s9 + $0xf0] sm:$0xff] }
  0x2a   : > { %725 = vmatpush.msra.mxu3 %v353_v58  ;;  %613 = vmatpush.msra.mxu2 %v336_v60  ;;  %v204_v29 = vld [vmem:[%s1259_s9 + $0xe0] sm:$0xff]  ;;  %v207_v30 = vld [vmem:[%s1259_s9 + $0xf8] sm:$0xff]  ;;  %v205_v31 = vld [vmem:[%s1259_s9 + $0xe8] sm:$0xff] }
  0x2b   : > { %499 = vmatpush.msra.mxu1 %v321_v59  ;;  %387 = vmatpush.msra.mxu0 %v304_v61  ;;  %v210_v32 = vld [vmem:[%s1259_s9 + $0x110] sm:$0xff]  ;;  %v208_v33 = vld [vmem:[%s1259_s9 + $0x100] sm:$0xff]  ;;  %v211_v34 = vld [vmem:[%s1259_s9 + $0x118] sm:$0xff] }
  0x2c   : > { %614 = vmatmul.f32.vlgmr.msra.gmra.mxu2 %v178_v62  ;;  %726 = vmatpush.msra.mxu3 %v352_v63  ;;  %v209_v35 = vld [vmem:[%s1259_s9 + $0x108] sm:$0xff]  ;;  %v214_v36 = vld [vmem:[%s1259_s9 + $0x130] sm:$0xff]  ;;  %v212_v37 = vld [vmem:[%s1259_s9 + $0x120] sm:$0xff] }
  0x2d   : > { %388 = vmatmul.f32.vlgmr.msra.gmra.mxu0 %v176_v0  ;;  %727 = vmatmul.f32.vlgmr.msra.gmra.mxu3 %v179_v1  ;;  %v215_v38 = vld [vmem:[%s1259_s9 + $0x138] sm:$0xff]  ;;  %v213_v39 = vld [vmem:[%s1259_s9 + $0x128] sm:$0xff]  ;;  %v218_v40 = vld [vmem:[%s1259_s9 + $0x150] sm:$0xff] }
  0x2e   : > { %500 = vmatpush.msra.mxu1 %v320_v2  ;;  %v216_v41 = vld [vmem:[%s1259_s9 + $0x140] sm:$0xff]  ;;  %v219_v42 = vld [vmem:[%s1259_s9 + $0x158] sm:$0xff]  ;;  %v217_v43 = vld [vmem:[%s1259_s9 + $0x148] sm:$0xff] }
  0x2f   : > { %501 = vmatmul.f32.vlgmr.msra.gmra.mxu1 %v177_v3  ;;  %v222_v44 = vld [vmem:[%s1259_s9 + $0x170] sm:$0xff]  ;;  %v220_v45 = vld [vmem:[%s1259_s9 + $0x160] sm:$0xff]  ;;  %v223_v46 = vld [vmem:[%s1259_s9 + $0x178] sm:$0xff] }
  0x30   : > { %v221_v47 = vld [vmem:[%s1259_s9 + $0x168] sm:$0xff]  ;;  %v226_v48 = vld [vmem:[%s1259_s9 + $0x190] sm:$0xff]  ;;  %v224_v49 = vld [vmem:[%s1259_s9 + $0x180] sm:$0xff] }
  0x31   : > { %v227_v50 = vld [vmem:[%s1259_s9 + $0x198] sm:$0xff]  ;;  %v225_v51 = vld [vmem:[%s1259_s9 + $0x188] sm:$0xff]  ;;  %v230_v52 = vld [vmem:[%s1259_s9 + $0x1b0] sm:$0xff] }
  0x32   : > { %v228_v53 = vld [vmem:[%s1259_s9 + $0x1a0] sm:$0xff]  ;;  %v231_v54 = vld [vmem:[%s1259_s9 + $0x1b8] sm:$0xff]  ;;  %v229_v55 = vld [vmem:[%s1259_s9 + $0x1a8] sm:$0xff] }
  0x33   : > { %v234_v56 = vld [vmem:[%s1259_s9 + $0x1d0] sm:$0xff]  ;;  %v232_v57 = vld [vmem:[%s1259_s9 + $0x1c0] sm:$0xff]  ;;  %v235_v58 = vld [vmem:[%s1259_s9 + $0x1d8] sm:$0xff] }
  0x34   : > { %617 = vmatmul.f32.gmra.mxu2 %v182_v4  ;;  %v233_v59 = vld [vmem:[%s1259_s9 + $0x1c8] sm:$0xff]  ;;  %v238_v60 = vld [vmem:[%s1259_s9 + $0x1f0] sm:$0xff]  ;;  %v236_v61 = vld [vmem:[%s1259_s9 + $0x1e0] sm:$0xff] }
  0x35   : > { %391 = vmatmul.f32.gmra.mxu0 %v180_v5  ;;  %730 = vmatmul.f32.gmra.mxu3 %v183_v6  ;;  %v239_v62 = vld [vmem:[%s1259_s9 + $0x1f8] sm:$0xff]  ;;  %v237_v63 = vld [vmem:[%s1259_s9 + $0x1e8] sm:$0xff]  ;;  %v1346_v0 = vld [vmem:[%s1488_s2] ss:$0 sm:$0xff] }
  0x36   : > { %v242_v1 = vld [vmem:[%s1259_s9 + $0x210] sm:$0xff]  ;;  %v240_v3 = vld [vmem:[%s1259_s9 + $0x200] sm:$0xff]  ;;  %v243_v4 = vld [vmem:[%s1259_s9 + $0x218] sm:$0xff] }
  0x37   : > { %504 = vmatmul.f32.gmra.mxu1 %v181_v7  ;;  %v241_v7 = vld [vmem:[%s1259_s9 + $0x208] sm:$0xff] }
  0x3c   : > { %620 = vmatmul.f32.gmra.mxu2 %v186_v8 }
  0x3d   : > { %394 = vmatmul.f32.gmra.mxu0 %v184_v9  ;;  %733 = vmatmul.f32.gmra.mxu3 %v187_v10 }
  0x3f   : > { %507 = vmatmul.f32.gmra.mxu1 %v185_v11 }
  0x44   : > { %623 = vmatmul.f32.gmra.mxu2 %v190_v12  ;;  %v246_v12 = vld [vmem:[%s1259_s9 + $0x230] sm:$0xff] }
  0x45   : > { %397 = vmatmul.f32.gmra.mxu0 %v188_v13  ;;  %736 = vmatmul.f32.gmra.mxu3 %v191_v14 }
  0x47   : > { %510 = vmatmul.f32.gmra.mxu1 %v189_v15  ;;  %v244_v15 = vld [vmem:[%s1259_s9 + $0x220] sm:$0xff] }
  0x4c   : > { %626 = vmatmul.f32.gmra.mxu2 %v194_v16  ;;  %v247_v16 = vld [vmem:[%s1259_s9 + $0x238] sm:$0xff] }
  0x4d   : > { %400 = vmatmul.f32.gmra.mxu0 %v192_v17  ;;  %739 = vmatmul.f32.gmra.mxu3 %v195_v18 }
  0x4f   : > { %513 = vmatmul.f32.gmra.mxu1 %v193_v19  ;;  %v245_v19 = vld [vmem:[%s1259_s9 + $0x228] sm:$0xff] }
  0x54   : > { %629 = vmatmul.f32.gmra.mxu2 %v198_v20 }
  0x55   : > { %403 = vmatmul.f32.gmra.mxu0 %v196_v21  ;;  %742 = vmatmul.f32.gmra.mxu3 %v199_v22 }
  0x57   : > { %516 = vmatmul.f32.gmra.mxu1 %v197_v23 }
  0x5c   : > { %632 = vmatmul.f32.gmra.mxu2 %v202_v24  ;;  %v250_v24 = vld [vmem:[%s1259_s9 + $0x250] sm:$0xff] }
  0x5d   : > { %406 = vmatmul.f32.gmra.mxu0 %v200_v25  ;;  %745 = vmatmul.f32.gmra.mxu3 %v203_v26 }
  0x5f   : > { %519 = vmatmul.f32.gmra.mxu1 %v201_v27 }
  0x64   : > { %635 = vmatmul.f32.gmra.mxu2 %v206_v28  ;;  %v248_v28 = vld [vmem:[%s1259_s9 + $0x240] sm:$0xff] }
  0x65   : > { %409 = vmatmul.f32.gmra.mxu0 %v204_v29  ;;  %748 = vmatmul.f32.gmra.mxu3 %v207_v30  ;;  %v251_v29 = vld [vmem:[%s1259_s9 + $0x258] sm:$0xff] }
  0x67   : > { %522 = vmatmul.f32.gmra.mxu1 %v205_v31 }
  0x6c   : > { %638 = vmatmul.f32.gmra.mxu2 %v210_v32  ;;  %v249_v32 = vld [vmem:[%s1259_s9 + $0x248] sm:$0xff] }
  0x6d   : > { %412 = vmatmul.f32.gmra.mxu0 %v208_v33  ;;  %751 = vmatmul.f32.gmra.mxu3 %v211_v34 }
  0x6f   : > { %525 = vmatmul.f32.gmra.mxu1 %v209_v35 }
  0x74   : > { %641 = vmatmul.f32.gmra.mxu2 %v214_v36 }
  0x75   : > { %415 = vmatmul.f32.gmra.mxu0 %v212_v37  ;;  %754 = vmatmul.f32.gmra.mxu3 %v215_v38  ;;  %v254_v37 = vld [vmem:[%s1259_s9 + $0x270] sm:$0xff] }
  0x77   : > { %528 = vmatmul.f32.gmra.mxu1 %v213_v39 }
  0x7c   : > { %644 = vmatmul.f32.gmra.mxu2 %v218_v40 }
  0x7d   : > { %418 = vmatmul.f32.gmra.mxu0 %v216_v41  ;;  %757 = vmatmul.f32.gmra.mxu3 %v219_v42  ;;  %v252_v41 = vld [vmem:[%s1259_s9 + $0x260] sm:$0xff]  ;;  %v255_v42 = vld [vmem:[%s1259_s9 + $0x278] sm:$0xff] }
  0x7f   : > { %531 = vmatmul.f32.gmra.mxu1 %v217_v43 }
  0x84   : > { %647 = vmatmul.f32.gmra.mxu2 %v222_v44 }
  0x85   : > { %421 = vmatmul.f32.gmra.mxu0 %v220_v45  ;;  %760 = vmatmul.f32.gmra.mxu3 %v223_v46  ;;  %v253_v45 = vld [vmem:[%s1259_s9 + $0x268] sm:$0xff] }
  0x87   : > { %534 = vmatmul.f32.gmra.mxu1 %v221_v47 }
  0x8c   : > { %650 = vmatmul.f32.gmra.mxu2 %v226_v48 }
  0x8d   : > { %424 = vmatmul.f32.gmra.mxu0 %v224_v49  ;;  %763 = vmatmul.f32.gmra.mxu3 %v227_v50  ;;  %v258_v50 = vld [vmem:[%s1259_s9 + $0x290] sm:$0xff] }
  0x8f   : > { %537 = vmatmul.f32.gmra.mxu1 %v225_v51 }
  0x94   : > { %653 = vmatmul.f32.gmra.mxu2 %v230_v52 }
  0x95   : > { %427 = vmatmul.f32.gmra.mxu0 %v228_v53  ;;  %766 = vmatmul.f32.gmra.mxu3 %v231_v54  ;;  %v256_v54 = vld [vmem:[%s1259_s9 + $0x280] sm:$0xff] }
  0x97   : > { %540 = vmatmul.f32.gmra.mxu1 %v229_v55  ;;  %v259_v55 = vld [vmem:[%s1259_s9 + $0x298] sm:$0xff] }
  0x9c   : > { %656 = vmatmul.f32.gmra.mxu2 %v234_v56 }
  0x9d   : > { %430 = vmatmul.f32.gmra.mxu0 %v232_v57  ;;  %769 = vmatmul.f32.gmra.mxu3 %v235_v58  ;;  %v257_v58 = vld [vmem:[%s1259_s9 + $0x288] sm:$0xff] }
  0x9f   : > { %543 = vmatmul.f32.gmra.mxu1 %v233_v59 }
  0xa4   : > { %659 = vmatmul.f32.gmra.mxu2 %v238_v60 }
  0xa5   : > { %433 = vmatmul.f32.gmra.mxu0 %v236_v61  ;;  %772 = vmatmul.f32.gmra.mxu3 %v239_v62 }
  0xa7   : > { %546 = vmatmul.f32.gmra.mxu1 %v237_v63  ;;  %v262_v63 = vld [vmem:[%s1259_s9 + $0x2b0] sm:$0xff] }
  0xaa   : > { %v389_v2 = vpop.f32.mrf.mxu0 }
  0xab   : > { %v390_v5 = vadd.f32 %v1346_v0, %v389_v2 }
  0xac   : > { %662 = vmatmul.f32.gmra.mxu2 %v242_v1  ;;  %v502_v6 = vpop.f32.mrf.mxu1 }
  0xad   : > { %v503_v8 = vadd.f32 %v502_v6, %v390_v5  ;;  %436 = vmatmul.f32.gmra.mxu0 %v240_v3  ;;  %775 = vmatmul.f32.gmra.mxu3 %v243_v4  ;;  %v260_v4 = vld [vmem:[%s1259_s9 + $0x2a0] sm:$0xff]  ;;  %v263_v5 = vld [vmem:[%s1259_s9 + $0x2b8] sm:$0xff] }
  0xaf   : > { %v615_v9 = vpop.f32.mrf.mxu2  ;;  %549 = vmatmul.f32.gmra.mxu1 %v241_v7 }
  0xb0   : > { %v616_v10 = vadd.f32 %v615_v9, %v503_v8  ;;  %v728_v11 = vpop.f32.mrf.mxu3  ;;  %v261_v8 = vld [vmem:[%s1259_s9 + $0x2a8] sm:$0xff] }
  0xb2   : > { %v729_v13 = vadd.f32 %v728_v11, %v616_v10  ;;  %v392_v14 = vpop.f32.mrf.mxu0 }
  0xb3   : > { %v393_v17 = vadd.f32 %v1346_v0, %v392_v14 }
  0xb4   : > { %966 = vtanh.f32 %v729_v13  ;;  %665 = vmatmul.f32.gmra.mxu2 %v246_v12  ;;  %v505_v18 = vpop.f32.mrf.mxu1  ;;  %v266_v13 = vld [vmem:[%s1259_s9 + $0x2d0] sm:$0xff] }
  0xb5   : > { %v506_v20 = vadd.f32 %v505_v18, %v393_v17  ;;  %439 = vmatmul.f32.gmra.mxu0 %v244_v15  ;;  %778 = vmatmul.f32.gmra.mxu3 %v247_v16  ;;  %v264_v17 = vld [vmem:[%s1259_s9 + $0x2c0] sm:$0xff]  ;;  %v267_v18 = vld [vmem:[%s1259_s9 + $0x2d8] sm:$0xff] }
  0xb7   : > { %v618_v21 = vpop.f32.mrf.mxu2  ;;  %552 = vmatmul.f32.gmra.mxu1 %v245_v19 }
  0xb8   : > { %v619_v22 = vadd.f32 %v618_v21, %v506_v20  ;;  %v731_v23 = vpop.f32.mrf.mxu3  ;;  %v265_v21 = vld [vmem:[%s1259_s9 + $0x2c8] sm:$0xff] }
  0xba   : > { %v967_v25 = vpop.eup %966  ;;  %v732_v26 = vadd.f32 %v731_v23, %v619_v22  ;;  %v395_v27 = vpop.f32.mrf.mxu0 }
  0xbb   : > { %856 = vst [vmem:[%s1363_s30] sm:$0xff] %v967_v25  ;;  %v396_v30 = vadd.f32 %v1346_v0, %v395_v27 }
  0xbc   : > { %968 = vtanh.f32 %v732_v26  ;;  %668 = vmatmul.f32.gmra.mxu2 %v250_v24  ;;  %v508_v31 = vpop.f32.mrf.mxu1  ;;  %v270_v26 = vld [vmem:[%s1259_s9 + $0x2f0] sm:$0xff] }
  0xbd   : > { %v509_v33 = vadd.f32 %v508_v31, %v396_v30  ;;  %442 = vmatmul.f32.gmra.mxu0 %v248_v28  ;;  %781 = vmatmul.f32.gmra.mxu3 %v251_v29  ;;  %v268_v30 = vld [vmem:[%s1259_s9 + $0x2e0] sm:$0xff]  ;;  %v271_v31 = vld [vmem:[%s1259_s9 + $0x2f8] sm:$0xff] }
  0xbf   : > { %v621_v34 = vpop.f32.mrf.mxu2  ;;  %555 = vmatmul.f32.gmra.mxu1 %v249_v32 }
  0xc0   : > { %v622_v35 = vadd.f32 %v621_v34, %v509_v33  ;;  %v734_v36 = vpop.f32.mrf.mxu3  ;;  %v269_v34 = vld [vmem:[%s1259_s9 + $0x2e8] sm:$0xff] }
  0xc2   : > { %v969_v38 = vpop.eup %968  ;;  %v735_v39 = vadd.f32 %v734_v36, %v622_v35  ;;  %v398_v40 = vpop.f32.mrf.mxu0 }
  0xc3   : > { %857 = vst [vmem:[%s1363_s30 + $0x8] sm:$0xff] %v969_v38  ;;  %v399_v43 = vadd.f32 %v1346_v0, %v398_v40 }
  0xc4   : > { %970 = vtanh.f32 %v735_v39  ;;  %671 = vmatmul.f32.gmra.mxu2 %v254_v37  ;;  %v511_v44 = vpop.f32.mrf.mxu1  ;;  %v274_v39 = vld [vmem:[%s1259_s9 + $0x310] sm:$0xff] }
  0xc5   : > { %v512_v46 = vadd.f32 %v511_v44, %v399_v43  ;;  %445 = vmatmul.f32.gmra.mxu0 %v252_v41  ;;  %784 = vmatmul.f32.gmra.mxu3 %v255_v42  ;;  %v272_v43 = vld [vmem:[%s1259_s9 + $0x300] sm:$0xff]  ;;  %v275_v44 = vld [vmem:[%s1259_s9 + $0x318] sm:$0xff] }
  0xc7   : > { %v624_v47 = vpop.f32.mrf.mxu2  ;;  %558 = vmatmul.f32.gmra.mxu1 %v253_v45 }
  0xc8   : > { %v625_v48 = vadd.f32 %v624_v47, %v512_v46  ;;  %v737_v49 = vpop.f32.mrf.mxu3  ;;  %v273_v47 = vld [vmem:[%s1259_s9 + $0x308] sm:$0xff] }
  0xca   : > { %v971_v51 = vpop.eup %970  ;;  %v738_v52 = vadd.f32 %v737_v49, %v625_v48  ;;  %v401_v53 = vpop.f32.mrf.mxu0 }
  0xcb   : > { %858 = vst [vmem:[%s1363_s30 + $0x10] sm:$0xff] %v971_v51  ;;  %v402_v56 = vadd.f32 %v1346_v0, %v401_v53 }
  0xcc   : > { %972 = vtanh.f32 %v738_v52  ;;  %674 = vmatmul.f32.gmra.mxu2 %v258_v50  ;;  %v514_v57 = vpop.f32.mrf.mxu1  ;;  %v278_v52 = vld [vmem:[%s1259_s9 + $0x330] sm:$0xff] }
  0xcd   : > { %v515_v59 = vadd.f32 %v514_v57, %v402_v56  ;;  %448 = vmatmul.f32.gmra.mxu0 %v256_v54  ;;  %787 = vmatmul.f32.gmra.mxu3 %v259_v55  ;;  %v276_v56 = vld [vmem:[%s1259_s9 + $0x320] sm:$0xff]  ;;  %v279_v57 = vld [vmem:[%s1259_s9 + $0x338] sm:$0xff] }
  0xcf   : > { %v627_v60 = vpop.f32.mrf.mxu2  ;;  %561 = vmatmul.f32.gmra.mxu1 %v257_v58 }
  0xd0   : > { %v628_v61 = vadd.f32 %v627_v60, %v515_v59  ;;  %v740_v62 = vpop.f32.mrf.mxu3  ;;  %v277_v60 = vld [vmem:[%s1259_s9 + $0x328] sm:$0xff] }
  0xd2   : > { %v973_v1 = vpop.eup %972  ;;  %v741_v2 = vadd.f32 %v740_v62, %v628_v61  ;;  %v404_v3 = vpop.f32.mrf.mxu0 }
  0xd3   : > { %859 = vst [vmem:[%s1363_s30 + $0x18] sm:$0xff] %v973_v1  ;;  %v405_v6 = vadd.f32 %v1346_v0, %v404_v3 }
  0xd4   : > { %974 = vtanh.f32 %v741_v2  ;;  %677 = vmatmul.f32.gmra.mxu2 %v262_v63  ;;  %v517_v7 = vpop.f32.mrf.mxu1  ;;  %v282_v2 = vld [vmem:[%s1259_s9 + $0x350] sm:$0xff] }
  0xd5   : > { %v518_v9 = vadd.f32 %v517_v7, %v405_v6  ;;  %451 = vmatmul.f32.gmra.mxu0 %v260_v4  ;;  %790 = vmatmul.f32.gmra.mxu3 %v263_v5  ;;  %v280_v6 = vld [vmem:[%s1259_s9 + $0x340] sm:$0xff]  ;;  %v283_v7 = vld [vmem:[%s1259_s9 + $0x358] sm:$0xff] }
  0xd7   : > { %v630_v10 = vpop.f32.mrf.mxu2  ;;  %564 = vmatmul.f32.gmra.mxu1 %v261_v8 }
  0xd8   : > { %v631_v11 = vadd.f32 %v630_v10, %v518_v9  ;;  %v743_v12 = vpop.f32.mrf.mxu3  ;;  %v281_v10 = vld [vmem:[%s1259_s9 + $0x348] sm:$0xff] }
  0xda   : > { %v975_v14 = vpop.eup %974  ;;  %v744_v15 = vadd.f32 %v743_v12, %v631_v11  ;;  %v407_v16 = vpop.f32.mrf.mxu0 }
  0xdb   : > { %860 = vst [vmem:[%s1363_s30 + $0x20] sm:$0xff] %v975_v14  ;;  %v408_v19 = vadd.f32 %v1346_v0, %v407_v16 }
  0xdc   : > { %976 = vtanh.f32 %v744_v15  ;;  %680 = vmatmul.f32.gmra.mxu2 %v266_v13  ;;  %v520_v20 = vpop.f32.mrf.mxu1  ;;  %v286_v15 = vld [vmem:[%s1259_s9 + $0x370] sm:$0xff] }
  0xdd   : > { %v521_v22 = vadd.f32 %v520_v20, %v408_v19  ;;  %454 = vmatmul.f32.gmra.mxu0 %v264_v17  ;;  %793 = vmatmul.f32.gmra.mxu3 %v267_v18  ;;  %v284_v19 = vld [vmem:[%s1259_s9 + $0x360] sm:$0xff]  ;;  %v287_v20 = vld [vmem:[%s1259_s9 + $0x378] sm:$0xff] }
  0xdf   : > { %v633_v23 = vpop.f32.mrf.mxu2  ;;  %567 = vmatmul.f32.gmra.mxu1 %v265_v21 }
  0xe0   : > { %v634_v24 = vadd.f32 %v633_v23, %v521_v22  ;;  %v746_v25 = vpop.f32.mrf.mxu3  ;;  %v285_v23 = vld [vmem:[%s1259_s9 + $0x368] sm:$0xff] }
  0xe2   : > { %v977_v27 = vpop.eup %976  ;;  %v747_v28 = vadd.f32 %v746_v25, %v634_v24  ;;  %v410_v29 = vpop.f32.mrf.mxu0 }
  0xe3   : > { %861 = vst [vmem:[%s1363_s30 + $0x28] sm:$0xff] %v977_v27  ;;  %v411_v32 = vadd.f32 %v1346_v0, %v410_v29 }
  0xe4   : > { %978 = vtanh.f32 %v747_v28  ;;  %683 = vmatmul.f32.gmra.mxu2 %v270_v26  ;;  %v523_v33 = vpop.f32.mrf.mxu1  ;;  %v290_v28 = vld [vmem:[%s1259_s9 + $0x390] sm:$0xff] }
  0xe5   : > { %v524_v35 = vadd.f32 %v523_v33, %v411_v32  ;;  %457 = vmatmul.f32.gmra.mxu0 %v268_v30  ;;  %796 = vmatmul.f32.gmra.mxu3 %v271_v31  ;;  %v288_v32 = vld [vmem:[%s1259_s9 + $0x380] sm:$0xff]  ;;  %v291_v33 = vld [vmem:[%s1259_s9 + $0x398] sm:$0xff] }
  0xe7   : > { %v636_v36 = vpop.f32.mrf.mxu2  ;;  %570 = vmatmul.f32.gmra.mxu1 %v269_v34 }
  0xe8   : > { %v637_v37 = vadd.f32 %v636_v36, %v524_v35  ;;  %v749_v38 = vpop.f32.mrf.mxu3  ;;  %v289_v36 = vld [vmem:[%s1259_s9 + $0x388] sm:$0xff] }
  0xea   : > { %v979_v40 = vpop.eup %978  ;;  %v750_v41 = vadd.f32 %v749_v38, %v637_v37  ;;  %v413_v42 = vpop.f32.mrf.mxu0 }
  0xeb   : > { %862 = vst [vmem:[%s1363_s30 + $0x30] sm:$0xff] %v979_v40  ;;  %v414_v45 = vadd.f32 %v1346_v0, %v413_v42 }
  0xec   : > { %980 = vtanh.f32 %v750_v41  ;;  %686 = vmatmul.f32.gmra.mxu2 %v274_v39  ;;  %v526_v46 = vpop.f32.mrf.mxu1  ;;  %v294_v41 = vld [vmem:[%s1259_s9 + $0x3b0] sm:$0xff] }
  0xed   : > { %v527_v48 = vadd.f32 %v526_v46, %v414_v45  ;;  %460 = vmatmul.f32.gmra.mxu0 %v272_v43  ;;  %799 = vmatmul.f32.gmra.mxu3 %v275_v44  ;;  %v292_v45 = vld [vmem:[%s1259_s9 + $0x3a0] sm:$0xff]  ;;  %v295_v46 = vld [vmem:[%s1259_s9 + $0x3b8] sm:$0xff] }
  0xef   : > { %v639_v49 = vpop.f32.mrf.mxu2  ;;  %573 = vmatmul.f32.gmra.mxu1 %v273_v47 }
  0xf0   : > { %v640_v50 = vadd.f32 %v639_v49, %v527_v48  ;;  %v752_v51 = vpop.f32.mrf.mxu3  ;;  %v293_v49 = vld [vmem:[%s1259_s9 + $0x3a8] sm:$0xff] }
  0xf2   : > { %v981_v53 = vpop.eup %980  ;;  %v753_v54 = vadd.f32 %v752_v51, %v640_v50  ;;  %v416_v55 = vpop.f32.mrf.mxu0 }
  0xf3   : > { %863 = vst [vmem:[%s1363_s30 + $0x38] sm:$0xff] %v981_v53  ;;  %v417_v58 = vadd.f32 %v1346_v0, %v416_v55 }
  0xf4   : > { %982 = vtanh.f32 %v753_v54  ;;  %689 = vmatmul.f32.gmra.mxu2 %v278_v52  ;;  %v529_v59 = vpop.f32.mrf.mxu1  ;;  %v298_v54 = vld [vmem:[%s1259_s9 + $0x3d0] sm:$0xff] }
  0xf5   : > { %v530_v61 = vadd.f32 %v529_v59, %v417_v58  ;;  %463 = vmatmul.f32.gmra.mxu0 %v276_v56  ;;  %802 = vmatmul.f32.gmra.mxu3 %v279_v57  ;;  %v296_v58 = vld [vmem:[%s1259_s9 + $0x3c0] sm:$0xff]  ;;  %v299_v59 = vld [vmem:[%s1259_s9 + $0x3d8] sm:$0xff] }
  0xf7   : > { %v642_v62 = vpop.f32.mrf.mxu2  ;;  %576 = vmatmul.f32.gmra.mxu1 %v277_v60 }
  0xf8   : > { %v643_v63 = vadd.f32 %v642_v62, %v530_v61  ;;  %v755_v1 = vpop.f32.mrf.mxu3  ;;  %v297_v62 = vld [vmem:[%s1259_s9 + $0x3c8] sm:$0xff] }
  0xfa   : > { %v983_v3 = vpop.eup %982  ;;  %v756_v4 = vadd.f32 %v755_v1, %v643_v63  ;;  %v419_v5 = vpop.f32.mrf.mxu0 }
  0xfb   : > { %864 = vst [vmem:[%s1363_s30 + $0x40] sm:$0xff] %v983_v3  ;;  %v420_v8 = vadd.f32 %v1346_v0, %v419_v5 }
  0xfc   : > { %984 = vtanh.f32 %v756_v4  ;;  %692 = vmatmul.f32.gmra.mxu2 %v282_v2  ;;  %v532_v9 = vpop.f32.mrf.mxu1  ;;  %v302_v4 = vld [vmem:[%s1259_s9 + $0x3f0] sm:$0xff] }
  0xfd   : > { %v533_v11 = vadd.f32 %v532_v9, %v420_v8  ;;  %466 = vmatmul.f32.gmra.mxu0 %v280_v6  ;;  %805 = vmatmul.f32.gmra.mxu3 %v283_v7  ;;  %v300_v8 = vld [vmem:[%s1259_s9 + $0x3e0] sm:$0xff]  ;;  %v303_v9 = vld [vmem:[%s1259_s9 + $0x3f8] sm:$0xff] }
  0xff   : > { %v645_v12 = vpop.f32.mrf.mxu2  ;;  %579 = vmatmul.f32.gmra.mxu1 %v281_v10 }
 0x100   : > { %v646_v13 = vadd.f32 %v645_v12, %v533_v11  ;;  %v758_v14 = vpop.f32.mrf.mxu3  ;;  %v301_v12 = vld [vmem:[%s1259_s9 + $0x3e8] sm:$0xff] }
 0x102   : > { %v985_v16 = vpop.eup %984  ;;  %v759_v17 = vadd.f32 %v758_v14, %v646_v13  ;;  %v422_v18 = vpop.f32.mrf.mxu0 }
 0x103   : > { %865 = vst [vmem:[%s1363_s30 + $0x48] sm:$0xff] %v985_v16  ;;  %v423_v21 = vadd.f32 %v1346_v0, %v422_v18 }
 0x104   : > { %986 = vtanh.f32 %v759_v17  ;;  %695 = vmatmul.f32.gmra.mxu2 %v286_v15  ;;  %v535_v22 = vpop.f32.mrf.mxu1 }
 0x105   : > { %v536_v24 = vadd.f32 %v535_v22, %v423_v21  ;;  %469 = vmatmul.f32.gmra.mxu0 %v284_v19  ;;  %808 = vmatmul.f32.gmra.mxu3 %v287_v20 }
 0x107   : > { %v648_v25 = vpop.f32.mrf.mxu2  ;;  %582 = vmatmul.f32.gmra.mxu1 %v285_v23 }
 0x108   : > { %v649_v26 = vadd.f32 %v648_v25, %v536_v24  ;;  %v761_v27 = vpop.f32.mrf.mxu3 }
 0x10a   : > { %v987_v29 = vpop.eup %986  ;;  %v762_v30 = vadd.f32 %v761_v27, %v649_v26  ;;  %v425_v31 = vpop.f32.mrf.mxu0 }
 0x10b   : > { %866 = vst [vmem:[%s1363_s30 + $0x50] sm:$0xff] %v987_v29  ;;  %v426_v34 = vadd.f32 %v1346_v0, %v425_v31 }
 0x10c   : > { %988 = vtanh.f32 %v762_v30  ;;  %698 = vmatmul.f32.gmra.mxu2 %v290_v28  ;;  %v538_v35 = vpop.f32.mrf.mxu1 }
 0x10d   : > { %v539_v37 = vadd.f32 %v538_v35, %v426_v34  ;;  %472 = vmatmul.f32.gmra.mxu0 %v288_v32  ;;  %811 = vmatmul.f32.gmra.mxu3 %v291_v33 }
 0x10f   : > { %v651_v38 = vpop.f32.mrf.mxu2  ;;  %585 = vmatmul.f32.gmra.mxu1 %v289_v36 }
 0x110   : > { %v652_v39 = vadd.f32 %v651_v38, %v539_v37  ;;  %v764_v40 = vpop.f32.mrf.mxu3 }
 0x112   : > { %v989_v42 = vpop.eup %988  ;;  %v765_v43 = vadd.f32 %v764_v40, %v652_v39  ;;  %v428_v44 = vpop.f32.mrf.mxu0 }
 0x113   : > { %867 = vst [vmem:[%s1363_s30 + $0x58] sm:$0xff] %v989_v42  ;;  %v429_v47 = vadd.f32 %v1346_v0, %v428_v44 }
 0x114   : > { %990 = vtanh.f32 %v765_v43  ;;  %701 = vmatmul.f32.gmra.mxu2 %v294_v41  ;;  %v541_v48 = vpop.f32.mrf.mxu1 }
 0x115   : > { %v542_v50 = vadd.f32 %v541_v48, %v429_v47  ;;  %475 = vmatmul.f32.gmra.mxu0 %v292_v45  ;;  %814 = vmatmul.f32.gmra.mxu3 %v295_v46 }
 0x117   : > { %v654_v51 = vpop.f32.mrf.mxu2  ;;  %588 = vmatmul.f32.gmra.mxu1 %v293_v49 }
 0x118   : > { %v655_v52 = vadd.f32 %v654_v51, %v542_v50  ;;  %v767_v53 = vpop.f32.mrf.mxu3 }
 0x11a   : > { %v991_v55 = vpop.eup %990  ;;  %v768_v56 = vadd.f32 %v767_v53, %v655_v52  ;;  %v431_v57 = vpop.f32.mrf.mxu0 }
 0x11b   : > { %868 = vst [vmem:[%s1363_s30 + $0x60] sm:$0xff] %v991_v55  ;;  %v432_v60 = vadd.f32 %v1346_v0, %v431_v57 }
 0x11c   : > { %992 = vtanh.f32 %v768_v56  ;;  %704 = vmatmul.f32.gmra.mxu2 %v298_v54  ;;  %v544_v61 = vpop.f32.mrf.mxu1 }
 0x11d   : > { %v545_v63 = vadd.f32 %v544_v61, %v432_v60  ;;  %478 = vmatmul.f32.gmra.mxu0 %v296_v58  ;;  %817 = vmatmul.f32.gmra.mxu3 %v299_v59 }
 0x11f   : > { %v657_v1 = vpop.f32.mrf.mxu2  ;;  %591 = vmatmul.f32.gmra.mxu1 %v297_v62 }
 0x120   : > { %v658_v2 = vadd.f32 %v657_v1, %v545_v63  ;;  %v770_v3 = vpop.f32.mrf.mxu3 }
 0x122   : > { %v993_v5 = vpop.eup %992  ;;  %v771_v6 = vadd.f32 %v770_v3, %v658_v2  ;;  %v434_v7 = vpop.f32.mrf.mxu0 }
 0x123   : > { %869 = vst [vmem:[%s1363_s30 + $0x68] sm:$0xff] %v993_v5  ;;  %v435_v10 = vadd.f32 %v1346_v0, %v434_v7 }
 0x124   : > { %994 = vtanh.f32 %v771_v6  ;;  %707 = vmatmul.f32.gmra.mxu2 %v302_v4  ;;  %v547_v11 = vpop.f32.mrf.mxu1 }
 0x125   : > { %v548_v13 = vadd.f32 %v547_v11, %v435_v10  ;;  %481 = vmatmul.f32.gmra.mxu0 %v300_v8  ;;  %820 = vmatmul.f32.gmra.mxu3 %v303_v9 }
 0x127   : > { %v660_v14 = vpop.f32.mrf.mxu2  ;;  %594 = vmatmul.f32.gmra.mxu1 %v301_v12 }
 0x128   : > { %v661_v15 = vadd.f32 %v660_v14, %v548_v13  ;;  %v773_v16 = vpop.f32.mrf.mxu3 }
 0x12a   : > { %v995_v17 = vpop.eup %994  ;;  %v774_v18 = vadd.f32 %v773_v16, %v661_v15  ;;  %v437_v19 = vpop.f32.mrf.mxu0 }
 0x12b   : > { %870 = vst [vmem:[%s1363_s30 + $0x70] sm:$0xff] %v995_v17  ;;  %v438_v20 = vadd.f32 %v1346_v0, %v437_v19 }
 0x12c   : > { %996 = vtanh.f32 %v774_v18  ;;  %v550_v21 = vpop.f32.mrf.mxu1 }
 0x12d   : > { %v551_v22 = vadd.f32 %v550_v21, %v438_v20 }
 0x12f   : > { %v663_v23 = vpop.f32.mrf.mxu2 }
 0x130   : > { %v664_v24 = vadd.f32 %v663_v23, %v551_v22  ;;  %v776_v25 = vpop.f32.mrf.mxu3 }
 0x132   : > { %v997_v26 = vpop.eup %996  ;;  %v777_v27 = vadd.f32 %v776_v25, %v664_v24  ;;  %v440_v28 = vpop.f32.mrf.mxu0 }
 0x133   : > { %871 = vst [vmem:[%s1363_s30 + $0x78] sm:$0xff] %v997_v26  ;;  %v441_v29 = vadd.f32 %v1346_v0, %v440_v28 }
 0x134   : > { %998 = vtanh.f32 %v777_v27  ;;  %v553_v30 = vpop.f32.mrf.mxu1 }
 0x135   : > { %v554_v31 = vadd.f32 %v553_v30, %v441_v29 }
 0x137   : > { %v666_v32 = vpop.f32.mrf.mxu2 }
 0x138   : > { %v667_v33 = vadd.f32 %v666_v32, %v554_v31  ;;  %v779_v34 = vpop.f32.mrf.mxu3 }
 0x13a   : > { %v999_v35 = vpop.eup %998  ;;  %v780_v36 = vadd.f32 %v779_v34, %v667_v33  ;;  %v443_v37 = vpop.f32.mrf.mxu0 }
 0x13b   : > { %872 = vst [vmem:[%s1363_s30 + $0x80] sm:$0xff] %v999_v35  ;;  %v444_v38 = vadd.f32 %v1346_v0, %v443_v37 }
 0x13c   : > { %1000 = vtanh.f32 %v780_v36  ;;  %v556_v39 = vpop.f32.mrf.mxu1 }
 0x13d   : > { %v557_v40 = vadd.f32 %v556_v39, %v444_v38 }
 0x13f   : > { %v669_v41 = vpop.f32.mrf.mxu2 }
 0x140   : > { %v670_v42 = vadd.f32 %v669_v41, %v557_v40  ;;  %v782_v43 = vpop.f32.mrf.mxu3 }
 0x142   : > { %v1001_v44 = vpop.eup %1000  ;;  %v783_v45 = vadd.f32 %v782_v43, %v670_v42  ;;  %v446_v46 = vpop.f32.mrf.mxu0 }
 0x143   : > { %873 = vst [vmem:[%s1363_s30 + $0x88] sm:$0xff] %v1001_v44  ;;  %v447_v47 = vadd.f32 %v1346_v0, %v446_v46 }
 0x144   : > { %1002 = vtanh.f32 %v783_v45  ;;  %v559_v48 = vpop.f32.mrf.mxu1 }
 0x145   : > { %v560_v49 = vadd.f32 %v559_v48, %v447_v47 }
 0x147   : > { %v672_v50 = vpop.f32.mrf.mxu2 }
 0x148   : > { %v673_v51 = vadd.f32 %v672_v50, %v560_v49  ;;  %v785_v52 = vpop.f32.mrf.mxu3 }
 0x14a   : > { %v1003_v53 = vpop.eup %1002  ;;  %v786_v54 = vadd.f32 %v785_v52, %v673_v51  ;;  %v449_v55 = vpop.f32.mrf.mxu0 }
 0x14b   : > { %874 = vst [vmem:[%s1363_s30 + $0x90] sm:$0xff] %v1003_v53  ;;  %v450_v56 = vadd.f32 %v1346_v0, %v449_v55 }
 0x14c   : > { %1004 = vtanh.f32 %v786_v54  ;;  %v562_v57 = vpop.f32.mrf.mxu1 }
 0x14d   : > { %v563_v58 = vadd.f32 %v562_v57, %v450_v56 }
 0x14f   : > { %v675_v59 = vpop.f32.mrf.mxu2 }
 0x150   : > { %v676_v60 = vadd.f32 %v675_v59, %v563_v58  ;;  %v788_v61 = vpop.f32.mrf.mxu3 }
 0x152   : > { %v1005_v62 = vpop.eup %1004  ;;  %v789_v63 = vadd.f32 %v788_v61, %v676_v60  ;;  %v452_v1 = vpop.f32.mrf.mxu0 }
 0x153   : > { %875 = vst [vmem:[%s1363_s30 + $0x98] sm:$0xff] %v1005_v62  ;;  %v453_v2 = vadd.f32 %v1346_v0, %v452_v1 }
 0x154   : > { %1006 = vtanh.f32 %v789_v63  ;;  %v565_v3 = vpop.f32.mrf.mxu1 }
 0x155   : > { %v566_v4 = vadd.f32 %v565_v3, %v453_v2 }
 0x157   : > { %v678_v5 = vpop.f32.mrf.mxu2 }
 0x158   : > { %v679_v6 = vadd.f32 %v678_v5, %v566_v4  ;;  %v791_v7 = vpop.f32.mrf.mxu3 }
 0x15a   : > { %v1007_v8 = vpop.eup %1006  ;;  %v792_v9 = vadd.f32 %v791_v7, %v679_v6  ;;  %v455_v10 = vpop.f32.mrf.mxu0 }
 0x15b   : > { %876 = vst [vmem:[%s1363_s30 + $0xa0] sm:$0xff] %v1007_v8  ;;  %v456_v11 = vadd.f32 %v1346_v0, %v455_v10 }
 0x15c   : > { %1008 = vtanh.f32 %v792_v9  ;;  %v568_v12 = vpop.f32.mrf.mxu1 }
 0x15d   : > { %v569_v13 = vadd.f32 %v568_v12, %v456_v11 }
 0x15f   : > { %v681_v14 = vpop.f32.mrf.mxu2 }
 0x160   : > { %v682_v15 = vadd.f32 %v681_v14, %v569_v13  ;;  %v794_v16 = vpop.f32.mrf.mxu3 }
 0x162   : > { %v1009_v17 = vpop.eup %1008  ;;  %v795_v18 = vadd.f32 %v794_v16, %v682_v15  ;;  %v458_v19 = vpop.f32.mrf.mxu0 }
 0x163   : > { %877 = vst [vmem:[%s1363_s30 + $0xa8] sm:$0xff] %v1009_v17  ;;  %v459_v20 = vadd.f32 %v1346_v0, %v458_v19 }
 0x164   : > { %1010 = vtanh.f32 %v795_v18  ;;  %v571_v21 = vpop.f32.mrf.mxu1 }
 0x165   : > { %v572_v22 = vadd.f32 %v571_v21, %v459_v20 }
 0x167   : > { %v684_v23 = vpop.f32.mrf.mxu2 }
 0x168   : > { %v685_v24 = vadd.f32 %v684_v23, %v572_v22  ;;  %v797_v25 = vpop.f32.mrf.mxu3 }
 0x16a   : > { %v1011_v26 = vpop.eup %1010  ;;  %v798_v27 = vadd.f32 %v797_v25, %v685_v24  ;;  %v461_v28 = vpop.f32.mrf.mxu0 }
 0x16b   : > { %878 = vst [vmem:[%s1363_s30 + $0xb0] sm:$0xff] %v1011_v26  ;;  %v462_v29 = vadd.f32 %v1346_v0, %v461_v28 }
 0x16c   : > { %1012 = vtanh.f32 %v798_v27  ;;  %v574_v30 = vpop.f32.mrf.mxu1 }
 0x16d   : > { %v575_v31 = vadd.f32 %v574_v30, %v462_v29 }
 0x16f   : > { %v687_v32 = vpop.f32.mrf.mxu2 }
 0x170   : > { %v688_v33 = vadd.f32 %v687_v32, %v575_v31  ;;  %v800_v34 = vpop.f32.mrf.mxu3 }
 0x172   : > { %v1013_v35 = vpop.eup %1012  ;;  %v801_v36 = vadd.f32 %v800_v34, %v688_v33  ;;  %v464_v37 = vpop.f32.mrf.mxu0 }
 0x173   : > { %879 = vst [vmem:[%s1363_s30 + $0xb8] sm:$0xff] %v1013_v35  ;;  %v465_v38 = vadd.f32 %v1346_v0, %v464_v37 }
 0x174   : > { %1014 = vtanh.f32 %v801_v36  ;;  %v577_v39 = vpop.f32.mrf.mxu1 }
 0x175   : > { %v578_v40 = vadd.f32 %v577_v39, %v465_v38 }
 0x177   : > { %v690_v41 = vpop.f32.mrf.mxu2 }
 0x178   : > { %v691_v42 = vadd.f32 %v690_v41, %v578_v40  ;;  %v803_v43 = vpop.f32.mrf.mxu3 }
 0x17a   : > { %v1015_v44 = vpop.eup %1014  ;;  %v804_v45 = vadd.f32 %v803_v43, %v691_v42  ;;  %v467_v46 = vpop.f32.mrf.mxu0 }
 0x17b   : > { %880 = vst [vmem:[%s1363_s30 + $0xc0] sm:$0xff] %v1015_v44  ;;  %v468_v47 = vadd.f32 %v1346_v0, %v467_v46 }
 0x17c   : > { %1016 = vtanh.f32 %v804_v45  ;;  %v580_v48 = vpop.f32.mrf.mxu1 }
 0x17d   : > { %v581_v49 = vadd.f32 %v580_v48, %v468_v47 }
 0x17f   : > { %v693_v50 = vpop.f32.mrf.mxu2 }
 0x180   : > { %v694_v51 = vadd.f32 %v693_v50, %v581_v49  ;;  %v806_v52 = vpop.f32.mrf.mxu3 }
 0x182   : > { %v1017_v53 = vpop.eup %1016  ;;  %v807_v54 = vadd.f32 %v806_v52, %v694_v51  ;;  %v470_v55 = vpop.f32.mrf.mxu0 }
 0x183   : > { %881 = vst [vmem:[%s1363_s30 + $0xc8] sm:$0xff] %v1017_v53  ;;  %v471_v56 = vadd.f32 %v1346_v0, %v470_v55 }
 0x184   : > { %1018 = vtanh.f32 %v807_v54  ;;  %v583_v57 = vpop.f32.mrf.mxu1 }
 0x185   : > { %v584_v58 = vadd.f32 %v583_v57, %v471_v56 }
 0x187   : > { %v696_v59 = vpop.f32.mrf.mxu2 }
 0x188   : > { %v697_v60 = vadd.f32 %v696_v59, %v584_v58  ;;  %v809_v61 = vpop.f32.mrf.mxu3 }
 0x18a   : > { %v1019_v62 = vpop.eup %1018  ;;  %v810_v63 = vadd.f32 %v809_v61, %v697_v60  ;;  %v473_v1 = vpop.f32.mrf.mxu0 }
 0x18b   : > { %882 = vst [vmem:[%s1363_s30 + $0xd0] sm:$0xff] %v1019_v62  ;;  %v474_v2 = vadd.f32 %v1346_v0, %v473_v1 }
 0x18c   : > { %1020 = vtanh.f32 %v810_v63  ;;  %v586_v3 = vpop.f32.mrf.mxu1 }
 0x18d   : > { %v587_v4 = vadd.f32 %v586_v3, %v474_v2 }
 0x18f   : > { %v699_v5 = vpop.f32.mrf.mxu2 }
 0x190   : > { %v700_v6 = vadd.f32 %v699_v5, %v587_v4  ;;  %v812_v7 = vpop.f32.mrf.mxu3 }
 0x192   : > { %v1021_v8 = vpop.eup %1020  ;;  %v813_v9 = vadd.f32 %v812_v7, %v700_v6  ;;  %v476_v10 = vpop.f32.mrf.mxu0 }
 0x193   : > { %883 = vst [vmem:[%s1363_s30 + $0xd8] sm:$0xff] %v1021_v8  ;;  %v477_v11 = vadd.f32 %v1346_v0, %v476_v10 }
 0x194   : > { %1022 = vtanh.f32 %v813_v9  ;;  %v589_v12 = vpop.f32.mrf.mxu1 }
 0x195   : > { %v590_v13 = vadd.f32 %v589_v12, %v477_v11 }
 0x197   : > { %v702_v14 = vpop.f32.mrf.mxu2 }
 0x198   : > { %v703_v15 = vadd.f32 %v702_v14, %v590_v13  ;;  %v815_v16 = vpop.f32.mrf.mxu3 }
 0x19a   : > { %v1023_v17 = vpop.eup %1022  ;;  %v816_v18 = vadd.f32 %v815_v16, %v703_v15  ;;  %v479_v19 = vpop.f32.mrf.mxu0 }
 0x19b   : > { %884 = vst [vmem:[%s1363_s30 + $0xe0] sm:$0xff] %v1023_v17  ;;  %v480_v20 = vadd.f32 %v1346_v0, %v479_v19 }
 0x19c   : > { %1024 = vtanh.f32 %v816_v18  ;;  %v592_v21 = vpop.f32.mrf.mxu1 }
 0x19d   : > { %v593_v22 = vadd.f32 %v592_v21, %v480_v20 }
 0x19f   : > { %v705_v23 = vpop.f32.mrf.mxu2 }
 0x1a0   : > { %v706_v24 = vadd.f32 %v705_v23, %v593_v22  ;;  %v818_v25 = vpop.f32.mrf.mxu3 }
 0x1a2   : > { %v1025_v26 = vpop.eup %1024  ;;  %v819_v27 = vadd.f32 %v818_v25, %v706_v24  ;;  %v482_v28 = vpop.f32.mrf.mxu0 }
 0x1a3   : > { %885 = vst [vmem:[%s1363_s30 + $0xe8] sm:$0xff] %v1025_v26  ;;  %v483_v29 = vadd.f32 %v1346_v0, %v482_v28 }
 0x1a4   : > { %1026 = vtanh.f32 %v819_v27  ;;  %v595_v30 = vpop.f32.mrf.mxu1 }
 0x1a5   : > { %v596_v31 = vadd.f32 %v595_v30, %v483_v29 }
 0x1a7   : > { %v708_v32 = vpop.f32.mrf.mxu2 }
 0x1a8   : > { %v709_v33 = vadd.f32 %v708_v32, %v596_v31  ;;  %v821_v34 = vpop.f32.mrf.mxu3 }
 0x1aa   : > { %v1027_v35 = vpop.eup %1026  ;;  %v822_v36 = vadd.f32 %v821_v34, %v709_v33 }
 0x1ab   : > { %886 = vst [vmem:[%s1363_s30 + $0xf0] sm:$0xff] %v1027_v35 }
 0x1ac   : > { %1028 = vtanh.f32 %v822_v36 }
 0x1b2   : > { %v1029_v37 = vpop.eup %1028 }
 0x1b3   : > { %887 = vst [vmem:[%s1363_s30 + $0xf8] sm:$0xff] %v1029_v37 }
 0x1b4 PF: > { %s13_s12 = sadd.s32 1, %s1036_s12  }
 0x1b5   : > { %p10_p5 = scmp.ge.s32.totalorder %s13_s12, 4  }
 0x1b7   :  { %12 = sbr.rel (!%p10_p5) target bundleno = 1 (0x1), region = 62 }

</bundles_post_ra>
